<compile_context>
chip_gen: v7x
topology: tpu7x:2x2x1
jax: 0.10.0
libtpu: 0.0.40
codegen_flags: <defaults>
</compile_context>

<pallas_src>
import functools

import jax
import jax.numpy as jnp
from jax.experimental import pallas as pl
from jax.experimental.pallas import tpu as pltpu

TRAIN_SIZE = 256        # train_size = (1, 3, 256, 256) in the reference code
BASE_SIZE = 210         # AvgPool2d(base_size=210)

_SQRT1_2 = 0.7071067811865476


# ----------------------------------------------------------------------------
# generation-aware VMEM budgets
# ----------------------------------------------------------------------------
@functools.lru_cache(maxsize=None)
def _vmem_budgets():
    """(scoped vmem_limit_bytes, per-grid-step tile budget) from the chip's VMEM."""
    cap = 64 * 1024 * 1024
    try:
        info = pltpu.get_tpu_info()
        for name in ("vmem_capacity_bytes", "vmem_bytes", "vmem_size_bytes"):
            v = getattr(info, name, None)
            if v:
                cap = int(v)
                break
    except Exception:
        pass
    if cap >= 100 * 1024 * 1024:          # v5e / v6e: 128 MiB physical VMEM
        return 96 * 1024 * 1024, 40 * 1024 * 1024
    return 44 * 1024 * 1024, 16 * 1024 * 1024   # v7x: 64 MiB physical VMEM


def _compiler_params(dimension_semantics):
    return pltpu.CompilerParams(dimension_semantics=dimension_semantics,
                                vmem_limit_bytes=_vmem_budgets()[0])


# ----------------------------------------------------------------------------
# in-kernel math helpers
# ----------------------------------------------------------------------------
def _erf_approx(x):
    # Abramowitz & Stegun 7.1.26 rational approximation, |err| <= 1.5e-7 (~f32
    # eps), so the exact (erf-based) nn.GELU() epilogue stays inside the kernel.
    p = 0.3275911
    a1, a2, a3, a4, a5 = 0.254829592, -0.284496736, 1.421413741, -1.453152027, 1.061405429
    ax = jnp.abs(x)
    d = 1.0 + p * ax
    t0 = pl.reciprocal(d, approx=True)     # EUP slot (hidden under the MXU)
    t = t0 * (2.0 - d * t0)                # one Newton step -> ~f32-accurate 1/d
    poly = ((((a5 * t + a4) * t + a3) * t + a2) * t + a1) * t
    r = 1.0 - poly * jnp.exp(-ax * ax)
    return jnp.where(x < 0, -r, r)


def _gelu_exact(x):
    return 0.5 * x * (1.0 + _erf_approx(x * _SQRT1_2))


def _window_sum(x, k, axis):
    """Sliding-window sum of length k along `axis` (valid positions only).

    Binary decomposition -> O(log k) full-tensor adds instead of the k-1 adds of
    a naive unroll (k is 210 at the FS-Net train resolution)."""
    length = x.shape[axis]
    assert 1 <= k <= length

    def take(a, start, n):
        idx = [slice(None)] * a.ndim
        idx[axis] = slice(start, start + n)
        return a[tuple(idx)]

    def rec(m):
        if m == 1:
            return x
        h = m // 2
        a = rec(h)                       # window sums of length h
        n_out = length - m + 1
        y = take(a, 0, n_out) + take(a, h, n_out)
        if m % 2:
            y = y + take(x, m - 1, n_out)
        return y

    return rec(k)


# ----------------------------------------------------------------------------
# conv 3x3 (+ bias + GELU / residual) kernel
# in-kernel zero border, bf16 MXU operands, f32 accumulation
# ----------------------------------------------------------------------------
def _make_conv_kernel(th, w, cins, cout, apply_gelu, has_residual, use_concat):
    cin = sum(cins)

    def kernel(*refs):
        hb = pl.program_id(1)
        last_hb = pl.num_programs(1) - 1
        top_scale = jnp.where(hb == 0, 0.0, 1.0)          # zero top halo at image edge
        bot_scale = jnp.where(hb == last_hb, 0.0, 1.0)    # zero bottom halo at image edge

        pos = 0
        row_blocks = []
        for ci in cins:
            main = refs[pos][0].astype(jnp.float32)       # (th, w, ci)
            top = refs[pos + 1][0].astype(jnp.float32)    # (1,  w, ci)
            bot = refs[pos + 2][0].astype(jnp.float32)    # (1,  w, ci)
            pos += 3
            rows = jnp.concatenate([top * top_scale, main, bot * bot_scale], axis=0)
            zc = jnp.zeros((th + 2, 1, ci), jnp.float32)
            rows = jnp.concatenate([zc, rows, zc], axis=1)      # (th+2, w+2, ci)
            row_blocks.append((rows, ci))

        w_ref = refs[pos]
        b_ref = refs[pos + 1]
        pos += 2
        if has_residual:
            res_ref = refs[pos]
            pos += 1
        else:
            res_ref = None
        out_ref = refs[pos]

        if use_concat:
            # tiny-channel path: one matmul with K = 9 * cin
            cols = []
            for rows, ci in row_blocks:
                for dy in range(3):
                    for dx in range(3):
                        cols.append(rows[dy:dy + th, dx:dx + w, :])
            patches = jnp.concatenate(cols, axis=-1).reshape(th * w, 9 * cin)
            acc = jnp.dot(patches.astype(jnp.bfloat16), w_ref[...],
                          preferred_element_type=jnp.float32)
        else:
            # large-channel path: 9 per-tap matmuls (K = ci) accumulated in f32;
            # no 9x patch buffer, no lane-axis concatenation.
            acc = jnp.zeros((th * w, cout), jnp.float32)
            base = 0
            for rows, ci in row_blocks:
                for dy in range(3):
                    for dx in range(3):
                        a = rows[dy:dy + th, dx:dx + w, :].reshape(th * w, ci)
                        r0 = base + (dy * 3 + dx) * ci
                        acc = acc + jnp.dot(a.astype(jnp.bfloat16),
                                            w_ref[r0:r0 + ci, :],
                                            preferred_element_type=jnp.float32)
                base += 9 * ci

        acc = acc + b_ref[...]
        if apply_gelu:
            acc = _gelu_exact(acc)
        out = acc.reshape(th, w, cout)
        if has_residual:
            out = out + res_ref[0]
        out_ref[0] = out.astype(out_ref.dtype)

    return kernel


def _choose_row_tile(h, w, cins, cout, in_bytes, out_bytes, has_residual,
                     use_concat, budget):
    """Even row-tile dividing h; targets >= 2048 output rows per grid step while
    keeping the rough per-step footprint under the generation-aware budget."""
    assert h % 2 == 0, "row-halo tiling requires an even height"
    cands = [t for t in range(2, h + 1, 2) if h % t == 0]
    cin = sum(cins)

    def step_bytes(t):
        rows = t * w
        b = 0
        for ci, ib in zip(cins, in_bytes):
            b += 2 * t * w * ci * ib             # double-buffered main input block
            b += (t + 2) * (w + 2) * ci * 4      # f32 assembled rows (VMEM temp)
        if use_concat:
            b += rows * 9 * cin * 6              # f32 patch temp + bf16 cast
        else:
            b += rows * max(cins) * 10           # live f32 tap slices + bf16 operand
        b += rows * cout * 4                     # f32 accumulator
        b += 2 * rows * cout * out_bytes         # double-buffered output block
        if has_residual:
            b += 2 * rows * cout * 4
        b += 2 * 9 * cin * cout * 2              # bf16 weights
        return b

    fits = [t for t in cands if step_bytes(t) <= budget]
    if not fits:
        return cands[0]          # smallest tile; only hit for extreme shapes
    for t in fits:
        if t * w >= 2048:
            return t
    return fits[-1]


def conv3x3_nhwc(inputs, w_hwio, bias, *, gelu, residual=None,
                 out_dtype=jnp.float32, row_tile=None, im2col_mode="auto"):
    """3x3 / stride-1 / pad-1 conv over the channel-concatenation of `inputs`.

    No HBM-side pad / im2col / torch.cat: the zero border and patch operands are
    assembled in VMEM per row tile from clamped halo-row views; bias + exact GELU
    (+ residual add) are fused into the matmul epilogue."""
    n, h, w, _ = inputs[0].shape
    cins = tuple(int(a.shape[-1]) for a in inputs)
    cin = sum(cins)
    assert w_hwio.shape[:3] == (3, 3, cin)
    cout = int(w_hwio.shape[-1])
    if residual is not None:
        assert residual.shape == (n, h, w, cout), \
            "fused residual requires in_channel == out_channel"

    if im2col_mode == "auto":
        use_concat = cin < 32
    else:
        use_concat = (im2col_mode == "concat")

    _, step_budget = _vmem_budgets()
    in_bytes = tuple(a.dtype.itemsize for a in inputs)
    out_bytes = jax.dtypes.canonicalize_dtype(out_dtype).itemsize
    if row_tile is None:
        th = _choose_row_tile(h, w, cins, cout, in_bytes, out_bytes,
                              residual is not None, use_concat, step_budget)
    else:
        th = int(row_tile)
    assert h % th == 0 and th % 2 == 0

    grid = (n, h // th)

    # weight rows: inputs-major, (dy, dx, ci) within each input, bf16 operands.
    w_parts, off = [], 0
    for ci in cins:
        w_parts.append(w_hwio[:, :, off:off + ci, :].reshape(9 * ci, cout))
        off += ci
    w2d = jnp.concatenate(w_parts, axis=0).astype(jnp.bfloat16)
    b2d = bias.reshape(1, cout).astype(jnp.float32)

    call_inputs, in_specs = [], []
    for a in inputs:
        ci = int(a.shape[-1])
        call_inputs += [a, a, a]   # same array: th-row block + 1-row top/bottom halos
        in_specs += [
            pl.BlockSpec((1, th, w, ci), lambda ni, hb: (ni, hb, 0, 0)),
            pl.BlockSpec((1, 1, w, ci),
                         lambda ni, hb, _t=th: (ni, jnp.maximum(hb * _t - 1, 0), 0, 0)),
            pl.BlockSpec((1, 1, w, ci),
                         lambda ni, hb, _t=th, _h=h:
                         (ni, jnp.minimum((hb + 1) * _t, _h - 1), 0, 0)),
        ]
    call_inputs += [w2d, b2d]
    in_specs += [pl.BlockSpec((9 * cin, cout), lambda ni, hb: (0, 0)),
                 pl.BlockSpec((1, cout), lambda ni, hb: (0, 0))]
    if residual is not None:
        call_inputs.append(residual)
        in_specs.append(pl.BlockSpec((1, th, w, cout), lambda ni, hb: (ni, hb, 0, 0)))

    out_shape = jax.ShapeDtypeStruct((n, h, w, cout), out_dtype)
    out_specs = pl.BlockSpec((1, th, w, cout), lambda ni, hb: (ni, hb, 0, 0))

    k = 9 * cin
    cost = pl.CostEstimate(
        flops=int(2 * n * h * w * k * cout),
        transcendentals=int(n * h * w * cout) if gelu else 0,
        bytes_accessed=int(sum(n * h * w * ci * ib for ci, ib in zip(cins, in_bytes))
                           + n * h * w * cout * out_bytes
                           + (n * h * w * cout * 4 if residual is not None else 0)
                           + k * cout * 2))

    return pl.pallas_call(
        _make_conv_kernel(th, w, cins, cout, gelu, residual is not None, use_concat),
        out_shape=out_shape,
        grid=grid,
        in_specs=in_specs,
        out_specs=out_specs,
        compiler_params=_compiler_params(("parallel", "parallel")),
        cost_estimate=cost,
    )(*call_inputs)


# ----------------------------------------------------------------------------
# fused AvgPool2d(base_size=210) + replicate-pad + frequency mix kernel
# ----------------------------------------------------------------------------
def _make_pool_mix_kernel(k1, k2, cproc, c_off):
    inv = 1.0 / float(k1 * k2)

    def kernel(x_ref, sl_ref, sh_ref, o_ref):
        x = x_ref[...]                                  # (1, hb, wb, c_block)
        if x.shape[-1] != cproc or c_off:
            x = x[..., c_off:c_off + cproc]             # tiny-channel fallback slice
        x = x.astype(jnp.float32)
        _, hb, wb, c = x.shape
        hv, wv = hb - k1 + 1, wb - k2 + 1

        # stride-1 box average over valid windows (== the torch cumsum trick)
        low = _window_sum(_window_sum(x, k1, axis=1), k2, axis=2) * inv   # (1,hv,wv,c)

        sl = sl_ref[...].reshape(1, 1, 1, c).astype(jnp.float32)
        sh = sh_ref[...].reshape(1, 1, 1, c).astype(jnp.float32)
        dt = o_ref.dtype

        def mix(lo, xi):
            return (lo * sl + (xi - lo) * sh).astype(dt)

        # auto_pad (replicate) + mix, written with direct sub-region stores
        # (interior, left/right bands, top/bottom strips) -- no full-tile concats.
        top, bottom = (hb - hv) // 2, (hb - hv + 1) // 2
        left, right = (wb - wv) // 2, (wb - wv + 1) // 2

        o_ref[:, top:top + hv, left:left + wv, :] = mix(
            low, x[:, top:top + hv, left:left + wv, :])
        if left:
            o_ref[:, top:top + hv, :left, :] = mix(
                low[:, :, :1, :], x[:, top:top + hv, :left, :])
        if right:
            o_ref[:, top:top + hv, left + wv:, :] = mix(
                low[:, :, wv - 1:wv, :], x[:, top:top + hv, left + wv:, :])

        if top or bottom:
            def widen(row):                              # (1,1,wv,c) -> (1,1,wb,c)
                parts = []
                if left:
                    parts.append(jnp.broadcast_to(row[:, :, :1, :], (1, 1, left, c)))
                parts.append(row)
                if right:
                    parts.append(jnp.broadcast_to(row[:, :, wv - 1:wv, :],
                                                  (1, 1, right, c)))
                return jnp.concatenate(parts, axis=2) if len(parts) > 1 else row

            if top:
                o_ref[:, :top, :, :] = mix(widen(low[:, :1, :, :]), x[:, :top, :, :])
            if bottom:
                o_ref[:, top + hv:, :, :] = mix(widen(low[:, hv - 1:hv, :, :]),
                                                x[:, top + hv:, :, :])

    return kernel


def _choose_chan_block(hb, wb, cc, budget):
    divs = [d for d in range(128, cc + 1, 128) if cc % d == 0]

    def bytes_for(cb):
        return hb * wb * cb * 32     # ~2x bf16 in (dbuf) + 2x bf16 out + ~6 f32 temps

    fits = [d for d in divs if bytes_for(d) <= budget]
    return fits[-1] if fits else 128


def pool_mix_nhwc(x, scale_low, scale_high, *, patch_grid,
                  chan_offset=0, chan_count=None, out_dtype=jnp.float32):
    """out = low * scale_low + (x - low) * scale_high over channels
    [chan_offset, chan_offset + chan_count) of x, where `low` is
    AvgPool2d(base_size=210, auto_pad=True), all fused in one kernel.

    For Patch_ap (patch_grid=(2,2)) the (p1, p2) grid axes implement the einops
    'b c (p1 w1) (p2 w2) -> b (c p1 p2) w1 w2' rearrange; a channel-block grid
    axis keeps per-step VMEM bounded and gives the megacore a parallel axis."""
    n, h, w, c_total = x.shape
    cc = c_total if chan_count is None else int(chan_count)
    assert chan_offset + cc <= c_total
    p1, p2 = patch_grid
    assert h % p1 == 0 and w % p2 == 0
    hb, wb = h // p1, w // p2
    if p2 > 1:
        assert wb % 8 == 0, "quadrant width must be a multiple of 8 (sublane tiling)"
    assert scale_low.shape == (p1 * p2, 1, cc) and scale_high.shape == (p1 * p2, 1, cc)

    k1 = max(1, min(hb, hb * BASE_SIZE // TRAIN_SIZE))
    k2 = max(1, min(wb, wb * BASE_SIZE // TRAIN_SIZE))

    _, step_budget = _vmem_budgets()
    aligned = (cc % 128 == 0) and (chan_offset % 128 == 0)
    if aligned:
        cb = _choose_chan_block(hb, wb, cc, step_budget)
        nchan = cc // cb
        cproc, c_off = cb, 0
        x_cb, o_cb = cb, cb
        x_cmap = lambda ni, i, j, cbi, _o=chan_offset // cb: (ni, i, j, _o + cbi)
        s_cmap = lambda ni, i, j, cbi, _p2=p2: (i * _p2 + j, 0, cbi)
    else:
        # tiny-channel fallback: read the full lane-dense channel dim, slice in-kernel
        nchan = 1
        cproc, c_off = cc, chan_offset
        x_cb, o_cb = c_total, cc
        x_cmap = lambda ni, i, j, cbi: (ni, i, j, 0)
        s_cmap = lambda ni, i, j, cbi, _p2=p2: (i * _p2 + j, 0, 0)

    return pl.pallas_call(
        _make_pool_mix_kernel(k1, k2, cproc, c_off),
        out_shape=jax.ShapeDtypeStruct((n, h, w, cc), out_dtype),
        grid=(n, p1, p2, nchan),
        in_specs=[
            pl.BlockSpec((1, hb, wb, x_cb), x_cmap),
            pl.BlockSpec((1, 1, o_cb), s_cmap),
            pl.BlockSpec((1, 1, o_cb), s_cmap),
        ],
        out_specs=pl.BlockSpec((1, hb, wb, o_cb), lambda ni, i, j, cbi: (ni, i, j, cbi)),
        compiler_params=_compiler_params(("parallel",) * 4),
    )(x, scale_low, scale_high)


# ----------------------------------------------------------------------------
# ResBlock forward (filter=False path)
# ----------------------------------------------------------------------------
def resblock_forward(x_nchw, params, *, row_tile=None, im2col_mode="auto"):
    n, c, h, w = x_nchw.shape
    cout = int(params["w1"].shape[-1])
    assert cout % 2 == 0
    c2 = cout // 2
    x = jnp.transpose(x_nchw, (0, 2, 3, 1)).astype(jnp.float32)       # NCHW -> NHWC

    # conv1 + exact GELU; single lane-dense bf16 output (no HBM channel split)
    out1 = conv3x3_nhwc([x], params["w1"], params["b1"], gelu=True,
                        out_dtype=jnp.bfloat16, row_tile=row_tile,
                        im2col_mode=im2col_mode)

    # Gap on channels [0, c2): x_d*fscale_d + (x - x_d)*(fscale_h + 1)
    gap_out = pool_mix_nhwc(
        out1,
        params["fscale_d"].reshape(1, 1, c2),
        (params["fscale_h"] + 1.0).reshape(1, 1, c2),
        patch_grid=(1, 1), chan_offset=0, chan_count=c2, out_dtype=jnp.bfloat16)

    # Patch_ap (patch_size=2) on channels [c2, 2*c2): per-quadrant scales ordered
    # (p1, p2, c), matching the '(c p1 p2)' channel flattening of the reference.
    l_q = jnp.transpose(params["l"].reshape(c2, 2, 2), (1, 2, 0)).reshape(4, 1, c2)
    h_q = jnp.transpose(params["h"].reshape(c2, 2, 2), (1, 2, 0)).reshape(4, 1, c2)
    local_out = pool_mix_nhwc(out1, l_q, h_q, patch_grid=(2, 2),
                              chan_offset=c2, chan_count=c2, out_dtype=jnp.bfloat16)

    # conv2 over the channel-concatenation of the two branches + fused residual
    y = conv3x3_nhwc([gap_out, local_out], params["w2"], params["b2"],
                     gelu=False, residual=x, out_dtype=jnp.float32,
                     row_tile=row_tile, im2col_mode=im2col_mode)
    return jnp.transpose(y, (0, 3, 1, 2))                             # NHWC -> NCHW


# ----------------------------------------------------------------------------
# plain-JAX reference (mirrors the PyTorch module + the kernel's precision policy:
# bf16 MXU operands with f32 accumulation, bf16 inter-kernel intermediates)
# ----------------------------------------------------------------------------
def _avgpool_ref(v):
    n_, h_, w_, c_ = v.shape
    k1 = max(1, min(h_, h_ * BASE_SIZE // TRAIN_SIZE))
    k2 = max(1, min(w_, w_ * BASE_SIZE // TRAIN_SIZE))
    s = jnp.cumsum(jnp.cumsum(v, axis=1), axis=2)
    s = jnp.pad(s, ((0, 0), (1, 0), (1, 0), (0, 0)))
    out = (s[:, k1:, k2:] + s[:, :-k1, :-k2] - s[:, :-k1, k2:] - s[:, k1:, :-k2]) / (k1 * k2)
    hh, ww = out.shape[1], out.shape[2]
    return jnp.pad(out, ((0, 0), ((h_ - hh) // 2, (h_ - hh + 1) // 2),
                         ((w_ - ww) // 2, (w_ - ww + 1) // 2), (0, 0)), mode="edge")


def resblock_reference(x_nchw, params):
    x = jnp.transpose(x_nchw, (0, 2, 3, 1)).astype(jnp.float32)
    n_, h_, w_, _ = x.shape
    c2 = int(params["w1"].shape[-1]) // 2

    def conv_bf16(inp, wgt, b):
        out = jax.lax.conv_general_dilated(
            inp.astype(jnp.bfloat16), wgt.astype(jnp.bfloat16),
            window_strides=(1, 1), padding="SAME",
            dimension_numbers=("NHWC", "HWIO", "NHWC"),
            preferred_element_type=jnp.float32)
        return out + b.reshape(1, 1, 1, -1)

    def q(v):  # bf16 round-trip: mirrors the kernel's bf16 HBM intermediates
        return v.astype(jnp.bfloat16).astype(jnp.float32)

    out = q(jax.nn.gelu(conv_bf16(x, params["w1"], params["b1"]), approximate=False))
    non_local, local = out[..., :c2], out[..., c2:]

    low = _avgpool_ref(non_local)
    gap_out = q(low * params["fscale_d"] + (non_local - low) * (params["fscale_h"] + 1.0))

    # explicit einops-style rearrange (independent of the kernel's quadrant grid)
    hs, ws = h_ // 2, w_ // 2
    loc_nchw = jnp.transpose(local, (0, 3, 1, 2))
    patch = loc_nchw.reshape(n_, c2, 2, hs, 2, ws)
    patch = jnp.transpose(patch, (0, 1, 2, 4, 3, 5)).reshape(n_, c2 * 4, hs, ws)
    patch_nhwc = jnp.transpose(patch, (0, 2, 3, 1))
    plow = _avgpool_ref(patch_nhwc)
    pa = plow * params["l"] + (patch_nhwc - plow) * params["h"]
    pa_nchw = jnp.transpose(pa, (0, 3, 1, 2)).reshape(n_, c2, 2, 2, hs, ws)
    pa_nchw = jnp.transpose(pa_nchw, (0, 1, 2, 4, 3, 5)).reshape(n_, c2, h_, w_)
    local_out = q(jnp.transpose(pa_nchw, (0, 2, 3, 1)))

    merged = jnp.concatenate([gap_out, local_out], axis=-1)
    y = conv_bf16(merged, params["w2"], params["b2"]) + x
    return jnp.transpose(y, (0, 3, 1, 2))


# ----------------------------------------------------------------------------
# deterministic synthetic parameters (shapes follow ResBlock.__init__)
# ----------------------------------------------------------------------------
def init_params(key, in_channel, out_channel):
    c2 = in_channel // 2
    ks = jax.random.split(key, 8)
    s1 = 1.0 / (3.0 * float(in_channel) ** 0.5)
    s2 = 1.0 / (3.0 * float(out_channel) ** 0.5)
    return dict(
        # conv weights in HWIO layout; per-output-channel biases
        w1=s1 * jax.random.normal(ks[0], (3, 3, in_channel, out_channel), jnp.float32),
        b1=0.1 * jax.random.normal(ks[1], (out_channel,), jnp.float32),
        w2=s2 * jax.random.normal(ks[2], (3, 3, out_channel, out_channel), jnp.float32),
        b2=0.1 * jax.random.normal(ks[3], (out_channel,), jnp.float32),
        # Gap parameters (torch inits to zeros; use small randoms to exercise the path)
        fscale_d=0.5 * jax.random.normal(ks[4], (c2,), jnp.float32),
        fscale_h=0.5 * jax.random.normal(ks[5], (c2,), jnp.float32),
        # Patch_ap parameters (channel = (in_channel//2) * patch_size**2)
        h=0.5 * jax.random.normal(ks[6], (c2 * 4,), jnp.float32),
        l=0.5 * jax.random.normal(ks[7], (c2 * 4,), jnp.float32),
    )


if __name__ == "__main__":
    # --- config A: tiny channels -> concat im2col, in-kernel channel-split fallback
    kx, kp = jax.random.split(jax.random.PRNGKey(0))
    N, C, H, W = 2, 4, 16, 16          # in_channel == out_channel (residual)
    x = jax.random.normal(kx, (N, C, H, W), jnp.float32)
    params = init_params(kp, C, C)

    fwd = jax.jit(functools.partial(resblock_forward, params=params))
    y = fwd(x)
    jax.block_until_ready(y)
    assert y.shape == (N, C, H, W) and y.dtype == jnp.float32
    assert bool(jnp.all(jnp.isfinite(y)))

    y_ref = jax.jit(functools.partial(resblock_reference, params=params))(x)
    assert bool(jnp.allclose(y, y_ref, rtol=2e-2, atol=2e-2)), \
        float(jnp.max(jnp.abs(y - y_ref)))

    # --- config B: 128-lane channels -> per-tap im2col, channel-block pool path,
    #               forced small row tile to exercise the cross-tile halo views
    kx2, kp2 = jax.random.split(jax.random.PRNGKey(1))
    N2, C2, H2, W2 = 1, 256, 16, 16
    x2 = jax.random.normal(kx2, (N2, C2, H2, W2), jnp.float32)
    params2 = init_params(kp2, C2, C2)

    fwd2 = jax.jit(functools.partial(resblock_forward, params=params2,
                                     row_tile=8, im2col_mode="taps"))
    y2 = fwd2(x2)
    jax.block_until_ready(y2)
    assert y2.shape == (N2, C2, H2, W2) and y2.dtype == jnp.float32
    assert bool(jnp.all(jnp.isfinite(y2)))

    y2_ref = jax.jit(functools.partial(resblock_reference, params=params2))(x2)
    assert bool(jnp.allclose(y2, y2_ref, rtol=2e-2, atol=2e-2)), \
        float(jnp.max(jnp.abs(y2 - y2_ref)))
    rel = float(jnp.linalg.norm(y2 - y2_ref) / jnp.linalg.norm(y2_ref))
    assert rel < 1e-2, rel

    print("KERNEL_OK")
</pallas_src>

<mosaic_0001>
module attributes {stable_mosaic.version = 11 : i64} {
  func.func @kernel(%arg0: i32, %arg1: i32, %arg2: i32, %arg3: i32, %arg4: memref<1x16x16x4xbf16, #tpu.memory_space<vmem>>, %arg5: memref<1x1x2xf32, #tpu.memory_space<vmem>>, %arg6: memref<1x1x2xf32, #tpu.memory_space<vmem>>, %arg7: memref<1x16x16x2xbf16, #tpu.memory_space<vmem>>) attributes {dimension_semantics = [#tpu.dimension_semantics<parallel>, #tpu.dimension_semantics<parallel>, #tpu.dimension_semantics<parallel>, #tpu.dimension_semantics<parallel>], iteration_bounds = array<i64: 2, 1, 1, 1>, scalar_prefetch = 0 : i64, scratch_operands = 0 : i64, tpu.core_type = #tpu.core_type<tc>, window_params = [{transform_indices = @transform_0, window_bounds = array<i64: 1, 16, 16, 4>}, {transform_indices = @transform_1, window_bounds = array<i64: 1, 1, 2>}, {transform_indices = @transform_2, window_bounds = array<i64: 1, 1, 2>}, {transform_indices = @transform_3, window_bounds = array<i64: 1, 16, 16, 2>}]} {
    %c0 = arith.constant 0 : index
    %c0_0 = arith.constant 0 : index
    %c0_1 = arith.constant 0 : index
    %c0_2 = arith.constant 0 : index
    %0 = vector.load %arg4[%c0, %c0_0, %c0_1, %c0_2] : memref<1x16x16x4xbf16, #tpu.memory_space<vmem>>, vector<1x16x16x4xbf16>
    %1 = vector.extract_strided_slice %0 {offsets = [0, 0, 0, 0], sizes = [1, 16, 16, 2], strides = [1, 1, 1, 1]} : vector<1x16x16x4xbf16> to vector<1x16x16x2xbf16>
    %2 = arith.extf %1 : vector<1x16x16x2xbf16> to vector<1x16x16x2xf32>
    %3 = vector.extract_strided_slice %2 {offsets = [0, 0, 0, 0], sizes = [1, 14, 16, 2], strides = [1, 1, 1, 1]} : vector<1x16x16x2xf32> to vector<1x14x16x2xf32>
    %4 = vector.extract_strided_slice %2 {offsets = [0, 1, 0, 0], sizes = [1, 14, 16, 2], strides = [1, 1, 1, 1]} : vector<1x16x16x2xf32> to vector<1x14x16x2xf32>
    %5 = arith.addf %3, %4 : vector<1x14x16x2xf32>
    %6 = vector.extract_strided_slice %2 {offsets = [0, 2, 0, 0], sizes = [1, 14, 16, 2], strides = [1, 1, 1, 1]} : vector<1x16x16x2xf32> to vector<1x14x16x2xf32>
    %7 = arith.addf %5, %6 : vector<1x14x16x2xf32>
    %8 = vector.extract_strided_slice %7 {offsets = [0, 0, 0, 0], sizes = [1, 11, 16, 2], strides = [1, 1, 1, 1]} : vector<1x14x16x2xf32> to vector<1x11x16x2xf32>
    %9 = vector.extract_strided_slice %7 {offsets = [0, 3, 0, 0], sizes = [1, 11, 16, 2], strides = [1, 1, 1, 1]} : vector<1x14x16x2xf32> to vector<1x11x16x2xf32>
    %10 = arith.addf %8, %9 : vector<1x11x16x2xf32>
    %11 = vector.extract_strided_slice %10 {offsets = [0, 0, 0, 0], sizes = [1, 4, 16, 2], strides = [1, 1, 1, 1]} : vector<1x11x16x2xf32> to vector<1x4x16x2xf32>
    %12 = vector.extract_strided_slice %10 {offsets = [0, 6, 0, 0], sizes = [1, 4, 16, 2], strides = [1, 1, 1, 1]} : vector<1x11x16x2xf32> to vector<1x4x16x2xf32>
    %13 = arith.addf %11, %12 : vector<1x4x16x2xf32>
    %14 = vector.extract_strided_slice %2 {offsets = [0, 12, 0, 0], sizes = [1, 4, 16, 2], strides = [1, 1, 1, 1]} : vector<1x16x16x2xf32> to vector<1x4x16x2xf32>
    %15 = arith.addf %13, %14 : vector<1x4x16x2xf32>
    %16 = vector.extract_strided_slice %15 {offsets = [0, 0, 0, 0], sizes = [1, 4, 14, 2], strides = [1, 1, 1, 1]} : vector<1x4x16x2xf32> to vector<1x4x14x2xf32>
    %17 = vector.extract_strided_slice %15 {offsets = [0, 0, 1, 0], sizes = [1, 4, 14, 2], strides = [1, 1, 1, 1]} : vector<1x4x16x2xf32> to vector<1x4x14x2xf32>
    %18 = arith.addf %16, %17 : vector<1x4x14x2xf32>
    %19 = vector.extract_strided_slice %15 {offsets = [0, 0, 2, 0], sizes = [1, 4, 14, 2], strides = [1, 1, 1, 1]} : vector<1x4x16x2xf32> to vector<1x4x14x2xf32>
    %20 = arith.addf %18, %19 : vector<1x4x14x2xf32>
    %21 = vector.extract_strided_slice %20 {offsets = [0, 0, 0, 0], sizes = [1, 4, 11, 2], strides = [1, 1, 1, 1]} : vector<1x4x14x2xf32> to vector<1x4x11x2xf32>
    %22 = vector.extract_strided_slice %20 {offsets = [0, 0, 3, 0], sizes = [1, 4, 11, 2], strides = [1, 1, 1, 1]} : vector<1x4x14x2xf32> to vector<1x4x11x2xf32>
    %23 = arith.addf %21, %22 : vector<1x4x11x2xf32>
    %24 = vector.extract_strided_slice %23 {offsets = [0, 0, 0, 0], sizes = [1, 4, 4, 2], strides = [1, 1, 1, 1]} : vector<1x4x11x2xf32> to vector<1x4x4x2xf32>
    %25 = vector.extract_strided_slice %23 {offsets = [0, 0, 6, 0], sizes = [1, 4, 4, 2], strides = [1, 1, 1, 1]} : vector<1x4x11x2xf32> to vector<1x4x4x2xf32>
    %26 = arith.addf %24, %25 : vector<1x4x4x2xf32>
    %27 = vector.extract_strided_slice %15 {offsets = [0, 0, 12, 0], sizes = [1, 4, 4, 2], strides = [1, 1, 1, 1]} : vector<1x4x16x2xf32> to vector<1x4x4x2xf32>
    %28 = arith.addf %26, %27 : vector<1x4x4x2xf32>
    %cst = arith.constant 5.917160e-03 : f32
    %29 = vector.broadcast %cst : f32 to vector<1x4x4x2xf32>
    %30 = arith.mulf %28, %29 : vector<1x4x4x2xf32>
    %c0_3 = arith.constant 0 : index
    %c0_4 = arith.constant 0 : index
    %c0_5 = arith.constant 0 : index
    %31 = vector.load %arg5[%c0_3, %c0_4, %c0_5] : memref<1x1x2xf32, #tpu.memory_space<vmem>>, vector<1x1x2xf32>
    %32 = vector.shape_cast %31 : vector<1x1x2xf32> to vector<1x1x1x2xf32>
    %c0_6 = arith.constant 0 : index
    %c0_7 = arith.constant 0 : index
    %c0_8 = arith.constant 0 : index
    %33 = vector.load %arg6[%c0_6, %c0_7, %c0_8] : memref<1x1x2xf32, #tpu.memory_space<vmem>>, vector<1x1x2xf32>
    %34 = vector.shape_cast %33 : vector<1x1x2xf32> to vector<1x1x1x2xf32>
    %35 = vector.extract_strided_slice %2 {offsets = [0, 6, 6, 0], sizes = [1, 4, 4, 2], strides = [1, 1, 1, 1]} : vector<1x16x16x2xf32> to vector<1x4x4x2xf32>
    %36 = vector.broadcast %32 : vector<1x1x1x2xf32> to vector<1x4x4x2xf32>
    %37 = arith.mulf %30, %36 : vector<1x4x4x2xf32>
    %38 = arith.subf %35, %30 : vector<1x4x4x2xf32>
    %39 = vector.broadcast %34 : vector<1x1x1x2xf32> to vector<1x4x4x2xf32>
    %40 = arith.mulf %38, %39 : vector<1x4x4x2xf32>
    %41 = arith.addf %37, %40 : vector<1x4x4x2xf32>
    %42 = arith.truncf %41 : vector<1x4x4x2xf32> to vector<1x4x4x2xbf16>
    %c0_9 = arith.constant 0 : index
    %c6 = arith.constant 6 : index
    %c6_10 = arith.constant 6 : index
    %c0_11 = arith.constant 0 : index
    %43 = vector.load %arg7[%c0_9, %c6, %c6_10, %c0_11] : memref<1x16x16x2xbf16, #tpu.memory_space<vmem>>, vector<1x4x4x2xbf16>
    tpu.vector_store %arg7[%c0_9, %c6, %c6_10, %c0_11], %42 {strides = array<i32>} : memref<1x16x16x2xbf16, #tpu.memory_space<vmem>>, vector<1x4x4x2xbf16>,
    %44 = vector.extract_strided_slice %30 {offsets = [0, 0, 0, 0], sizes = [1, 4, 1, 2], strides = [1, 1, 1, 1]} : vector<1x4x4x2xf32> to vector<1x4x1x2xf32>
    %45 = vector.extract_strided_slice %2 {offsets = [0, 6, 0, 0], sizes = [1, 4, 6, 2], strides = [1, 1, 1, 1]} : vector<1x16x16x2xf32> to vector<1x4x6x2xf32>
    %46 = vector.broadcast %32 : vector<1x1x1x2xf32> to vector<1x4x1x2xf32>
    %47 = arith.mulf %44, %46 : vector<1x4x1x2xf32>
    %48 = vector.broadcast %44 : vector<1x4x1x2xf32> to vector<1x4x6x2xf32>
    %49 = arith.subf %45, %48 : vector<1x4x6x2xf32>
    %50 = vector.broadcast %34 : vector<1x1x1x2xf32> to vector<1x4x6x2xf32>
    %51 = arith.mulf %49, %50 : vector<1x4x6x2xf32>
    %52 = vector.broadcast %47 : vector<1x4x1x2xf32> to vector<1x4x6x2xf32>
    %53 = arith.addf %52, %51 : vector<1x4x6x2xf32>
    %54 = arith.truncf %53 : vector<1x4x6x2xf32> to vector<1x4x6x2xbf16>
    %c0_12 = arith.constant 0 : index
    %c6_13 = arith.constant 6 : index
    %c0_14 = arith.constant 0 : index
    %c0_15 = arith.constant 0 : index
    %55 = vector.load %arg7[%c0_12, %c6_13, %c0_14, %c0_15] : memref<1x16x16x2xbf16, #tpu.memory_space<vmem>>, vector<1x4x6x2xbf16>
    tpu.vector_store %arg7[%c0_12, %c6_13, %c0_14, %c0_15], %54 {strides = array<i32>} : memref<1x16x16x2xbf16, #tpu.memory_space<vmem>>, vector<1x4x6x2xbf16>,
    %56 = vector.extract_strided_slice %30 {offsets = [0, 0, 3, 0], sizes = [1, 4, 1, 2], strides = [1, 1, 1, 1]} : vector<1x4x4x2xf32> to vector<1x4x1x2xf32>
    %57 = vector.extract_strided_slice %2 {offsets = [0, 6, 10, 0], sizes = [1, 4, 6, 2], strides = [1, 1, 1, 1]} : vector<1x16x16x2xf32> to vector<1x4x6x2xf32>
    %58 = vector.broadcast %32 : vector<1x1x1x2xf32> to vector<1x4x1x2xf32>
    %59 = arith.mulf %56, %58 : vector<1x4x1x2xf32>
    %60 = vector.broadcast %56 : vector<1x4x1x2xf32> to vector<1x4x6x2xf32>
    %61 = arith.subf %57, %60 : vector<1x4x6x2xf32>
    %62 = vector.broadcast %34 : vector<1x1x1x2xf32> to vector<1x4x6x2xf32>
    %63 = arith.mulf %61, %62 : vector<1x4x6x2xf32>
    %64 = vector.broadcast %59 : vector<1x4x1x2xf32> to vector<1x4x6x2xf32>
    %65 = arith.addf %64, %63 : vector<1x4x6x2xf32>
    %66 = arith.truncf %65 : vector<1x4x6x2xf32> to vector<1x4x6x2xbf16>
    %c0_16 = arith.constant 0 : index
    %c6_17 = arith.constant 6 : index
    %c10 = arith.constant 10 : index
    %c0_18 = arith.constant 0 : index
    %67 = vector.load %arg7[%c0_16, %c6_17, %c10, %c0_18] : memref<1x16x16x2xbf16, #tpu.memory_space<vmem>>, vector<1x4x6x2xbf16>
    tpu.vector_store %arg7[%c0_16, %c6_17, %c10, %c0_18], %66 {strides = array<i32>} : memref<1x16x16x2xbf16, #tpu.memory_space<vmem>>, vector<1x4x6x2xbf16>,
    %68 = vector.extract_strided_slice %30 {offsets = [0, 0, 0, 0], sizes = [1, 1, 4, 2], strides = [1, 1, 1, 1]} : vector<1x4x4x2xf32> to vector<1x1x4x2xf32>
    %69 = vector.extract_strided_slice %68 {offsets = [0, 0, 0, 0], sizes = [1, 1, 1, 2], strides = [1, 1, 1, 1]} : vector<1x1x4x2xf32> to vector<1x1x1x2xf32>
    %70 = vector.shape_cast %69 : vector<1x1x1x2xf32> to vector<1x1x1x2xf32>
    %71 = vector.broadcast %70 : vector<1x1x1x2xf32> to vector<1x1x6x2xf32>
    %72 = vector.extract_strided_slice %68 {offsets = [0, 0, 3, 0], sizes = [1, 1, 1, 2], strides = [1, 1, 1, 1]} : vector<1x1x4x2xf32> to vector<1x1x1x2xf32>
    %73 = vector.shape_cast %72 : vector<1x1x1x2xf32> to vector<1x1x1x2xf32>
    %74 = vector.broadcast %73 : vector<1x1x1x2xf32> to vector<1x1x6x2xf32>
    %75 = tpu.concatenate %71, %68, %74 in 2 : vector<1x1x6x2xf32>, vector<1x1x4x2xf32>, vector<1x1x6x2xf32> -> vector<1x1x16x2xf32>
    %76 = vector.extract_strided_slice %2 {offsets = [0, 0, 0, 0], sizes = [1, 6, 16, 2], strides = [1, 1, 1, 1]} : vector<1x16x16x2xf32> to vector<1x6x16x2xf32>
    %77 = vector.broadcast %32 : vector<1x1x1x2xf32> to vector<1x1x16x2xf32>
    %78 = arith.mulf %75, %77 : vector<1x1x16x2xf32>
    %79 = vector.broadcast %75 : vector<1x1x16x2xf32> to vector<1x6x16x2xf32>
    %80 = arith.subf %76, %79 : vector<1x6x16x2xf32>
    %81 = vector.broadcast %34 : vector<1x1x1x2xf32> to vector<1x6x16x2xf32>
    %82 = arith.mulf %80, %81 : vector<1x6x16x2xf32>
    %83 = vector.broadcast %78 : vector<1x1x16x2xf32> to vector<1x6x16x2xf32>
    %84 = arith.addf %83, %82 : vector<1x6x16x2xf32>
    %85 = arith.truncf %84 : vector<1x6x16x2xf32> to vector<1x6x16x2xbf16>
    %c0_19 = arith.constant 0 : index
    %c0_20 = arith.constant 0 : index
    %c0_21 = arith.constant 0 : index
    %c0_22 = arith.constant 0 : index
    %86 = vector.load %arg7[%c0_19, %c0_20, %c0_21, %c0_22] : memref<1x16x16x2xbf16, #tpu.memory_space<vmem>>, vector<1x6x16x2xbf16>
    tpu.vector_store %arg7[%c0_19, %c0_20, %c0_21, %c0_22], %85 {strides = array<i32>} : memref<1x16x16x2xbf16, #tpu.memory_space<vmem>>, vector<1x6x16x2xbf16>,
    %87 = vector.extract_strided_slice %30 {offsets = [0, 3, 0, 0], sizes = [1, 1, 4, 2], strides = [1, 1, 1, 1]} : vector<1x4x4x2xf32> to vector<1x1x4x2xf32>
    %88 = vector.extract_strided_slice %87 {offsets = [0, 0, 0, 0], sizes = [1, 1, 1, 2], strides = [1, 1, 1, 1]} : vector<1x1x4x2xf32> to vector<1x1x1x2xf32>
    %89 = vector.shape_cast %88 : vector<1x1x1x2xf32> to vector<1x1x1x2xf32>
    %90 = vector.broadcast %89 : vector<1x1x1x2xf32> to vector<1x1x6x2xf32>
    %91 = vector.extract_strided_slice %87 {offsets = [0, 0, 3, 0], sizes = [1, 1, 1, 2], strides = [1, 1, 1, 1]} : vector<1x1x4x2xf32> to vector<1x1x1x2xf32>
    %92 = vector.shape_cast %91 : vector<1x1x1x2xf32> to vector<1x1x1x2xf32>
    %93 = vector.broadcast %92 : vector<1x1x1x2xf32> to vector<1x1x6x2xf32>
    %94 = tpu.concatenate %90, %87, %93 in 2 : vector<1x1x6x2xf32>, vector<1x1x4x2xf32>, vector<1x1x6x2xf32> -> vector<1x1x16x2xf32>
    %95 = vector.extract_strided_slice %2 {offsets = [0, 10, 0, 0], sizes = [1, 6, 16, 2], strides = [1, 1, 1, 1]} : vector<1x16x16x2xf32> to vector<1x6x16x2xf32>
    %96 = vector.broadcast %32 : vector<1x1x1x2xf32> to vector<1x1x16x2xf32>
    %97 = arith.mulf %94, %96 : vector<1x1x16x2xf32>
    %98 = vector.broadcast %94 : vector<1x1x16x2xf32> to vector<1x6x16x2xf32>
    %99 = arith.subf %95, %98 : vector<1x6x16x2xf32>
    %100 = vector.broadcast %34 : vector<1x1x1x2xf32> to vector<1x6x16x2xf32>
    %101 = arith.mulf %99, %100 : vector<1x6x16x2xf32>
    %102 = vector.broadcast %97 : vector<1x1x16x2xf32> to vector<1x6x16x2xf32>
    %103 = arith.addf %102, %101 : vector<1x6x16x2xf32>
    %104 = arith.truncf %103 : vector<1x6x16x2xf32> to vector<1x6x16x2xbf16>
    %c0_23 = arith.constant 0 : index
    %c10_24 = arith.constant 10 : index
    %c0_25 = arith.constant 0 : index
    %c0_26 = arith.constant 0 : index
    %105 = vector.load %arg7[%c0_23, %c10_24, %c0_25, %c0_26] : memref<1x16x16x2xbf16, #tpu.memory_space<vmem>>, vector<1x6x16x2xbf16>
    tpu.vector_store %arg7[%c0_23, %c10_24, %c0_25, %c0_26], %104 {strides = array<i32>} : memref<1x16x16x2xbf16, #tpu.memory_space<vmem>>, vector<1x6x16x2xbf16>,
    return
  }
  func.func @transform_0(%arg0: i32, %arg1: i32, %arg2: i32, %arg3: i32) -> (i32, i32, i32, i32) {
    %c0_i32 = arith.constant 0 : i32
    %c0_i32_0 = arith.constant 0 : i32
    return %arg0, %arg1, %arg2, %c0_i32 : i32, i32, i32, i32
  }
  func.func @transform_1(%arg0: i32, %arg1: i32, %arg2: i32, %arg3: i32) -> (i32, i32, i32) {
    %c1_i32 = arith.constant 1 : i32
    %0 = arith.muli %arg1, %c1_i32 : i32
    %1 = arith.addi %0, %arg2 : i32
    %c0_i32 = arith.constant 0 : i32
    %c0_i32_0 = arith.constant 0 : i32
    %c0_i32_1 = arith.constant 0 : i32
    return %1, %c0_i32, %c0_i32_0 : i32, i32, i32
  }
  func.func @transform_2(%arg0: i32, %arg1: i32, %arg2: i32, %arg3: i32) -> (i32, i32, i32) {
    %c1_i32 = arith.constant 1 : i32
    %0 = arith.muli %arg1, %c1_i32 : i32
    %1 = arith.addi %0, %arg2 : i32
    %c0_i32 = arith.constant 0 : i32
    %c0_i32_0 = arith.constant 0 : i32
    %c0_i32_1 = arith.constant 0 : i32
    return %1, %c0_i32, %c0_i32_0 : i32, i32, i32
  }
  func.func @transform_3(%arg0: i32, %arg1: i32, %arg2: i32, %arg3: i32) -> (i32, i32, i32, i32) {
    %c0_i32 = arith.constant 0 : i32
    return %arg0, %arg1, %arg2, %arg3 : i32, i32, i32, i32
  }
}

module attributes {stable_mosaic.version = 11 : i64} {
  func.func @kernel(%arg0: i32, %arg1: i32, %arg2: i32, %arg3: i32, %arg4: memref<1x8x8x4xbf16, #tpu.memory_space<vmem>>, %arg5: memref<1x1x2xf32, #tpu.memory_space<vmem>>, %arg6: memref<1x1x2xf32, #tpu.memory_space<vmem>>, %arg7: memref<1x8x8x2xbf16, #tpu.memory_space<vmem>>) attributes {dimension_semantics = [#tpu.dimension_semantics<parallel>, #tpu.dimension_semantics<parallel>, #tpu.dimension_semantics<parallel>, #tpu.dimension_semantics<parallel>], iteration_bounds = array<i64: 2, 2, 2, 1>, scalar_prefetch = 0 : i64, scratch_operands = 0 : i64, tpu.core_type = #tpu.core_type<tc>, window_params = [{transform_indices = @transform_0, window_bounds = array<i64: 1, 8, 8, 4>}, {transform_indices = @transform_1, window_bounds = array<i64: 1, 1, 2>}, {transform_indices = @transform_2, window_bounds = array<i64: 1, 1, 2>}, {transform_indices = @transform_3, window_bounds = array<i64: 1, 8, 8, 2>}]} {
    %c0 = arith.constant 0 : index
    %c0_0 = arith.constant 0 : index
    %c0_1 = arith.constant 0 : index
    %c0_2 = arith.constant 0 : index
    %0 = vector.load %arg4[%c0, %c0_0, %c0_1, %c0_2] : memref<1x8x8x4xbf16, #tpu.memory_space<vmem>>, vector<1x8x8x4xbf16>
    %1 = vector.extract_strided_slice %0 {offsets = [0, 0, 0, 2], sizes = [1, 8, 8, 2], strides = [1, 1, 1, 1]} : vector<1x8x8x4xbf16> to vector<1x8x8x2xbf16>
    %2 = arith.extf %1 : vector<1x8x8x2xbf16> to vector<1x8x8x2xf32>
    %3 = vector.extract_strided_slice %2 {offsets = [0, 0, 0, 0], sizes = [1, 6, 8, 2], strides = [1, 1, 1, 1]} : vector<1x8x8x2xf32> to vector<1x6x8x2xf32>
    %4 = vector.extract_strided_slice %2 {offsets = [0, 1, 0, 0], sizes = [1, 6, 8, 2], strides = [1, 1, 1, 1]} : vector<1x8x8x2xf32> to vector<1x6x8x2xf32>
    %5 = arith.addf %3, %4 : vector<1x6x8x2xf32>
    %6 = vector.extract_strided_slice %2 {offsets = [0, 2, 0, 0], sizes = [1, 6, 8, 2], strides = [1, 1, 1, 1]} : vector<1x8x8x2xf32> to vector<1x6x8x2xf32>
    %7 = arith.addf %5, %6 : vector<1x6x8x2xf32>
    %8 = vector.extract_strided_slice %7 {offsets = [0, 0, 0, 0], sizes = [1, 3, 8, 2], strides = [1, 1, 1, 1]} : vector<1x6x8x2xf32> to vector<1x3x8x2xf32>
    %9 = vector.extract_strided_slice %7 {offsets = [0, 3, 0, 0], sizes = [1, 3, 8, 2], strides = [1, 1, 1, 1]} : vector<1x6x8x2xf32> to vector<1x3x8x2xf32>
    %10 = arith.addf %8, %9 : vector<1x3x8x2xf32>
    %11 = vector.extract_strided_slice %10 {offsets = [0, 0, 0, 0], sizes = [1, 3, 6, 2], strides = [1, 1, 1, 1]} : vector<1x3x8x2xf32> to vector<1x3x6x2xf32>
    %12 = vector.extract_strided_slice %10 {offsets = [0, 0, 1, 0], sizes = [1, 3, 6, 2], strides = [1, 1, 1, 1]} : vector<1x3x8x2xf32> to vector<1x3x6x2xf32>
    %13 = arith.addf %11, %12 : vector<1x3x6x2xf32>
    %14 = vector.extract_strided_slice %10 {offsets = [0, 0, 2, 0], sizes = [1, 3, 6, 2], strides = [1, 1, 1, 1]} : vector<1x3x8x2xf32> to vector<1x3x6x2xf32>
    %15 = arith.addf %13, %14 : vector<1x3x6x2xf32>
    %16 = vector.extract_strided_slice %15 {offsets = [0, 0, 0, 0], sizes = [1, 3, 3, 2], strides = [1, 1, 1, 1]} : vector<1x3x6x2xf32> to vector<1x3x3x2xf32>
    %17 = vector.extract_strided_slice %15 {offsets = [0, 0, 3, 0], sizes = [1, 3, 3, 2], strides = [1, 1, 1, 1]} : vector<1x3x6x2xf32> to vector<1x3x3x2xf32>
    %18 = arith.addf %16, %17 : vector<1x3x3x2xf32>
    %cst = arith.constant 0.027777778 : f32
    %19 = vector.broadcast %cst : f32 to vector<1x3x3x2xf32>
    %20 = arith.mulf %18, %19 : vector<1x3x3x2xf32>
    %c0_3 = arith.constant 0 : index
    %c0_4 = arith.constant 0 : index
    %c0_5 = arith.constant 0 : index
    %21 = vector.load %arg5[%c0_3, %c0_4, %c0_5] : memref<1x1x2xf32, #tpu.memory_space<vmem>>, vector<1x1x2xf32>
    %22 = vector.shape_cast %21 : vector<1x1x2xf32> to vector<1x1x1x2xf32>
    %c0_6 = arith.constant 0 : index
    %c0_7 = arith.constant 0 : index
    %c0_8 = arith.constant 0 : index
    %23 = vector.load %arg6[%c0_6, %c0_7, %c0_8] : memref<1x1x2xf32, #tpu.memory_space<vmem>>, vector<1x1x2xf32>
    %24 = vector.shape_cast %23 : vector<1x1x2xf32> to vector<1x1x1x2xf32>
    %25 = vector.extract_strided_slice %2 {offsets = [0, 2, 2, 0], sizes = [1, 3, 3, 2], strides = [1, 1, 1, 1]} : vector<1x8x8x2xf32> to vector<1x3x3x2xf32>
    %26 = vector.broadcast %22 : vector<1x1x1x2xf32> to vector<1x3x3x2xf32>
    %27 = arith.mulf %20, %26 : vector<1x3x3x2xf32>
    %28 = arith.subf %25, %20 : vector<1x3x3x2xf32>
    %29 = vector.broadcast %24 : vector<1x1x1x2xf32> to vector<1x3x3x2xf32>
    %30 = arith.mulf %28, %29 : vector<1x3x3x2xf32>
    %31 = arith.addf %27, %30 : vector<1x3x3x2xf32>
    %32 = arith.truncf %31 : vector<1x3x3x2xf32> to vector<1x3x3x2xbf16>
    %c0_9 = arith.constant 0 : index
    %c2 = arith.constant 2 : index
    %c2_10 = arith.constant 2 : index
    %c0_11 = arith.constant 0 : index
    %33 = vector.load %arg7[%c0_9, %c2, %c2_10, %c0_11] : memref<1x8x8x2xbf16, #tpu.memory_space<vmem>>, vector<1x3x3x2xbf16>
    tpu.vector_store %arg7[%c0_9, %c2, %c2_10, %c0_11], %32 {strides = array<i32>} : memref<1x8x8x2xbf16, #tpu.memory_space<vmem>>, vector<1x3x3x2xbf16>,
    %34 = vector.extract_strided_slice %20 {offsets = [0, 0, 0, 0], sizes = [1, 3, 1, 2], strides = [1, 1, 1, 1]} : vector<1x3x3x2xf32> to vector<1x3x1x2xf32>
    %35 = vector.extract_strided_slice %2 {offsets = [0, 2, 0, 0], sizes = [1, 3, 2, 2], strides = [1, 1, 1, 1]} : vector<1x8x8x2xf32> to vector<1x3x2x2xf32>
    %36 = vector.broadcast %22 : vector<1x1x1x2xf32> to vector<1x3x1x2xf32>
    %37 = arith.mulf %34, %36 : vector<1x3x1x2xf32>
    %38 = vector.broadcast %34 : vector<1x3x1x2xf32> to vector<1x3x2x2xf32>
    %39 = arith.subf %35, %38 : vector<1x3x2x2xf32>
    %40 = vector.broadcast %24 : vector<1x1x1x2xf32> to vector<1x3x2x2xf32>
    %41 = arith.mulf %39, %40 : vector<1x3x2x2xf32>
    %42 = vector.broadcast %37 : vector<1x3x1x2xf32> to vector<1x3x2x2xf32>
    %43 = arith.addf %42, %41 : vector<1x3x2x2xf32>
    %44 = arith.truncf %43 : vector<1x3x2x2xf32> to vector<1x3x2x2xbf16>
    %c0_12 = arith.constant 0 : index
    %c2_13 = arith.constant 2 : index
    %c0_14 = arith.constant 0 : index
    %c0_15 = arith.constant 0 : index
    %45 = vector.load %arg7[%c0_12, %c2_13, %c0_14, %c0_15] : memref<1x8x8x2xbf16, #tpu.memory_space<vmem>>, vector<1x3x2x2xbf16>
    tpu.vector_store %arg7[%c0_12, %c2_13, %c0_14, %c0_15], %44 {strides = array<i32>} : memref<1x8x8x2xbf16, #tpu.memory_space<vmem>>, vector<1x3x2x2xbf16>,
    %46 = vector.extract_strided_slice %20 {offsets = [0, 0, 2, 0], sizes = [1, 3, 1, 2], strides = [1, 1, 1, 1]} : vector<1x3x3x2xf32> to vector<1x3x1x2xf32>
    %47 = vector.extract_strided_slice %2 {offsets = [0, 2, 5, 0], sizes = [1, 3, 3, 2], strides = [1, 1, 1, 1]} : vector<1x8x8x2xf32> to vector<1x3x3x2xf32>
    %48 = vector.broadcast %22 : vector<1x1x1x2xf32> to vector<1x3x1x2xf32>
    %49 = arith.mulf %46, %48 : vector<1x3x1x2xf32>
    %50 = vector.broadcast %46 : vector<1x3x1x2xf32> to vector<1x3x3x2xf32>
    %51 = arith.subf %47, %50 : vector<1x3x3x2xf32>
    %52 = vector.broadcast %24 : vector<1x1x1x2xf32> to vector<1x3x3x2xf32>
    %53 = arith.mulf %51, %52 : vector<1x3x3x2xf32>
    %54 = vector.broadcast %49 : vector<1x3x1x2xf32> to vector<1x3x3x2xf32>
    %55 = arith.addf %54, %53 : vector<1x3x3x2xf32>
    %56 = arith.truncf %55 : vector<1x3x3x2xf32> to vector<1x3x3x2xbf16>
    %c0_16 = arith.constant 0 : index
    %c2_17 = arith.constant 2 : index
    %c5 = arith.constant 5 : index
    %c0_18 = arith.constant 0 : index
    %57 = vector.load %arg7[%c0_16, %c2_17, %c5, %c0_18] : memref<1x8x8x2xbf16, #tpu.memory_space<vmem>>, vector<1x3x3x2xbf16>
    tpu.vector_store %arg7[%c0_16, %c2_17, %c5, %c0_18], %56 {strides = array<i32>} : memref<1x8x8x2xbf16, #tpu.memory_space<vmem>>, vector<1x3x3x2xbf16>,
    %58 = vector.extract_strided_slice %20 {offsets = [0, 0, 0, 0], sizes = [1, 1, 3, 2], strides = [1, 1, 1, 1]} : vector<1x3x3x2xf32> to vector<1x1x3x2xf32>
    %59 = vector.extract_strided_slice %58 {offsets = [0, 0, 0, 0], sizes = [1, 1, 1, 2], strides = [1, 1, 1, 1]} : vector<1x1x3x2xf32> to vector<1x1x1x2xf32>
    %60 = vector.shape_cast %59 : vector<1x1x1x2xf32> to vector<1x1x1x2xf32>
    %61 = vector.broadcast %60 : vector<1x1x1x2xf32> to vector<1x1x2x2xf32>
    %62 = vector.extract_strided_slice %58 {offsets = [0, 0, 2, 0], sizes = [1, 1, 1, 2], strides = [1, 1, 1, 1]} : vector<1x1x3x2xf32> to vector<1x1x1x2xf32>
    %63 = vector.shape_cast %62 : vector<1x1x1x2xf32> to vector<1x1x1x2xf32>
    %64 = vector.broadcast %63 : vector<1x1x1x2xf32> to vector<1x1x3x2xf32>
    %65 = tpu.concatenate %61, %58, %64 in 2 : vector<1x1x2x2xf32>, vector<1x1x3x2xf32>, vector<1x1x3x2xf32> -> vector<1x1x8x2xf32>
    %66 = vector.extract_strided_slice %2 {offsets = [0, 0, 0, 0], sizes = [1, 2, 8, 2], strides = [1, 1, 1, 1]} : vector<1x8x8x2xf32> to vector<1x2x8x2xf32>
    %67 = vector.broadcast %22 : vector<1x1x1x2xf32> to vector<1x1x8x2xf32>
    %68 = arith.mulf %65, %67 : vector<1x1x8x2xf32>
    %69 = vector.broadcast %65 : vector<1x1x8x2xf32> to vector<1x2x8x2xf32>
    %70 = arith.subf %66, %69 : vector<1x2x8x2xf32>
    %71 = vector.broadcast %24 : vector<1x1x1x2xf32> to vector<1x2x8x2xf32>
    %72 = arith.mulf %70, %71 : vector<1x2x8x2xf32>
    %73 = vector.broadcast %68 : vector<1x1x8x2xf32> to vector<1x2x8x2xf32>
    %74 = arith.addf %73, %72 : vector<1x2x8x2xf32>
    %75 = arith.truncf %74 : vector<1x2x8x2xf32> to vector<1x2x8x2xbf16>
    %c0_19 = arith.constant 0 : index
    %c0_20 = arith.constant 0 : index
    %c0_21 = arith.constant 0 : index
    %c0_22 = arith.constant 0 : index
    %76 = vector.load %arg7[%c0_19, %c0_20, %c0_21, %c0_22] : memref<1x8x8x2xbf16, #tpu.memory_space<vmem>>, vector<1x2x8x2xbf16>
    tpu.vector_store %arg7[%c0_19, %c0_20, %c0_21, %c0_22], %75 {strides = array<i32>} : memref<1x8x8x2xbf16, #tpu.memory_space<vmem>>, vector<1x2x8x2xbf16>,
    %77 = vector.extract_strided_slice %20 {offsets = [0, 2, 0, 0], sizes = [1, 1, 3, 2], strides = [1, 1, 1, 1]} : vector<1x3x3x2xf32> to vector<1x1x3x2xf32>
    %78 = vector.extract_strided_slice %77 {offsets = [0, 0, 0, 0], sizes = [1, 1, 1, 2], strides = [1, 1, 1, 1]} : vector<1x1x3x2xf32> to vector<1x1x1x2xf32>
    %79 = vector.shape_cast %78 : vector<1x1x1x2xf32> to vector<1x1x1x2xf32>
    %80 = vector.broadcast %79 : vector<1x1x1x2xf32> to vector<1x1x2x2xf32>
    %81 = vector.extract_strided_slice %77 {offsets = [0, 0, 2, 0], sizes = [1, 1, 1, 2], strides = [1, 1, 1, 1]} : vector<1x1x3x2xf32> to vector<1x1x1x2xf32>
    %82 = vector.shape_cast %81 : vector<1x1x1x2xf32> to vector<1x1x1x2xf32>
    %83 = vector.broadcast %82 : vector<1x1x1x2xf32> to vector<1x1x3x2xf32>
    %84 = tpu.concatenate %80, %77, %83 in 2 : vector<1x1x2x2xf32>, vector<1x1x3x2xf32>, vector<1x1x3x2xf32> -> vector<1x1x8x2xf32>
    %85 = vector.extract_strided_slice %2 {offsets = [0, 5, 0, 0], sizes = [1, 3, 8, 2], strides = [1, 1, 1, 1]} : vector<1x8x8x2xf32> to vector<1x3x8x2xf32>
    %86 = vector.broadcast %22 : vector<1x1x1x2xf32> to vector<1x1x8x2xf32>
    %87 = arith.mulf %84, %86 : vector<1x1x8x2xf32>
    %88 = vector.broadcast %84 : vector<1x1x8x2xf32> to vector<1x3x8x2xf32>
    %89 = arith.subf %85, %88 : vector<1x3x8x2xf32>
    %90 = vector.broadcast %24 : vector<1x1x1x2xf32> to vector<1x3x8x2xf32>
    %91 = arith.mulf %89, %90 : vector<1x3x8x2xf32>
    %92 = vector.broadcast %87 : vector<1x1x8x2xf32> to vector<1x3x8x2xf32>
    %93 = arith.addf %92, %91 : vector<1x3x8x2xf32>
    %94 = arith.truncf %93 : vector<1x3x8x2xf32> to vector<1x3x8x2xbf16>
    %c0_23 = arith.constant 0 : index
    %c5_24 = arith.constant 5 : index
    %c0_25 = arith.constant 0 : index
    %c0_26 = arith.constant 0 : index
    %95 = vector.load %arg7[%c0_23, %c5_24, %c0_25, %c0_26] : memref<1x8x8x2xbf16, #tpu.memory_space<vmem>>, vector<1x3x8x2xbf16>
    tpu.vector_store %arg7[%c0_23, %c5_24, %c0_25, %c0_26], %94 {strides = array<i32>} : memref<1x8x8x2xbf16, #tpu.memory_space<vmem>>, vector<1x3x8x2xbf16>,
    return
  }
  func.func @transform_0(%arg0: i32, %arg1: i32, %arg2: i32, %arg3: i32) -> (i32, i32, i32, i32) {
    %c0_i32 = arith.constant 0 : i32
    %c0_i32_0 = arith.constant 0 : i32
    return %arg0, %arg1, %arg2, %c0_i32 : i32, i32, i32, i32
  }
  func.func @transform_1(%arg0: i32, %arg1: i32, %arg2: i32, %arg3: i32) -> (i32, i32, i32) {
    %c2_i32 = arith.constant 2 : i32
    %0 = arith.muli %arg1, %c2_i32 : i32
    %1 = arith.addi %0, %arg2 : i32
    %c0_i32 = arith.constant 0 : i32
    %c0_i32_0 = arith.constant 0 : i32
    %c0_i32_1 = arith.constant 0 : i32
    return %1, %c0_i32, %c0_i32_0 : i32, i32, i32
  }
  func.func @transform_2(%arg0: i32, %arg1: i32, %arg2: i32, %arg3: i32) -> (i32, i32, i32) {
    %c2_i32 = arith.constant 2 : i32
    %0 = arith.muli %arg1, %c2_i32 : i32
    %1 = arith.addi %0, %arg2 : i32
    %c0_i32 = arith.constant 0 : i32
    %c0_i32_0 = arith.constant 0 : i32
    %c0_i32_1 = arith.constant 0 : i32
    return %1, %c0_i32, %c0_i32_0 : i32, i32, i32
  }
  func.func @transform_3(%arg0: i32, %arg1: i32, %arg2: i32, %arg3: i32) -> (i32, i32, i32, i32) {
    %c0_i32 = arith.constant 0 : i32
    return %arg0, %arg1, %arg2, %arg3 : i32, i32, i32, i32
  }
}

module attributes {stable_mosaic.version = 11 : i64} {
  func.func @kernel(%arg0: i32, %arg1: i32, %arg2: memref<1x16x16x4xf32, #tpu.memory_space<vmem>>, %arg3: memref<1x1x16x4xf32, #tpu.memory_space<vmem>>, %arg4: memref<1x1x16x4xf32, #tpu.memory_space<vmem>>, %arg5: memref<36x4xbf16, #tpu.memory_space<vmem>>, %arg6: memref<1x4xf32, #tpu.memory_space<vmem>>, %arg7: memref<1x16x16x4xbf16, #tpu.memory_space<vmem>>) attributes {dimension_semantics = [#tpu.dimension_semantics<parallel>, #tpu.dimension_semantics<parallel>], iteration_bounds = array<i64: 2, 1>, scalar_prefetch = 0 : i64, scratch_operands = 0 : i64, tpu.core_type = #tpu.core_type<tc>, window_params = [{transform_indices = @transform_0, window_bounds = array<i64: 1, 16, 16, 4>}, {transform_indices = @transform_1, window_bounds = array<i64: 1, 1, 16, 4>}, {transform_indices = @transform_2, window_bounds = array<i64: 1, 1, 16, 4>}, {pipeline_mode = #tpu.pipeline_mode<synchronous>, transform_indices = @transform_3, window_bounds = array<i64: 36, 4>}, {pipeline_mode = #tpu.pipeline_mode<synchronous>, transform_indices = @transform_4, window_bounds = array<i64: 1, 4>}, {transform_indices = @transform_5, window_bounds = array<i64: 1, 16, 16, 4>}]} {
    %c0_i32 = arith.constant 0 : i32
    %0 = arith.cmpi eq, %arg1, %c0_i32 : i32
    %cst = arith.constant 0.000000e+00 : f32
    %cst_0 = arith.constant 1.000000e+00 : f32
    %1 = arith.select %0, %cst, %cst_0 : f32
    %c0_i32_1 = arith.constant 0 : i32
    %2 = arith.cmpi eq, %arg1, %c0_i32_1 : i32
    %cst_2 = arith.constant 0.000000e+00 : f32
    %cst_3 = arith.constant 1.000000e+00 : f32
    %3 = arith.select %2, %cst_2, %cst_3 : f32
    %c0 = arith.constant 0 : index
    %c0_4 = arith.constant 0 : index
    %c0_5 = arith.constant 0 : index
    %c0_6 = arith.constant 0 : index
    %4 = vector.load %arg2[%c0, %c0_4, %c0_5, %c0_6] : memref<1x16x16x4xf32, #tpu.memory_space<vmem>>, vector<1x16x16x4xf32>
    %5 = vector.shape_cast %4 : vector<1x16x16x4xf32> to vector<16x16x4xf32>
    %c0_7 = arith.constant 0 : index
    %c0_8 = arith.constant 0 : index
    %c0_9 = arith.constant 0 : index
    %c0_10 = arith.constant 0 : index
    %6 = vector.load %arg3[%c0_7, %c0_8, %c0_9, %c0_10] : memref<1x1x16x4xf32, #tpu.memory_space<vmem>>, vector<1x1x16x4xf32>
    %7 = vector.shape_cast %6 : vector<1x1x16x4xf32> to vector<1x16x4xf32>
    %c0_11 = arith.constant 0 : index
    %c0_12 = arith.constant 0 : index
    %c0_13 = arith.constant 0 : index
    %c0_14 = arith.constant 0 : index
    %8 = vector.load %arg4[%c0_11, %c0_12, %c0_13, %c0_14] : memref<1x1x16x4xf32, #tpu.memory_space<vmem>>, vector<1x1x16x4xf32>
    %9 = vector.shape_cast %8 : vector<1x1x16x4xf32> to vector<1x16x4xf32>
    %10 = vector.broadcast %1 : f32 to vector<1x16x4xf32>
    %11 = arith.mulf %7, %10 : vector<1x16x4xf32>
    %12 = vector.broadcast %3 : f32 to vector<1x16x4xf32>
    %13 = arith.mulf %9, %12 : vector<1x16x4xf32>
    %14 = tpu.concatenate %11, %5, %13 in 0 : vector<1x16x4xf32>, vector<16x16x4xf32>, vector<1x16x4xf32> -> vector<18x16x4xf32>
    %cst_15 = arith.constant 0.000000e+00 : f32
    %15 = vector.broadcast %cst_15 : f32 to vector<18x1x4xf32>
    %16 = tpu.concatenate %15, %14, %15 in 1 : vector<18x1x4xf32>, vector<18x16x4xf32>, vector<18x1x4xf32> -> vector<18x18x4xf32>
    %17 = vector.extract_strided_slice %16 {offsets = [0, 0, 0], sizes = [16, 16, 4], strides = [1, 1, 1]} : vector<18x18x4xf32> to vector<16x16x4xf32>
    %18 = vector.extract_strided_slice %16 {offsets = [0, 1, 0], sizes = [16, 16, 4], strides = [1, 1, 1]} : vector<18x18x4xf32> to vector<16x16x4xf32>
    %19 = vector.extract_strided_slice %16 {offsets = [0, 2, 0], sizes = [16, 16, 4], strides = [1, 1, 1]} : vector<18x18x4xf32> to vector<16x16x4xf32>
    %20 = vector.extract_strided_slice %16 {offsets = [1, 0, 0], sizes = [16, 16, 4], strides = [1, 1, 1]} : vector<18x18x4xf32> to vector<16x16x4xf32>
    %21 = vector.extract_strided_slice %16 {offsets = [1, 1, 0], sizes = [16, 16, 4], strides = [1, 1, 1]} : vector<18x18x4xf32> to vector<16x16x4xf32>
    %22 = vector.extract_strided_slice %16 {offsets = [1, 2, 0], sizes = [16, 16, 4], strides = [1, 1, 1]} : vector<18x18x4xf32> to vector<16x16x4xf32>
    %23 = vector.extract_strided_slice %16 {offsets = [2, 0, 0], sizes = [16, 16, 4], strides = [1, 1, 1]} : vector<18x18x4xf32> to vector<16x16x4xf32>
    %24 = vector.extract_strided_slice %16 {offsets = [2, 1, 0], sizes = [16, 16, 4], strides = [1, 1, 1]} : vector<18x18x4xf32> to vector<16x16x4xf32>
    %25 = vector.extract_strided_slice %16 {offsets = [2, 2, 0], sizes = [16, 16, 4], strides = [1, 1, 1]} : vector<18x18x4xf32> to vector<16x16x4xf32>
    %26 = tpu.concatenate %17, %18, %19, %20, %21, %22, %23, %24, %25 in 2 : vector<16x16x4xf32>, vector<16x16x4xf32>, vector<16x16x4xf32>, vector<16x16x4xf32>, vector<16x16x4xf32>, vector<16x16x4xf32>, vector<16x16x4xf32>, vector<16x16x4xf32>, vector<16x16x4xf32> -> vector<16x16x36xf32>
    %27 = vector.shape_cast %26 : vector<16x16x36xf32> to vector<256x36xf32>
    %28 = arith.truncf %27 : vector<256x36xf32> to vector<256x36xbf16>
    %c0_16 = arith.constant 0 : index
    %c0_17 = arith.constant 0 : index
    %29 = vector.load %arg5[%c0_16, %c0_17] : memref<36x4xbf16, #tpu.memory_space<vmem>>, vector<36x4xbf16>
    %cst_18 = arith.constant dense<0.000000e+00> : vector<256x4xf32>
    %30 = tpu.matmul %28, %29, %cst_18 {dimension_numbers = #tpu.dot_dimension_numbers<[1], [0], [0], [1], [0, 0, 1, 1], [], []>} : vector<256x36xbf16>, vector<36x4xbf16>, vector<256x4xf32> -> vector<256x4xf32>
    %c0_19 = arith.constant 0 : index
    %c0_20 = arith.constant 0 : index
    %31 = vector.load %arg6[%c0_19, %c0_20] : memref<1x4xf32, #tpu.memory_space<vmem>>, vector<1x4xf32>
    %32 = vector.broadcast %31 : vector<1x4xf32> to vector<256x4xf32>
    %33 = arith.addf %30, %32 : vector<256x4xf32>
    %cst_21 = arith.constant 5.000000e-01 : f32
    %34 = vector.broadcast %cst_21 : f32 to vector<256x4xf32>
    %35 = arith.mulf %34, %33 : vector<256x4xf32>
    %cst_22 = arith.constant 0.707106769 : f32
    %36 = vector.broadcast %cst_22 : f32 to vector<256x4xf32>
    %37 = arith.mulf %33, %36 : vector<256x4xf32>
    %38 = math.absf %37 : vector<256x4xf32>
    %cst_23 = arith.constant 0.327591091 : f32
    %39 = vector.broadcast %cst_23 : f32 to vector<256x4xf32>
    %40 = arith.mulf %39, %38 : vector<256x4xf32>
    %cst_24 = arith.constant 1.000000e+00 : f32
    %41 = vector.broadcast %cst_24 : f32 to vector<256x4xf32>
    %42 = arith.addf %41, %40 : vector<256x4xf32>
    %43 = tpu.reciprocal %42 {approx = true} : vector<256x4xf32> -> vector<256x4xf32>
    %44 = arith.mulf %42, %43 : vector<256x4xf32>
    %cst_25 = arith.constant 2.000000e+00 : f32
    %45 = vector.broadcast %cst_25 : f32 to vector<256x4xf32>
    %46 = arith.subf %45, %44 : vector<256x4xf32>
    %47 = arith.mulf %43, %46 : vector<256x4xf32>
    %cst_26 = arith.constant 1.06140542 : f32
    %48 = vector.broadcast %cst_26 : f32 to vector<256x4xf32>
    %49 = arith.mulf %48, %47 : vector<256x4xf32>
    %cst_27 = arith.constant -1.45315206 : f32
    %50 = vector.broadcast %cst_27 : f32 to vector<256x4xf32>
    %51 = arith.addf %49, %50 : vector<256x4xf32>
    %52 = arith.mulf %51, %47 : vector<256x4xf32>
    %cst_28 = arith.constant 1.42141378 : f32
    %53 = vector.broadcast %cst_28 : f32 to vector<256x4xf32>
    %54 = arith.addf %52, %53 : vector<256x4xf32>
    %55 = arith.mulf %54, %47 : vector<256x4xf32>
    %cst_29 = arith.constant -0.284496725 : f32
    %56 = vector.broadcast %cst_29 : f32 to vector<256x4xf32>
    %57 = arith.addf %55, %56 : vector<256x4xf32>
    %58 = arith.mulf %57, %47 : vector<256x4xf32>
    %cst_30 = arith.constant 0.254829586 : f32
    %59 = vector.broadcast %cst_30 : f32 to vector<256x4xf32>
    %60 = arith.addf %58, %59 : vector<256x4xf32>
    %61 = arith.mulf %60, %47 : vector<256x4xf32>
    %cst_31 = arith.constant 0.000000e+00 : f32
    %62 = vector.broadcast %cst_31 : f32 to vector<256x4xf32>
    %63 = arith.subf %62, %38 : vector<256x4xf32>
    %64 = arith.mulf %63, %38 : vector<256x4xf32>
    %65 = math.exp %64 : vector<256x4xf32>
    %66 = arith.mulf %61, %65 : vector<256x4xf32>
    %cst_32 = arith.constant 1.000000e+00 : f32
    %67 = vector.broadcast %cst_32 : f32 to vector<256x4xf32>
    %68 = arith.subf %67, %66 : vector<256x4xf32>
    %cst_33 = arith.constant 0.000000e+00 : f32
    %69 = vector.broadcast %cst_33 : f32 to vector<256x4xf32>
    %70 = arith.cmpf olt, %37, %69 : vector<256x4xf32>
    %cst_34 = arith.constant 0.000000e+00 : f32
    %71 = vector.broadcast %cst_34 : f32 to vector<256x4xf32>
    %72 = arith.subf %71, %68 : vector<256x4xf32>
    %73 = arith.select %70, %72, %68 : vector<256x4xi1>, vector<256x4xf32>
    %cst_35 = arith.constant 1.000000e+00 : f32
    %74 = vector.broadcast %cst_35 : f32 to vector<256x4xf32>
    %75 = arith.addf %74, %73 : vector<256x4xf32>
    %76 = arith.mulf %35, %75 : vector<256x4xf32>
    %77 = vector.shape_cast %76 : vector<256x4xf32> to vector<16x16x4xf32>
    %78 = arith.truncf %77 : vector<16x16x4xf32> to vector<16x16x4xbf16>
    %c0_36 = arith.constant 0 : index
    %c0_37 = arith.constant 0 : index
    %c0_38 = arith.constant 0 : index
    %c0_39 = arith.constant 0 : index
    %79 = vector.load %arg7[%c0_36, %c0_37, %c0_38, %c0_39] : memref<1x16x16x4xbf16, #tpu.memory_space<vmem>>, vector<1x16x16x4xbf16>
    %80 = vector.shape_cast %79 : vector<1x16x16x4xbf16> to vector<16x16x4xbf16>
    %81 = vector.shape_cast %78 : vector<16x16x4xbf16> to vector<1x16x16x4xbf16>
    tpu.vector_store %arg7[%c0_36, %c0_37, %c0_38, %c0_39], %81 {strides = array<i32>} : memref<1x16x16x4xbf16, #tpu.memory_space<vmem>>, vector<1x16x16x4xbf16>,
    return
  }
  func.func @transform_0(%arg0: i32, %arg1: i32) -> (i32, i32, i32, i32) {
    %c0_i32 = arith.constant 0 : i32
    %c0_i32_0 = arith.constant 0 : i32
    %c0_i32_1 = arith.constant 0 : i32
    return %arg0, %arg1, %c0_i32, %c0_i32_0 : i32, i32, i32, i32
  }
  func.func @transform_1(%arg0: i32, %arg1: i32) -> (i32, i32, i32, i32) {
    %c16_i32 = arith.constant 16 : i32
    %0 = arith.muli %arg1, %c16_i32 : i32
    %c1_i32 = arith.constant 1 : i32
    %1 = arith.subi %0, %c1_i32 : i32
    %c0_i32 = arith.constant 0 : i32
    %2 = arith.maxsi %1, %c0_i32 : i32
    %c0_i32_0 = arith.constant 0 : i32
    %c0_i32_1 = arith.constant 0 : i32
    %c0_i32_2 = arith.constant 0 : i32
    return %arg0, %2, %c0_i32_0, %c0_i32_1 : i32, i32, i32, i32
  }
  func.func @transform_2(%arg0: i32, %arg1: i32) -> (i32, i32, i32, i32) {
    %c1_i32 = arith.constant 1 : i32
    %0 = arith.addi %arg1, %c1_i32 : i32
    %c16_i32 = arith.constant 16 : i32
    %1 = arith.muli %0, %c16_i32 : i32
    %c15_i32 = arith.constant 15 : i32
    %2 = arith.minsi %1, %c15_i32 : i32
    %c0_i32 = arith.constant 0 : i32
    %c0_i32_0 = arith.constant 0 : i32
    %c0_i32_1 = arith.constant 0 : i32
    return %arg0, %2, %c0_i32, %c0_i32_0 : i32, i32, i32, i32
  }
  func.func @transform_3(%arg0: i32, %arg1: i32) -> (i32, i32) {
    %c0_i32 = arith.constant 0 : i32
    %c0_i32_0 = arith.constant 0 : i32
    %c0_i32_1 = arith.constant 0 : i32
    return %c0_i32, %c0_i32_0 : i32, i32
  }
  func.func @transform_4(%arg0: i32, %arg1: i32) -> (i32, i32) {
    %c0_i32 = arith.constant 0 : i32
    %c0_i32_0 = arith.constant 0 : i32
    %c0_i32_1 = arith.constant 0 : i32
    return %c0_i32, %c0_i32_0 : i32, i32
  }
  func.func @transform_5(%arg0: i32, %arg1: i32) -> (i32, i32, i32, i32) {
    %c0_i32 = arith.constant 0 : i32
    %c0_i32_0 = arith.constant 0 : i32
    %c0_i32_1 = arith.constant 0 : i32
    return %arg0, %arg1, %c0_i32, %c0_i32_0 : i32, i32, i32, i32
  }
}

module attributes {stable_mosaic.version = 11 : i64} {
  func.func @kernel(%arg0: i32, %arg1: i32, %arg2: memref<1x16x16x2xbf16, #tpu.memory_space<vmem>>, %arg3: memref<1x1x16x2xbf16, #tpu.memory_space<vmem>>, %arg4: memref<1x1x16x2xbf16, #tpu.memory_space<vmem>>, %arg5: memref<1x16x16x2xbf16, #tpu.memory_space<vmem>>, %arg6: memref<1x1x16x2xbf16, #tpu.memory_space<vmem>>, %arg7: memref<1x1x16x2xbf16, #tpu.memory_space<vmem>>, %arg8: memref<36x4xbf16, #tpu.memory_space<vmem>>, %arg9: memref<1x4xf32, #tpu.memory_space<vmem>>, %arg10: memref<1x16x16x4xf32, #tpu.memory_space<vmem>>, %arg11: memref<1x16x16x4xf32, #tpu.memory_space<vmem>>) attributes {dimension_semantics = [#tpu.dimension_semantics<parallel>, #tpu.dimension_semantics<parallel>], iteration_bounds = array<i64: 2, 1>, scalar_prefetch = 0 : i64, scratch_operands = 0 : i64, tpu.core_type = #tpu.core_type<tc>, window_params = [{transform_indices = @transform_0, window_bounds = array<i64: 1, 16, 16, 2>}, {transform_indices = @transform_1, window_bounds = array<i64: 1, 1, 16, 2>}, {transform_indices = @transform_2, window_bounds = array<i64: 1, 1, 16, 2>}, {transform_indices = @transform_3, window_bounds = array<i64: 1, 16, 16, 2>}, {transform_indices = @transform_4, window_bounds = array<i64: 1, 1, 16, 2>}, {transform_indices = @transform_5, window_bounds = array<i64: 1, 1, 16, 2>}, {pipeline_mode = #tpu.pipeline_mode<synchronous>, transform_indices = @transform_6, window_bounds = array<i64: 36, 4>}, {pipeline_mode = #tpu.pipeline_mode<synchronous>, transform_indices = @transform_7, window_bounds = array<i64: 1, 4>}, {transform_indices = @transform_8, window_bounds = array<i64: 1, 16, 16, 4>}, {transform_indices = @transform_9, window_bounds = array<i64: 1, 16, 16, 4>}]} {
    %c0_i32 = arith.constant 0 : i32
    %0 = arith.cmpi eq, %arg1, %c0_i32 : i32
    %cst = arith.constant 0.000000e+00 : f32
    %cst_0 = arith.constant 1.000000e+00 : f32
    %1 = arith.select %0, %cst, %cst_0 : f32
    %c0_i32_1 = arith.constant 0 : i32
    %2 = arith.cmpi eq, %arg1, %c0_i32_1 : i32
    %cst_2 = arith.constant 0.000000e+00 : f32
    %cst_3 = arith.constant 1.000000e+00 : f32
    %3 = arith.select %2, %cst_2, %cst_3 : f32
    %c0 = arith.constant 0 : index
    %c0_4 = arith.constant 0 : index
    %c0_5 = arith.constant 0 : index
    %c0_6 = arith.constant 0 : index
    %4 = vector.load %arg2[%c0, %c0_4, %c0_5, %c0_6] : memref<1x16x16x2xbf16, #tpu.memory_space<vmem>>, vector<1x16x16x2xbf16>
    %5 = vector.shape_cast %4 : vector<1x16x16x2xbf16> to vector<16x16x2xbf16>
    %6 = arith.extf %5 : vector<16x16x2xbf16> to vector<16x16x2xf32>
    %c0_7 = arith.constant 0 : index
    %c0_8 = arith.constant 0 : index
    %c0_9 = arith.constant 0 : index
    %c0_10 = arith.constant 0 : index
    %7 = vector.load %arg3[%c0_7, %c0_8, %c0_9, %c0_10] : memref<1x1x16x2xbf16, #tpu.memory_space<vmem>>, vector<1x1x16x2xbf16>
    %8 = vector.shape_cast %7 : vector<1x1x16x2xbf16> to vector<1x16x2xbf16>
    %9 = arith.extf %8 : vector<1x16x2xbf16> to vector<1x16x2xf32>
    %c0_11 = arith.constant 0 : index
    %c0_12 = arith.constant 0 : index
    %c0_13 = arith.constant 0 : index
    %c0_14 = arith.constant 0 : index
    %10 = vector.load %arg4[%c0_11, %c0_12, %c0_13, %c0_14] : memref<1x1x16x2xbf16, #tpu.memory_space<vmem>>, vector<1x1x16x2xbf16>
    %11 = vector.shape_cast %10 : vector<1x1x16x2xbf16> to vector<1x16x2xbf16>
    %12 = arith.extf %11 : vector<1x16x2xbf16> to vector<1x16x2xf32>
    %13 = vector.broadcast %1 : f32 to vector<1x16x2xf32>
    %14 = arith.mulf %9, %13 : vector<1x16x2xf32>
    %15 = vector.broadcast %3 : f32 to vector<1x16x2xf32>
    %16 = arith.mulf %12, %15 : vector<1x16x2xf32>
    %17 = tpu.concatenate %14, %6, %16 in 0 : vector<1x16x2xf32>, vector<16x16x2xf32>, vector<1x16x2xf32> -> vector<18x16x2xf32>
    %cst_15 = arith.constant 0.000000e+00 : f32
    %18 = vector.broadcast %cst_15 : f32 to vector<18x1x2xf32>
    %19 = tpu.concatenate %18, %17, %18 in 1 : vector<18x1x2xf32>, vector<18x16x2xf32>, vector<18x1x2xf32> -> vector<18x18x2xf32>
    %c0_16 = arith.constant 0 : index
    %c0_17 = arith.constant 0 : index
    %c0_18 = arith.constant 0 : index
    %c0_19 = arith.constant 0 : index
    %20 = vector.load %arg5[%c0_16, %c0_17, %c0_18, %c0_19] : memref<1x16x16x2xbf16, #tpu.memory_space<vmem>>, vector<1x16x16x2xbf16>
    %21 = vector.shape_cast %20 : vector<1x16x16x2xbf16> to vector<16x16x2xbf16>
    %22 = arith.extf %21 : vector<16x16x2xbf16> to vector<16x16x2xf32>
    %c0_20 = arith.constant 0 : index
    %c0_21 = arith.constant 0 : index
    %c0_22 = arith.constant 0 : index
    %c0_23 = arith.constant 0 : index
    %23 = vector.load %arg6[%c0_20, %c0_21, %c0_22, %c0_23] : memref<1x1x16x2xbf16, #tpu.memory_space<vmem>>, vector<1x1x16x2xbf16>
    %24 = vector.shape_cast %23 : vector<1x1x16x2xbf16> to vector<1x16x2xbf16>
    %25 = arith.extf %24 : vector<1x16x2xbf16> to vector<1x16x2xf32>
    %c0_24 = arith.constant 0 : index
    %c0_25 = arith.constant 0 : index
    %c0_26 = arith.constant 0 : index
    %c0_27 = arith.constant 0 : index
    %26 = vector.load %arg7[%c0_24, %c0_25, %c0_26, %c0_27] : memref<1x1x16x2xbf16, #tpu.memory_space<vmem>>, vector<1x1x16x2xbf16>
    %27 = vector.shape_cast %26 : vector<1x1x16x2xbf16> to vector<1x16x2xbf16>
    %28 = arith.extf %27 : vector<1x16x2xbf16> to vector<1x16x2xf32>
    %29 = vector.broadcast %1 : f32 to vector<1x16x2xf32>
    %30 = arith.mulf %25, %29 : vector<1x16x2xf32>
    %31 = vector.broadcast %3 : f32 to vector<1x16x2xf32>
    %32 = arith.mulf %28, %31 : vector<1x16x2xf32>
    %33 = tpu.concatenate %30, %22, %32 in 0 : vector<1x16x2xf32>, vector<16x16x2xf32>, vector<1x16x2xf32> -> vector<18x16x2xf32>
    %cst_28 = arith.constant 0.000000e+00 : f32
    %34 = vector.broadcast %cst_28 : f32 to vector<18x1x2xf32>
    %35 = tpu.concatenate %34, %33, %34 in 1 : vector<18x1x2xf32>, vector<18x16x2xf32>, vector<18x1x2xf32> -> vector<18x18x2xf32>
    %36 = vector.extract_strided_slice %19 {offsets = [0, 0, 0], sizes = [16, 16, 2], strides = [1, 1, 1]} : vector<18x18x2xf32> to vector<16x16x2xf32>
    %37 = vector.extract_strided_slice %19 {offsets = [0, 1, 0], sizes = [16, 16, 2], strides = [1, 1, 1]} : vector<18x18x2xf32> to vector<16x16x2xf32>
    %38 = vector.extract_strided_slice %19 {offsets = [0, 2, 0], sizes = [16, 16, 2], strides = [1, 1, 1]} : vector<18x18x2xf32> to vector<16x16x2xf32>
    %39 = vector.extract_strided_slice %19 {offsets = [1, 0, 0], sizes = [16, 16, 2], strides = [1, 1, 1]} : vector<18x18x2xf32> to vector<16x16x2xf32>
    %40 = vector.extract_strided_slice %19 {offsets = [1, 1, 0], sizes = [16, 16, 2], strides = [1, 1, 1]} : vector<18x18x2xf32> to vector<16x16x2xf32>
    %41 = vector.extract_strided_slice %19 {offsets = [1, 2, 0], sizes = [16, 16, 2], strides = [1, 1, 1]} : vector<18x18x2xf32> to vector<16x16x2xf32>
    %42 = vector.extract_strided_slice %19 {offsets = [2, 0, 0], sizes = [16, 16, 2], strides = [1, 1, 1]} : vector<18x18x2xf32> to vector<16x16x2xf32>
    %43 = vector.extract_strided_slice %19 {offsets = [2, 1, 0], sizes = [16, 16, 2], strides = [1, 1, 1]} : vector<18x18x2xf32> to vector<16x16x2xf32>
    %44 = vector.extract_strided_slice %19 {offsets = [2, 2, 0], sizes = [16, 16, 2], strides = [1, 1, 1]} : vector<18x18x2xf32> to vector<16x16x2xf32>
    %45 = vector.extract_strided_slice %35 {offsets = [0, 0, 0], sizes = [16, 16, 2], strides = [1, 1, 1]} : vector<18x18x2xf32> to vector<16x16x2xf32>
    %46 = vector.extract_strided_slice %35 {offsets = [0, 1, 0], sizes = [16, 16, 2], strides = [1, 1, 1]} : vector<18x18x2xf32> to vector<16x16x2xf32>
    %47 = vector.extract_strided_slice %35 {offsets = [0, 2, 0], sizes = [16, 16, 2], strides = [1, 1, 1]} : vector<18x18x2xf32> to vector<16x16x2xf32>
    %48 = vector.extract_strided_slice %35 {offsets = [1, 0, 0], sizes = [16, 16, 2], strides = [1, 1, 1]} : vector<18x18x2xf32> to vector<16x16x2xf32>
    %49 = vector.extract_strided_slice %35 {offsets = [1, 1, 0], sizes = [16, 16, 2], strides = [1, 1, 1]} : vector<18x18x2xf32> to vector<16x16x2xf32>
    %50 = vector.extract_strided_slice %35 {offsets = [1, 2, 0], sizes = [16, 16, 2], strides = [1, 1, 1]} : vector<18x18x2xf32> to vector<16x16x2xf32>
    %51 = vector.extract_strided_slice %35 {offsets = [2, 0, 0], sizes = [16, 16, 2], strides = [1, 1, 1]} : vector<18x18x2xf32> to vector<16x16x2xf32>
    %52 = vector.extract_strided_slice %35 {offsets = [2, 1, 0], sizes = [16, 16, 2], strides = [1, 1, 1]} : vector<18x18x2xf32> to vector<16x16x2xf32>
    %53 = vector.extract_strided_slice %35 {offsets = [2, 2, 0], sizes = [16, 16, 2], strides = [1, 1, 1]} : vector<18x18x2xf32> to vector<16x16x2xf32>
    %54 = tpu.concatenate %36, %37, %38, %39, %40, %41, %42, %43, %44, %45, %46, %47, %48, %49, %50, %51 in 2 : vector<16x16x2xf32>, vector<16x16x2xf32>, vector<16x16x2xf32>, vector<16x16x2xf32>, vector<16x16x2xf32>, vector<16x16x2xf32>, vector<16x16x2xf32>, vector<16x16x2xf32>, vector<16x16x2xf32>, vector<16x16x2xf32>, vector<16x16x2xf32>, vector<16x16x2xf32>, vector<16x16x2xf32>, vector<16x16x2xf32>, vector<16x16x2xf32>, vector<16x16x2xf32> -> vector<16x16x32xf32>
    %55 = tpu.concatenate %52, %53 in 2 : vector<16x16x2xf32>, vector<16x16x2xf32> -> vector<16x16x4xf32>
    %56 = tpu.concatenate %54, %55 in 2 : vector<16x16x32xf32>, vector<16x16x4xf32> -> vector<16x16x36xf32>
    %57 = vector.shape_cast %56 : vector<16x16x36xf32> to vector<256x36xf32>
    %58 = arith.truncf %57 : vector<256x36xf32> to vector<256x36xbf16>
    %c0_29 = arith.constant 0 : index
    %c0_30 = arith.constant 0 : index
    %59 = vector.load %arg8[%c0_29, %c0_30] : memref<36x4xbf16, #tpu.memory_space<vmem>>, vector<36x4xbf16>
    %cst_31 = arith.constant dense<0.000000e+00> : vector<256x4xf32>
    %60 = tpu.matmul %58, %59, %cst_31 {dimension_numbers = #tpu.dot_dimension_numbers<[1], [0], [0], [1], [0, 0, 1, 1], [], []>} : vector<256x36xbf16>, vector<36x4xbf16>, vector<256x4xf32> -> vector<256x4xf32>
    %c0_32 = arith.constant 0 : index
    %c0_33 = arith.constant 0 : index
    %61 = vector.load %arg9[%c0_32, %c0_33] : memref<1x4xf32, #tpu.memory_space<vmem>>, vector<1x4xf32>
    %62 = vector.broadcast %61 : vector<1x4xf32> to vector<256x4xf32>
    %63 = arith.addf %60, %62 : vector<256x4xf32>
    %64 = vector.shape_cast %63 : vector<256x4xf32> to vector<16x16x4xf32>
    %c0_34 = arith.constant 0 : index
    %c0_35 = arith.constant 0 : index
    %c0_36 = arith.constant 0 : index
    %c0_37 = arith.constant 0 : index
    %65 = vector.load %arg10[%c0_34, %c0_35, %c0_36, %c0_37] : memref<1x16x16x4xf32, #tpu.memory_space<vmem>>, vector<1x16x16x4xf32>
    %66 = vector.shape_cast %65 : vector<1x16x16x4xf32> to vector<16x16x4xf32>
    %67 = arith.addf %64, %66 : vector<16x16x4xf32>
    %c0_38 = arith.constant 0 : index
    %c0_39 = arith.constant 0 : index
    %c0_40 = arith.constant 0 : index
    %c0_41 = arith.constant 0 : index
    %68 = vector.load %arg11[%c0_38, %c0_39, %c0_40, %c0_41] : memref<1x16x16x4xf32, #tpu.memory_space<vmem>>, vector<1x16x16x4xf32>
    %69 = vector.shape_cast %68 : vector<1x16x16x4xf32> to vector<16x16x4xf32>
    %70 = vector.shape_cast %67 : vector<16x16x4xf32> to vector<1x16x16x4xf32>
    tpu.vector_store %arg11[%c0_38, %c0_39, %c0_40, %c0_41], %70 {strides = array<i32>} : memref<1x16x16x4xf32, #tpu.memory_space<vmem>>, vector<1x16x16x4xf32>,
    return
  }
  func.func @transform_0(%arg0: i32, %arg1: i32) -> (i32, i32, i32, i32) {
    %c0_i32 = arith.constant 0 : i32
    %c0_i32_0 = arith.constant 0 : i32
    %c0_i32_1 = arith.constant 0 : i32
    return %arg0, %arg1, %c0_i32, %c0_i32_0 : i32, i32, i32, i32
  }
  func.func @transform_1(%arg0: i32, %arg1: i32) -> (i32, i32, i32, i32) {
    %c16_i32 = arith.constant 16 : i32
    %0 = arith.muli %arg1, %c16_i32 : i32
    %c1_i32 = arith.constant 1 : i32
    %1 = arith.subi %0, %c1_i32 : i32
    %c0_i32 = arith.constant 0 : i32
    %2 = arith.maxsi %1, %c0_i32 : i32
    %c0_i32_0 = arith.constant 0 : i32
    %c0_i32_1 = arith.constant 0 : i32
    %c0_i32_2 = arith.constant 0 : i32
    return %arg0, %2, %c0_i32_0, %c0_i32_1 : i32, i32, i32, i32
  }
  func.func @transform_2(%arg0: i32, %arg1: i32) -> (i32, i32, i32, i32) {
    %c1_i32 = arith.constant 1 : i32
    %0 = arith.addi %arg1, %c1_i32 : i32
    %c16_i32 = arith.constant 16 : i32
    %1 = arith.muli %0, %c16_i32 : i32
    %c15_i32 = arith.constant 15 : i32
    %2 = arith.minsi %1, %c15_i32 : i32
    %c0_i32 = arith.constant 0 : i32
    %c0_i32_0 = arith.constant 0 : i32
    %c0_i32_1 = arith.constant 0 : i32
    return %arg0, %2, %c0_i32, %c0_i32_0 : i32, i32, i32, i32
  }
  func.func @transform_3(%arg0: i32, %arg1: i32) -> (i32, i32, i32, i32) {
    %c0_i32 = arith.constant 0 : i32
    %c0_i32_0 = arith.constant 0 : i32
    %c0_i32_1 = arith.constant 0 : i32
    return %arg0, %arg1, %c0_i32, %c0_i32_0 : i32, i32, i32, i32
  }
  func.func @transform_4(%arg0: i32, %arg1: i32) -> (i32, i32, i32, i32) {
    %c16_i32 = arith.constant 16 : i32
    %0 = arith.muli %arg1, %c16_i32 : i32
    %c1_i32 = arith.constant 1 : i32
    %1 = arith.subi %0, %c1_i32 : i32
    %c0_i32 = arith.constant 0 : i32
    %2 = arith.maxsi %1, %c0_i32 : i32
    %c0_i32_0 = arith.constant 0 : i32
    %c0_i32_1 = arith.constant 0 : i32
    %c0_i32_2 = arith.constant 0 : i32
    return %arg0, %2, %c0_i32_0, %c0_i32_1 : i32, i32, i32, i32
  }
  func.func @transform_5(%arg0: i32, %arg1: i32) -> (i32, i32, i32, i32) {
    %c1_i32 = arith.constant 1 : i32
    %0 = arith.addi %arg1, %c1_i32 : i32
    %c16_i32 = arith.constant 16 : i32
    %1 = arith.muli %0, %c16_i32 : i32
    %c15_i32 = arith.constant 15 : i32
    %2 = arith.minsi %1, %c15_i32 : i32
    %c0_i32 = arith.constant 0 : i32
    %c0_i32_0 = arith.constant 0 : i32
    %c0_i32_1 = arith.constant 0 : i32
    return %arg0, %2, %c0_i32, %c0_i32_0 : i32, i32, i32, i32
  }
  func.func @transform_6(%arg0: i32, %arg1: i32) -> (i32, i32) {
    %c0_i32 = arith.constant 0 : i32
    %c0_i32_0 = arith.constant 0 : i32
    %c0_i32_1 = arith.constant 0 : i32
    return %c0_i32, %c0_i32_0 : i32, i32
  }
  func.func @transform_7(%arg0: i32, %arg1: i32) -> (i32, i32) {
    %c0_i32 = arith.constant 0 : i32
    %c0_i32_0 = arith.constant 0 : i32
    %c0_i32_1 = arith.constant 0 : i32
    return %c0_i32, %c0_i32_0 : i32, i32
  }
  func.func @transform_8(%arg0: i32, %arg1: i32) -> (i32, i32, i32, i32) {
    %c0_i32 = arith.constant 0 : i32
    %c0_i32_0 = arith.constant 0 : i32
    %c0_i32_1 = arith.constant 0 : i32
    return %arg0, %arg1, %c0_i32, %c0_i32_0 : i32, i32, i32, i32
  }
  func.func @transform_9(%arg0: i32, %arg1: i32) -> (i32, i32, i32, i32) {
    %c0_i32 = arith.constant 0 : i32
    %c0_i32_0 = arith.constant 0 : i32
    %c0_i32_1 = arith.constant 0 : i32
    return %arg0, %arg1, %c0_i32, %c0_i32_0 : i32, i32, i32, i32
  }
}

</mosaic_0001>

<bundles_post_ra>
// kernel: resblock_forward.6
= control target key start
LH: loop header
LB: loop body
LE: loop exit
PB: predicated region body
PF: predicated region fallthrough
CT: control target
= control target key end

     0   :  { %s1122_s12 = smov 0   ;;  %s1124_s13 = smov 0   ;;  %s1423_s0 = inlined_call_operand.vmem [shape: bf16[2,16,16,4], index: 0, kind: input, shape index: {}]   ;;  %s1424_s1 = inlined_call_operand.vmem [shape: f32[4,1,2], index: 1, kind: input, shape index: {}]   ;;  %s1425_s2 = inlined_call_operand.vmem [shape: f32[4,1,2], index: 2, kind: input, shape index: {}]   ;;  %s1426_s3 = inlined_call_operand.vmem [shape: bf16[2,16,16,2], index: 3, kind: output, shape index: {}]  }
   0x1   :  { %s1126_s14 = smov 0   ;;  %s1128_s15 = smov 0  }
   0x2   :  { %s1130_s16 = smov 0   ;;  %s1132_s17 = smov 0  }
   0x3   :  { %s1134_s18 = smov 0   ;;  %s1136_s19 = smov 0  }
   0x4   :  { %s1138_s20 = smov 0  }
   0x5 LB: > { %s31_s21 = sadd.s32 1, %s1086_s17  ;;  %s35_s22 = sadd.s32 1, %s1090_s18  ;;  %s1098_s20 = sphi %s1138_s20, %s13_s20   ;;  %s1094_s19 = sphi %s1136_s19, %s1440_s19   ;;  %s1090_s18 = sphi %s1134_s18, %s1439_s18   ;;  %s1086_s17 = sphi %s1132_s17, %s1438_s17   ;;  %s1082_s16 = sphi %s1130_s16, %s1437_s16   ;;  %s1078_s15 = sphi %s1128_s15, %s1436_s15   ;;  %s1074_s14 = sphi %s1126_s14, %s1435_s14   ;;  %s1070_s13 = sphi %s1124_s13, %s1434_s13   ;;  %s1066_s12 = sphi %s1122_s12, %s1433_s12  }
   0x6   : > { %p33_p0 = scmp.ge.s32.totalorder %s31_s21, 2  ;;  %s860_s23 = sadd.s32 4294967295, %s1098_s20  }
   0x7   : > { %s39_s24 = sadd.s32 1, %s1094_s19  ;;  %p57_p1 = scmp.ne.s32.totalorder %s1070_s13, %s1066_s12 }
   0x8   : > { %s1442_s21 = smov (%p33_p0, %s31_s21), 0  ;;  %s1444_s22 = smov (!%p33_p0, %s35_s22), %s1090_s18 }
   0x9   : > { %p37_p2 = scmp.ge.s32.totalorder %s1444_s22, 2  ;;  %p58_p3 = scmp.eq.s32.totalorder %s1098_s20, 0 }
   0xa   : > { %p153_p4 = scmp.eq.s32.totalorder %s860_s23, 7  ;;  %s46_s28 = ssub.s32 %s1086_s17, %s1442_s21 }
   0xb   : > { %s1446_s22 = smov (%p37_p2, %s1444_s22), 0  ;;  %s1448_s24 = smov (!%p37_p2, %s39_s24), %s1094_s19 }
   0xc   : > { %p1180_p5 = por %p58_p3, %p57_p1  ;;  %p41_p6 = scmp.ge.s32.totalorder %s1448_s24, 2 }
   0xd   : > { %p1184_p7 = por %p153_p4, %p57_p1  ;;  %s44_s27 = ssub.s32 %s1090_s18, %s1446_s22 }
   0xe   : > { %s1450_s24 = smov (%p41_p6, %s1448_s24), 0  ;;  %s50_s5 = sadd.s32 1, %s1070_s13 }
   0xf   : > { %s43_s29 = ssub.s32 %s1094_s19, %s1450_s24  ;;  %p867_p9 = scmp.ge.s32.totalorder %s1098_s20, 8 }
  0x10   : > { %s45_s30 = sor.u32 %s44_s27, %s43_s29 }
  0x11   : > { %s47_s4 = sor.u32 %s46_s28, %s45_s30  ;;  %175 = sbr.rel (%p867_p9) target bundleno = 36 (0x24), region = 16 }
  0x12   : > { %p48_p8 = scmp.eq.s32.totalorder %s47_s4, 0 }
  0x14   : > { %s1198_s6 = scalar_select %p48_p8, %s1070_s13, %s50_s5  }
  0x18   : > { %178 = sbr.rel (!%p1180_p5) target bundleno = 36 (0x24), region = 20  ;;  %s180_s7 = sand.u32 (%p1180_p5), 1, %s1070_s13  }
  0x19   : > { %s919_s8 = sshll.u32 (%p1180_p5), %s1090_s18, 4  ;;  %s868_s9 = sshll.u32 (%p1180_p5), %s180_s7, 5 }
  0x1a   : > { %s185_s10 = sadd.s32 (%p1180_p5), %s1086_s17, %s919_s8  ;;  %s871_s11 = sshll.u32 (%p1180_p5), %s1094_s19, 5 }
  0x1b   : > { %s187_s23 = sadd.s32 (%p1180_p5), %s871_s11, %s185_s10  ;;  %s182_s25 = scalar_lea.vmem (%p1180_p5), [#allocation2], %s868_s9 }
  0x1c   : > { %s872_s27 = sshll.u32 (%p1180_p5), %s187_s23, 2 }
  0x1d   : > { %s189_s30 = scalar_lea.vmem (%p1180_p5), %s1423_s0, %s872_s27 }
  0x1e   : > { %v205_v0 = vld [vmem:[%s189_s30] sm:$0xf] (%p1180_p5)  ;;  %v207_v1 = vld [vmem:[%s189_s30 + $0x8] sm:$0xf] (%p1180_p5)  ;;  %v209_v2 = vld [vmem:[%s189_s30 + $0x10] sm:$0xf] (%p1180_p5) }
  0x1f   : > { %206 = vst [vmem:[%s182_s25] sm:$0xf] %v205_v0  ;;  %208 = vst [vmem:[%s182_s25 + $0x4] sm:$0xf] %v207_v1  ;;  %v211_v3 = vld [vmem:[%s189_s30 + $0x18] sm:$0xf] }
  0x20   : > { %210 = vst [vmem:[%s182_s25 + $0x8] sm:$0xf] %v209_v2  ;;  %v213_v4 = vld [vmem:[%s189_s30 + $0x20] sm:$0xf]  ;;  %v215_v5 = vld [vmem:[%s189_s30 + $0x28] sm:$0xf] }
  0x21   : > { %212 = vst [vmem:[%s182_s25 + $0xc] sm:$0xf] %v211_v3  ;;  %214 = vst [vmem:[%s182_s25 + $0x10] sm:$0xf] %v213_v4  ;;  %v217_v6 = vld [vmem:[%s189_s30 + $0x30] sm:$0xf] }
  0x22   : > { %216 = vst [vmem:[%s182_s25 + $0x14] sm:$0xf] %v215_v5  ;;  %v219_v7 = vld [vmem:[%s189_s30 + $0x38] sm:$0xf]  ;;  %218 = vst [vmem:[%s182_s25 + $0x18] sm:$0xf] %v217_v6 }
  0x23   : > { %220 = vst [vmem:[%s182_s25 + $0x1c] sm:$0xf] %v219_v7 }
  0x24 PF: > { %p873_p10 = scmp.ge.s32.totalorder %s1098_s20, 1  ;;  %p278_p11 = scmp.lt.s32.totalorder %s1098_s20, 9 }
  0x26   : > { %p279_p12 = pnand %p873_p10, %p278_p11 }
  0x27   : > { %s876_s4 = sshll.u32 (!%p279_p12), %s1078_s15, 1  ;;  %s1100_s27 = smov (!%p279_p12), 2   ;;  %v485_v49 = vlaneseq (!%p279_p12)  ;;  %vm609_vm0 = vcmask (!%p279_p12), 1041408   ;;  %vm611_vm1 = vcmask (!%p279_p12), 1044480   ;;  %vm539_vm2 = vcmask (!%p279_p12), 8192  }
  0x28   : > { %282 = sbr.rel (%p279_p12) target bundleno = 329 (0x149), region = 69  ;;  %s319_s5 = sadd.s32 (!%p279_p12), %s1074_s14, %s876_s4  ;;  %vm473_vm3 = vcmask (!%p279_p12), 10241   ;;  %vm474_vm4 = vsmask.f32 (!%p279_p12), 2304  ;;  %vm597_vm6 = vcmask (!%p279_p12), 11266   ;;  %vm634_vm8 = vcmask (!%p279_p12), 11264  }
  0x29   : > { %p320_p13 = scmp.lt.s32.totalorder (!%p279_p12), %s319_s5, 3  ;;  %s285_s28 = sand.u32 (!%p279_p12), 1, %s1066_s12   ;;  %v486_v53 = vshrl.u32 (!%p279_p12), %v485_v49, 7  ;;  %vm1334_vm5 = vmand (!%p279_p12), %vm473_vm3, %vm474_vm4  ;;  %vm598_vm7 = vsmask.f32 (!%p279_p12), 7946 }
  0x2a   : > { %s1221_s29 = sshll.u32 (!%p279_p12), %s285_s28, 5  ;;  %s1101_s12 = smov (!%p279_p12), 126   ;;  %vm1351_vm9 = vmand (!%p279_p12), %vm597_vm6, %vm598_vm7 }
  0x2b   : > { %s287_s30 = scalar_lea.vmem (!%p279_p12), [#allocation2], %s1221_s29  ;;  %v545_v57 = vsub.s32 (!%p279_p12), 2, %v486_v53  ;;  %v1264_v0 = vsub.s32 (!%p279_p12), 0, %v486_v53  ;;  %s1330_s25 = scalar_lea.vmem (!%p279_p12), [#allocation3], %s1221_s29 }
  0x2c   : > { %v1224_v10 = vld [vmem:[%s287_s30] sm:$0xff] (!%p279_p12)   ;;  %v951_v11 = vld [vmem:[%s287_s30 + $0x8] sm:$0xff] (!%p279_p12)   ;;  %v952_v12 = vld [vmem:[%s287_s30 + $0x10] sm:$0xff] (!%p279_p12)  }
  0x2d   : > { %v1226_v13 = vld [vmem:[%s287_s30 + $0x18] sm:$0xff] (!%p279_p12)   ;;  %v1229_v14 = vunpack.c.h.bf16 (!%p279_p12), %v1224_v10  ;;  %v1231_v15 = vunpack.c.l.bf16 (!%p279_p12), %v951_v11  ;;  %v1233_v16 = vunpack.c.h.bf16 (!%p279_p12), %v951_v11  ;;  %v1235_v17 = vunpack.c.l.bf16 (!%p279_p12), %v952_v12 }
  0x2e   : > { %v1237_v18 = vunpack.c.h.bf16 (!%p279_p12), %v952_v12  ;;  %v1240_v19 = vunpack.c.l.bf16 (!%p279_p12), %v1226_v13  ;;  %v937_v20 = vunpack.c.l.bf16 (!%p279_p12), %v1224_v10  ;;  %v950_v21 = vunpack.c.h.bf16 (!%p279_p12), %v1226_v13 }
  0x2f   : > { %s1452_s5 = smov (!%p320_p13, %s319_s5), 3  ;;  %v350_v22 = vadd.f32 %v1231_v15, %v1229_v14  ;;  %v351_v23 = vadd.f32 %v1233_v16, %v1231_v15  ;;  %v352_v27 = vadd.f32 %v1235_v17, %v1233_v16  ;;  %s934_s4 = sshll.u32 (%p1184_p7), %s1078_s15, 4 }
  0x30   : > { %s329_s9 = scalar_lea.vmem %s1425_s2, %s1452_s5  ;;  %s322_s23 = scalar_lea.vmem %s1424_s1, %s1452_s5  ;;  %v353_v24 = vadd.f32 %v1237_v18, %v1235_v17  ;;  %v354_v25 = vadd.f32 %v1240_v19, %v1237_v18  ;;  %v349_v26 = vadd.f32 %v1229_v14, %v937_v20 }
  0x31   : > { %v879_v8 = vld [vmem:[%s329_s9] ss:$0 sm:$0xff]  ;;  %v356_v28 = vadd.f32 %v1233_v16, %v350_v22  ;;  %v357_v29 = vadd.f32 %v1235_v17, %v351_v23  ;;  %v358_v33 = vadd.f32 %v1237_v18, %v352_v27  ;;  %s915_s5 = sshll.u32 (%p1184_p7), %s1082_s16, 5  ;;  %s684_s7 = sadd.s32 (%p1184_p7), %s1074_s14, %s934_s4 }
  0x32   : > { %430 = vrot.lane.b32.xlu0 %v879_v8, %s1100_s27  ;;  %v878_v9 = vld [vmem:[%s322_s23] ss:$0 sm:$0xff]  ;;  %v359_v30 = vadd.f32 %v1240_v19, %v353_v24  ;;  %v360_v31 = vadd.f32 %v950_v21, %v354_v25  ;;  %v355_v32 = vadd.f32 %v1231_v15, %v349_v26  ;;  %s686_s26 = sadd.s32 (%p1184_p7), %s915_s5, %s684_s7 }
  0x33   : > { %s916_s8 = sshll.u32 (%p1184_p7), %s686_s26, 2 }
  0x34   : > { %v362_v34 = vadd.f32 %v359_v30, %v356_v28  ;;  %v363_v35 = vadd.f32 %v360_v31, %v357_v29  ;;  %v361_v36 = vadd.f32 %v358_v33, %v355_v32  ;;  %s688_s11 = scalar_lea.vmem (%p1184_p7), %s1426_s3, %s916_s8 }
  0x36   : > { %407 = vrot.lane.b32.xlu0 %v878_v9, %s1100_s27  ;;  %v368_v37 = vrot.slane %v362_v34, 1  ;;  %v369_v38 = vrot.slane %v363_v35, 1  ;;  %v367_v39 = vrot.slane %v361_v36, 1  ;;  %v377_v40 = vrot.slane %v362_v34, 2 }
  0x37   : > { %v378_v41 = vrot.slane %v363_v35, 2  ;;  %v376_v45 = vrot.slane %v361_v36, 2 }
  0x38   : > { %v374_v42 = vadd.f32 %v368_v37, %v362_v34  ;;  %v375_v43 = vadd.f32 %v369_v38, %v363_v35  ;;  %v373_v44 = vadd.f32 %v367_v39, %v361_v36 }
  0x3a   : > { %v383_v46 = vadd.f32 %v377_v40, %v374_v42  ;;  %v384_v47 = vadd.f32 %v378_v41, %v375_v43  ;;  %v382_v48 = vadd.f32 %v376_v45, %v373_v44 }
  0x3c   : > { %v389_v50 = vrot.slane %v383_v46, 3  ;;  %v390_v51 = vrot.slane %v384_v47, 3  ;;  %v388_v52 = vrot.slane %v382_v48, 3 }
  0x3e   : > { %v395_v54 = vadd.f32 %v389_v50, %v383_v46  ;;  %v396_v55 = vadd.f32 %v390_v51, %v384_v47  ;;  %v394_v56 = vadd.f32 %v388_v52, %v382_v48 }
  0x40   : > { %v398_v58 = vmul.f32 0.027777778, %v395_v54  ;;  %v399_v59 = vmul.f32 0.027777778, %v396_v55  ;;  %v397_v60 = vmul.f32 0.027777778, %v394_v56 }
  0x42   : > { %v418_v61 = vrot.slane %v399_v59, 6  ;;  %v550_v62 = vrot.slane %v398_v58, %v545_v57  ;;  %v546_v63 = vrot.slane %v397_v60, %v545_v57  ;;  %v554_v2 = vrot.slane %v399_v59, %v545_v57 }
  0x43   : > { %v416_v6 = vrot.slane %v397_v60, 6  ;;  %v488_v7 = vrot.slane %v397_v60, %v1264_v0  ;;  %v492_v8 = vrot.slane %v398_v58, %v1264_v0  ;;  %v417_v23 = vrot.slane %v398_v58, 6 }
  0x44   : > { %v424_v3 = vsub.f32 %v1235_v17, %v418_v61  ;;  %v556_v4 = vsub.f32 %v1233_v16, %v550_v62  ;;  %v555_v5 = vsub.f32 %v1231_v15, %v546_v63  ;;  %v557_v11 = vsub.f32 %v1235_v17, %v554_v2 }
  0x45   : > { %v422_v22 = vsub.f32 %v1231_v15, %v416_v6  ;;  %v497_v27 = vsub.f32 %v1231_v15, %v488_v7  ;;  %v498_v34 = vsub.f32 %v1233_v16, %v492_v8  ;;  %v423_v37 = vsub.f32 %v1233_v16, %v417_v23 }
  0x46   : > { %v496_v41 = vrot.slane %v399_v59, %v1264_v0  ;;  %v610_v44 = vsel %vm609_vm0, %v488_v7, %v416_v6 }
  0x47   : > { %v612_v55 = vsel %vm611_vm1, %v610_v44, %v546_v63  ;;  %v885_v44 = vld [vmem:[%s1330_s25 + $0xc] sm:$0x6] }
  0x48   : > { %v499_v49 = vsub.f32 %v1235_v17, %v496_v41  ;;  %v637_v52 = vsel %vm609_vm0, %v496_v41, %v418_v61 }
  0x49   : > { %v638_v61 = vsel %vm611_vm1, %v637_v52, %v554_v2 }
  0x4a   : > { %v641_v8 = vsub.f32 %v1240_v19, %v638_v61 }
  0xa4   : > { %v1266_v1 = vpop.permute.xlu0 %430 }
  0xa5   : > { %v435_v12 = vmul.f32 %v1266_v1, %v424_v3  ;;  %v559_v28 = vmul.f32 %v556_v4, %v1266_v1  ;;  %v558_v29 = vmul.f32 %v555_v5, %v1266_v1  ;;  %v433_v36 = vmul.f32 %v1266_v1, %v422_v22 }
  0xa6   : > { %v560_v39 = vmul.f32 %v557_v11, %v1266_v1  ;;  %v500_v40 = vmul.f32 %v497_v27, %v1266_v1  ;;  %v501_v50 = vmul.f32 %v498_v34, %v1266_v1  ;;  %v434_v51 = vmul.f32 %v1266_v1, %v423_v37  ;;  %v887_v37 = vld [vmem:[%s1330_s25 + $0x10] sm:$0x6] }
  0xa7   : > { %v441_v35 = vrot.slane %v435_v12, 2  ;;  %v439_v16 = vrot.slane %v433_v36, 2 }
  0xa8   : > { %v1273_v9 = vpop.permute.xlu0 %407  ;;  %v440_v62 = vrot.slane %v434_v51, 2 }
  0xa9   : > { %v411_v24 = vmul.f32 %v1273_v9, %v398_v58  ;;  %v412_v25 = vmul.f32 %v1273_v9, %v399_v59  ;;  %v410_v26 = vmul.f32 %v1273_v9, %v397_v60  ;;  %v502_v59 = vmul.f32 %v499_v49, %v1266_v1 }
  0xaa   : > { %v615_v60 = vsub.f32 %v1229_v14, %v612_v55  ;;  %v614_v14 = vsub.f32 %v937_v20, %v612_v55  ;;  %v639_v2 = vmul.f32 %v638_v61, %v1273_v9 }
  0xab   : > { %v568_v30 = vrot.slane %v411_v24, %v545_v57  ;;  %v564_v31 = vrot.slane %v410_v26, %v545_v57  ;;  %v572_v32 = vrot.slane %v412_v25, %v545_v57  ;;  %v506_v33 = vrot.slane %v410_v26, %v1264_v0 }
  0xac   : > { %v510_v42 = vrot.slane %v411_v24, %v1264_v0  ;;  %v447_v43 = vadd.f32 %v441_v35, %v412_v25  ;;  %v514_v53 = vrot.slane %v412_v25, %v1264_v0  ;;  %v445_v54 = vadd.f32 %v439_v16, %v410_v26 }
  0xad   : > { %v574_v38 = vadd.f32 %v568_v30, %v559_v28  ;;  %v573_v15 = vadd.f32 %v564_v31, %v558_v29  ;;  %v575_v47 = vadd.f32 %v572_v32, %v560_v39  ;;  %v515_v48 = vadd.f32 %v506_v33, %v500_v40  ;;  %v883_v40 = vld [vmem:[%s1330_s25 + $0x8] sm:$0x6] }
  0xae   : > { %v516_v17 = vadd.f32 %v510_v42, %v501_v50  ;;  %v922_v58 = vpack.c.bf16 %v447_v43, %v447_v43  ;;  %v517_v3 = vadd.f32 %v514_v53, %v502_v59  ;;  %v613_v0 = vmul.f32 %v612_v55, %v1273_v9 }
  0xaf   : > { %v927_v45 = vpack.c.bf16 %v574_v38, %v574_v38  ;;  %v926_v46 = vpack.c.bf16 %v573_v15, %v573_v15  ;;  %v928_v56 = vpack.c.bf16 %v575_v47, %v575_v47  ;;  %v923_v57 = vpack.c.bf16 %v515_v48, %v515_v48 }
  0xb0   : > { %v924_v4 = vpack.c.bf16 %v516_v17, %v516_v17  ;;  %v462_v63 = vrot.slane %v922_v58, 7  ;;  %v920_v5 = vpack.c.bf16 %v445_v54, %v445_v54  ;;  %v446_v6 = vadd.f32 %v440_v62, %v411_v24 }
  0xb1   : > { %590 = vrot.lane.b32.xlu0 %v927_v45, %s1101_s12  ;;  %588 = vrot.lane.b32.xlu1 %v926_v46, %s1101_s12  ;;  %v617_v7 = vmul.f32 %v615_v60, %v1266_v1  ;;  %v925_v11 = vpack.c.bf16 %v517_v3, %v517_v3  ;;  %v644_v24 = vmul.f32 %v641_v8, %v1266_v1 }
  0xb2   : > { %v460_v12 = vrot.slane %v920_v5, 7  ;;  %v921_v23 = vpack.c.bf16 %v446_v6, %v446_v6  ;;  %v616_v25 = vmul.f32 %v614_v14, %v1266_v1  ;;  %v640_v26 = vsub.f32 %v1237_v18, %v638_v61 }
  0xb3   : > { %v619_v22 = vadd.f32 %v617_v7, %v613_v0  ;;  %v647_v10 = vadd.f32 %v644_v24, %v639_v2  ;;  %v642_v28 = vsub.f32 %v950_v21, %v638_v61 }
  0xb4   : > { %v461_v27 = vrot.slane %v921_v23, 7  ;;  %v618_v20 = vadd.f32 %v616_v25, %v613_v0  ;;  %v643_v9 = vmul.f32 %v640_v26, %v1266_v1 }
  0xb5   : > { %592 = vrot.lane.b32.xlu1 %v928_v56, %s1101_s12  ;;  %530 = vrot.lane.b32.xlu0 %v923_v57, %s1101_s12  ;;  %v930_v19 = vpack.c.bf16 %v619_v22, %v619_v22  ;;  %v932_v29 = vpack.c.bf16 %v647_v10, %v647_v10  ;;  %v645_v18 = vmul.f32 %v642_v28, %v1266_v1 }
  0xb6   : > { %v929_v30 = vpack.c.bf16 %v618_v20, %v618_v20  ;;  %v646_v31 = vadd.f32 %v643_v9, %v639_v2 }
  0xb7   : > { %v648_v33 = vadd.f32 %v645_v18, %v639_v2 }
  0xb8   : > { %v931_v32 = vpack.c.bf16 %v646_v31, %v646_v31 }
  0xb9   : > { %532 = vrot.lane.b32.xlu1 %v924_v4, %s1101_s12  ;;  %467 = vrot.lane.b32.xlu0 %v462_v63, %s1101_s12  ;;  %v933_v34 = vpack.c.bf16 %v648_v33, %v648_v33 }
  0xbd   : > { %534 = vrot.lane.b32.xlu0 %v925_v11, %s1101_s12  ;;  %463 = vrot.lane.b32.xlu1 %v460_v12, %s1101_s12 }
  0xc1   : > { %630 = vrot.lane.b32.xlu0 %v930_v19, %s1101_s12  ;;  %465 = vrot.lane.b32.xlu1 %v461_v27, %s1101_s12 }
  0xc5   : > { %663 = vrot.lane.b32.xlu0 %v932_v29, %s1101_s12  ;;  %628 = vrot.lane.b32.xlu1 %v929_v30, %s1101_s12 }
  0xc9   : > { %661 = vrot.lane.b32.xlu1 %v931_v32, %s1101_s12 }
  0xcd   : > { %665 = vrot.lane.b32.xlu1 %v933_v34, %s1101_s12 }
 0x123   : > { %v591_v35 = vpop.permute.xlu0 %590  ;;  %v589_v13 = vpop.permute.xlu1 %588 }
 0x127   : > { %v593_v21 = vpop.permute.xlu1 %592  ;;  %v531_v36 = vpop.permute.xlu0 %530 }
 0x128   : > { %892 = vst.msk [vmem:[%s1330_s25 + $0x8] sm:$0x1] %vm539_vm2, %v531_v36 }
 0x12b   : > { %v533_v38 = vpop.permute.xlu1 %532  ;;  %v468_v15 = vpop.permute.xlu0 %467 }
 0x12c   : > { %893 = vst.msk [vmem:[%s1330_s25 + $0xc] sm:$0x1] %vm539_vm2, %v533_v38  ;;  %v483_v39 = vsel %vm1334_vm5, %v468_v15, %v887_v37 }
 0x12d   : > { %888 = vst [vmem:[%s1330_s25 + $0x10] sm:$0x6] %v483_v39 }
 0x12f   : > { %v535_v41 = vpop.permute.xlu0 %534  ;;  %v464_v42 = vpop.permute.xlu1 %463 }
 0x130   : > { %894 = vst.msk [vmem:[%s1330_s25 + $0x10] sm:$0x1] %vm539_vm2, %v535_v41  ;;  %v477_v43 = vsel %vm1334_vm5, %v464_v42, %v883_v40 }
 0x131   : > { %884 = vst [vmem:[%s1330_s25 + $0x8] sm:$0x6] %v477_v43 }
 0x133   : > { %v631_v46 = vpop.permute.xlu0 %630  ;;  %v466_v47 = vpop.permute.xlu1 %465 }
 0x134   : > { %v902_v48 = vld [vmem:[%s1330_s25 + $0x10] sm:$0xc]  ;;  %636 = vst.msk [vmem:[%s1330_s25 + $0x4] sm:$0xf] %vm634_vm8, %v631_v46  ;;  %v480_v49 = vsel %vm1334_vm5, %v466_v47, %v885_v44 }
 0x135   : > { %v607_v16 = vsel %vm1351_vm9, %v593_v21, %v902_v48  ;;  %886 = vst [vmem:[%s1330_s25 + $0xc] sm:$0x6] %v480_v49 }
 0x136   : > { %903 = vst [vmem:[%s1330_s25 + $0x10] sm:$0xc] %v607_v16 }
 0x137   : > { %v664_v50 = vpop.permute.xlu0 %663  ;;  %v629_v51 = vpop.permute.xlu1 %628 }
 0x138   : > { %v898_v52 = vld [vmem:[%s1330_s25 + $0x8] sm:$0xc]  ;;  %910 = vst.msk [vmem:[%s1330_s25 + $0x18] sm:$0xf] %vm634_vm8, %v664_v50  ;;  %635 = vst.msk [vmem:[%s1330_s25] sm:$0xf] %vm634_vm8, %v629_v51 }
 0x139   : > { %v601_v53 = vsel %vm1351_vm9, %v589_v13, %v898_v52 }
 0x13a   : > { %899 = vst [vmem:[%s1330_s25 + $0x8] sm:$0xc] %v601_v53  ;;  %680 = sbr.rel (!%p1184_p7) target bundleno = 329 (0x149), region = 77 }
 0x13b   : > { %v662_v54 = vpop.permute.xlu1 %661  ;;  %v706_v58 = vld [vmem:[%s1330_s25 + $0x4] sm:$0xf] (%p1184_p7) }
 0x13c   : > { %v900_v55 = vld [vmem:[%s1330_s25 + $0xc] sm:$0xc]  ;;  %909 = vst.msk [vmem:[%s1330_s25 + $0x14] sm:$0xf] %vm634_vm8, %v662_v54  ;;  %707 = vst [vmem:[%s688_s11 + $0x8] sm:$0xf] (%p1184_p7), %v706_v58 }
 0x13d   : > { %v604_v56 = vsel %vm1351_vm9, %v591_v35, %v900_v55  ;;  %v712_v62 = vld [vmem:[%s1330_s25 + $0x10] sm:$0xf] (%p1184_p7) }
 0x13e   : > { %901 = vst [vmem:[%s1330_s25 + $0xc] sm:$0xc] %v604_v56  ;;  %713 = vst [vmem:[%s688_s11 + $0x20] sm:$0xf] (%p1184_p7), %v712_v62 }
 0x13f   : > { %v666_v57 = vpop.permute.xlu1 %665  ;;  %v704_v17 = vld [vmem:[%s1330_s25] sm:$0xf] (%p1184_p7)  ;;  %v716_v3 = vld [vmem:[%s1330_s25 + $0x18] sm:$0xf] (%p1184_p7) }
 0x140   : > { %911 = vst.msk [vmem:[%s1330_s25 + $0x1c] sm:$0xf] %vm634_vm8, %v666_v57  ;;  %705 = vst [vmem:[%s688_s11] sm:$0xf] (%p1184_p7), %v704_v17 }
 0x141   : > { %v708_v59 = vld [vmem:[%s1330_s25 + $0x8] sm:$0xf]  ;;  %717 = vst [vmem:[%s688_s11 + $0x30] sm:$0xf] %v716_v3 }
 0x142   : > { %709 = vst [vmem:[%s688_s11 + $0x10] sm:$0xf] %v708_v59 }
 0x143   : > { %v714_v61 = vld [vmem:[%s1330_s25 + $0x14] sm:$0xf] }
 0x144   : > { %715 = vst [vmem:[%s688_s11 + $0x28] sm:$0xf] %v714_v61 }
 0x145   : > { %v710_v60 = vld [vmem:[%s1330_s25 + $0xc] sm:$0xf] }
 0x146   : > { %711 = vst [vmem:[%s688_s11 + $0x18] sm:$0xf] %v710_v60 }
 0x147   : > { %v718_v0 = vld [vmem:[%s1330_s25 + $0x1c] sm:$0xf] }
 0x148   : > { %719 = vst [vmem:[%s688_s11 + $0x38] sm:$0xf] %v718_v0 }
 0x149 PF: > { %s13_s20 = sadd.s32 1, %s1098_s20   ;;  %s1433_s12 = smov %s1070_s13 }
 0x14a   : > { %p10_p0 = scmp.ge.s32.totalorder %s13_s20, 10   ;;  %s1434_s13 = smov %s1198_s6 }
 0x14b   : > { %s1435_s14 = smov %s1086_s17  ;;  %s1436_s15 = smov %s1090_s18 }
 0x14c   : > { %s1437_s16 = smov %s1094_s19  ;;  %s1438_s17 = smov %s1442_s21 }
 0x14d   : > { %s1439_s18 = smov %s1446_s22  ;;  %s1440_s19 = smov %s1450_s24 }
 0x14e   :  { %12 = sbr.rel (!%p10_p0) target bundleno = 5 (0x5), region = 157 }

// kernel: resblock_forward.5
= control target key start
LH: loop header
LB: loop body
LE: loop exit
PB: predicated region body
PF: predicated region fallthrough
CT: control target
= control target key end

     0   :  { %s1430_s12 = smov 0   ;;  %s1432_s13 = smov 0   ;;  %s2038_s0 = inlined_call_operand.vmem [shape: bf16[2,16,16,4], index: 0, kind: input, shape index: {}]   ;;  %s2039_s1 = inlined_call_operand.vmem [shape: f32[1,1,2], index: 1, kind: input, shape index: {}]   ;;  %s2040_s2 = inlined_call_operand.vmem [shape: f32[1,1,2], index: 2, kind: input, shape index: {}]   ;;  %s2041_s3 = inlined_call_operand.vmem [shape: bf16[2,16,16,2], index: 3, kind: output, shape index: {}]  }
   0x1   :  { %s1434_s14 = smov 0  }
   0x2 LB: > { %s39_s15 = sadd.s32 1, %s1404_s13  ;;  %p1189_p0 = scmp.ge.s32.totalorder %s1408_s14, 1  ;;  %s1408_s14 = sphi %s1434_s14, %s13_s14   ;;  %s1404_s13 = sphi %s1432_s13, %s2073_s13   ;;  %s1400_s12 = sphi %s1430_s12, %s2072_s12  }
   0x3   : > { %p41_p1 = scmp.ge.s32.totalorder %s39_s15, 2  ;;  %p208_p2 = scmp.lt.s32.totalorder %s1408_s14, 3 }
   0x5   : > { %s2075_s15 = smov (%p41_p1, %s39_s15), 0  ;;  %p209_p3 = pnand %p1189_p0, %p208_p2 }
   0x7   : > { %212 = sbr.rel (%p209_p3) target bundleno = 130 (0x82), region = 32 }
   0xe   : > { %p263_p4 = scmp.lt.s32.totalorder %s1400_s12, 1  ;;  %v605_v0 = vlaneseq  ;;  %v1554_v53 = vld [vmem:[%s2039_s1] sm:$0x1]  ;;  %vm462_vm0 = vcmask 1046528   ;;  %vm491_vm1 = vcmask 1045504   ;;  %vm528_vm2 = vcmask 1044480  }
   0xf   : > { %vm565_vm3 = vcmask 1041408   ;;  %vm709_vm4 = vcmask 11267   ;;  %vm711_vm5 = vcmask 8192   ;;  %vm771_vm6 = vcmask 10240  }
  0x10   : > { %s2077_s12 = smov (!%p263_p4, %s1400_s12), 1  ;;  %v606_v1 = vshrl.u32 %v605_v0, 7  ;;  %vm824_vm7 = vcmask 11265   ;;  %vm917_vm8 = vcmask 11264  }
  0x11   : > { %s1253_s16 = sshll.u32 %s2077_s12, 7 }
  0x12   : > { %s1456_s19 = scalar_lea.vmem %s2038_s0, %s1253_s16  ;;  %v1463_v5 = vsub.s32 0, %v606_v1  ;;  %v1465_v6 = vsub.s32 3, %v606_v1  ;;  %s1753_s26 = scalar_lea.vmem %s2041_s3, %s1253_s16 }
  0x13   : > { %v1459_v2 = vld [vmem:[%s1456_s19] sm:$0xff]   ;;  %v1347_v3 = vld [vmem:[%s1456_s19 + $0x8] sm:$0xff]   ;;  %v1348_v4 = vld [vmem:[%s1456_s19 + $0x10] sm:$0xff]  }
  0x14   : > { %v2043_v7 = vunpack.c.l.bf16 %v1459_v2  ;;  %v2042_v8 = vunpack.c.h.bf16 %v1459_v2  ;;  %v1469_v9 = vunpack.c.l.bf16 %v1347_v3  ;;  %v1471_v10 = vunpack.c.h.bf16 %v1347_v3  ;;  %v1349_v11 = vld [vmem:[%s1456_s19 + $0x18] sm:$0xff]   ;;  %v1350_v12 = vld [vmem:[%s1456_s19 + $0x20] sm:$0xff]   ;;  %v1351_v13 = vld [vmem:[%s1456_s19 + $0x28] sm:$0xff]  }
  0x15   : > { %v1476_v14 = vunpack.c.l.bf16 %v1348_v4  ;;  %v1478_v15 = vunpack.c.h.bf16 %v1348_v4  ;;  %v1480_v16 = vunpack.c.l.bf16 %v1349_v11  ;;  %v1482_v17 = vunpack.c.h.bf16 %v1349_v11  ;;  %v1352_v18 = vld [vmem:[%s1456_s19 + $0x30] sm:$0xff]   ;;  %v1353_v19 = vld [vmem:[%s1456_s19 + $0x38] sm:$0xff]   ;;  %v1354_v20 = vld [vmem:[%s1456_s19 + $0x40] sm:$0xff]  }
  0x16   : > { %v1487_v21 = vunpack.c.l.bf16 %v1350_v12  ;;  %v1489_v22 = vunpack.c.h.bf16 %v1350_v12  ;;  %v1491_v23 = vunpack.c.l.bf16 %v1351_v13  ;;  %v1493_v24 = vunpack.c.h.bf16 %v1351_v13  ;;  %v1355_v25 = vld [vmem:[%s1456_s19 + $0x48] sm:$0xff]   ;;  %v1356_v26 = vld [vmem:[%s1456_s19 + $0x50] sm:$0xff]   ;;  %v1357_v27 = vld [vmem:[%s1456_s19 + $0x58] sm:$0xff]  }
  0x17   : > { %2052 = vst [vmem:[#allocation2_spill] sm:$0xff] %v1480_v16  ;;  %2053 = vst [vmem:[#allocation3_spill] sm:$0xff] %v1482_v17  ;;  %v1498_v28 = vunpack.c.l.bf16 %v1352_v18  ;;  %v1500_v29 = vunpack.c.h.bf16 %v1352_v18  ;;  %v1502_v30 = vunpack.c.l.bf16 %v1353_v19  ;;  %v1504_v31 = vunpack.c.h.bf16 %v1353_v19  ;;  %v1358_v32 = vld [vmem:[%s1456_s19 + $0x60] sm:$0xff]   ;;  %v1359_v58 = vld [vmem:[%s1456_s19 + $0x68] sm:$0xff]  }
  0x18   : > { %2054 = vst [vmem:[#allocation4_spill] sm:$0xff] %v1487_v21  ;;  %2055 = vst [vmem:[#allocation5_spill] sm:$0xff] %v1489_v22  ;;  %v1507_v33 = vunpack.c.l.bf16 %v1354_v20  ;;  %v1509_v34 = vunpack.c.h.bf16 %v1354_v20  ;;  %v1511_v35 = vunpack.c.l.bf16 %v1355_v25  ;;  %v1513_v36 = vunpack.c.h.bf16 %v1355_v25 }
  0x19   : > { %2056 = vst [vmem:[#allocation6_spill] sm:$0xff] %v1491_v23  ;;  %2057 = vst [vmem:[#allocation7_spill] sm:$0xff] %v1493_v24  ;;  %v1515_v37 = vunpack.c.l.bf16 %v1356_v26  ;;  %v1517_v38 = vunpack.c.h.bf16 %v1356_v26  ;;  %v1519_v39 = vunpack.c.l.bf16 %v1357_v27  ;;  %v1521_v40 = vunpack.c.h.bf16 %v1357_v27 }
  0x1a   : > { %v1523_v41 = vunpack.c.l.bf16 %v1358_v32  ;;  %v1525_v42 = vunpack.c.h.bf16 %v1358_v32  ;;  %v370_v43 = vadd.f32 %v1469_v9, %v2043_v7  ;;  %v371_v44 = vadd.f32 %v1471_v10, %v2042_v8 }
  0x1b   : > { %2058 = vst [vmem:[#allocation8_spill] sm:$0xff] %v1519_v39  ;;  %2059 = vst [vmem:[#allocation9_spill] sm:$0xff] %v1521_v40  ;;  %v376_v45 = vadd.f32 %v1487_v21, %v1480_v16  ;;  %v377_v46 = vadd.f32 %v1489_v22, %v1482_v17  ;;  %v378_v47 = vadd.f32 %v1491_v23, %v1487_v21  ;;  %v1586_v11 = vunpack.c.l.bf16 %v1359_v58 }
  0x1c   : > { %v1541_v48 = vadd.f32 %v1498_v28, %v1491_v23  ;;  %v382_v49 = vadd.f32 %v1502_v30, %v1498_v28  ;;  %v383_v50 = vadd.f32 %v1504_v31, %v1500_v29  ;;  %v388_v51 = vadd.f32 %v1515_v37, %v1511_v35 }
  0x1d   : > { %v389_v52 = vadd.f32 %v1517_v38, %v1513_v36  ;;  %v396_v54 = vadd.f32 %v1476_v14, %v370_v43  ;;  %v397_v55 = vadd.f32 %v1478_v15, %v371_v44  ;;  %v1559_v56 = vadd.f32 %v1491_v23, %v376_v45 }
  0x1e   : > { %v1562_v57 = vadd.f32 %v1493_v24, %v377_v46  ;;  %v404_v59 = vadd.f32 %v1498_v28, %v378_v47  ;;  %v1567_v60 = vadd.f32 %v1507_v33, %v382_v49  ;;  %v1570_v61 = vadd.f32 %v1509_v34, %v383_v50  ;;  %v1360_v49 = vld [vmem:[%s1456_s19 + $0x70] sm:$0xff]  }
  0x1f   : > { %v1573_v62 = vadd.f32 %v1519_v39, %v388_v51  ;;  %v1576_v63 = vadd.f32 %v1521_v40, %v389_v52  ;;  %v422_v0 = vadd.f32 %v1559_v56, %v396_v54  ;;  %v1582_v3 = vrot.slane %v1554_v53, %v1463_v5 }
  0x20   : > { %v423_v1 = vadd.f32 %v1562_v57, %v397_v55  ;;  %v1588_v12 = vunpack.c.h.bf16 %v1359_v58  ;;  %v372_v13 = vadd.f32 %v1476_v14, %v1469_v9  ;;  %v373_v19 = vadd.f32 %v1478_v15, %v1471_v10 }
  0x21   : > { %v430_v4 = vadd.f32 %v1573_v62, %v1567_v60  ;;  %v431_v18 = vadd.f32 %v1576_v63, %v1570_v61  ;;  %v379_v20 = vadd.f32 %v1493_v24, %v1489_v22  ;;  %v384_v25 = vadd.f32 %v1507_v33, %v1502_v30 }
  0x22   : > { %v385_v27 = vadd.f32 %v1509_v34, %v1504_v31  ;;  %v390_v32 = vadd.f32 %v1519_v39, %v1515_v37  ;;  %v391_v43 = vadd.f32 %v1521_v40, %v1517_v38  ;;  %v398_v45 = vadd.f32 %v1480_v16, %v372_v13 }
  0x23   : > { %v438_v26 = vadd.f32 %v430_v4, %v422_v0  ;;  %v439_v44 = vadd.f32 %v431_v18, %v423_v1  ;;  %v399_v46 = vadd.f32 %v1482_v17, %v373_v19  ;;  %v405_v47 = vadd.f32 %v1500_v29, %v379_v20 }
  0x24   : > { %v410_v51 = vadd.f32 %v1511_v35, %v384_v25  ;;  %v411_v52 = vadd.f32 %v1513_v36, %v385_v27  ;;  %v416_v54 = vadd.f32 %v1523_v41, %v390_v32  ;;  %v417_v58 = vadd.f32 %v1525_v42, %v391_v43 }
  0x25   : > { %v446_v50 = vadd.f32 %v1523_v41, %v438_v26  ;;  %v1615_v55 = vadd.f32 %v1525_v42, %v439_v44  ;;  %v424_v0 = vadd.f32 %v404_v59, %v398_v45  ;;  %v425_v1 = vadd.f32 %v405_v47, %v399_v46 }
  0x26   : > { %v432_v18 = vadd.f32 %v416_v54, %v410_v51  ;;  %v1618_v19 = vunpack.c.l.bf16 %v1360_v49  ;;  %v433_v27 = vadd.f32 %v417_v58, %v411_v52  ;;  %v1623_v44 = vunpack.c.h.bf16 %v1360_v49 }
  0x27   : > { %v463_v4 = vrot.slane %v446_v50, 1  ;;  %v492_v13 = vrot.slane %v446_v50, 2  ;;  %v464_v20 = vrot.slane %v1615_v55, 1  ;;  %v493_v25 = vrot.slane %v1615_v55, 2 }
  0x28   : > { %v440_v32 = vadd.f32 %v432_v18, %v424_v0  ;;  %v374_v43 = vadd.f32 %v1480_v16, %v1476_v14  ;;  %v375_v59 = vadd.f32 %v1482_v17, %v1478_v15  ;;  %v441_v51 = vadd.f32 %v433_v27, %v425_v1 }
  0x29   : > { %v465_v45 = vsel %vm462_vm0, %v463_v4, %v464_v20  ;;  %v484_v46 = vadd.f32 %v464_v20, %v1615_v55  ;;  %v494_v47 = vsel %vm491_vm1, %v492_v13, %v493_v25  ;;  %v381_v49 = vadd.f32 %v1500_v29, %v1493_v24 }
  0x2a   : > { %v483_v54 = vadd.f32 %v465_v45, %v446_v50  ;;  %v448_v52 = vadd.f32 %v1586_v11, %v440_v32  ;;  %v386_v58 = vadd.f32 %v1511_v35, %v1507_v33  ;;  %v1638_v18 = vadd.f32 %v1588_v12, %v441_v51 }
  0x2b   : > { %v513_v0 = vadd.f32 %v493_v25, %v484_v46  ;;  %v387_v4 = vadd.f32 %v1513_v36, %v1509_v34  ;;  %v392_v1 = vadd.f32 %v1523_v41, %v1519_v39  ;;  %v393_v27 = vadd.f32 %v1525_v42, %v1521_v40 }
  0x2c   : > { %v512_v50 = vadd.f32 %v494_v47, %v483_v54  ;;  %v466_v13 = vrot.slane %v448_v52, 1  ;;  %v495_v20 = vrot.slane %v448_v52, 2  ;;  %v467_v45 = vrot.slane %v1638_v18, 1 }
  0x2d   : > { %v530_v32 = vrot.slane %v513_v0, 3  ;;  %v496_v25 = vrot.slane %v1638_v18, 2  ;;  %v400_v8 = vadd.f32 %v1487_v21, %v374_v43  ;;  %v401_v7 = vadd.f32 %v1489_v22, %v375_v59  ;;  %v1660_v43 = vld [vmem:[%s1456_s19 + $0x78] sm:$0xff]  }
  0x2e   : > { %v529_v51 = vrot.slane %v512_v50, 3  ;;  %v406_v47 = vadd.f32 %v1502_v30, %v1541_v48  ;;  %v468_v26 = vsel %vm462_vm0, %v466_v13, %v467_v45  ;;  %v486_v40 = vadd.f32 %v467_v45, %v1638_v18 }
  0x2f   : > { %v550_v54 = vadd.f32 %v530_v32, %v513_v0  ;;  %v497_v39 = vsel %vm491_vm1, %v495_v20, %v496_v25  ;;  %v485_v23 = vadd.f32 %v468_v26, %v448_v52  ;;  %v407_v46 = vadd.f32 %v1504_v31, %v381_v49 }
  0x30   : > { %v531_v24 = vsel %vm528_vm2, %v529_v51, %v530_v32  ;;  %v412_v17 = vadd.f32 %v1515_v37, %v386_v58  ;;  %v515_v21 = vadd.f32 %v496_v25, %v486_v40  ;;  %v413_v48 = vadd.f32 %v1517_v38, %v387_v4 }
  0x31   : > { %v549_v59 = vadd.f32 %v531_v24, %v512_v50  ;;  %v567_v22 = vrot.slane %v550_v54, 6  ;;  %v514_v0 = vadd.f32 %v497_v39, %v485_v23  ;;  %v418_v13 = vadd.f32 %v1586_v11, %v392_v1 }
  0x32   : > { %v419_v45 = vadd.f32 %v1588_v12, %v393_v27  ;;  %v426_v20 = vadd.f32 %v406_v47, %v400_v8  ;;  %v533_v32 = vrot.slane %v515_v21, 3  ;;  %v427_v26 = vadd.f32 %v407_v46, %v401_v7 }
  0x33   : > { %v566_v16 = vrot.slane %v549_v59, 6  ;;  %v1345_v52 = vunpack.c.l.bf16 %v1660_v43  ;;  %v532_v49 = vrot.slane %v514_v0, 3  ;;  %v434_v58 = vadd.f32 %v418_v13, %v412_v17 }
  0x34   : > { %v435_v51 = vadd.f32 %v419_v45, %v413_v48  ;;  %v1346_v24 = vunpack.c.h.bf16 %v1660_v43  ;;  %v552_v50 = vadd.f32 %v533_v32, %v515_v21  ;;  %v394_v23 = vadd.f32 %v1586_v11, %v1523_v41 }
  0x35   : > { %v568_v40 = vsel %vm565_vm3, %v566_v16, %v567_v22  ;;  %v395_v39 = vadd.f32 %v1588_v12, %v1525_v42  ;;  %v534_v4 = vsel %vm528_vm2, %v532_v49, %v533_v32  ;;  %v442_v7 = vadd.f32 %v434_v58, %v426_v20  ;;  %v1704_v58 = vld [vmem:[%s2040_s2] ss:$0 sm:$0xff] }
  0x36   : > { %v582_v8 = vadd.f32 %v568_v40, %v549_v59  ;;  %v443_v1 = vadd.f32 %v435_v51, %v427_v26  ;;  %v551_v27 = vadd.f32 %v534_v4, %v514_v0  ;;  %v570_v25 = vrot.slane %v552_v50, 6 }
  0x37   : > { %v420_v17 = vadd.f32 %v1618_v19, %v394_v23  ;;  %v421_v46 = vadd.f32 %v1623_v44, %v395_v39  ;;  %v2060_v16 = vrot.slane %v1615_v55, 4  ;;  %v450_v22 = vadd.f32 %v1618_v19, %v442_v7 }
  0x38   : > { %v1679_v47 = vadd.f32 %v1623_v44, %v443_v1  ;;  %v428_v54 = vadd.f32 %v1567_v60, %v1559_v56  ;;  %v569_v59 = vrot.slane %v551_v27, 6  ;;  %v429_v48 = vadd.f32 %v1570_v61, %v1562_v57 }
  0x39   : > { %v594_v21 = vadd.f32 %v2060_v16, %v582_v8  ;;  %v436_v0 = vadd.f32 %v420_v17, %v1573_v62  ;;  %v437_v13 = vadd.f32 %v421_v46, %v1576_v63  ;;  %v469_v55 = vrot.slane %v450_v22, 1 }
  0x3a   : > { %v470_v20 = vrot.slane %v1679_v47, 1  ;;  %v498_v32 = vrot.slane %v450_v22, 2  ;;  %v571_v26 = vsel %vm565_vm3, %v569_v59, %v570_v25  ;;  %v499_v49 = vrot.slane %v1679_v47, 2 }
  0x3b   : > { %v1687_v45 = vmul.f32 0.00591716, %v594_v21  ;;  %v588_v56 = vrot.slane %v1679_v47, 4  ;;  %v444_v60 = vadd.f32 %v436_v0, %v428_v54  ;;  %v583_v62 = vadd.f32 %v571_v26, %v551_v27 }
  0x3c   : > { %v471_v63 = vsel %vm462_vm0, %v469_v55, %v470_v20  ;;  %v488_v40 = vadd.f32 %v470_v20, %v1679_v47  ;;  %v500_v50 = vsel %vm491_vm1, %v498_v32, %v499_v49  ;;  %v445_v23 = vadd.f32 %v437_v13, %v429_v48 }
  0x3d   : > { %v1695_v57 = vmul.f32 %v1582_v3, %v1687_v45  ;;  %v1698_v61 = vrot.slane %v1687_v45, 2  ;;  %v487_v51 = vadd.f32 %v471_v63, %v450_v22  ;;  %v2061_v4 = vrot.slane %v1638_v18, 4 }
  0x3e   : > { %v452_v1 = vadd.f32 %v1345_v52, %v444_v60  ;;  %v517_v25 = vadd.f32 %v499_v49, %v488_v40  ;;  %v1718_v17 = vadd.f32 %v1346_v24, %v445_v23  ;;  %v1722_v46 = vmul.f32 %v1554_v53, %v1687_v45 }
  0x3f   : > { %v626_v39 = vsub.f32 %v1498_v28, %v1698_v61  ;;  %v627_v8 = vsub.f32 %v1500_v29, %v1698_v61  ;;  %v595_v7 = vadd.f32 %v2061_v4, %v583_v62  ;;  %v516_v27 = vadd.f32 %v500_v50, %v487_v51 }
  0x40   : > { %v472_v22 = vrot.slane %v452_v1, 1  ;;  %v536_v59 = vrot.slane %v517_v25, 3  ;;  %v473_v48 = vrot.slane %v1718_v17, 1  ;;  %v501_v0 = vrot.slane %v452_v1, 2 }
  0x41   : > { %v640_v16 = vmul.f32 %v1704_v58, %v626_v39  ;;  %v641_v21 = vmul.f32 %v1704_v58, %v627_v8  ;;  %v1726_v18 = vmul.f32 0.00591716, %v595_v7  ;;  %v535_v54 = vrot.slane %v516_v27, 3 }
  0x42   : > { %v554_v49 = vadd.f32 %v536_v59, %v517_v25  ;;  %v474_v60 = vsel %vm462_vm0, %v472_v22, %v473_v48  ;;  %v490_v62 = vadd.f32 %v473_v48, %v1718_v17  ;;  %v502_v4 = vrot.slane %v1718_v17, 2 }
  0x43   : > { %v656_v13 = vrot.slane %v640_v16, 6  ;;  %v657_v55 = vrot.slane %v641_v21, 6  ;;  %v1731_v20 = vmul.f32 %v1582_v3, %v1726_v18  ;;  %v619_v32 = vrot.slane %v1726_v18, 2 }
  0x44   : > { %v537_v26 = vsel %vm528_vm2, %v535_v54, %v536_v59  ;;  %v573_v39 = vrot.slane %v554_v49, 6  ;;  %v489_v8 = vadd.f32 %v474_v60, %v452_v1  ;;  %v589_v21 = vrot.slane %v1718_v17, 4 }
  0x45   : > { %v658_v63 = vsel %vm565_vm3, %v656_v13, %v657_v55  ;;  %v628_v51 = vsub.f32 %v1502_v30, %v619_v32  ;;  %v629_v40 = vsub.f32 %v1504_v31, %v619_v32  ;;  %v553_v50 = vadd.f32 %v537_v26, %v516_v27 }
  0x46   : > { %v672_v23 = vadd.f32 %v658_v63, %v1695_v57  ;;  %v503_v54 = vsel %vm491_vm1, %v501_v0, %v502_v4  ;;  %v519_v59 = vadd.f32 %v502_v4, %v490_v62  ;;  %v726_v27 = vrot.slane %v1687_v45, %v1463_v5 }
  0x47   : > { %v642_v7 = vmul.f32 %v1704_v58, %v628_v51  ;;  %v643_v25 = vmul.f32 %v1704_v58, %v629_v40  ;;  %v572_v16 = vrot.slane %v553_v50, 6  ;;  %v518_v17 = vadd.f32 %v503_v54, %v489_v8 }
  0x48   : > { %v1255_v22 = vpack.c.bf16 %v672_v23, %v672_v23  ;;  %v539_v0 = vrot.slane %v519_v59, 3  ;;  %v739_v26 = vsub.f32 %v1498_v28, %v726_v27  ;;  %v750_v62 = vrot.slane %v1722_v46, %v1463_v5 }
  0x49   : > { %v659_v1 = vrot.slane %v642_v7, 6  ;;  %v660_v48 = vrot.slane %v643_v25, 6  ;;  %v574_v13 = vsel %vm565_vm3, %v572_v16, %v573_v39  ;;  %v538_v60 = vrot.slane %v518_v17, 3 }
  0x4a   : > { %v692_v55 = vrot.slane %v1255_v22, 5  ;;  %v584_v32 = vadd.f32 %v574_v13, %v553_v50  ;;  %v1762_v63 = vsel %vm491_vm1, %v726_v27, %v1698_v61  ;;  %v556_v23 = vadd.f32 %v539_v0, %v519_v59 }
  0x4b   : > { %v661_v49 = vsel %vm565_vm3, %v659_v1, %v660_v48  ;;  %v540_v28 = vsel %vm528_vm2, %v538_v60, %v539_v0  ;;  %v743_v39 = vmul.f32 %v1704_v58, %v739_v26  ;;  %v720_v46 = vmul.f32 %v1554_v53, %v1726_v18 }
  0x4c   : > { %1199 = vst.msk [vmem:[%s1753_s26 + $0x30] sm:$0x8] %vm709_vm4, %v692_v55  ;;  %v693_v51 = vrot.slane %v692_v55, 4  ;;  %v673_v40 = vadd.f32 %v661_v49, %v1731_v20  ;;  %v596_v50 = vadd.f32 %v588_v56, %v584_v32  ;;  %v730_v8 = vrot.slane %v1726_v18, %v1463_v5 }
  0x4d   : > { %v555_v25 = vadd.f32 %v540_v28, %v518_v17  ;;  %v576_v16 = vrot.slane %v556_v23, 6  ;;  %v763_v47 = vadd.f32 %v750_v62, %v743_v39  ;;  %v754_v22 = vrot.slane %v720_v46, %v1463_v5 }
  0x4e   : > { %1200 = vst.msk [vmem:[%s1753_s26 + $0x34] sm:$0x1] %vm711_vm5, %v693_v51  ;;  %v1256_v4 = vpack.c.bf16 %v673_v40, %v673_v40  ;;  %v600_v7 = vmul.f32 0.00591716, %v596_v50  ;;  %v740_v56 = vsub.f32 %v1502_v30, %v730_v8  ;;  %v779_v54 = vrot.slane %v1687_v45, %v1465_v6 }
  0x4f   : > { %v575_v48 = vrot.slane %v555_v25, 6  ;;  %v767_v13 = vpack.c.bf16 %v763_v47, %v763_v47  ;;  %v803_v28 = vrot.slane %v1695_v57, %v1465_v6  ;;  %v783_v47 = vrot.slane %v1726_v18, %v1465_v6 }
  0x50   : > { %v694_v59 = vrot.slane %v1256_v4, 5  ;;  %v1782_v27 = vmul.f32 %v1582_v3, %v600_v7  ;;  %v620_v1 = vrot.slane %v600_v7, 2  ;;  %v744_v17 = vmul.f32 %v1704_v58, %v740_v56 }
  0x51   : > { %v721_v55 = vmul.f32 %v1554_v53, %v600_v7  ;;  %v734_v30 = vrot.slane %v600_v7, %v1463_v5  ;;  %v577_v26 = vsel %vm565_vm3, %v575_v48, %v576_v16  ;;  %1207 = vst.msk [vmem:[%s1753_s26 + $0x30] sm:$0x7] %vm771_vm6, %v767_v13  ;;  %v792_v23 = vsub.f32 %v1500_v29, %v779_v54 }
  0x52   : > { %1201 = vst.msk [vmem:[%s1753_s26 + $0x38] sm:$0x8] %vm709_vm4, %v694_v59  ;;  %v695_v32 = vrot.slane %v694_v59, 4  ;;  %v630_v45 = vsub.f32 %v1507_v33, %v620_v1  ;;  %v631_v0 = vsub.f32 %v1509_v34, %v620_v1  ;;  %v585_v49 = vadd.f32 %v577_v26, %v555_v25 }
  0x53   : > { %v764_v60 = vadd.f32 %v754_v22, %v744_v17  ;;  %v741_v62 = vsub.f32 %v1507_v33, %v734_v30  ;;  %v758_v51 = vrot.slane %v721_v55, %v1463_v5  ;;  %v1806_v33 = vsel %vm565_vm3, %v1698_v61, %v779_v54 }
  0x54   : > { %1202 = vst.msk [vmem:[%s1753_s26 + $0x3c] sm:$0x1] %vm711_vm5, %v695_v32  ;;  %v644_v40 = vmul.f32 %v1704_v58, %v630_v45  ;;  %v645_v50 = vmul.f32 %v1704_v58, %v631_v0  ;;  %v597_v39 = vadd.f32 %v589_v21, %v585_v49  ;;  %v796_v16 = vmul.f32 %v1704_v58, %v792_v23 }
  0x55   : > { %v768_v46 = vpack.c.bf16 %v764_v60, %v764_v60  ;;  %v745_v8 = vmul.f32 %v1704_v58, %v741_v62  ;;  %v807_v57 = vrot.slane %v1731_v20, %v1465_v6  ;;  %v787_v21 = vrot.slane %v600_v7, %v1465_v6 }
  0x56   : > { %v662_v4 = vrot.slane %v644_v40, 6  ;;  %v663_v25 = vrot.slane %v645_v50, 6  ;;  %v601_v56 = vmul.f32 0.00591716, %v597_v39  ;;  %v816_v22 = vadd.f32 %v803_v28, %v796_v16 }
  0x57   : > { %1208 = vst.msk [vmem:[%s1753_s26 + $0x38] sm:$0x7] %vm771_vm6, %v768_v46  ;;  %v765_v29 = vadd.f32 %v758_v51, %v745_v8  ;;  %v793_v54 = vsub.f32 %v1504_v31, %v783_v47  ;;  %v811_v59 = vrot.slane %v1782_v27, %v1465_v6  ;;  %v2062_v47 = vunpack.c.l.bf16 %v1459_v2 }
  0x58   : > { %v664_v61 = vsel %vm565_vm3, %v662_v4, %v663_v25  ;;  %v613_v1 = vmul.f32 %v1582_v3, %v601_v56  ;;  %v621_v48 = vrot.slane %v601_v56, 2  ;;  %v722_v20 = vmul.f32 %v1554_v53, %v601_v56 }
  0x59   : > { %v674_v18 = vadd.f32 %v664_v61, %v1782_v27  ;;  %v769_v13 = vpack.c.bf16 %v765_v29, %v765_v29  ;;  %v738_v7 = vrot.slane %v601_v56, %v1463_v5  ;;  %v820_v17 = vpack.c.bf16 %v816_v22, %v816_v22 }
  0x5a   : > { %v797_v55 = vmul.f32 %v1704_v58, %v793_v54  ;;  %v632_v31 = vsub.f32 %v1511_v35, %v621_v48  ;;  %v633_v32 = vsub.f32 %v1513_v36, %v621_v48  ;;  %v794_v27 = vsub.f32 %v1509_v34, %v787_v21 }
  0x5b   : > { %v1257_v30 = vpack.c.bf16 %v674_v18, %v674_v18  ;;  %1209 = vst.msk [vmem:[%s1753_s26 + $0x40] sm:$0x7] %vm771_vm6, %v769_v13  ;;  %v742_v45 = vsub.f32 %v1511_v35, %v738_v7  ;;  %v762_v0 = vrot.slane %v722_v20, %v1463_v5  ;;  %v1833_v53 = vsel %vm491_vm1, %v738_v7, %v621_v48 }
  0x5c   : > { %1211 = vst.msk [vmem:[%s1753_s26 + $0x34] sm:$0xe] %vm824_vm7, %v820_v17  ;;  %v817_v26 = vadd.f32 %v807_v57, %v797_v55  ;;  %v646_v60 = vmul.f32 %v1704_v58, %v632_v31  ;;  %v647_v62 = vmul.f32 %v1704_v58, %v633_v32  ;;  %v798_v51 = vmul.f32 %v1704_v58, %v794_v27 }
  0x5d   : > { %v696_v49 = vrot.slane %v1257_v30, 5  ;;  %v746_v34 = vmul.f32 %v1704_v58, %v742_v45  ;;  %v791_v5 = vrot.slane %v601_v56, %v1465_v6  ;;  %v815_v40 = vrot.slane %v613_v1, %v1465_v6 }
  0x5e   : > { %v821_v35 = vpack.c.bf16 %v817_v26, %v817_v26  ;;  %v665_v23 = vrot.slane %v646_v60, 6  ;;  %v666_v28 = vrot.slane %v647_v62, 6  ;;  %v818_v39 = vadd.f32 %v811_v59, %v798_v51  ;;  %v2064_v60 = vld [vmem:[#allocation2_spill] sm:$0xff] }
  0x5f   : > { %1203 = vst.msk [vmem:[%s1753_s26 + $0x40] sm:$0x8] %vm709_vm4, %v696_v49  ;;  %v697_v50 = vrot.slane %v696_v49, 4  ;;  %v766_v46 = vadd.f32 %v762_v0, %v746_v34  ;;  %v795_v8 = vsub.f32 %v1513_v36, %v791_v5  ;;  %v1849_v4 = vsel %vm565_vm3, %v621_v48, %v791_v5  ;;  %v2065_v5 = vld [vmem:[#allocation3_spill] sm:$0xff] }
  0x60   : > { %1212 = vst.msk [vmem:[%s1753_s26 + $0x3c] sm:$0xe] %vm824_vm7, %v821_v35  ;;  %v1853_v25 = vmul.f32 %v1762_v63, %v1582_v3  ;;  %v667_v6 = vsel %vm565_vm3, %v665_v23, %v666_v28  ;;  %v822_v16 = vpack.c.bf16 %v818_v39, %v818_v39  ;;  %v833_v56 = vsub.f32 %v2062_v47, %v1762_v63  ;;  %v2066_v28 = vld [vmem:[#allocation4_spill] sm:$0xff] }
  0x61   : > { %1204 = vst.msk [vmem:[%s1753_s26 + $0x44] sm:$0x1] %vm711_vm5, %v697_v50  ;;  %v1863_v36 = vmul.f32 %v1806_v33, %v1582_v3  ;;  %v675_v29 = vadd.f32 %v667_v6, %v613_v1  ;;  %v770_v57 = vpack.c.bf16 %v766_v46, %v766_v46  ;;  %v799_v21 = vmul.f32 %v1704_v58, %v795_v8  ;;  %v2067_v46 = vld [vmem:[#allocation5_spill] sm:$0xff] }
  0x62   : > { %v2063_v61 = vunpack.c.h.bf16 %v1459_v2  ;;  %1213 = vst.msk [vmem:[%s1753_s26 + $0x44] sm:$0xe] %vm824_vm7, %v822_v16  ;;  %v845_v54 = vmul.f32 %v1704_v58, %v833_v56  ;;  %v835_v59 = vsub.f32 %v1469_v9, %v1762_v63  ;;  %v836_v18 = vsub.f32 %v1471_v10, %v1806_v33  ;;  %v2068_v16 = vld [vmem:[#allocation6_spill] sm:$0xff]  ;;  %v2069_v56 = vld [vmem:[#allocation7_spill] sm:$0xff] }
  0x63   : > { %v837_v1 = vsub.f32 %v1476_v14, %v1762_v63  ;;  %v1258_v48 = vpack.c.bf16 %v675_v29, %v675_v29  ;;  %1210 = vst.msk [vmem:[%s1753_s26 + $0x48] sm:$0x7] %vm771_vm6, %v770_v57  ;;  %v819_v13 = vadd.f32 %v815_v40, %v799_v21  ;;  %v838_v20 = vsub.f32 %v1478_v15, %v1806_v33 }
  0x64   : > { %v834_v22 = vsub.f32 %v2063_v61, %v1806_v33  ;;  %v857_v7 = vadd.f32 %v845_v54, %v1853_v25  ;;  %v847_v9 = vmul.f32 %v1704_v58, %v835_v59  ;;  %v848_v10 = vmul.f32 %v1704_v58, %v836_v18 }
  0x65   : > { %v849_v14 = vmul.f32 %v1704_v58, %v837_v1  ;;  %v698_v17 = vrot.slane %v1258_v48, 5  ;;  %v823_v55 = vpack.c.bf16 %v819_v13, %v819_v13  ;;  %v850_v31 = vmul.f32 %v1704_v58, %v838_v20 }
  0x66   : > { %v846_v2 = vmul.f32 %v1704_v58, %v834_v22  ;;  %v1259_v32 = vpack.c.bf16 %v857_v7, %v857_v7  ;;  %v859_v15 = vadd.f32 %v847_v9, %v1853_v25  ;;  %v860_v27 = vadd.f32 %v848_v10, %v1863_v36 }
  0x67   : > { %v861_v45 = vadd.f32 %v849_v14, %v1853_v25  ;;  %1205 = vst.msk [vmem:[%s1753_s26 + $0x48] sm:$0x8] %vm709_vm4, %v698_v17  ;;  %v699_v0 = vrot.slane %v698_v17, 4  ;;  %v862_v49 = vadd.f32 %v850_v31, %v1863_v36  ;;  %v839_v62 = vsub.f32 %v2064_v60, %v1762_v63  ;;  %v2070_v17 = vld [vmem:[#allocation8_spill] sm:$0xff] }
  0x68   : > { %v858_v30 = vadd.f32 %v846_v2, %v1863_v36  ;;  %1214 = vst.msk [vmem:[%s1753_s26 + $0x4c] sm:$0xe] %vm824_vm7, %v823_v55  ;;  %v1261_v51 = vpack.c.bf16 %v859_v15, %v859_v15  ;;  %v1262_v34 = vpack.c.bf16 %v860_v27, %v860_v27  ;;  %v840_v40 = vsub.f32 %v2065_v5, %v1806_v33 }
  0x69   : > { %918 = vst.msk [vmem:[%s1753_s26] sm:$0xf] %vm917_vm8, %v1259_v32  ;;  %v1263_v35 = vpack.c.bf16 %v861_v45, %v861_v45  ;;  %v1264_v50 = vpack.c.bf16 %v862_v49, %v862_v49  ;;  %v851_v23 = vmul.f32 %v1704_v58, %v839_v62  ;;  %v841_v39 = vsub.f32 %v2066_v28, %v1762_v63 }
  0x6a   : > { %v1260_v26 = vpack.c.bf16 %v858_v30, %v858_v30  ;;  %1206 = vst.msk [vmem:[%s1753_s26 + $0x4c] sm:$0x1] %vm711_vm5, %v699_v0  ;;  %v842_v8 = vsub.f32 %v2067_v46, %v1806_v33  ;;  %v852_v6 = vmul.f32 %v1704_v58, %v840_v40  ;;  %v843_v47 = vsub.f32 %v2068_v16, %v1762_v63 }
  0x6b   : > { %920 = vst.msk [vmem:[%s1753_s26 + $0x8] sm:$0xf] %vm917_vm8, %v1261_v51  ;;  %921 = vst.msk [vmem:[%s1753_s26 + $0xc] sm:$0xf] %vm917_vm8, %v1262_v34  ;;  %v844_v29 = vsub.f32 %v2069_v56, %v1806_v33  ;;  %v1925_v57 = vmul.f32 %v1833_v53, %v1582_v3  ;;  %v863_v21 = vadd.f32 %v851_v23, %v1853_v25 }
  0x6c   : > { %919 = vst.msk [vmem:[%s1753_s26 + $0x4] sm:$0xf] %vm917_vm8, %v1260_v26  ;;  %922 = vst.msk [vmem:[%s1753_s26 + $0x10] sm:$0xf] %vm917_vm8, %v1263_v35  ;;  %v853_v61 = vmul.f32 %v1704_v58, %v841_v39  ;;  %v854_v22 = vmul.f32 %v1704_v58, %v842_v8  ;;  %v934_v54 = vsub.f32 %v1515_v37, %v1833_v53 }
  0x6d   : > { %923 = vst.msk [vmem:[%s1753_s26 + $0x14] sm:$0xf] %vm917_vm8, %v1264_v50  ;;  %v864_v63 = vadd.f32 %v852_v6, %v1863_v36  ;;  %v855_v33 = vmul.f32 %v1704_v58, %v843_v47  ;;  %v856_v59 = vmul.f32 %v1704_v58, %v844_v29  ;;  %v1939_v18 = vmul.f32 %v1849_v4, %v1582_v3 }
  0x6e   : > { %v1265_v1 = vpack.c.bf16 %v863_v21, %v863_v21  ;;  %v865_v48 = vadd.f32 %v853_v61, %v1853_v25  ;;  %v866_v13 = vadd.f32 %v854_v22, %v1863_v36  ;;  %v946_v2 = vmul.f32 %v1704_v58, %v934_v54 }
  0x6f   : > { %v1266_v37 = vpack.c.bf16 %v864_v63, %v864_v63  ;;  %v867_v20 = vadd.f32 %v855_v33, %v1853_v25  ;;  %v868_v7 = vadd.f32 %v856_v59, %v1863_v36  ;;  %v935_v9 = vsub.f32 %v1517_v38, %v1849_v4  ;;  %v2071_v38 = vld [vmem:[#allocation9_spill] sm:$0xff] }
  0x70   : > { %924 = vst.msk [vmem:[%s1753_s26 + $0x18] sm:$0xf] %vm917_vm8, %v1265_v1  ;;  %v1267_v3 = vpack.c.bf16 %v865_v48, %v865_v48  ;;  %v1268_v10 = vpack.c.bf16 %v866_v13, %v866_v13  ;;  %v958_v14 = vadd.f32 %v946_v2, %v1925_v57  ;;  %v936_v55 = vsub.f32 %v2070_v17, %v1833_v53 }
  0x71   : > { %925 = vst.msk [vmem:[%s1753_s26 + $0x1c] sm:$0xf] %vm917_vm8, %v1266_v37  ;;  %v1269_v30 = vpack.c.bf16 %v867_v20, %v867_v20  ;;  %v1270_v25 = vpack.c.bf16 %v868_v7, %v868_v7  ;;  %v947_v36 = vmul.f32 %v1704_v58, %v935_v9  ;;  %v937_v31 = vsub.f32 %v2071_v38, %v1849_v4 }
  0x72   : > { %926 = vst.msk [vmem:[%s1753_s26 + $0x20] sm:$0xf] %vm917_vm8, %v1267_v3  ;;  %927 = vst.msk [vmem:[%s1753_s26 + $0x24] sm:$0xf] %vm917_vm8, %v1268_v10  ;;  %v1271_v32 = vpack.c.bf16 %v958_v14, %v958_v14  ;;  %v948_v15 = vmul.f32 %v1704_v58, %v936_v55  ;;  %v938_v27 = vsub.f32 %v1523_v41, %v1833_v53 }
  0x73   : > { %v939_v45 = vsub.f32 %v1525_v42, %v1849_v4  ;;  %928 = vst.msk [vmem:[%s1753_s26 + $0x28] sm:$0xf] %vm917_vm8, %v1269_v30  ;;  %929 = vst.msk [vmem:[%s1753_s26 + $0x2c] sm:$0xf] %vm917_vm8, %v1270_v25  ;;  %v959_v0 = vadd.f32 %v947_v36, %v1939_v18  ;;  %v949_v26 = vmul.f32 %v1704_v58, %v937_v31 }
  0x74   : > { %v940_v49 = vsub.f32 %v1586_v11, %v1833_v53  ;;  %v941_v60 = vsub.f32 %v1588_v12, %v1849_v4  ;;  %1239 = vst.msk [vmem:[%s1753_s26 + $0x50] sm:$0xf] %vm917_vm8, %v1271_v32  ;;  %v960_v41 = vadd.f32 %v948_v15, %v1925_v57  ;;  %v950_v42 = vmul.f32 %v1704_v58, %v938_v27 }
  0x75   : > { %v951_v62 = vmul.f32 %v1704_v58, %v939_v45  ;;  %v942_v51 = vsub.f32 %v1618_v19, %v1833_v53  ;;  %v1272_v34 = vpack.c.bf16 %v959_v0, %v959_v0  ;;  %v961_v35 = vadd.f32 %v949_v26, %v1939_v18 }
  0x76   : > { %v952_v11 = vmul.f32 %v1704_v58, %v940_v49  ;;  %v953_v12 = vmul.f32 %v1704_v58, %v941_v60  ;;  %v1273_v5 = vpack.c.bf16 %v960_v41, %v960_v41  ;;  %v962_v40 = vadd.f32 %v950_v42, %v1925_v57 }
  0x77   : > { %v963_v50 = vadd.f32 %v951_v62, %v1939_v18  ;;  %v954_v23 = vmul.f32 %v1704_v58, %v942_v51  ;;  %1240 = vst.msk [vmem:[%s1753_s26 + $0x54] sm:$0xf] %vm917_vm8, %v1272_v34  ;;  %v1274_v19 = vpack.c.bf16 %v961_v35, %v961_v35  ;;  %v943_v46 = vsub.f32 %v1623_v44, %v1849_v4 }
  0x78   : > { %v964_v28 = vadd.f32 %v952_v11, %v1925_v57  ;;  %v965_v39 = vadd.f32 %v953_v12, %v1939_v18  ;;  %1241 = vst.msk [vmem:[%s1753_s26 + $0x58] sm:$0xf] %vm917_vm8, %v1273_v5  ;;  %v1275_v8 = vpack.c.bf16 %v962_v40, %v962_v40  ;;  %v944_v47 = vsub.f32 %v1345_v52, %v1833_v53 }
  0x79   : > { %v1276_v6 = vpack.c.bf16 %v963_v50, %v963_v50  ;;  %v966_v16 = vadd.f32 %v954_v23, %v1925_v57  ;;  %1242 = vst.msk [vmem:[%s1753_s26 + $0x5c] sm:$0xf] %vm917_vm8, %v1274_v19  ;;  %v955_v21 = vmul.f32 %v1704_v58, %v943_v46  ;;  %v945_v44 = vsub.f32 %v1346_v24, %v1849_v4 }
  0x7a   : > { %v1277_v56 = vpack.c.bf16 %v964_v28, %v964_v28  ;;  %v1278_v29 = vpack.c.bf16 %v965_v39, %v965_v39  ;;  %1243 = vst.msk [vmem:[%s1753_s26 + $0x60] sm:$0xf] %vm917_vm8, %v1275_v8  ;;  %v956_v52 = vmul.f32 %v1704_v58, %v944_v47 }
  0x7b   : > { %1244 = vst.msk [vmem:[%s1753_s26 + $0x64] sm:$0xf] %vm917_vm8, %v1276_v6  ;;  %v1279_v61 = vpack.c.bf16 %v966_v16, %v966_v16  ;;  %v967_v53 = vadd.f32 %v955_v21, %v1939_v18  ;;  %v957_v22 = vmul.f32 %v1704_v58, %v945_v44 }
  0x7c   : > { %1245 = vst.msk [vmem:[%s1753_s26 + $0x68] sm:$0xf] %vm917_vm8, %v1277_v56  ;;  %1246 = vst.msk [vmem:[%s1753_s26 + $0x6c] sm:$0xf] %vm917_vm8, %v1278_v29  ;;  %v968_v43 = vadd.f32 %v956_v52, %v1925_v57 }
  0x7d   : > { %1247 = vst.msk [vmem:[%s1753_s26 + $0x70] sm:$0xf] %vm917_vm8, %v1279_v61  ;;  %v1280_v24 = vpack.c.bf16 %v967_v53, %v967_v53  ;;  %v969_v4 = vadd.f32 %v957_v22, %v1939_v18 }
  0x7e   : > { %v1281_v54 = vpack.c.bf16 %v968_v43, %v968_v43 }
  0x7f   : > { %1248 = vst.msk [vmem:[%s1753_s26 + $0x74] sm:$0xf] %vm917_vm8, %v1280_v24  ;;  %v1282_v63 = vpack.c.bf16 %v969_v4, %v969_v4 }
  0x80   : > { %1249 = vst.msk [vmem:[%s1753_s26 + $0x78] sm:$0xf] %vm917_vm8, %v1281_v54 }
  0x81   : > { %1250 = vst.msk [vmem:[%s1753_s26 + $0x7c] sm:$0xf] %vm917_vm8, %v1282_v63 }
  0x82 PF: > { %s13_s14 = sadd.s32 1, %s1408_s14   ;;  %s2072_s12 = smov %s1404_s13 }
  0x83   : > { %p10_p5 = scmp.ge.s32.totalorder %s13_s14, 4   ;;  %s2073_s13 = smov %s2075_s15 }
  0x85   :  { %12 = sbr.rel (!%p10_p5) target bundleno = 2 (0x2), region = 70 }

// kernel: resblock_forward.4
= control target key start
LH: loop header
LB: loop body
LE: loop exit
PB: predicated region body
PF: predicated region fallthrough
CT: control target
= control target key end

     0   :  { %s4386_s18 = smov 0   ;;  %s4388_s19 = smov 0   ;;  %s6587_s0 = inlined_call_operand.vmem [shape: f32[2,16,16,4], index: 0, kind: input, shape index: {}, may-alias: {0,1,2}]   ;;  %s6588_s1 = inlined_call_operand.vmem [shape: f32[2,16,16,4], index: 1, kind: input, shape index: {}, may-alias: {0,1,2}]   ;;  %s6589_s2 = inlined_call_operand.vmem [shape: f32[2,16,16,4], index: 2, kind: input, shape index: {}, may-alias: {0,1,2}]   ;;  %s6590_s3 = inlined_call_operand.vmem [shape: bf16[36,4], index: 3, kind: input, shape index: {}]   ;;  %s6591_s4 = inlined_call_operand.vmem [shape: f32[1,4], index: 4, kind: input, shape index: {}]   ;;  %s6592_s5 = inlined_call_operand.vmem [shape: bf16[2,16,16,4], index: 5, kind: output, shape index: {}]  }
   0x1   :  { %s4390_s20 = smov 0  }
   0x2 LB: > { %s27_s21 = sadd.s32 1, %s4342_s19  ;;  %p3354_p0 = scmp.ge.s32.totalorder %s4346_s20, 1  ;;  %s4346_s20 = sphi %s4390_s20, %s15_s20   ;;  %s4342_s19 = sphi %s4388_s19, %s6720_s19   ;;  %s4338_s18 = sphi %s4386_s18, %s6719_s18  }
   0x3   : > { %p29_p1 = scmp.ge.s32.totalorder %s27_s21, 2  ;;  %p273_p2 = scmp.lt.s32.totalorder %s4346_s20, 3 }
   0x5   : > { %s6722_s21 = smov (%p29_p1, %s27_s21), 0  ;;  %p274_p3 = pnand %p3354_p0, %p273_p2 }
   0x7   : > { %277 = sbr.rel (%p274_p3) target bundleno = 751 (0x2ef), region = 40 }
   0xe   : > { %p338_p4 = scmp.lt.s32.totalorder %s4338_s18, 1  ;;  %vm473_vm0 = vcmask 1040384   ;;  %vm648_vm1 = vcmask 1046528   ;;  %s4348_s26 = smov 4   ;;  %vm825_vm2 = vcmask 1045504   ;;  %vm1958_vm3 = vcmask 1041408  }
   0xf   : > { %s4349_s30 = smov 8   ;;  %s4350_s6 = smov 12   ;;  %vm1602_vm4 = vcmask 31744   ;;  %vm1635_vm5 = vcmask 64512   ;;  %vm1668_vm6 = vcmask 97280   ;;  %vm1701_vm7 = vcmask 130048  }
  0x10   : > { %s6724_s18 = smov (!%p338_p4, %s4338_s18), 1  ;;  %s4351_s7 = smov 16   ;;  %vm1734_vm8 = vcmask 162816   ;;  %vm1767_vm9 = vcmask 195584   ;;  %vm1800_vm10 = vcmask 228352   ;;  %vm1833_vm11 = vcmask 261120  }
  0x11   : > { %s4407_s22 = sshll.u32 %s6724_s18, 8  ;;  %s4352_s8 = smov 20   ;;  %vm1909_vm12 = vcmask 293888  }
  0x12   : > { %s4413_s25 = scalar_lea.vmem %s6587_s0, %s4407_s22  ;;  %s360_s29 = scalar_lea.vmem %s6588_s1, %s4407_s22 }
  0x13   : > { %v398_v0 = vld [vmem:[%s4413_s25 + $0x10] sm:$0xff]  ;;  %v399_v1 = vld [vmem:[%s4413_s25 + $0x18] sm:$0xff]  ;;  %v396_v2 = vld [vmem:[%s4413_s25] sm:$0xff]  ;;  %s4353_s9 = smov 24   ;;  %s4354_s14 = smov 28  }
  0x14   : > { %v480_v3 = vrot.slane %v398_v0, 7  ;;  %v481_v4 = vrot.slane %v399_v1, 7  ;;  %v397_v5 = vld [vmem:[%s4413_s25 + $0x8] sm:$0xff]  ;;  %v477_v6 = vrot.slane %v396_v2, 7  ;;  %v400_v7 = vld [vmem:[%s4413_s25 + $0x20] sm:$0xff]  ;;  %v402_v28 = vld [vmem:[%s4413_s25 + $0x30] sm:$0xff] }
  0x15   : > { %v401_v8 = vld [vmem:[%s4413_s25 + $0x28] sm:$0xff]  ;;  %v478_v9 = vrot.slane %v397_v5, 7  ;;  %v483_v10 = vrot.slane %v400_v7, 7  ;;  %v403_v33 = vld [vmem:[%s4413_s25 + $0x38] sm:$0xff]  ;;  %v404_v34 = vld [vmem:[%s4413_s25 + $0x40] sm:$0xff]  ;;  %v486_v44 = vrot.slane %v402_v28, 7 }
  0x16   : > { %v484_v11 = vrot.slane %v401_v8, 7  ;;  %v4422_v12 = vsel %vm473_vm0, %v480_v3, %v481_v4  ;;  %v4425_v13 = vsel %vm473_vm0, 0.0, %v480_v3  ;;  %v4428_v14 = vsel %vm473_vm0, %v481_v4, 0.0  ;;  %v405_v35 = vld [vmem:[%s4413_s25 + $0x48] sm:$0xff]  ;;  %v406_v40 = vld [vmem:[%s4413_s25 + $0x50] sm:$0xff]  ;;  %v407_v41 = vld [vmem:[%s4413_s25 + $0x58] sm:$0xff] }
  0x17   : > { %6634 = vst [vmem:[#allocation2_spill] sm:$0xff] %v4425_v13  ;;  %v4431_v15 = vsel %vm473_vm0, 0.0, %v477_v6  ;;  %v659_v16 = vrot.slane %v4425_v13, 1  ;;  %v660_v17 = vrot.slane %v4422_v12, 1  ;;  %v662_v18 = vrot.slane %v4428_v14, 1  ;;  %v408_v1 = vld [vmem:[%s4413_s25 + $0x60] sm:$0xff] }
  0x18   : > { %v4438_v20 = vsel %vm473_vm0, %v477_v6, %v478_v9  ;;  %v4441_v21 = vsel %vm473_vm0, %v478_v9, 0.0  ;;  %v654_v22 = vrot.slane %v4431_v15, 1  ;;  %v4445_v23 = vsel %vm473_vm0, %v483_v10, %v484_v11  ;;  %v409_v6 = vld [vmem:[%s4413_s25 + $0x68] sm:$0xff]  ;;  %v428_v7 = vld [vmem:[%s360_s29] sm:$0xff]  ;;  %s4355_s17 = smov 32   ;;  %s3420_s23 = sadd.s32 240, %s4407_s22 }
  0x19   : > { %6635 = vst [vmem:[#allocation3_spill] sm:$0xff] %v4445_v23  ;;  %v661_v24 = vsel %vm648_vm1, %v659_v16, %v660_v17  ;;  %v663_v25 = vsel %vm648_vm1, %v660_v17, %v662_v18  ;;  %v655_v26 = vrot.slane %v4438_v20, 1  ;;  %v657_v27 = vrot.slane %v4441_v21, 1  ;;  %v429_v8 = vld [vmem:[%s360_s29 + $0x8] sm:$0xff]  ;;  %v412_v17 = vld [vmem:[%s4413_s25 + $0x80] sm:$0xff]  ;;  %s377_s27 = scalar_lea.vmem %s6589_s2, %s3420_s23  ;;  %s3421_s28 = sshll.u32 %s6724_s18, 7 }
  0x1a   : > { %v4452_v29 = vpack.i.bf16 %v663_v25, %v661_v24  ;;  %v4456_v31 = vsel %vm473_vm0, 0.0, %v483_v10  ;;  %v4459_v32 = vsel %vm473_vm0, %v484_v11, 0.0  ;;  %v665_v39 = vrot.slane %v4445_v23, 1 }
  0x1b   : > { %6637 = vst [vmem:[#allocation5_spill] sm:$0xff] %v4456_v31  ;;  %v656_v36 = vsel %vm648_vm1, %v654_v22, %v655_v26  ;;  %v658_v37 = vsel %vm648_vm1, %v655_v26, %v657_v27  ;;  %v664_v38 = vrot.slane %v4456_v31, 1  ;;  %v667_v43 = vrot.slane %v4459_v32, 1 }
  0x1c   : > { %6636 = vst [vmem:[#allocation4_spill] sm:$0xff] %v4452_v29  ;;  %3558 = vrot.lane.b32.xlu1 %v4452_v29, %s4348_s26  ;;  %v4472_v42 = vpack.i.bf16 %v658_v37, %v656_v36  ;;  %v487_v46 = vrot.slane %v403_v33, 7  ;;  %v489_v47 = vrot.slane %v404_v34, 7  ;;  %v490_v48 = vrot.slane %v405_v35, 7  ;;  %v413_v37 = vld [vmem:[%s4413_s25 + $0x88] sm:$0xff] }
  0x1d   : > { %v666_v45 = vsel %vm648_vm1, %v664_v38, %v665_v39  ;;  %v668_v49 = vsel %vm648_vm1, %v665_v39, %v667_v43  ;;  %v4480_v50 = vsel %vm473_vm0, 0.0, %v486_v44  ;;  %v492_v51 = vrot.slane %v406_v40, 7  ;;  %v410_v39 = vld [vmem:[%s4413_s25 + $0x70] sm:$0xff]  ;;  %v411_v40 = vld [vmem:[%s4413_s25 + $0x78] sm:$0xff] }
  0x1e   : > { %6638 = vst [vmem:[#allocation6_spill] sm:$0xff] %v4472_v42  ;;  %3553 = vrot.lane.b32.xlu0 %v4472_v42, %s4348_s26  ;;  %v493_v52 = vrot.slane %v407_v41, 7  ;;  %v4482_v53 = vpack.i.bf16 %v668_v49, %v666_v45  ;;  %v4485_v54 = vsel %vm473_vm0, %v486_v44, %v487_v46  ;;  %v4488_v55 = vsel %vm473_vm0, %v487_v46, 0.0 }
  0x1f   : > { %v669_v56 = vrot.slane %v4480_v50, 1  ;;  %v670_v57 = vrot.slane %v4485_v54, 1  ;;  %v672_v58 = vrot.slane %v4488_v55, 1  ;;  %v4498_v59 = vsel %vm473_vm0, %v489_v47, %v490_v48 }
  0x20   : > { %6639 = vst [vmem:[#allocation7_spill] sm:$0xff] %v4482_v53  ;;  %v4501_v60 = vsel %vm473_vm0, 0.0, %v489_v47  ;;  %3563 = vrot.lane.b32.xlu1 %v4482_v53, %s4348_s26  ;;  %v4506_v61 = vsel %vm473_vm0, %v490_v48, 0.0  ;;  %v675_v63 = vrot.slane %v4498_v59, 1  ;;  %v4511_v0 = vsel %vm473_vm0, %v492_v51, %v493_v52 }
  0x21   : > { %v674_v62 = vrot.slane %v4501_v60, 1  ;;  %v671_v2 = vsel %vm648_vm1, %v669_v56, %v670_v57  ;;  %v673_v3 = vsel %vm648_vm1, %v670_v57, %v672_v58  ;;  %v677_v4 = vrot.slane %v4506_v61, 1 }
  0x22   : > { %v4518_v5 = vsel %vm473_vm0, 0.0, %v492_v51  ;;  %v4521_v9 = vpack.i.bf16 %v673_v3, %v671_v2  ;;  %v4525_v11 = vsel %vm473_vm0, %v493_v52, 0.0  ;;  %v680_v22 = vrot.slane %v4511_v0, 1 }
  0x23   : > { %v676_v10 = vsel %vm648_vm1, %v674_v62, %v675_v63  ;;  %v679_v16 = vrot.slane %v4518_v5, 1  ;;  %v678_v18 = vsel %vm648_vm1, %v675_v63, %v677_v4  ;;  %v682_v24 = vrot.slane %v4525_v11, 1 }
  0x24   : > { %6640 = vst [vmem:[#allocation8_spill] sm:$0xff] %v4521_v9  ;;  %v495_v25 = vrot.slane %v408_v1, 7  ;;  %3568 = vrot.lane.b32.xlu0 %v4521_v9, %s4348_s26  ;;  %v4534_v26 = vpack.i.bf16 %v678_v18, %v676_v10  ;;  %v496_v27 = vrot.slane %v409_v6, 7  ;;  %v433_v28 = vmul.f32 0.0, %v428_v7 }
  0x25   : > { %v434_v33 = vmul.f32 0.0, %v429_v8  ;;  %v681_v34 = vsel %vm648_vm1, %v679_v16, %v680_v22  ;;  %v683_v35 = vsel %vm648_vm1, %v680_v22, %v682_v24  ;;  %v501_v38 = vrot.slane %v412_v17, 7 }
  0x26   : > { %6641 = vst [vmem:[#allocation9_spill] sm:$0xff] %v4534_v26  ;;  %v4539_v36 = vsel %vm473_vm0, 0.0, %v495_v25  ;;  %3573 = vrot.lane.b32.xlu1 %v4534_v26, %s4348_s26  ;;  %v4546_v41 = vpack.i.bf16 %v683_v35, %v681_v34  ;;  %v4549_v43 = vsel %vm473_vm0, %v495_v25, %v496_v27  ;;  %v4552_v44 = vsel %vm473_vm0, %v496_v27, 0.0  ;;  %v416_v25 = vld [vmem:[%s4413_s25 + $0xa0] sm:$0xff]  ;;  %v417_v27 = vld [vmem:[%s4413_s25 + $0xa8] sm:$0xff] }
  0x27   : > { %v684_v45 = vrot.slane %v4539_v36, 1  ;;  %v685_v46 = vrot.slane %v4549_v43, 1  ;;  %v687_v47 = vrot.slane %v4552_v44, 1  ;;  %v474_v48 = vrot.slane %v433_v28, 7 }
  0x28   : > { %6642 = vst [vmem:[#allocation10_spill] sm:$0xff] %v4546_v41  ;;  %v475_v49 = vrot.slane %v434_v33, 7  ;;  %3578 = vrot.lane.b32.xlu0 %v4546_v41, %s4348_s26  ;;  %v502_v51 = vrot.slane %v413_v37, 7  ;;  %v4560_v52 = vsel %vm473_vm0, 0.0, %v501_v38  ;;  %v498_v56 = vrot.slane %v410_v39, 7  ;;  %v414_v37 = vld [vmem:[%s4413_s25 + $0x90] sm:$0xff] }
  0x29   : > { %v499_v57 = vrot.slane %v411_v40, 7  ;;  %v686_v58 = vsel %vm648_vm1, %v684_v45, %v685_v46  ;;  %v688_v62 = vsel %vm648_vm1, %v685_v46, %v687_v47  ;;  %v4568_v1 = vsel %vm473_vm0, 0.0, %v474_v48  ;;  %v420_v39 = vld [vmem:[%s4413_s25 + $0xc0] sm:$0xff]  ;;  %v422_v41 = vld [vmem:[%s4413_s25 + $0xd0] sm:$0xff] }
  0x2a   : > { %v4565_v63 = vsel %vm473_vm0, %v474_v48, %v475_v49  ;;  %6644 = vst [vmem:[#allocation12_spill] sm:$0xff] %v4568_v1  ;;  %v4570_v2 = vpack.i.bf16 %v688_v62, %v686_v58  ;;  %v4573_v3 = vsel %vm473_vm0, %v475_v49, 0.0  ;;  %v649_v4 = vrot.slane %v4568_v1, 1 }
  0x2b   : > { %6643 = vst [vmem:[#allocation11_spill] sm:$0xff] %v4565_v63  ;;  %v650_v6 = vrot.slane %v4565_v63, 1  ;;  %v652_v7 = vrot.slane %v4573_v3, 1  ;;  %v4579_v8 = vsel %vm473_vm0, %v501_v38, %v502_v51  ;;  %v4582_v10 = vsel %vm473_vm0, %v502_v51, 0.0  ;;  %v415_v38 = vld [vmem:[%s4413_s25 + $0x98] sm:$0xff] }
  0x2c   : > { %6645 = vst [vmem:[#allocation13_spill] sm:$0xff] %v4570_v2  ;;  %v694_v16 = vrot.slane %v4560_v52, 1  ;;  %3583 = vrot.lane.b32.xlu1 %v4570_v2, %s4348_s26  ;;  %v695_v18 = vrot.slane %v4579_v8, 1  ;;  %v697_v22 = vrot.slane %v4582_v10, 1  ;;  %v4591_v24 = vsel %vm473_vm0, %v498_v56, %v499_v57 }
  0x2d   : > { %v651_v17 = vsel %vm648_vm1, %v649_v4, %v650_v6  ;;  %v653_v28 = vsel %vm648_vm1, %v650_v6, %v652_v7  ;;  %v4597_v33 = vsel %vm473_vm0, 0.0, %v498_v56  ;;  %v4600_v34 = vsel %vm473_vm0, %v499_v57, 0.0  ;;  %v421_v4 = vld [vmem:[%s4413_s25 + $0xc8] sm:$0xff] }
  0x2e   : > { %v690_v35 = vrot.slane %v4591_v24, 1  ;;  %v3587_v40 = vpack.i.bf16 %v653_v28, %v651_v17  ;;  %v696_v45 = vsel %vm648_vm1, %v694_v16, %v695_v18  ;;  %v698_v46 = vsel %vm648_vm1, %v695_v18, %v697_v22 }
  0x2f   : > { %v689_v47 = vrot.slane %v4597_v33, 1  ;;  %v4609_v48 = vpack.i.bf16 %v698_v46, %v696_v45  ;;  %v692_v49 = vrot.slane %v4600_v34, 1  ;;  %v507_v51 = vrot.slane %v416_v25, 7 }
  0x30   : > { %v508_v56 = vrot.slane %v417_v27, 7  ;;  %3588 = vrot.lane.b32.xlu0 %v3587_v40, %s4348_s26  ;;  %v504_v58 = vrot.slane %v414_v37, 7  ;;  %v505_v62 = vrot.slane %v415_v38, 7  ;;  %v513_v6 = vrot.slane %v420_v39, 7 }
  0x31   : > { %6646 = vst [vmem:[#allocation14_spill] sm:$0xff] %v4609_v48  ;;  %v691_v57 = vsel %vm648_vm1, %v689_v47, %v690_v35  ;;  %3598 = vrot.lane.b32.xlu1 %v4609_v48, %s4348_s26  ;;  %v693_v7 = vsel %vm648_vm1, %v690_v35, %v692_v49  ;;  %v4622_v17 = vsel %vm473_vm0, 0.0, %v507_v51  ;;  %v514_v39 = vrot.slane %v421_v4, 7  ;;  %v418_v49 = vld [vmem:[%s4413_s25 + $0xb0] sm:$0xff]  ;;  %v424_v4 = vld [vmem:[%s4413_s25 + $0xe0] sm:$0xff] }
  0x32   : > { %v4619_v16 = vsel %vm473_vm0, %v507_v51, %v508_v56  ;;  %6648 = vst [vmem:[#allocation16_spill] sm:$0xff] %v4622_v17  ;;  %v4625_v18 = vsel %vm473_vm0, %v508_v56, 0.0  ;;  %v4627_v22 = vpack.i.bf16 %v693_v7, %v691_v57  ;;  %v704_v25 = vrot.slane %v4622_v17, 1  ;;  %v419_v51 = vld [vmem:[%s4413_s25 + $0xb8] sm:$0xff]  ;;  %v425_v7 = vld [vmem:[%s4413_s25 + $0xe8] sm:$0xff] }
  0x33   : > { %6647 = vst [vmem:[#allocation15_spill] sm:$0xff] %v4619_v16  ;;  %v705_v27 = vrot.slane %v4619_v16, 1  ;;  %v707_v28 = vrot.slane %v4625_v18, 1  ;;  %v4633_v35 = vsel %vm473_vm0, %v504_v58, %v505_v62  ;;  %v4636_v37 = vsel %vm473_vm0, 0.0, %v504_v58 }
  0x34   : > { %6649 = vst [vmem:[#allocation17_spill] sm:$0xff] %v4627_v22  ;;  %6650 = vst [vmem:[#allocation18_spill] sm:$0xff] %v4633_v35  ;;  %v4639_v38 = vsel %vm473_vm0, %v505_v62, 0.0  ;;  %3593 = vrot.lane.b32.xlu0 %v4627_v22, %s4348_s26  ;;  %v699_v46 = vrot.slane %v4636_v37, 1  ;;  %v700_v47 = vrot.slane %v4633_v35, 1  ;;  %v4653_v58 = vsel %vm473_vm0, %v513_v6, %v514_v39 }
  0x35   : > { %6651 = vst [vmem:[#allocation19_spill] sm:$0xff] %v4636_v37  ;;  %v706_v40 = vsel %vm648_vm1, %v704_v25, %v705_v27  ;;  %v708_v45 = vsel %vm648_vm1, %v705_v27, %v707_v28  ;;  %v702_v57 = vrot.slane %v4639_v38, 1  ;;  %v4656_v62 = vsel %vm473_vm0, 0.0, %v513_v6 }
  0x36   : > { %v4649_v56 = vpack.i.bf16 %v708_v45, %v706_v40  ;;  %v701_v25 = vsel %vm648_vm1, %v699_v46, %v700_v47  ;;  %v4662_v27 = vsel %vm473_vm0, %v514_v39, 0.0  ;;  %v714_v28 = vrot.slane %v4656_v62, 1 }
  0x37   : > { %v715_v40 = vrot.slane %v4653_v58, 1  ;;  %v703_v45 = vsel %vm648_vm1, %v700_v47, %v702_v57  ;;  %v717_v6 = vrot.slane %v4662_v27, 1  ;;  %v510_v19 = vrot.slane %v418_v49, 7 }
  0x38   : > { %6652 = vst [vmem:[#allocation20_spill] sm:$0xff] %v4649_v56  ;;  %3608 = vrot.lane.b32.xlu1 %v4649_v56, %s4348_s26  ;;  %v511_v30 = vrot.slane %v419_v51, 7  ;;  %v4670_v22 = vpack.i.bf16 %v703_v45, %v701_v25  ;;  %v519_v39 = vrot.slane %v424_v4, 7  ;;  %v520_v2 = vrot.slane %v425_v7, 7  ;;  %v423_v7 = vld [vmem:[%s4413_s25 + $0xd8] sm:$0xff] }
  0x39   : > { %v716_v46 = vsel %vm648_vm1, %v714_v28, %v715_v40  ;;  %v718_v26 = vsel %vm648_vm1, %v715_v40, %v717_v6  ;;  %v4679_v56 = vsel %vm473_vm0, 0.0, %v510_v19  ;;  %v516_v28 = vrot.slane %v422_v41, 7 }
  0x3a   : > { %6653 = vst [vmem:[#allocation21_spill] sm:$0xff] %v4670_v22  ;;  %v4676_v9 = vsel %vm473_vm0, %v510_v19, %v511_v30  ;;  %v4682_v47 = vsel %vm473_vm0, %v511_v30, 0.0  ;;  %3603 = vrot.lane.b32.xlu0 %v4670_v22, %s4348_s26  ;;  %v4686_v49 = vpack.i.bf16 %v718_v26, %v716_v46  ;;  %v709_v51 = vrot.slane %v4679_v56, 1 }
  0x3b   : > { %v710_v57 = vrot.slane %v4676_v9, 1  ;;  %v712_v4 = vrot.slane %v4682_v47, 1  ;;  %v4693_v25 = vsel %vm473_vm0, %v519_v39, %v520_v2  ;;  %v4696_v19 = vsel %vm473_vm0, 0.0, %v519_v39 }
  0x3c   : > { %6654 = vst [vmem:[#allocation22_spill] sm:$0xff] %v4686_v49  ;;  %v4699_v30 = vsel %vm473_vm0, %v520_v2, 0.0  ;;  %3618 = vrot.lane.b32.xlu1 %v4686_v49, %s4348_s26  ;;  %v724_v45 = vrot.slane %v4696_v19, 1  ;;  %v725_v6 = vrot.slane %v4693_v25, 1  ;;  %v517_v53 = vrot.slane %v423_v7, 7 }
  0x3d   : > { %v711_v26 = vsel %vm648_vm1, %v709_v51, %v710_v57  ;;  %v713_v40 = vsel %vm648_vm1, %v710_v57, %v712_v4  ;;  %v727_v39 = vrot.slane %v4699_v30, 1  ;;  %v4711_v2 = vsel %vm473_vm0, 0.0, %v516_v28 }
  0x3e   : > { %v4707_v46 = vpack.i.bf16 %v713_v40, %v711_v26  ;;  %v726_v41 = vsel %vm648_vm1, %v724_v45, %v725_v6  ;;  %v719_v49 = vrot.slane %v4711_v2, 1  ;;  %v831_v51 = vrot.slane %v4431_v15, 2 }
  0x3f   : > { %v832_v57 = vrot.slane %v4438_v20, 2  ;;  %v728_v4 = vsel %vm648_vm1, %v725_v6, %v727_v39  ;;  %v4721_v26 = vsel %vm473_vm0, %v516_v28, %v517_v53  ;;  %v4724_v7 = vsel %vm473_vm0, %v517_v53, 0.0 }
  0x40   : > { %6655 = vst [vmem:[#allocation23_spill] sm:$0xff] %v4707_v46  ;;  %3613 = vrot.lane.b32.xlu0 %v4707_v46, %s4348_s26  ;;  %v826_v40 = vrot.slane %v4568_v1, 2  ;;  %v4727_v45 = vpack.i.bf16 %v728_v4, %v726_v41  ;;  %v720_v22 = vrot.slane %v4721_v26, 1  ;;  %v722_v48 = vrot.slane %v4724_v7, 1 }
  0x41   : > { %v833_v29 = vsel %vm825_vm2, %v831_v51, %v832_v57  ;;  %v6657_v46 = vrot.slane %v4441_v21, 2  ;;  %v827_v28 = vrot.slane %v4565_v63, 2  ;;  %v829_v39 = vrot.slane %v4573_v3, 2 }
  0x42   : > { %6656 = vst [vmem:[#allocation24_spill] sm:$0xff] %v4727_v45  ;;  %v841_v53 = vrot.slane %v4456_v31, 2  ;;  %3628 = vrot.lane.b32.xlu1 %v4727_v45, %s4348_s26  ;;  %v721_v41 = vsel %vm648_vm1, %v719_v49, %v720_v22  ;;  %v723_v4 = vsel %vm648_vm1, %v720_v22, %v722_v48  ;;  %v842_v51 = vrot.slane %v4445_v23, 2 }
  0x43   : > { %v835_v6 = vsel %vm825_vm2, %v832_v57, %v6657_v46  ;;  %v4745_v21 = vpack.i.bf16 %v723_v4, %v721_v41  ;;  %v828_v46 = vsel %vm825_vm2, %v826_v40, %v827_v28  ;;  %v830_v57 = vsel %vm825_vm2, %v827_v28, %v829_v39 }
  0x44   : > { %v4742_v1 = vpack.i.bf16 %v835_v6, %v833_v29  ;;  %v844_v3 = vrot.slane %v4459_v32, 2  ;;  %v3632_v63 = vpack.i.bf16 %v830_v57, %v828_v46  ;;  %v843_v42 = vsel %vm825_vm2, %v841_v53, %v842_v51 }
  0x45   : > { %v836_v45 = vrot.slane %v4425_v13, 2  ;;  %v837_v49 = vrot.slane %v4422_v12, 2  ;;  %3623 = vrot.lane.b32.xlu0 %v4745_v21, %s4348_s26  ;;  %v851_v48 = vrot.slane %v4501_v60, 2  ;;  %v852_v22 = vrot.slane %v4498_v59, 2 }
  0x46   : > { %v845_v29 = vsel %vm825_vm2, %v842_v51, %v844_v3  ;;  %v854_v40 = vrot.slane %v4506_v61, 2  ;;  %3638 = vrot.lane.b32.xlu1 %v4742_v1, %s4349_s30  ;;  %v6658_v28 = vrot.slane %v4428_v14, 2  ;;  %v846_v53 = vrot.slane %v4480_v50, 2 }
  0x47   : > { %v4761_v32 = vpack.i.bf16 %v845_v29, %v843_v42  ;;  %v838_v6 = vsel %vm825_vm2, %v836_v45, %v837_v49  ;;  %v853_v4 = vsel %vm825_vm2, %v851_v48, %v852_v22  ;;  %v847_v51 = vrot.slane %v4485_v54, 2 }
  0x48   : > { %v840_v39 = vsel %vm825_vm2, %v837_v49, %v6658_v28  ;;  %v855_v61 = vsel %vm825_vm2, %v852_v22, %v854_v40  ;;  %v849_v42 = vrot.slane %v4488_v55, 2  ;;  %v861_v45 = vrot.slane %v4539_v36, 2 }
  0x49   : > { %v4768_v41 = vpack.i.bf16 %v840_v39, %v838_v6  ;;  %v4773_v46 = vpack.i.bf16 %v855_v61, %v853_v4  ;;  %v862_v14 = vrot.slane %v4549_v43, 2  ;;  %3633 = vrot.lane.b32.xlu0 %v3632_v63, %s4349_s30  ;;  %v848_v57 = vsel %vm825_vm2, %v846_v53, %v847_v51 }
  0x4a   : > { %v864_v3 = vrot.slane %v4552_v44, 2  ;;  %v856_v49 = vrot.slane %v4518_v5, 2  ;;  %v857_v29 = vrot.slane %v4511_v0, 2  ;;  %3648 = vrot.lane.b32.xlu1 %v4761_v32, %s4349_s30  ;;  %v850_v48 = vsel %vm825_vm2, %v847_v51, %v849_v42 }
  0x4b   : > { %v863_v55 = vsel %vm825_vm2, %v861_v45, %v862_v14  ;;  %v859_v22 = vrot.slane %v4525_v11, 2  ;;  %v871_v40 = vrot.slane %v4560_v52, 2  ;;  %v4789_v63 = vpack.i.bf16 %v850_v48, %v848_v57 }
  0x4c   : > { %v865_v6 = vsel %vm825_vm2, %v862_v14, %v864_v3  ;;  %v872_v44 = vrot.slane %v4579_v8, 2  ;;  %v858_v39 = vsel %vm825_vm2, %v856_v49, %v857_v29  ;;  %v874_v53 = vrot.slane %v4582_v10, 2 }
  0x4d   : > { %v4793_v28 = vpack.i.bf16 %v865_v6, %v863_v55  ;;  %v866_v4 = vrot.slane %v4597_v33, 2  ;;  %3643 = vrot.lane.b32.xlu0 %v4768_v41, %s4349_s30  ;;  %v860_v11 = vsel %vm825_vm2, %v857_v29, %v859_v22  ;;  %v867_v51 = vrot.slane %v4591_v24, 2 }
  0x4e   : > { %v873_v61 = vsel %vm825_vm2, %v871_v40, %v872_v44  ;;  %v869_v42 = vrot.slane %v4600_v34, 2  ;;  %3658 = vrot.lane.b32.xlu1 %v4773_v46, %s4349_s30  ;;  %v875_v45 = vsel %vm825_vm2, %v872_v44, %v874_v53  ;;  %v881_v10 = vrot.slane %v4622_v17, 2 }
  0x4f   : > { %v882_v14 = vrot.slane %v4619_v16, 2  ;;  %v884_v57 = vrot.slane %v4625_v18, 2  ;;  %v4810_v3 = vpack.i.bf16 %v860_v11, %v858_v39  ;;  %v4812_v49 = vpack.i.bf16 %v875_v45, %v873_v61 }
  0x50   : > { %v868_v29 = vsel %vm825_vm2, %v866_v4, %v867_v51  ;;  %v870_v48 = vsel %vm825_vm2, %v867_v51, %v869_v42  ;;  %v876_v22 = vrot.slane %v4636_v37, 2  ;;  %v877_v40 = vrot.slane %v4633_v35, 2 }
  0x51   : > { %6659 = vst [vmem:[#allocation25_spill] sm:$0xff] %v4812_v49  ;;  %3653 = vrot.lane.b32.xlu0 %v4789_v63, %s4349_s30  ;;  %v883_v34 = vsel %vm825_vm2, %v881_v10, %v882_v14  ;;  %v885_v55 = vsel %vm825_vm2, %v882_v14, %v884_v57  ;;  %v879_v18 = vrot.slane %v4639_v38, 2  ;;  %v891_v6 = vrot.slane %v4656_v62, 2 }
  0x52   : > { %3668 = vrot.lane.b32.xlu1 %v4793_v28, %s4349_s30  ;;  %v892_v44 = vrot.slane %v4653_v58, 2  ;;  %v894_v39 = vrot.slane %v4662_v27, 2  ;;  %v4828_v53 = vpack.i.bf16 %v870_v48, %v868_v29  ;;  %v4832_v4 = vpack.i.bf16 %v885_v55, %v883_v34 }
  0x53   : > { %v886_v11 = vrot.slane %v4679_v56, 2  ;;  %v887_v61 = vrot.slane %v4676_v9, 2  ;;  %v889_v51 = vrot.slane %v4682_v47, 2  ;;  %v878_v38 = vsel %vm825_vm2, %v876_v22, %v877_v40 }
  0x54   : > { %v880_v27 = vsel %vm825_vm2, %v877_v40, %v879_v18  ;;  %v893_v42 = vsel %vm825_vm2, %v891_v6, %v892_v44  ;;  %v895_v45 = vsel %vm825_vm2, %v892_v44, %v894_v39  ;;  %v901_v10 = vrot.slane %v4696_v19, 2 }
  0x55   : > { %3663 = vrot.lane.b32.xlu0 %v4810_v3, %s4349_s30  ;;  %v902_v14 = vrot.slane %v4693_v25, 2  ;;  %v904_v57 = vrot.slane %v4699_v30, 2  ;;  %v4848_v47 = vpack.i.bf16 %v880_v27, %v878_v38  ;;  %v4850_v29 = vpack.i.bf16 %v895_v45, %v893_v42 }
  0x56   : > { %3678 = vrot.lane.b32.xlu1 %v4812_v49, %s4349_s30  ;;  %v888_v48 = vsel %vm825_vm2, %v886_v11, %v887_v61  ;;  %v890_v34 = vsel %vm825_vm2, %v887_v61, %v889_v51  ;;  %v896_v55 = vrot.slane %v4711_v2, 2  ;;  %v897_v22 = vrot.slane %v4721_v26, 2 }
  0x57   : > { %v899_v30 = vrot.slane %v4724_v7, 2  ;;  %v903_v40 = vsel %vm825_vm2, %v901_v10, %v902_v14  ;;  %v905_v18 = vsel %vm825_vm2, %v902_v14, %v904_v57  ;;  %v4863_v6 = vpack.i.bf16 %v890_v34, %v888_v48  ;;  %v6660_v14 = vld [vmem:[#allocation6_spill] sm:$0xff]  ;;  %v6661_v57 = vld [vmem:[#allocation4_spill] sm:$0xff]  ;;  %v6663_v34 = vld [vmem:[#allocation21_spill] sm:$0xff] }
  0x58   : > { %v4867_v44 = vpack.i.bf16 %v905_v18, %v903_v40  ;;  %v898_v39 = vsel %vm825_vm2, %v896_v55, %v897_v22  ;;  %v3717_v61 = vpack.i.bf16 %v4422_v12, %v4425_v13  ;;  %v3712_v51 = vpack.i.bf16 %v4438_v20, %v4431_v15  ;;  %v6662_v48 = vld [vmem:[#allocation14_spill] sm:$0xff] }
  0x59   : > { %3673 = vrot.lane.b32.xlu0 %v4828_v53, %s4349_s30  ;;  %v900_v11 = vsel %vm825_vm2, %v897_v22, %v899_v30  ;;  %v4886_v38 = vpack.i.bf16 %v4485_v54, %v4480_v50  ;;  %v3722_v27 = vpack.i.bf16 %v4445_v23, %v4456_v31  ;;  %v4895_v42 = vpack.i.bf16 %v4579_v8, %v4560_v52  ;;  %v4192_v55 = vld [vmem:[%s6590_s3] sm:$0xff]   ;;  %v4194_v30 = vld [vmem:[%s6590_s3 + $0x10] ss:$0 sps:$4 sm:$0x33]  }
  0x5a   : > { %3688 = vrot.lane.b32.xlu1 %v4832_v4, %s4349_s30  ;;  %v4873_v7 = vpack.i.bf16 %v900_v11, %v898_v39  ;;  %v4900_v45 = vpack.i.bf16 %v4498_v59, %v4501_v60  ;;  %v3742_v10 = vpack.i.bf16 %v4633_v35, %v4636_v37  ;;  %3474 = vmatprep.subr.bf16.mxu0 %v4192_v55  ;;  %v1960_v18 = vsel %vm1958_vm3, %v4194_v30, 0  ;;  %v6664_v39 = vld [vmem:[#allocation7_spill] sm:$0xff]  ;;  %v6670_v37 = vld [vmem:[#allocation9_spill] sm:$0xff]  ;;  %v6673_v13 = vld [vmem:[#allocation22_spill] sm:$0xff] }
  0x5b   : > { %3475 = vmatpush3.bf16.msra.mxu0 %v4192_v55  ;;  %3512 = vmatprep.subr.bf16.mxu1 %v4192_v55  ;;  %v3802_v22 = vpack.i.bf16 %v4619_v16, %v4622_v17 }
  0x5c   : > { %3515 = vmatpush3.bf16.msra.mxu1 %v4192_v55 }
  0x5d   : > { %3683 = vrot.lane.b32.xlu0 %v4848_v47, %s4349_s30 }
  0x5e   : > { %3698 = vrot.lane.b32.xlu1 %v4850_v29, %s4349_s30 }
  0x61   : > { %3693 = vrot.lane.b32.xlu0 %v4863_v6, %s4349_s30 }
  0x62   : > { %3708 = vrot.lane.b32.xlu1 %v4867_v44, %s4349_s30 }
  0x65   : > { %3703 = vrot.lane.b32.xlu0 %v4873_v7, %s4349_s30  ;;  %s5912_s30 = scalar_lea.vmem %s6592_s5, %s3421_s28 }
  0x66   : > { %3718 = vrot.lane.b32.xlu1 %v3717_v61, %s4350_s6 }
  0x69   : > { %3713 = vrot.lane.b32.xlu0 %v3712_v51, %s4350_s6  ;;  %v6665_v51 = vld [vmem:[#allocation20_spill] sm:$0xff] }
  0x6a   : > { %3728 = vrot.lane.b32.xlu1 %v4886_v38, %s4350_s6 }
  0x6d   : > { %3723 = vrot.lane.b32.xlu0 %v3722_v27, %s4350_s6 }
  0x6e   : > { %3738 = vrot.lane.b32.xlu1 %v4895_v42, %s4350_s6 }
  0x71   : > { %3733 = vrot.lane.b32.xlu0 %v4900_v45, %s4350_s6 }
  0x72   : > { %3748 = vrot.lane.b32.xlu1 %v6660_v14, %s4351_s7 }
  0x75   : > { %3743 = vrot.lane.b32.xlu0 %v3742_v10, %s4350_s6 }
  0x76   : > { %3758 = vrot.lane.b32.xlu1 %v6661_v57, %s4351_s7 }
  0x79   : > { %3753 = vrot.lane.b32.xlu0 %v6662_v48, %s4351_s7 }
  0x7a   : > { %3768 = vrot.lane.b32.xlu1 %v4742_v1, %s4352_s8  ;;  %v4193_v1 = vld [vmem:[%s6590_s3 + $0x8] sm:$0xff]  }
  0x7b   : > { %3476 = vmatprep.subr.bf16.mxu0 %v4193_v1  ;;  %3513 = vmatprep.subr.bf16.mxu1 %v4193_v1 }
  0x7c   : > { %3477 = vmatpush3.bf16.msra.mxu0 %v4193_v1  ;;  %3516 = vmatpush3.bf16.msra.mxu1 %v4193_v1 }
  0x7d   : > { %3763 = vrot.lane.b32.xlu0 %v6663_v34, %s4351_s7  ;;  %3518 = vmatprep.subr.msk.bf16.mxu0 %vm1958_vm3, %v4194_v30 }
  0x7e   : > { %3778 = vrot.lane.b32.xlu1 %v4768_v41, %s4352_s8  ;;  %3519 = vmatprep.subr.msk.bf16.mxu1 %vm1958_vm3, %v4194_v30 }
  0x80   : > { %3479 = vmatpush3.bf16.msra.mxu0 %v1960_v18  ;;  %3517 = vmatpush3.bf16.msra.mxu1 %v1960_v18 }
  0x81   : > { %3773 = vrot.lane.b32.xlu0 %v4812_v49, %s4352_s8 }
  0x82   : > { %3788 = vrot.lane.b32.xlu1 %v3717_v61, %s4353_s9 }
  0x85   : > { %3783 = vrot.lane.b32.xlu0 %v4848_v47, %s4352_s8 }
  0x86   : > { %3798 = vrot.lane.b32.xlu1 %v3722_v27, %s4353_s9 }
  0x89   : > { %3793 = vrot.lane.b32.xlu0 %v3742_v10, %s4353_s9 }
  0x8a   : > { %3808 = vrot.lane.b32.xlu1 %v6661_v57, %s4354_s14 }
  0x8d   : > { %3803 = vrot.lane.b32.xlu0 %v3802_v22, %s4353_s9 }
  0x8e   : > { %v4942_v40 = vpop.permute.xlu1 %3558  ;;  %3818 = vrot.lane.b32.xlu1 %v6664_v39, %s4354_s14 }
  0x90   : > { %v4946_v11 = vpop.permute.xlu0 %3553 }
  0x91   : > { %3813 = vrot.lane.b32.xlu0 %v6663_v34, %s4354_s14  ;;  %v6666_v34 = vld [vmem:[#allocation8_spill] sm:$0xff] }
  0x92   : > { %3828 = vrot.lane.b32.xlu1 %v4768_v41, %s4355_s17  ;;  %v4952_v61 = vpop.permute.xlu1 %3563  ;;  %v3852_v41 = vpack.i.bf16 %v4676_v9, %v4679_v56 }
  0x95   : > { %3823 = vrot.lane.b32.xlu0 %v6665_v51, %s4354_s14 }
  0x96   : > { %3838 = vrot.lane.b32.xlu1 %v4761_v32, %s4355_s17  ;;  %v3569_v27 = vpop.permute.xlu0 %3568 }
  0x97   : > { %v3571_v16 = vunpack.i.h.bf16 %v3569_v27  ;;  %v3570_v31 = vunpack.i.l.bf16 %v3569_v27 }
  0x98   : > { %v3574_v10 = vpop.permute.xlu1 %3573 }
  0x99   : > { %3833 = vrot.lane.b32.xlu0 %v4848_v47, %s4355_s17  ;;  %v3575_v17 = vunpack.i.l.bf16 %v3574_v10 }
  0x9a   : > { %3848 = vrot.lane.b32.xlu1 %v3802_v22, %s4350_s6  ;;  %v4961_v14 = vpop.permute.xlu0 %3578  ;;  %v6667_v22 = vld [vmem:[#allocation23_spill] sm:$0xff] }
  0x9d   : > { %3843 = vrot.lane.b32.xlu0 %v4832_v4, %s4355_s17 }
  0x9e   : > { %3858 = vrot.lane.b32.xlu1 %v6664_v39, %s4351_s7  ;;  %v4969_v57 = vpop.permute.xlu1 %3583 }
  0xa1   : > { %3853 = vrot.lane.b32.xlu0 %v3852_v41, %s4350_s6 }
  0xa2   : > { %3868 = vrot.lane.b32.xlu1 %v6666_v34, %s4351_s7  ;;  %v4974_v47 = vpop.permute.xlu0 %3588 }
  0xa3   : > { %v4976_v55 = vpop.permute.xlu1 %3598 }
  0xa5   : > { %3863 = vrot.lane.b32.xlu0 %v6665_v51, %s4351_s7 }
  0xa6   : > { %3878 = vrot.lane.b32.xlu1 %v4761_v32, %s4352_s8  ;;  %v4982_v1 = vpop.permute.xlu0 %3593 }
  0xa9   : > { %3873 = vrot.lane.b32.xlu0 %v6667_v22, %s4351_s7 }
  0xaa   : > { %v4986_v30 = vpop.permute.xlu1 %3608  ;;  %3888 = vrot.lane.b32.xlu1 %v4789_v63, %s4352_s8 }
  0xab   : > { %6668 = vst [vmem:[#allocation6_spill] sm:$0xff] %v4986_v30 }
  0xac   : > { %v4990_v18 = vpop.permute.xlu0 %3603 }
  0xad   : > { %6669 = vst [vmem:[#allocation4_spill] sm:$0xff] %v4990_v18  ;;  %3883 = vrot.lane.b32.xlu0 %v4832_v4, %s4352_s8  ;;  %v3912_v4 = vpack.i.bf16 %v4653_v58, %v4656_v62 }
  0xae   : > { %3898 = vrot.lane.b32.xlu1 %v4886_v38, %s4353_s9  ;;  %v4996_v39 = vpop.permute.xlu1 %3618 }
  0xb1   : > { %3893 = vrot.lane.b32.xlu0 %v4863_v6, %s4352_s8 }
  0xb2   : > { %v5000_v32 = vpop.permute.xlu0 %3613  ;;  %3908 = vrot.lane.b32.xlu1 %v4900_v45, %s4353_s9 }
  0xb4   : > { %v5004_v51 = vpop.permute.xlu1 %3628 }
  0xb5   : > { %3903 = vrot.lane.b32.xlu0 %v3852_v41, %s4353_s9  ;;  %v3576_v41 = vunpack.i.h.bf16 %v3574_v10  ;;  %v1613_v10 = vsel %vm1602_vm4, %v4501_v60, %v3575_v17  ;;  %v1612_v60 = vsel %vm1602_vm4, %v4485_v54, %v3571_v16  ;;  %v1611_v17 = vsel %vm1602_vm4, %v4480_v50, %v3570_v31 }
  0xb6   : > { %3918 = vrot.lane.b32.xlu1 %v6666_v34, %s4354_s14 }
  0xb7   : > { %v5011_v38 = vpop.permute.xlu0 %3623 }
  0xb8   : > { %v5013_v49 = vpop.permute.xlu1 %3638 }
  0xb9   : > { %3913 = vrot.lane.b32.xlu0 %v3912_v4, %s4353_s9 }
  0xba   : > { %3928 = vrot.lane.b32.xlu1 %v6670_v37, %s4354_s14 }
  0xbb   : > { %v5018_v45 = vpop.permute.xlu0 %3633 }
  0xbc   : > { %v5020_v35 = vpop.permute.xlu1 %3648 }
  0xbd   : > { %6671 = vst [vmem:[#allocation21_spill] sm:$0xff] %v5020_v35  ;;  %3923 = vrot.lane.b32.xlu0 %v6667_v22, %s4354_s14  ;;  %v1614_v22 = vsel %vm1602_vm4, %v4498_v59, %v3576_v41  ;;  %v5046_v59 = vpack.i.bf16 %v4721_v26, %v4711_v2 }
  0xbe   : > { %3938 = vrot.lane.b32.xlu1 %v4789_v63, %s4355_s17  ;;  %v3586_v63 = vunpack.i.h.bf16 %v4969_v57 }
  0xbf   : > { %v5026_v34 = vpop.permute.xlu0 %3643 }
  0xc0   : > { %6672 = vst [vmem:[#allocation7_spill] sm:$0xff] %v5026_v34  ;;  %v3659_v23 = vpop.permute.xlu1 %3658  ;;  %v3585_v34 = vunpack.i.l.bf16 %v4969_v57 }
  0xc1   : > { %3933 = vrot.lane.b32.xlu0 %v6673_v13, %s4354_s14  ;;  %v3661_v18 = vunpack.i.h.bf16 %v3659_v23  ;;  %v3660_v35 = vunpack.i.l.bf16 %v3659_v23 }
  0xc2   : > { %3948 = vrot.lane.b32.xlu1 %v4773_v46, %s4355_s17  ;;  %v1617_v54 = vsel %vm1602_vm4, %v4539_v36, %v3585_v34 }
  0xc3   : > { %v5039_v27 = vsel %vm1635_vm5, %v1614_v22, %v3661_v18  ;;  %v5042_v48 = vsel %vm1635_vm5, %v1613_v10, %v3660_v35  ;;  %v3654_v23 = vpop.permute.xlu0 %3653  ;;  %v3581_v18 = vunpack.i.h.bf16 %v4961_v14  ;;  %v3580_v22 = vunpack.i.l.bf16 %v4961_v14 }
  0xc4   : > { %6674 = vst [vmem:[#allocation20_spill] sm:$0xff] %v5039_v27  ;;  %6675 = vst [vmem:[#allocation8_spill] sm:$0xff] %v5042_v48  ;;  %v3656_v57 = vunpack.i.h.bf16 %v3654_v23  ;;  %v3655_v41 = vunpack.i.l.bf16 %v3654_v23  ;;  %v3669_v30 = vpop.permute.xlu1 %3668  ;;  %v1618_v48 = vsel %vm1602_vm4, %v4549_v43, %v3586_v63 }
  0xc5   : > { %3943 = vrot.lane.b32.xlu0 %v4863_v6, %s4355_s17  ;;  %v3671_v35 = vunpack.i.h.bf16 %v3669_v30  ;;  %v3670_v10 = vunpack.i.l.bf16 %v3669_v30  ;;  %v1616_v34 = vsel %vm1602_vm4, %v4511_v0, %v3581_v18  ;;  %v3621_v18 = vunpack.i.h.bf16 %v4996_v39 }
  0xc6   : > { %v5061_v31 = vsel %vm1635_vm5, %v1611_v17, %v3655_v41  ;;  %v5064_v50 = vsel %vm1635_vm5, %v1612_v60, %v3656_v57  ;;  %3958 = vrot.lane.b32.xlu1 %v3912_v4, %s4350_s6  ;;  %v1615_v60 = vsel %vm1602_vm4, %v4518_v5, %v3580_v22  ;;  %v3620_v22 = vunpack.i.l.bf16 %v4996_v39 }
  0xc7   : > { %v5068_v16 = vsel %vm1635_vm5, %v1618_v48, %v3671_v35  ;;  %v5071_v6 = vsel %vm1635_vm5, %v1617_v54, %v3670_v10  ;;  %v3664_v14 = vpop.permute.xlu0 %3663  ;;  %v3962_v48 = vpack.i.bf16 %v4511_v0, %v4518_v5  ;;  %v3616_v5 = vunpack.i.h.bf16 %v5000_v32 }
  0xc8   : > { %6676 = vst [vmem:[#allocation23_spill] sm:$0xff] %v5068_v16  ;;  %6677 = vst [vmem:[#allocation9_spill] sm:$0xff] %v5071_v6  ;;  %v3666_v30 = vunpack.i.h.bf16 %v3664_v14  ;;  %v3665_v63 = vunpack.i.l.bf16 %v3664_v14  ;;  %v5073_v23 = vpop.permute.xlu1 %3678  ;;  %v3615_v35 = vunpack.i.l.bf16 %v5000_v32  ;;  %v1629_v39 = vsel %vm1602_vm4, %v4656_v62, %v3620_v22 }
  0xc9   : > { %3953 = vrot.lane.b32.xlu0 %v4850_v29, %s4355_s17 }
  0xca   : > { %v5084_v4 = vsel %vm1635_vm5, %v1615_v60, %v3665_v63  ;;  %v5087_v17 = vsel %vm1635_vm5, %v1616_v34, %v3666_v30  ;;  %3968 = vrot.lane.b32.xlu1 %v5046_v59, %s4350_s6  ;;  %v1630_v30 = vsel %vm1602_vm4, %v4653_v58, %v3621_v18  ;;  %v3630_v63 = vunpack.i.l.bf16 %v5004_v51 }
  0xcb   : > { %6678 = vst [vmem:[#allocation22_spill] sm:$0xff] %v5084_v4  ;;  %6679 = vst [vmem:[#allocation26_spill] sm:$0xff] %v5087_v17  ;;  %v5091_v57 = vpop.permute.xlu0 %3673  ;;  %v1628_v58 = vsel %vm1602_vm4, %v4676_v9, %v3616_v5  ;;  %v1627_v62 = vsel %vm1602_vm4, %v4679_v56, %v3615_v35 }
  0xcc   : > { %v5093_v41 = vpop.permute.xlu1 %3688  ;;  %v1633_v9 = vsel %vm1602_vm4, %v4696_v19, %v3630_v63  ;;  %v3675_v27 = vunpack.i.l.bf16 %v5091_v57 }
  0xcd   : > { %3963 = vrot.lane.b32.xlu0 %v3962_v48, %s4350_s6 }
  0xce   : > { %3978 = vrot.lane.b32.xlu1 %v6673_v13, %s4351_s7  ;;  %v3631_v13 = vunpack.i.h.bf16 %v5004_v51  ;;  %v3626_v51 = vunpack.i.h.bf16 %v5011_v38 }
  0xcf   : > { %v5100_v0 = vpop.permute.xlu0 %3683 }
  0xd0   : > { %v3699_v10 = vpop.permute.xlu1 %3698 }
  0xd1   : > { %3973 = vrot.lane.b32.xlu0 %v6670_v37, %s4351_s7  ;;  %v3701_v54 = vunpack.i.h.bf16 %v3699_v10  ;;  %v3700_v14 = vunpack.i.l.bf16 %v3699_v10  ;;  %v3625_v10 = vunpack.i.l.bf16 %v5011_v38 }
  0xd2   : > { %3988 = vrot.lane.b32.xlu1 %v4745_v21, %s4351_s7 }
  0xd3   : > { %v5115_v32 = vsel %vm1635_vm5, %v1630_v30, %v3701_v54  ;;  %v5118_v37 = vsel %vm1635_vm5, %v1629_v39, %v3700_v14  ;;  %v3694_v34 = vpop.permute.xlu0 %3693  ;;  %v6680_v54 = vld [vmem:[#allocation10_spill] sm:$0xff]  ;;  %v1634_v39 = vsel %vm1602_vm4, %v4693_v25, %v3631_v13 }
  0xd4   : > { %v3696_v60 = vunpack.i.h.bf16 %v3694_v34  ;;  %v3695_v18 = vunpack.i.l.bf16 %v3694_v34  ;;  %v3709_v22 = vpop.permute.xlu1 %3708 }
  0xd5   : > { %3983 = vrot.lane.b32.xlu0 %v6680_v54, %s4351_s7  ;;  %v3711_v30 = vunpack.i.h.bf16 %v3709_v22  ;;  %v3710_v14 = vunpack.i.l.bf16 %v3709_v22 }
  0xd6   : > { %v5133_v56 = vsel %vm1635_vm5, %v1627_v62, %v3695_v18  ;;  %v5136_v5 = vsel %vm1635_vm5, %v1628_v58, %v3696_v60  ;;  %3998 = vrot.lane.b32.xlu1 %v4850_v29, %s4352_s8  ;;  %v1632_v58 = vsel %vm1602_vm4, %v4721_v26, %v3626_v51  ;;  %v1631_v29 = vsel %vm1602_vm4, %v4711_v2, %v3625_v10  ;;  %v426_v26 = vld [vmem:[%s4413_s25 + $0xf0] sm:$0xff]  ;;  %v427_v51 = vld [vmem:[%s4413_s25 + $0xf8] sm:$0xff] }
  0xd7   : > { %v5141_v38 = vsel %vm1635_vm5, %v1634_v39, %v3711_v30  ;;  %v5144_v35 = vsel %vm1635_vm5, %v1633_v9, %v3710_v14  ;;  %v3704_v13 = vpop.permute.xlu0 %3703  ;;  %v5172_v2 = vpack.i.bf16 %v4693_v25, %v4696_v19  ;;  %v5184_v14 = vpack.i.bf16 %v4549_v43, %v4539_v36 }
  0xd8   : > { %6681 = vst [vmem:[#allocation10_spill] sm:$0xff] %v5141_v38  ;;  %6682 = vst [vmem:[#allocation27_spill] sm:$0xff] %v5144_v35  ;;  %v3706_v34 = vunpack.i.h.bf16 %v3704_v13  ;;  %v3705_v63 = vunpack.i.l.bf16 %v3704_v13  ;;  %v5146_v62 = vpop.permute.xlu1 %3718  ;;  %v522_v39 = vrot.slane %v426_v26, 7  ;;  %v523_v25 = vrot.slane %v427_v51, 7 }
  0xd9   : > { %3993 = vrot.lane.b32.xlu0 %v4773_v46, %s4352_s8 }
  0xda   : > { %v5155_v60 = vsel %vm1635_vm5, %v1631_v29, %v3705_v63  ;;  %v5158_v18 = vsel %vm1635_vm5, %v1632_v58, %v3706_v34  ;;  %4008 = vrot.lane.b32.xlu1 %v4873_v7, %s4352_s8  ;;  %v430_v34 = vld [vmem:[%s377_s27] sm:$0xff]  ;;  %v431_v63 = vld [vmem:[%s377_s27 + $0x8] sm:$0xff]  ;;  %v596_v36 = vsel %vm473_vm0, 0.0, %v522_v39  ;;  %v524_v29 = vsel %vm473_vm0, %v522_v39, %v523_v25 }
  0xdb   : > { %6683 = vst [vmem:[#allocation28_spill] sm:$0xff] %v5155_v60  ;;  %6684 = vst [vmem:[#allocation29_spill] sm:$0xff] %v5158_v18  ;;  %v5162_v22 = vpop.permute.xlu0 %3713  ;;  %v1100_v26 = vrot.slane %v596_v36, 1  ;;  %v435_v16 = vmul.f32 0.0, %v430_v34  ;;  %v436_v35 = vmul.f32 0.0, %v431_v63  ;;  %v3556_v18 = vunpack.i.h.bf16 %v4946_v11  ;;  %v6688_v60 = vld [vmem:[#allocation13_spill] sm:$0xff] }
  0xdc   : > { %v5164_v30 = vpop.permute.xlu1 %3728 }
  0xdd   : > { %4003 = vrot.lane.b32.xlu0 %v4810_v3, %s4352_s8  ;;  %v526_v34 = vrot.slane %v436_v35, 7 }
  0xde   : > { %4018 = vrot.lane.b32.xlu1 %v5046_v59, %s4353_s9 }
  0xdf   : > { %v5176_v46 = vpop.permute.xlu0 %3723 }
  0xe0   : > { %v5179_v10 = vpop.permute.xlu1 %3738 }
  0xe1   : > { %4013 = vrot.lane.b32.xlu0 %v3962_v48, %s4353_s9  ;;  %v614_v48 = vsel %vm473_vm0, %v523_v25, 0.0 }
  0xe2   : > { %4028 = vrot.lane.b32.xlu1 %v5172_v2, %s4353_s9  ;;  %v1103_v6 = vrot.slane %v614_v48, 1  ;;  %v1204_v17 = vrot.slane %v614_v48, 2 }
  0xe3   : > { %v3734_v19 = vpop.permute.xlu0 %3733 }
  0xe4   : > { %v3736_v59 = vunpack.i.h.bf16 %v3734_v19  ;;  %v3735_v9 = vunpack.i.l.bf16 %v3734_v19  ;;  %v5191_v13 = vpop.permute.xlu1 %3748  ;;  %v1101_v19 = vrot.slane %v524_v29, 1 }
  0xe5   : > { %4023 = vrot.lane.b32.xlu0 %v5184_v14, %s4353_s9 }
  0xe6   : > { %v5199_v43 = vsel %vm1668_vm6, %v5061_v31, %v3735_v9  ;;  %v5203_v58 = vsel %vm1668_vm6, %v5064_v50, %v3736_v59  ;;  %4038 = vrot.lane.b32.xlu1 %v4745_v21, %s4354_s14  ;;  %v1201_v31 = vrot.slane %v596_v36, 2  ;;  %v1202_v9 = vrot.slane %v524_v29, 2  ;;  %v6687_v50 = vld [vmem:[#allocation24_spill] sm:$0xff] }
  0xe7   : > { %6685 = vst [vmem:[#allocation30_spill] sm:$0xff] %v5199_v43  ;;  %6686 = vst [vmem:[#allocation31_spill] sm:$0xff] %v5203_v58  ;;  %v5208_v51 = vpop.permute.xlu0 %3743  ;;  %v1102_v39 = vsel %vm648_vm1, %v1100_v26, %v1101_v19  ;;  %v1104_v25 = vsel %vm648_vm1, %v1101_v19, %v1103_v6  ;;  %v525_v59 = vrot.slane %v435_v16, 7  ;;  %v5228_v58 = vpack.i.bf16 %v524_v29, %v596_v36 }
  0xe8   : > { %v5210_v38 = vpop.permute.xlu1 %3758  ;;  %v1203_v4 = vsel %vm825_vm2, %v1201_v31, %v1202_v9  ;;  %v1205_v48 = vsel %vm825_vm2, %v1202_v9, %v1204_v17  ;;  %v5234_v16 = vpack.i.bf16 %v4591_v24, %v4597_v33  ;;  %v5236_v6 = vpack.i.bf16 %v1104_v25, %v1102_v39 }
  0xe9   : > { %4033 = vrot.lane.b32.xlu0 %v6680_v54, %s4354_s14  ;;  %v3555_v54 = vunpack.i.l.bf16 %v4946_v11  ;;  %v3591_v17 = vunpack.i.h.bf16 %v4974_v47  ;;  %v5241_v26 = vpack.i.bf16 %v1205_v48, %v1203_v4  ;;  %v5244_v11 = vsel %vm473_vm0, %v525_v59, %v526_v34  ;;  %v6690_v48 = vld [vmem:[#allocation12_spill] sm:$0xff] }
  0xea   : > { %4048 = vrot.lane.b32.xlu1 %v6687_v50, %s4354_s14  ;;  %v5247_v36 = vsel %vm473_vm0, 0.0, %v525_v59  ;;  %v3601_v29 = vunpack.i.h.bf16 %v4976_v55  ;;  %v1606_v31 = vsel %vm1602_vm4, %v4438_v20, %v3556_v18  ;;  %v3600_v4 = vunpack.i.l.bf16 %v4976_v55  ;;  %v6689_v18 = vld [vmem:[#allocation11_spill] sm:$0xff] }
  0xeb   : > { %v5216_v21 = vpop.permute.xlu0 %3753  ;;  %v1605_v9 = vsel %vm1602_vm4, %v4431_v15, %v3555_v54  ;;  %v3596_v39 = vunpack.i.h.bf16 %v4982_v1  ;;  %v3595_v25 = vunpack.i.l.bf16 %v4982_v1  ;;  %v1604_v15 = vsel %vm1602_vm4, %v6689_v18, %v3591_v17 }
  0xec   : > { %v5220_v63 = vpop.permute.xlu1 %3768  ;;  %v3641_v55 = vunpack.i.h.bf16 %v5013_v49  ;;  %v5274_v1 = vsel %vm473_vm0, %v526_v34, 0.0  ;;  %v1622_v43 = vsel %vm1602_vm4, %v4579_v8, %v3601_v29  ;;  %v3636_v20 = vunpack.i.h.bf16 %v5018_v45 }
  0xed   : > { %4043 = vrot.lane.b32.xlu0 %v6688_v60, %s4354_s14  ;;  %v3635_v17 = vunpack.i.l.bf16 %v5018_v45  ;;  %v3680_v34 = vunpack.i.l.bf16 %v5073_v23  ;;  %v1620_v8 = vsel %vm1602_vm4, %v4591_v24, %v3596_v39  ;;  %v1619_v45 = vsel %vm1602_vm4, %v4597_v33, %v3595_v25 }
  0xee   : > { %4058 = vrot.lane.b32.xlu1 %v4873_v7, %s4355_s17  ;;  %v3590_v7 = vunpack.i.l.bf16 %v4974_v47  ;;  %v3640_v47 = vunpack.i.l.bf16 %v5013_v49  ;;  %v1621_v49 = vsel %vm1602_vm4, %v4560_v52, %v3600_v4  ;;  %v3676_v29 = vunpack.i.h.bf16 %v5091_v57 }
  0xef   : > { %v5239_v35 = vpop.permute.xlu0 %3763  ;;  %v1639_v52 = vsel %vm1635_vm5, %v1606_v31, %v3641_v55  ;;  %v3720_v4 = vunpack.i.l.bf16 %v5146_v62  ;;  %v3716_v57 = vunpack.i.h.bf16 %v5162_v22  ;;  %v3740_v39 = vunpack.i.l.bf16 %v5179_v10 }
  0xf0   : > { %v5251_v19 = vpop.permute.xlu1 %3778  ;;  %v1603_v54 = vsel %vm1602_vm4, %v6690_v48, %v3590_v7  ;;  %v1638_v7 = vsel %vm1635_vm5, %v1605_v9, %v3640_v47  ;;  %v3715_v48 = vunpack.i.l.bf16 %v5162_v22  ;;  %v1637_v9 = vsel %vm1635_vm5, %v1604_v15, %v3636_v20 }
  0xf1   : > { %4053 = vrot.lane.b32.xlu0 %v4810_v3, %s4355_s17  ;;  %v3681_v3 = vunpack.i.h.bf16 %v5073_v23  ;;  %v3721_v23 = vunpack.i.h.bf16 %v5146_v62  ;;  %v1636_v33 = vsel %vm1635_vm5, %v1603_v54, %v3635_v17  ;;  %v1654_v31 = vsel %vm1635_vm5, %v1621_v49, %v3680_v34 }
  0xf2   : > { %4068 = vrot.lane.b32.xlu1 %v4867_v44, %s4355_s17  ;;  %v1652_v62 = vsel %vm1635_vm5, %v1619_v45, %v3675_v27  ;;  %v3741_v47 = vunpack.i.h.bf16 %v5179_v10  ;;  %v1653_v20 = vsel %vm1635_vm5, %v1620_v8, %v3676_v29  ;;  %v3751_v22 = vunpack.i.h.bf16 %v5191_v13 }
  0xf3   : > { %v5270_v59 = vpop.permute.xlu0 %3773  ;;  %v3750_v15 = vunpack.i.l.bf16 %v5191_v13  ;;  %v3746_v55 = vunpack.i.h.bf16 %v5208_v51  ;;  %v1672_v27 = vsel %vm1668_vm6, %v1639_v52, %v3721_v23  ;;  %v1669_v10 = vsel %vm1668_vm6, %v1636_v33, %v3715_v48 }
  0xf4   : > { %v5282_v18 = vpop.permute.xlu1 %3788  ;;  %v1670_v54 = vsel %vm1668_vm6, %v1637_v9, %v3716_v57  ;;  %v1685_v13 = vsel %vm1668_vm6, %v1652_v62, %v3740_v39  ;;  %v3761_v17 = vunpack.i.h.bf16 %v5210_v38  ;;  %v3760_v49 = vunpack.i.l.bf16 %v5210_v38 }
  0xf5   : > { %4063 = vrot.lane.b32.xlu0 %v4793_v28, %s4355_s17  ;;  %v1686_v8 = vsel %vm1668_vm6, %v1653_v20, %v3741_v47  ;;  %v3756_v45 = vunpack.i.h.bf16 %v5216_v21  ;;  %v1702_v29 = vsel %vm1701_vm7, %v1669_v10, %v3750_v15  ;;  %v1703_v52 = vsel %vm1701_vm7, %v1670_v54, %v3751_v22 }
  0xf6   : > { %4078 = vrot.lane.b32.xlu1 %v5172_v2, %s4350_s6  ;;  %v1655_v2 = vsel %vm1635_vm5, %v1622_v43, %v3681_v3  ;;  %v1671_v43 = vsel %vm1668_vm6, %v1638_v7, %v3720_v4  ;;  %v3745_v3 = vunpack.i.l.bf16 %v5208_v51  ;;  %v3755_v7 = vunpack.i.l.bf16 %v5216_v21 }
  0xf7   : > { %v5303_v24 = vpop.permute.xlu0 %3783  ;;  %v3770_v51 = vunpack.i.l.bf16 %v5220_v63  ;;  %v5342_v23 = vsel %vm1668_vm6, %v1655_v2, %v3746_v55  ;;  %v3771_v38 = vunpack.i.h.bf16 %v5220_v63  ;;  %v3765_v21 = vunpack.i.l.bf16 %v5239_v35 }
  0xf8   : > { %v5309_v25 = vpop.permute.xlu1 %3798  ;;  %v1687_v4 = vsel %vm1668_vm6, %v1654_v31, %v3745_v3  ;;  %v3781_v48 = vunpack.i.h.bf16 %v5251_v19  ;;  %v3780_v33 = vunpack.i.l.bf16 %v5251_v19  ;;  %v1704_v57 = vsel %vm1701_vm7, %v1671_v43, %v3760_v49 }
  0xf9   : > { %4073 = vrot.lane.b32.xlu0 %v5184_v14, %s4350_s6  ;;  %v1705_v39 = vsel %vm1701_vm7, %v1672_v27, %v3761_v17  ;;  %v3775_v63 = vunpack.i.l.bf16 %v5270_v59  ;;  %v3790_v2 = vunpack.i.l.bf16 %v5282_v18  ;;  %v1718_v31 = vsel %vm1701_vm7, %v1685_v13, %v3755_v7 }
  0xfa   : > { %4088 = vrot.lane.b32.xlu1 %v5228_v58, %s4350_s6  ;;  %v1719_v62 = vsel %vm1701_vm7, %v1686_v8, %v3756_v45  ;;  %v1735_v47 = vsel %vm1734_vm8, %v1702_v29, %v3770_v51  ;;  %v3791_v19 = vunpack.i.h.bf16 %v5282_v18  ;;  %v1736_v20 = vsel %vm1734_vm8, %v1703_v52, %v3771_v38  ;;  %v6691_v8 = vld [vmem:[#allocation17_spill] sm:$0xff] }
  0xfb   : > { %v5327_v14 = vpop.permute.xlu0 %3793  ;;  %v3766_v22 = vunpack.i.h.bf16 %v5239_v35  ;;  %v5368_v43 = vsel %vm1701_vm7, %v1687_v4, %v3765_v21  ;;  %v1737_v27 = vsel %vm1734_vm8, %v1704_v57, %v3780_v33  ;;  %v1738_v10 = vsel %vm1734_vm8, %v1705_v39, %v3781_v48 }
  0xfc   : > { %v3809_v34 = vpop.permute.xlu1 %3808  ;;  %v3776_v18 = vunpack.i.h.bf16 %v5270_v59  ;;  %v1768_v54 = vsel %vm1767_vm9, %v1735_v47, %v3790_v2  ;;  %v3801_v35 = vunpack.i.h.bf16 %v5309_v25  ;;  %v3800_v13 = vunpack.i.l.bf16 %v5309_v25 }
  0xfd   : > { %4083 = vrot.lane.b32.xlu0 %v5234_v16, %s4350_s6  ;;  %v3811_v15 = vunpack.i.h.bf16 %v3809_v34  ;;  %v3810_v55 = vunpack.i.l.bf16 %v3809_v34  ;;  %v1769_v49 = vsel %vm1767_vm9, %v1736_v20, %v3791_v19  ;;  %v3795_v34 = vunpack.i.l.bf16 %v5327_v14 }
  0xfe   : > { %4098 = vrot.lane.b32.xlu1 %v6687_v50, %s4351_s7  ;;  %v1752_v25 = vsel %vm1734_vm8, %v1719_v62, %v3776_v18  ;;  %v3796_v38 = vunpack.i.h.bf16 %v5327_v14  ;;  %v3786_v33 = vunpack.i.h.bf16 %v5303_v24  ;;  %v1770_v57 = vsel %vm1767_vm9, %v1737_v27, %v3800_v13 }
  0xff   : > { %v5351_v9 = vpop.permute.xlu0 %3803  ;;  %v1801_v29 = vsel %vm1800_vm10, %v1768_v54, %v3810_v55  ;;  %v1802_v52 = vsel %vm1800_vm10, %v1769_v49, %v3811_v15  ;;  %v1771_v39 = vsel %vm1767_vm9, %v1738_v10, %v3801_v35  ;;  %v3785_v62 = vunpack.i.l.bf16 %v5303_v24 }
 0x100   : > { %v3819_v50 = vpop.permute.xlu1 %3818  ;;  %v1785_v15 = vsel %vm1767_vm9, %v1752_v25, %v3796_v38  ;;  %v3806_v55 = vunpack.i.h.bf16 %v5351_v9  ;;  %v3805_v10 = vunpack.i.l.bf16 %v5351_v9  ;;  %vm3179_vm0 = vcmask 27648  }
 0x101   : > { %4093 = vrot.lane.b32.xlu0 %v6688_v60, %s4351_s7  ;;  %v1751_v60 = vsel %vm1734_vm8, %v1718_v31, %v3775_v63  ;;  %v3821_v59 = vunpack.i.h.bf16 %v3819_v50  ;;  %v3820_v51 = vunpack.i.l.bf16 %v3819_v50 }
 0x102   : > { %4108 = vrot.lane.b32.xlu1 %v5236_v6, %s4351_s7  ;;  %v1784_v47 = vsel %vm1767_vm9, %v1751_v60, %v3795_v34  ;;  %v1721_v34 = vsel %vm1701_vm7, %v5342_v23, %v3766_v22  ;;  %v1403_v23 = vrot.slane %v5274_v1, 1 }
 0x103   : > { %v3814_v3 = vpop.permute.xlu0 %3813  ;;  %v1803_v19 = vsel %vm1800_vm10, %v1770_v57, %v3820_v51  ;;  %v1804_v20 = vsel %vm1800_vm10, %v1771_v39, %v3821_v59  ;;  %v1753_v59 = vsel %vm1734_vm8, %v5368_v43, %v3785_v62  ;;  %v1754_v51 = vsel %vm1734_vm8, %v1721_v34, %v3786_v33 }
 0x104   : > { %v3829_v17 = vpop.permute.xlu1 %3828  ;;  %v3816_v2 = vunpack.i.h.bf16 %v3814_v3  ;;  %v3815_v50 = vunpack.i.l.bf16 %v3814_v3  ;;  %v1786_v22 = vsel %vm1767_vm9, %v1753_v59, %v3805_v10  ;;  %v6692_v57 = vpack.i.bf16 %v5244_v11, %v5247_v36  ;;  %v6695_v10 = vld [vmem:[#allocation14_spill] sm:$0xff] }
 0x105   : > { %4103 = vrot.lane.b32.xlu0 %v6691_v8, %s4351_s7  ;;  %v3831_v45 = vunpack.i.h.bf16 %v3829_v17  ;;  %v3830_v7 = vunpack.i.l.bf16 %v3829_v17  ;;  %v1502_v62 = vrot.slane %v5244_v11, 2 }
 0x106   : > { %4118 = vrot.lane.b32.xlu1 %v4867_v44, %s4352_s8  ;;  %v1817_v17 = vsel %vm1800_vm10, %v1784_v47, %v3815_v50  ;;  %v1818_v49 = vsel %vm1800_vm10, %v1785_v15, %v3816_v2  ;;  %v3561_v15 = vunpack.i.h.bf16 %v4942_v40 }
 0x107   : > { %v3824_v4 = vpop.permute.xlu0 %3823  ;;  %v1834_v21 = vsel %vm1833_vm11, %v1801_v29, %v3830_v7  ;;  %v1835_v48 = vsel %vm1833_vm11, %v1802_v52, %v3831_v45  ;;  %v1401_v7 = vrot.slane %v5244_v11, 1 }
 0x108   : > { %v3839_v44 = vpop.permute.xlu1 %3838  ;;  %v1866_v63 = vpack.c.bf16 %v1835_v48, %v1834_v21  ;;  %v3826_v35 = vunpack.i.h.bf16 %v3824_v4  ;;  %v3825_v13 = vunpack.i.l.bf16 %v3824_v4 }
 0x109   : > { %4113 = vrot.lane.b32.xlu0 %v4793_v28, %s4352_s8  ;;  %v3841_v31 = vunpack.i.h.bf16 %v3839_v44  ;;  %v3840_v14 = vunpack.i.l.bf16 %v3839_v44 }
 0x10a   : > { %4128 = vrot.lane.b32.xlu1 %v5241_v26, %s4352_s8  ;;  %3480 = vmatprep.mubr.msk.bf16.mxu0 %vm1909_vm12, %v1866_v63  ;;  %v1819_v21 = vsel %vm1800_vm10, %v1786_v22, %v3825_v13  ;;  %v6693_v63 = vrot.slane %v5247_v36, 1 }
 0x10b   : > { %v1836_v28 = vsel %vm1833_vm11, %v1803_v19, %v3840_v14  ;;  %v1837_v27 = vsel %vm1833_vm11, %v1804_v20, %v3841_v31  ;;  %v3834_v24 = vpop.permute.xlu0 %3833  ;;  %v1501_v14 = vrot.slane %v5247_v36, 2  ;;  %v1504_v19 = vrot.slane %v5274_v1, 2 }
 0x10c   : > { %v1867_v18 = vpack.c.bf16 %v1837_v27, %v1836_v28  ;;  %v3836_v3 = vunpack.i.h.bf16 %v3834_v24  ;;  %v3835_v60 = vunpack.i.l.bf16 %v3834_v24  ;;  %v5406_v54 = vpop.permute.xlu1 %3848  ;;  %v1402_v2 = vsel %vm648_vm1, %v6693_v63, %v1401_v7 }
 0x10d   : > { %4123 = vrot.lane.b32.xlu0 %v4828_v53, %s4352_s8  ;;  %v1503_v11 = vsel %vm825_vm2, %v1501_v14, %v1502_v62  ;;  %v3565_v1 = vunpack.i.l.bf16 %v4952_v61  ;;  %v1608_v27 = vsel %vm1602_vm4, %v4422_v12, %v3561_v15  ;;  %v3686_v63 = vunpack.i.h.bf16 %v5100_v0 }
 0x10e   : > { %4138 = vrot.lane.b32.xlu1 %v5228_v58, %s4353_s9  ;;  %3481 = vmatmul.mubr.msk.bf16.vlgmr.msra.gmra.mrb[0].mxu0 %vm1909_vm12, %v1867_v18  ;;  %v1850_v9 = vsel %vm1833_vm11, %v1817_v17, %v3835_v60  ;;  %v1851_v45 = vsel %vm1833_vm11, %v1818_v49, %v3836_v3  ;;  %v1787_v58 = vsel %vm1767_vm9, %v1754_v51, %v3806_v55  ;;  %v6696_v18 = vld [vmem:[#allocation4_spill] sm:$0xff]  ;;  %v6698_v17 = vld [vmem:[#allocation3_spill] sm:$0xff]  ;;  %v6699_v49 = vld [vmem:[#allocation21_spill] sm:$0xff] }
 0x10f   : > { %v3844_v29 = vpop.permute.xlu0 %3843  ;;  %v1874_v52 = vpack.c.bf16 %v1851_v45, %v1850_v9  ;;  %v1820_v48 = vsel %vm1800_vm10, %v1787_v58, %v3826_v35  ;;  %v1505_v55 = vsel %vm825_vm2, %v1502_v62, %v1504_v19  ;;  %v3606_v3 = vunpack.i.h.bf16 %v6696_v18  ;;  %v6697_v35 = vld [vmem:[#allocation2_spill] sm:$0xff]  ;;  %v6701_v51 = vld [vmem:[#allocation7_spill] sm:$0xff] }
 0x110   : > { %v3846_v25 = vunpack.i.h.bf16 %v3844_v29  ;;  %v3845_v38 = vunpack.i.l.bf16 %v3844_v29  ;;  %v5426_v4 = vpop.permute.xlu1 %3858  ;;  %v3605_v60 = vunpack.i.l.bf16 %v6696_v18  ;;  %v3651_v34 = vunpack.i.h.bf16 %v6699_v49 }
 0x111   : > { %4133 = vrot.lane.b32.xlu0 %v5234_v16, %s4353_s9  ;;  %3496 = vmatprep.mubr.msk.bf16.mxu1 %vm1909_vm12, %v1874_v52  ;;  %v1404_v16 = vsel %vm648_vm1, %v1401_v7, %v1403_v23  ;;  %v3650_v9 = vunpack.i.l.bf16 %v6699_v49  ;;  %v6700_v7 = vld [vmem:[#allocation5_spill] sm:$0xff]  ;;  %v3646_v29 = vunpack.i.h.bf16 %v6701_v51  ;;  %v6702_v23 = vld [vmem:[#allocation15_spill] sm:$0xff]  ;;  %v3691_v58 = vunpack.i.h.bf16 %v5093_v41 }
 0x112   : > { %v1852_v43 = vsel %vm1833_vm11, %v1819_v21, %v3845_v38  ;;  %v1853_v33 = vsel %vm1833_vm11, %v1820_v48, %v3846_v25  ;;  %4148 = vrot.lane.b32.xlu1 %v6692_v57, %s4353_s9  ;;  %v4167_v31 = vpack.i.bf16 %v1404_v16, %v1402_v2  ;;  %v1609_v59 = vsel %vm1602_vm4, %v6700_v7, %v3565_v1  ;;  %v6703_v21 = vld [vmem:[#allocation16_spill] sm:$0xff]  ;;  %v6705_v57 = vld [vmem:[#allocation19_spill] sm:$0xff] }
 0x113   : > { %v1875_v39 = vpack.c.bf16 %v1853_v33, %v1852_v43  ;;  %v5439_v44 = vpop.permute.xlu0 %3853  ;;  %v3690_v25 = vunpack.i.l.bf16 %v5093_v41  ;;  %v3685_v38 = vunpack.i.l.bf16 %v5100_v0  ;;  %v6704_v43 = vld [vmem:[#allocation18_spill] sm:$0xff]  ;;  %v1642_v2 = vsel %vm1635_vm5, %v1609_v59, %v3650_v9 }
 0x114   : > { %v5445_v50 = vpop.permute.xlu1 %3868  ;;  %v1624_v33 = vsel %vm1602_vm4, %v6704_v43, %v3606_v3  ;;  %v3731_v16 = vunpack.i.h.bf16 %v5164_v30  ;;  %v1641_v14 = vsel %vm1635_vm5, %v1608_v27, %v3646_v29  ;;  %v3726_v19 = vunpack.i.h.bf16 %v5176_v46 }
 0x115   : > { %4143 = vrot.lane.b32.xlu0 %v4895_v42, %s4353_s9  ;;  %3497 = vmatmul.mubr.msk.bf16.vlgmr.msra.gmra.mrb[0].mxu1 %vm1909_vm12, %v1875_v39  ;;  %v3560_v42 = vunpack.i.l.bf16 %v4942_v40  ;;  %v1623_v39 = vsel %vm1602_vm4, %v6705_v57, %v3605_v60  ;;  %v3725_v0 = vunpack.i.l.bf16 %v5176_v46  ;;  %v1657_v1 = vsel %vm1635_vm5, %v1624_v33, %v3686_v63 }
 0x116   : > { %4158 = vrot.lane.b32.xlu1 %v5236_v6, %s4354_s14  ;;  %v3566_v6 = vunpack.i.h.bf16 %v4952_v61  ;;  %v4187_v61 = vpack.i.bf16 %v1505_v55, %v1503_v11  ;;  %v1656_v11 = vsel %vm1635_vm5, %v1623_v39, %v3685_v38  ;;  %v6706_v55 = vld [vmem:[#allocation25_spill] sm:$0xff]  ;;  %v3851_v27 = vunpack.i.h.bf16 %v5406_v54 }
 0x117   : > { %v5454_v47 = vpop.permute.xlu0 %3863  ;;  %v1607_v13 = vsel %vm1602_vm4, %v6697_v35, %v3560_v42  ;;  %v3860_v46 = vunpack.i.l.bf16 %v5426_v4  ;;  %v3855_v18 = vunpack.i.l.bf16 %v5439_v44  ;;  %v3870_v35 = vunpack.i.l.bf16 %v5445_v50 }
 0x118   : > { %v5457_v20 = vpop.permute.xlu1 %3878  ;;  %v1610_v12 = vsel %vm1602_vm4, %v6698_v17, %v3566_v6  ;;  %v3866_v17 = vunpack.i.h.bf16 %v5454_v47 }
 0x119   : > { %4153 = vrot.lane.b32.xlu0 %v6691_v8, %s4354_s14  ;;  %v6694_v8 = vld [vmem:[#allocation6_spill] sm:$0xff]  ;;  %v1643_v41 = vsel %vm1635_vm5, %v1610_v12, %v3651_v34  ;;  %v3865_v12 = vunpack.i.l.bf16 %v5454_v47  ;;  %v3880_v49 = vunpack.i.l.bf16 %v5457_v20  ;;  %v3881_v7 = vunpack.i.h.bf16 %v5457_v20 }
 0x11a   : > { %4168 = vrot.lane.b32.xlu1 %v4167_v31, %s4354_s14  ;;  %v3611_v24 = vunpack.i.h.bf16 %v6694_v8  ;;  %v3610_v40 = vunpack.i.l.bf16 %v6694_v8  ;;  %v3861_v8 = vunpack.i.h.bf16 %v5426_v4 }
 0x11b   : > { %v5465_v36 = vpop.permute.xlu0 %3873 }
 0x11c   : > { %v5470_v28 = vpop.permute.xlu1 %3888  ;;  %v1626_v22 = vsel %vm1602_vm4, %v6702_v23, %v3611_v24  ;;  %v1625_v48 = vsel %vm1602_vm4, %v6703_v21, %v3610_v40  ;;  %v3856_v40 = vunpack.i.h.bf16 %v5439_v44  ;;  %v1690_v44 = vsel %vm1668_vm6, %v1657_v1, %v3851_v27 }
 0x11d   : > { %4163 = vrot.lane.b32.xlu0 %v6695_v10, %s4354_s14  ;;  %v1659_v42 = vsel %vm1635_vm5, %v1626_v22, %v3691_v58  ;;  %v1658_v6 = vsel %vm1635_vm5, %v1625_v48, %v3690_v25  ;;  %v1676_v10 = vsel %vm1668_vm6, %v1643_v41, %v3731_v16  ;;  %v3890_v47 = vunpack.i.l.bf16 %v5470_v28 }
 0x11e   : > { %4178 = vrot.lane.b32.xlu1 %v5241_v26, %s4355_s17  ;;  %v3645_v26 = vunpack.i.l.bf16 %v6701_v51  ;;  %v5552_v59 = vsel %vm1668_vm6, %v1659_v42, %v3856_v40  ;;  %v3891_v51 = vunpack.i.h.bf16 %v5470_v28  ;;  %v1723_v38 = vsel %vm1701_vm7, %v1690_v44, %v3866_v17 }
 0x11f   : > { %v5488_v45 = vpop.permute.xlu0 %3883  ;;  %v3876_v43 = vunpack.i.h.bf16 %v5465_v36  ;;  %v3875_v39 = vunpack.i.l.bf16 %v5465_v36 }
 0x120   : > { %v5494_v52 = vpop.permute.xlu1 %3898  ;;  %v1640_v62 = vsel %vm1635_vm5, %v1607_v13, %v3645_v26  ;;  %v3885_v22 = vunpack.i.l.bf16 %v5488_v45 }
 0x121   : > { %4173 = vrot.lane.b32.xlu0 %v4828_v53, %s4355_s17  ;;  %v3730_v53 = vunpack.i.l.bf16 %v5164_v30  ;;  %v3850_v30 = vunpack.i.l.bf16 %v5406_v54  ;;  %v1673_v60 = vsel %vm1668_vm6, %v1640_v62, %v3725_v0  ;;  %v3871_v54 = vunpack.i.h.bf16 %v5445_v50 }
 0x122   : > { %4188 = vrot.lane.b32.xlu1 %v4187_v61, %s4355_s17  ;;  %v1674_v61 = vsel %vm1668_vm6, %v1641_v14, %v3726_v19  ;;  %v1706_v34 = vsel %vm1701_vm7, %v1673_v60, %v3860_v46  ;;  %v5555_v50 = vsel %vm1668_vm6, %v1658_v6, %v3855_v18  ;;  %v3900_v20 = vunpack.i.l.bf16 %v5494_v52 }
 0x123   : > { %v5515_v31 = vpop.permute.xlu0 %3893  ;;  %v1675_v24 = vsel %vm1668_vm6, %v1642_v2, %v3730_v53  ;;  %v1689_v4 = vsel %vm1668_vm6, %v1656_v11, %v3850_v30  ;;  %v1707_v9 = vsel %vm1701_vm7, %v1674_v61, %v3861_v8  ;;  %v1709_v26 = vsel %vm1701_vm7, %v1676_v10, %v3871_v54 }
 0x124   : > { %v5521_v15 = vpop.permute.xlu1 %3908  ;;  %v1708_v23 = vsel %vm1701_vm7, %v1675_v24, %v3870_v35  ;;  %v1722_v25 = vsel %vm1701_vm7, %v1689_v4, %v3865_v12  ;;  %v1739_v21 = vsel %vm1734_vm8, %v1706_v34, %v3880_v49  ;;  %v3901_v48 = vunpack.i.h.bf16 %v5494_v52 }
 0x125   : > { %4183 = vrot.lane.b32.xlu0 %v6706_v55, %s4355_s17  ;;  %v1740_v28 = vsel %vm1734_vm8, %v1707_v9, %v3881_v7  ;;  %v1741_v63 = vsel %vm1734_vm8, %v1708_v23, %v3890_v47  ;;  %v1742_v41 = vsel %vm1734_vm8, %v1709_v26, %v3891_v51  ;;  %v3886_v2 = vunpack.i.h.bf16 %v5488_v45 }
 0x126   : > { %v1755_v53 = vsel %vm1734_vm8, %v1722_v25, %v3885_v22  ;;  %v1772_v14 = vsel %vm1767_vm9, %v1739_v21, %v3900_v20  ;;  %v3911_v52 = vunpack.i.h.bf16 %v5521_v15  ;;  %v3910_v62 = vunpack.i.l.bf16 %v5521_v15 }
 0x127   : > { %v5537_v3 = vpop.permute.xlu0 %3903  ;;  %v1773_v0 = vsel %vm1767_vm9, %v1740_v28, %v3901_v48  ;;  %v1756_v1 = vsel %vm1734_vm8, %v1723_v38, %v3886_v2  ;;  %v3896_v24 = vunpack.i.h.bf16 %v5515_v31  ;;  %v3895_v4 = vunpack.i.l.bf16 %v5515_v31 }
 0x128   : > { %v3919_v13 = vpop.permute.xlu1 %3918  ;;  %v3905_v36 = vunpack.i.l.bf16 %v5537_v3  ;;  %v3906_v27 = vunpack.i.h.bf16 %v5537_v3  ;;  %v1774_v10 = vsel %vm1767_vm9, %v1741_v63, %v3910_v62  ;;  %v1775_v40 = vsel %vm1767_vm9, %v1742_v41, %v3911_v52 }
 0x129   : > { %v3921_v33 = vunpack.i.h.bf16 %v3919_v13  ;;  %v3920_v57 = vunpack.i.l.bf16 %v3919_v13  ;;  %v1724_v38 = vsel %vm1701_vm7, %v5555_v50, %v3875_v39  ;;  %v1725_v21 = vsel %vm1701_vm7, %v5552_v59, %v3876_v43 }
 0x12a   : > { %v1788_v3 = vsel %vm1767_vm9, %v1755_v53, %v3905_v36  ;;  %v1789_v49 = vsel %vm1767_vm9, %v1756_v1, %v3906_v27  ;;  %v1757_v28 = vsel %vm1734_vm8, %v1724_v38, %v3895_v4 }
 0x12b   : > { %v5559_v29 = vpop.permute.xlu0 %3913  ;;  %v1805_v11 = vsel %vm1800_vm10, %v1772_v14, %v3920_v57  ;;  %v1806_v45 = vsel %vm1800_vm10, %v1773_v0, %v3921_v33  ;;  %v1758_v33 = vsel %vm1734_vm8, %v1725_v21, %v3896_v24 }
 0x12c   : > { %v3929_v58 = vpop.permute.xlu1 %3928  ;;  %v3916_v44 = vunpack.i.h.bf16 %v5559_v29  ;;  %v3915_v51 = vunpack.i.l.bf16 %v5559_v29 }
 0x12d   : > { %v3931_v30 = vunpack.i.h.bf16 %v3929_v58  ;;  %v3930_v55 = vunpack.i.l.bf16 %v3929_v58 }
 0x12e   : > { %v1790_v41 = vsel %vm1767_vm9, %v1757_v28, %v3915_v51  ;;  %v1791_v2 = vsel %vm1767_vm9, %v1758_v33, %v3916_v44 }
 0x12f   : > { %v3924_v16 = vpop.permute.xlu0 %3923  ;;  %v1807_v17 = vsel %vm1800_vm10, %v1774_v10, %v3930_v55  ;;  %v1808_v12 = vsel %vm1800_vm10, %v1775_v40, %v3931_v30 }
 0x130   : > { %v3939_v19 = vpop.permute.xlu1 %3938  ;;  %v3926_v61 = vunpack.i.h.bf16 %v3924_v16  ;;  %v3925_v54 = vunpack.i.l.bf16 %v3924_v16 }
 0x131   : > { %v3941_v42 = vunpack.i.h.bf16 %v3939_v19  ;;  %v3940_v6 = vunpack.i.l.bf16 %v3939_v19 }
 0x132   : > { %v1821_v22 = vsel %vm1800_vm10, %v1788_v3, %v3925_v54  ;;  %v1822_v20 = vsel %vm1800_vm10, %v1789_v49, %v3926_v61  ;;  %v6707_v49 = vld [vmem:[#allocation20_spill] sm:$0xff] }
 0x133   : > { %v1838_v8 = vsel %vm1833_vm11, %v1805_v11, %v3940_v6  ;;  %v1839_v15 = vsel %vm1833_vm11, %v1806_v45, %v3941_v42  ;;  %v3934_v46 = vpop.permute.xlu0 %3933 }
 0x134   : > { %v1868_v18 = vpack.c.bf16 %v1839_v15, %v1838_v8  ;;  %v3949_v60 = vpop.permute.xlu1 %3948  ;;  %v3936_v58 = vunpack.i.h.bf16 %v3934_v46  ;;  %v3935_v25 = vunpack.i.l.bf16 %v3934_v46 }
 0x135   : > { %v3951_v35 = vunpack.i.h.bf16 %v3949_v60  ;;  %v3950_v13 = vunpack.i.l.bf16 %v3949_v60 }
 0x136   : > { %3484 = vmatprep.mubr.msk.bf16.mxu0 %vm1909_vm12, %v1868_v18  ;;  %v1823_v59 = vsel %vm1800_vm10, %v1790_v41, %v3935_v25  ;;  %v1824_v43 = vsel %vm1800_vm10, %v1791_v2, %v3936_v58 }
 0x137   : > { %v1840_v34 = vsel %vm1833_vm11, %v1807_v17, %v3950_v13  ;;  %v1841_v9 = vsel %vm1833_vm11, %v1808_v12, %v3951_v35  ;;  %v3944_v7 = vpop.permute.xlu0 %3943 }
 0x138   : > { %v1869_v31 = vpack.c.bf16 %v1841_v9, %v1840_v34  ;;  %v3946_v47 = vunpack.i.h.bf16 %v3944_v7  ;;  %v3945_v26 = vunpack.i.l.bf16 %v3944_v7  ;;  %v3959_v23 = vpop.permute.xlu1 %3958  ;;  %v6708_v7 = vld [vmem:[#allocation8_spill] sm:$0xff] }
 0x139   : > { %v3961_v1 = vunpack.i.h.bf16 %v3959_v23  ;;  %v3960_v27 = vunpack.i.l.bf16 %v3959_v23  ;;  %v6710_v23 = vld [vmem:[#allocation31_spill] sm:$0xff] }
 0x13a   : > { %v1854_v48 = vsel %vm1833_vm11, %v1821_v22, %v3945_v26  ;;  %v1855_v29 = vsel %vm1833_vm11, %v1822_v20, %v3946_v47  ;;  %3485 = vmatmul.mubr.msk.bf16.gmra.mrb[4].mxu0 %vm1909_vm12, %v1869_v31 }
 0x13b   : > { %v1876_v57 = vpack.c.bf16 %v1855_v29, %v1854_v48  ;;  %v3954_v63 = vpop.permute.xlu0 %3953  ;;  %v1693_v13 = vsel %vm1668_vm6, %v5133_v56, %v3960_v27  ;;  %v1694_v4 = vsel %vm1668_vm6, %v5136_v5, %v3961_v1 }
 0x13c   : > { %v3956_v50 = vunpack.i.h.bf16 %v3954_v63  ;;  %v3955_v39 = vunpack.i.l.bf16 %v3954_v63  ;;  %v3969_v16 = vpop.permute.xlu1 %3968 }
 0x13d   : > { %3500 = vmatprep.mubr.msk.bf16.mxu1 %vm1909_vm12, %v1876_v57  ;;  %v3971_v8 = vunpack.i.h.bf16 %v3969_v16  ;;  %v3970_v15 = vunpack.i.l.bf16 %v3969_v16 }
 0x13e   : > { %v1856_v53 = vsel %vm1833_vm11, %v1823_v59, %v3955_v39  ;;  %v1857_v14 = vsel %vm1833_vm11, %v1824_v43, %v3956_v50 }
 0x13f   : > { %v1877_v52 = vpack.c.bf16 %v1857_v14, %v1856_v53  ;;  %v3964_v62 = vpop.permute.xlu0 %3963  ;;  %v1696_v3 = vsel %vm1668_vm6, %v5115_v32, %v3971_v8  ;;  %v1695_v12 = vsel %vm1668_vm6, %v5118_v37, %v3970_v15  ;;  %v6709_v32 = vld [vmem:[#allocation30_spill] sm:$0xff] }
 0x140   : > { %v3979_v19 = vpop.permute.xlu1 %3978  ;;  %v3966_v46 = vunpack.i.h.bf16 %v3964_v62  ;;  %v3965_v24 = vunpack.i.l.bf16 %v3964_v62 }
 0x141   : > { %3501 = vmatmul.mubr.msk.bf16.gmra.mrb[4].mxu1 %vm1909_vm12, %v1877_v52  ;;  %v3981_v10 = vunpack.i.h.bf16 %v3979_v19  ;;  %v3980_v40 = vunpack.i.l.bf16 %v3979_v19 }
 0x142   : > { %v1680_v44 = vsel %vm1668_vm6, %v6707_v49, %v3966_v46  ;;  %v1679_v51 = vsel %vm1668_vm6, %v6708_v7, %v3965_v24 }
 0x143   : > { %v3974_v0 = vpop.permute.xlu0 %3973  ;;  %v1726_v56 = vsel %vm1701_vm7, %v1693_v13, %v3980_v40  ;;  %v1727_v31 = vsel %vm1701_vm7, %v1694_v4, %v3981_v10 }
 0x144   : > { %v3989_v36 = vpop.permute.xlu1 %3988  ;;  %v3976_v60 = vunpack.i.h.bf16 %v3974_v0  ;;  %v3975_v61 = vunpack.i.l.bf16 %v3974_v0 }
 0x145   : > { %v3990_v54 = vunpack.i.l.bf16 %v3989_v36  ;;  %v3991_v17 = vunpack.i.h.bf16 %v3989_v36 }
 0x146   : > { %v1710_v26 = vsel %vm1701_vm7, %v6709_v32, %v3975_v61  ;;  %v1711_v37 = vsel %vm1701_vm7, %v6710_v23, %v3976_v60 }
 0x147   : > { %v3984_v42 = vpop.permute.xlu0 %3983  ;;  %v1728_v22 = vsel %vm1701_vm7, %v1695_v12, %v3990_v54  ;;  %v1729_v25 = vsel %vm1701_vm7, %v1696_v3, %v3991_v17 }
 0x148   : > { %v3999_v6 = vpop.permute.xlu1 %3998  ;;  %v3986_v34 = vunpack.i.h.bf16 %v3984_v42  ;;  %v3985_v9 = vunpack.i.l.bf16 %v3984_v42 }
 0x149   : > { %v4000_v5 = vunpack.i.l.bf16 %v3999_v6  ;;  %v4001_v20 = vunpack.i.h.bf16 %v3999_v6 }
 0x14a   : > { %v1712_v29 = vsel %vm1701_vm7, %v1679_v51, %v3985_v9  ;;  %v1713_v28 = vsel %vm1701_vm7, %v1680_v44, %v3986_v34 }
 0x14b   : > { %v3994_v11 = vpop.permute.xlu0 %3993  ;;  %v1759_v63 = vsel %vm1734_vm8, %v1726_v56, %v4000_v5  ;;  %v1760_v16 = vsel %vm1734_vm8, %v1727_v31, %v4001_v20 }
 0x14c   : > { %v4009_v45 = vpop.permute.xlu1 %4008  ;;  %v3996_v38 = vunpack.i.h.bf16 %v3994_v11  ;;  %v3995_v21 = vunpack.i.l.bf16 %v3994_v11 }
 0x14d   : > { %v4010_v48 = vunpack.i.l.bf16 %v4009_v45  ;;  %v4011_v33 = vunpack.i.h.bf16 %v4009_v45 }
 0x14e   : > { %v1743_v52 = vsel %vm1734_vm8, %v1710_v26, %v3995_v21  ;;  %v1744_v62 = vsel %vm1734_vm8, %v1711_v37, %v3996_v38 }
 0x14f   : > { %v4004_v30 = vpop.permute.xlu0 %4003  ;;  %v1761_v19 = vsel %vm1734_vm8, %v1728_v22, %v4010_v48  ;;  %v1762_v36 = vsel %vm1734_vm8, %v1729_v25, %v4011_v33 }
 0x150   : > { %v4019_v55 = vpop.permute.xlu1 %4018  ;;  %v4005_v57 = vunpack.i.l.bf16 %v4004_v30  ;;  %v4006_v41 = vunpack.i.h.bf16 %v4004_v30 }
 0x151   : > { %v4021_v2 = vunpack.i.h.bf16 %v4019_v55  ;;  %v4020_v50 = vunpack.i.l.bf16 %v4019_v55 }
 0x152   : > { %v1745_v42 = vsel %vm1734_vm8, %v1712_v29, %v4005_v57  ;;  %v1746_v45 = vsel %vm1734_vm8, %v1713_v28, %v4006_v41 }
 0x153   : > { %v4014_v18 = vpop.permute.xlu0 %4013  ;;  %v1792_v30 = vsel %vm1767_vm9, %v1759_v63, %v4020_v50  ;;  %v1793_v55 = vsel %vm1767_vm9, %v1760_v16, %v4021_v2 }
 0x154   : > { %v4029_v35 = vpop.permute.xlu1 %4028  ;;  %v4016_v59 = vunpack.i.h.bf16 %v4014_v18  ;;  %v4015_v43 = vunpack.i.l.bf16 %v4014_v18 }
 0x155   : > { %v4030_v53 = vunpack.i.l.bf16 %v4029_v35  ;;  %v4031_v0 = vunpack.i.h.bf16 %v4029_v35 }
 0x156   : > { %v1776_v8 = vsel %vm1767_vm9, %v1743_v52, %v4015_v43  ;;  %v1777_v15 = vsel %vm1767_vm9, %v1744_v62, %v4016_v59 }
 0x157   : > { %v5633_v47 = vpop.permute.xlu0 %4023  ;;  %v1794_v46 = vsel %vm1767_vm9, %v1761_v19, %v4030_v53  ;;  %v1795_v40 = vsel %vm1767_vm9, %v1762_v36, %v4031_v0 }
 0x158   : > { %v4039_v58 = vpop.permute.xlu1 %4038  ;;  %v4026_v18 = vunpack.i.h.bf16 %v5633_v47  ;;  %v4025_v3 = vunpack.i.l.bf16 %v5633_v47 }
 0x159   : > { %v4041_v6 = vunpack.i.h.bf16 %v4039_v58  ;;  %v4040_v11 = vunpack.i.l.bf16 %v4039_v58 }
 0x15a   : > { %v1778_v20 = vsel %vm1767_vm9, %v1745_v42, %v4025_v3  ;;  %v1779_v48 = vsel %vm1767_vm9, %v1746_v45, %v4026_v18  ;;  %v6713_v3 = vld [vmem:[#allocation22_spill] sm:$0xff] }
 0x15b   : > { %v4034_v39 = vpop.permute.xlu0 %4033  ;;  %v1825_v54 = vsel %vm1800_vm10, %v1792_v30, %v4040_v11  ;;  %v1826_v35 = vsel %vm1800_vm10, %v1793_v55, %v4041_v6 }
 0x15c   : > { %v4049_v14 = vpop.permute.xlu1 %4048  ;;  %v4035_v1 = vunpack.i.l.bf16 %v4034_v39  ;;  %v4036_v24 = vunpack.i.h.bf16 %v4034_v39 }
 0x15d   : > { %v4051_v13 = vunpack.i.h.bf16 %v4049_v14  ;;  %v4050_v4 = vunpack.i.l.bf16 %v4049_v14 }
 0x15e   : > { %v1809_v17 = vsel %vm1800_vm10, %v1776_v8, %v4035_v1  ;;  %v1810_v34 = vsel %vm1800_vm10, %v1777_v15, %v4036_v24  ;;  %v6711_v15 = vld [vmem:[#allocation28_spill] sm:$0xff] }
 0x15f   : > { %v4044_v27 = vpop.permute.xlu0 %4043  ;;  %v1827_v23 = vsel %vm1800_vm10, %v1794_v46, %v4050_v4  ;;  %v1828_v47 = vsel %vm1800_vm10, %v1795_v40, %v4051_v13 }
 0x160   : > { %v4059_v10 = vpop.permute.xlu1 %4058  ;;  %v4046_v31 = vunpack.i.h.bf16 %v4044_v27  ;;  %v4045_v5 = vunpack.i.l.bf16 %v4044_v27 }
 0x161   : > { %v4061_v60 = vunpack.i.h.bf16 %v4059_v10  ;;  %v4060_v61 = vunpack.i.l.bf16 %v4059_v10 }
 0x162   : > { %v1811_v63 = vsel %vm1800_vm10, %v1778_v20, %v4045_v5  ;;  %v1812_v41 = vsel %vm1800_vm10, %v1779_v48, %v4046_v31 }
 0x163   : > { %v1858_v12 = vsel %vm1833_vm11, %v1825_v54, %v4060_v61  ;;  %v1859_v49 = vsel %vm1833_vm11, %v1826_v35, %v4061_v60  ;;  %v4054_v44 = vpop.permute.xlu0 %4053  ;;  %v6712_v60 = vld [vmem:[#allocation29_spill] sm:$0xff] }
 0x164   : > { %v1878_v9 = vpack.c.bf16 %v1859_v49, %v1858_v12  ;;  %v4056_v7 = vunpack.i.h.bf16 %v4054_v44  ;;  %v4055_v51 = vunpack.i.l.bf16 %v4054_v44  ;;  %v4069_v56 = vpop.permute.xlu1 %4068  ;;  %v6714_v12 = vld [vmem:[#allocation26_spill] sm:$0xff] }
 0x165   : > { %v4071_v32 = vunpack.i.h.bf16 %v4069_v56  ;;  %v4070_v26 = vunpack.i.l.bf16 %v4069_v56  ;;  %v6715_v44 = vld [vmem:[#allocation10_spill] sm:$0xff]  ;;  %v6717_v56 = vld [vmem:[#allocation23_spill] sm:$0xff] }
 0x166   : > { %v1842_v37 = vsel %vm1833_vm11, %v1809_v17, %v4055_v51  ;;  %v1843_v22 = vsel %vm1833_vm11, %v1810_v34, %v4056_v7  ;;  %3504 = vmatprep.mubr.msk.bf16.mxu1 %vm1909_vm12, %v1878_v9  ;;  %v6716_v7 = vld [vmem:[#allocation27_spill] sm:$0xff] }
 0x167   : > { %v1870_v58 = vpack.c.bf16 %v1843_v22, %v1842_v37  ;;  %v1860_v25 = vsel %vm1833_vm11, %v1827_v23, %v4070_v26  ;;  %v1861_v38 = vsel %vm1833_vm11, %v1828_v47, %v4071_v32  ;;  %v4064_v21 = vpop.permute.xlu0 %4063  ;;  %v6718_v26 = vld [vmem:[#allocation9_spill] sm:$0xff] }
 0x168   : > { %v1879_v29 = vpack.c.bf16 %v1861_v38, %v1860_v25  ;;  %v4066_v28 = vunpack.i.h.bf16 %v4064_v21  ;;  %v4065_v33 = vunpack.i.l.bf16 %v4064_v21  ;;  %v4079_v57 = vpop.permute.xlu1 %4078 }
 0x169   : > { %3488 = vmatprep.mubr.msk.bf16.mxu0 %vm1909_vm12, %v1870_v58  ;;  %v4080_v42 = vunpack.i.l.bf16 %v4079_v57  ;;  %v4081_v11 = vunpack.i.h.bf16 %v4079_v57 }
 0x16a   : > { %v1844_v2 = vsel %vm1833_vm11, %v1811_v63, %v4065_v33  ;;  %v1845_v50 = vsel %vm1833_vm11, %v1812_v41, %v4066_v28  ;;  %3505 = vmatmul.mubr.msk.bf16.gmra.mrb[8].mxu1 %vm1909_vm12, %v1879_v29 }
 0x16b   : > { %v1871_v39 = vpack.c.bf16 %v1845_v50, %v1844_v2  ;;  %v4074_v16 = vpop.permute.xlu0 %4073  ;;  %v1697_v46 = vsel %vm1668_vm6, %v6711_v15, %v4080_v42  ;;  %v1698_v61 = vsel %vm1668_vm6, %v6712_v60, %v4081_v11 }
 0x16c   : > { %v4089_v59 = vpop.permute.xlu1 %4088  ;;  %v4076_v30 = vunpack.i.h.bf16 %v4074_v16  ;;  %v4075_v55 = vunpack.i.l.bf16 %v4074_v16 }
 0x16d   : > { %3489 = vmatmul.mubr.msk.bf16.gmra.mrb[8].mxu0 %vm1909_vm12, %v1871_v39  ;;  %v4091_v1 = vunpack.i.h.bf16 %v4089_v59  ;;  %v4090_v27 = vunpack.i.l.bf16 %v4089_v59 }
 0x16e   : > { %v1681_v17 = vsel %vm1668_vm6, %v6713_v3, %v4075_v55  ;;  %v1682_v49 = vsel %vm1668_vm6, %v6714_v12, %v4076_v30 }
 0x16f   : > { %v4084_v43 = vpop.permute.xlu0 %4083  ;;  %v1700_v34 = vsel %vm1668_vm6, %v6715_v44, %v4091_v1  ;;  %v1699_v51 = vsel %vm1668_vm6, %v6716_v7, %v4090_v27 }
 0x170   : > { %v4099_v53 = vpop.permute.xlu1 %4098  ;;  %v4086_v8 = vunpack.i.h.bf16 %v4084_v43  ;;  %v4085_v24 = vunpack.i.l.bf16 %v4084_v43 }
 0x171   : > { %v4101_v10 = vunpack.i.h.bf16 %v4099_v53  ;;  %v4100_v40 = vunpack.i.l.bf16 %v4099_v53 }
 0x172   : > { %v1684_v31 = vsel %vm1668_vm6, %v6717_v56, %v4086_v8  ;;  %v1683_v23 = vsel %vm1668_vm6, %v6718_v26, %v4085_v24 }
 0x173   : > { %v4094_v14 = vpop.permute.xlu0 %4093  ;;  %v1730_v47 = vsel %vm1701_vm7, %v1697_v46, %v4100_v40  ;;  %v1731_v37 = vsel %vm1701_vm7, %v1698_v61, %v4101_v10 }
 0x174   : > { %v4109_v52 = vpop.permute.xlu1 %4108  ;;  %v4096_v54 = vunpack.i.h.bf16 %v4094_v14  ;;  %v4095_v35 = vunpack.i.l.bf16 %v4094_v14 }
 0x175   : > { %v4110_v13 = vunpack.i.l.bf16 %v4109_v52  ;;  %v4111_v9 = vunpack.i.h.bf16 %v4109_v52 }
 0x176   : > { %v1714_v58 = vsel %vm1701_vm7, %v1681_v17, %v4095_v35  ;;  %v1715_v25 = vsel %vm1701_vm7, %v1682_v49, %v4096_v54 }
 0x177   : > { %v4104_v62 = vpop.permute.xlu0 %4103  ;;  %v1732_v38 = vsel %vm1701_vm7, %v1699_v51, %v4110_v13  ;;  %v1733_v29 = vsel %vm1701_vm7, %v1700_v34, %v4111_v9 }
 0x178   : > { %v4119_v19 = vpop.permute.xlu1 %4118  ;;  %v4106_v5 = vunpack.i.h.bf16 %v4104_v62  ;;  %v4105_v32 = vunpack.i.l.bf16 %v4104_v62 }
 0x179   : > { %v4120_v22 = vunpack.i.l.bf16 %v4119_v19  ;;  %v4121_v21 = vunpack.i.h.bf16 %v4119_v19 }
 0x17a   : > { %v1716_v63 = vsel %vm1701_vm7, %v1683_v23, %v4105_v32  ;;  %v1717_v41 = vsel %vm1701_vm7, %v1684_v31, %v4106_v5 }
 0x17b   : > { %v4114_v0 = vpop.permute.xlu0 %4113  ;;  %v1763_v39 = vsel %vm1734_vm8, %v1730_v47, %v4120_v22  ;;  %v1764_v14 = vsel %vm1734_vm8, %v1731_v37, %v4121_v21 }
 0x17c   : > { %v4129_v36 = vpop.permute.xlu1 %4128  ;;  %v4116_v28 = vunpack.i.h.bf16 %v4114_v0  ;;  %v4115_v33 = vunpack.i.l.bf16 %v4114_v0 }
 0x17d   : > { %v4130_v57 = vunpack.i.l.bf16 %v4129_v36  ;;  %v4131_v2 = vunpack.i.h.bf16 %v4129_v36 }
 0x17e   : > { %v1747_v42 = vsel %vm1734_vm8, %v1714_v58, %v4115_v33  ;;  %v1748_v36 = vsel %vm1734_vm8, %v1715_v25, %v4116_v28 }
 0x17f   : > { %v5681_v6 = vpop.permute.xlu0 %4123  ;;  %v1765_v11 = vsel %vm1734_vm8, %v1732_v38, %v4130_v57 }
 0x180   : > { %v5683_v45 = vpop.permute.xlu1 %4138  ;;  %v4125_v50 = vunpack.i.l.bf16 %v5681_v6  ;;  %v4126_v16 = vunpack.i.h.bf16 %v5681_v6  ;;  %v1766_v6 = vsel %vm1734_vm8, %v1733_v29, %v4131_v2 }
 0x181   : > { %v4141_v59 = vunpack.i.h.bf16 %v5683_v45  ;;  %v4140_v43 = vunpack.i.l.bf16 %v5683_v45 }
 0x182   : > { %v1749_v55 = vsel %vm1734_vm8, %v1716_v63, %v4125_v50  ;;  %v1750_v27 = vsel %vm1734_vm8, %v1717_v41, %v4126_v16 }
 0x183   : > { %v4134_v18 = vpop.permute.xlu0 %4133  ;;  %v1796_v8 = vsel %vm1767_vm9, %v1763_v39, %v4140_v43  ;;  %v1797_v15 = vsel %vm1767_vm9, %v1764_v14, %v4141_v59 }
 0x184   : > { %v4149_v4 = vpop.permute.xlu1 %4148  ;;  %v4136_v52 = vunpack.i.h.bf16 %v4134_v18  ;;  %v4135_v62 = vunpack.i.l.bf16 %v4134_v18 }
 0x185   : > { %v4150_v19 = vunpack.i.l.bf16 %v4149_v4  ;;  %v4151_v30 = vunpack.i.h.bf16 %v4149_v4 }
 0x186   : > { %v1780_v10 = vsel %vm1767_vm9, %v1747_v42, %v4135_v62  ;;  %v1781_v40 = vsel %vm1767_vm9, %v1748_v36, %v4136_v52 }
 0x187   : > { %v5703_v20 = vpop.permute.xlu0 %4143  ;;  %v1798_v18 = vsel %vm1767_vm9, %v1765_v11, %v4150_v19  ;;  %v1799_v54 = vsel %vm1767_vm9, %v1766_v6, %v4151_v30 }
 0x188   : > { %v4159_v48 = vpop.permute.xlu1 %4158  ;;  %v4146_v35 = vunpack.i.h.bf16 %v5703_v20  ;;  %v4145_v44 = vunpack.i.l.bf16 %v5703_v20 }
 0x189   : > { %v4161_v1 = vunpack.i.h.bf16 %v4159_v48  ;;  %v4160_v45 = vunpack.i.l.bf16 %v4159_v48 }
 0x18a   : > { %v1782_v21 = vsel %vm1767_vm9, %v1749_v55, %v4145_v44  ;;  %v1783_v57 = vsel %vm1767_vm9, %v1750_v27, %v4146_v35 }
 0x18b   : > { %v4154_v53 = vpop.permute.xlu0 %4153  ;;  %v1829_v3 = vsel %vm1800_vm10, %v1796_v8, %v4160_v45  ;;  %v1830_v17 = vsel %vm1800_vm10, %v1797_v15, %v4161_v1 }
 0x18c   : > { %v4169_v0 = vpop.permute.xlu1 %4168  ;;  %v4155_v46 = vunpack.i.l.bf16 %v4154_v53  ;;  %v4156_v60 = vunpack.i.h.bf16 %v4154_v53  ;;  %v5756_v53 = vld [vmem:[%s6591_s4] ss:$0 sm:$0xff] }
 0x18d   : > { %v4171_v12 = vunpack.i.h.bf16 %v4169_v0  ;;  %v4170_v49 = vunpack.i.l.bf16 %v4169_v0 }
 0x18e   : > { %v1813_v34 = vsel %vm1800_vm10, %v1780_v10, %v4155_v46  ;;  %v1814_v56 = vsel %vm1800_vm10, %v1781_v40, %v4156_v60 }
 0x18f   : > { %v4164_v24 = vpop.permute.xlu0 %4163  ;;  %v1831_v58 = vsel %vm1800_vm10, %v1798_v18, %v4170_v49  ;;  %v1832_v20 = vsel %vm1800_vm10, %v1799_v54, %v4171_v12 }
 0x190   : > { %v4179_v61 = vpop.permute.xlu1 %4178  ;;  %v4166_v23 = vunpack.i.h.bf16 %v4164_v24  ;;  %v4165_v47 = vunpack.i.l.bf16 %v4164_v24 }
 0x191   : > { %v4181_v13 = vunpack.i.h.bf16 %v4179_v61  ;;  %v4180_v4 = vunpack.i.l.bf16 %v4179_v61 }
 0x192   : > { %v1815_v50 = vsel %vm1800_vm10, %v1782_v21, %v4165_v47  ;;  %v1816_v39 = vsel %vm1800_vm10, %v1783_v57, %v4166_v23 }
 0x193   : > { %v1862_v9 = vsel %vm1833_vm11, %v1829_v3, %v4180_v4  ;;  %v1863_v7 = vsel %vm1833_vm11, %v1830_v17, %v4181_v13  ;;  %v4174_v51 = vpop.permute.xlu0 %4173 }
 0x194   : > { %v1880_v31 = vpack.c.bf16 %v1863_v7, %v1862_v9  ;;  %v4176_v5 = vunpack.i.h.bf16 %v4174_v51  ;;  %v4175_v32 = vunpack.i.l.bf16 %v4174_v51  ;;  %v4189_v26 = vpop.permute.xlu1 %4188 }
 0x195   : > { %v4191_v37 = vunpack.i.h.bf16 %v4189_v26  ;;  %v4190_v22 = vunpack.i.l.bf16 %v4189_v26 }
 0x196   : > { %v1846_v25 = vsel %vm1833_vm11, %v1813_v34, %v4175_v32  ;;  %v1847_v38 = vsel %vm1833_vm11, %v1814_v56, %v4176_v5  ;;  %3508 = vmatprep.mubr.msk.bf16.mxu1 %vm1909_vm12, %v1880_v31 }
 0x197   : > { %v1872_v48 = vpack.c.bf16 %v1847_v38, %v1846_v25  ;;  %v1864_v29 = vsel %vm1833_vm11, %v1831_v58, %v4190_v22  ;;  %v1865_v28 = vsel %vm1833_vm11, %v1832_v20, %v4191_v37  ;;  %v4184_v33 = vpop.permute.xlu0 %4183 }
 0x198   : > { %v1881_v63 = vpack.c.bf16 %v1865_v28, %v1864_v29  ;;  %v4186_v41 = vunpack.i.h.bf16 %v4184_v33  ;;  %v4185_v2 = vunpack.i.l.bf16 %v4184_v33 }
 0x199   : > { %3492 = vmatprep.mubr.msk.bf16.mxu0 %vm1909_vm12, %v1872_v48 }
 0x19a   : > { %v1848_v16 = vsel %vm1833_vm11, %v1815_v50, %v4185_v2  ;;  %v1849_v59 = vsel %vm1833_vm11, %v1816_v39, %v4186_v41  ;;  %3509 = vmatmul.mubr.msk.bf16.gmra.mrb[12].mxu1 %vm1909_vm12, %v1881_v63 }
 0x19b   : > { %v1873_v43 = vpack.c.bf16 %v1849_v59, %v1848_v16 }
 0x19d   : > { %3493 = vmatmul.mubr.msk.bf16.gmra.mrb[12].mxu0 %vm1909_vm12, %v1873_v43 }
 0x1e1   : > { %v3482_v14 = vpop.f32.mrb[0].mxu0 }
 0x1e2   : > { %v2005_v52 = vadd.f32 %v3482_v14, %v5756_v53  ;;  %v1996_v62 = vpop.f32.mrb[1].mxu0 }
 0x1e3   : > { %v1997_v19 = vadd.f32 %v5756_v53, %v1996_v62  ;;  %v3483_v0 = vpop.f32.mrb[2].mxu0 }
 0x1e4   : > { %v5760_v42 = vmul.f32 0.70710677, %v2005_v52  ;;  %v5763_v36 = vadd.f32 %v3483_v0, %v5756_v53  ;;  %v1999_v11 = vpop.f32.mrb[3].mxu0  ;;  %v5804_v37 = vmul.f32 0.5, %v2005_v52 }
 0x1e5   : > { %v5765_v30 = vmul.f32 0.70710677, %v1997_v19  ;;  %v5768_v6 = vadd.f32 %v5756_v53, %v1999_v11  ;;  %v5809_v20 = vmul.f32 0.5, %v1997_v19 }
 0x1e6   : > { %v2189_v55 = vand.u32 2147483647, %v5760_v42  ;;  %v5772_v1 = vmul.f32 0.70710677, %v5763_v36  ;;  %vm2893_vm13 = vcmp.lt.f32.partialorder %v5760_v42, 0.0 }
 0x1e7   : > { %v2187_v45 = vand.u32 2147483647, %v5765_v30  ;;  %v5776_v27 = vmul.f32 0.70710677, %v5768_v6  ;;  %vm2891_vm14 = vcmp.lt.f32.partialorder %v5765_v30, 0.0 }
 0x1e8   : > { %v2221_v8 = vmul.f32 0.3275911, %v2189_v55  ;;  %v2190_v15 = vand.u32 2147483647, %v5772_v1  ;;  %v3498_v18 = vpop.f32.mrb[0].mxu1  ;;  %v2701_v3 = vsub.f32 0.0, %v2189_v55 }
 0x1e9   : > { %v2219_v46 = vmul.f32 0.3275911, %v2187_v45  ;;  %v2188_v24 = vand.u32 2147483647, %v5776_v27  ;;  %v2060_v54 = vpop.f32.mrb[1].mxu1  ;;  %v5781_v12 = vadd.f32 %v3498_v18, %v5756_v53  ;;  %v2699_v44 = vsub.f32 0.0, %v2187_v45 }
 0x1ea   : > { %v2253_v10 = vadd.f32 1.0, %v2221_v8  ;;  %v2222_v40 = vmul.f32 0.3275911, %v2190_v15  ;;  %v3499_v13 = vpop.f32.mrb[2].mxu1  ;;  %v5784_v49 = vadd.f32 %v5756_v53, %v2060_v54  ;;  %v2733_v31 = vmul.f32 %v2701_v3, %v2189_v55 }
 0x1eb   : > { %v2251_v60 = vadd.f32 1.0, %v2219_v46  ;;  %v2220_v61 = vmul.f32 0.3275911, %v2188_v24  ;;  %v2063_v4 = vpop.f32.mrb[3].mxu1  ;;  %v5787_v34 = vadd.f32 %v3499_v13, %v5756_v53  ;;  %v5790_v9 = vmul.f32 0.70710677, %v5781_v12 }
 0x1ec   : > { %4195 = vrcp.f32 %v2253_v10  ;;  %v2254_v35 = vadd.f32 1.0, %v2222_v40  ;;  %v5793_v7 = vadd.f32 %v5756_v53, %v2063_v4  ;;  %v5796_v51 = vmul.f32 0.70710677, %v5784_v49 }
 0x1ed   : > { %4197 = vrcp.f32 %v2251_v60  ;;  %v2252_v17 = vadd.f32 1.0, %v2220_v61  ;;  %v5799_v56 = vmul.f32 0.70710677, %v5787_v34  ;;  %v2205_v5 = vand.u32 2147483647, %v5790_v9 }
 0x1ee   : > { %4199 = vrcp.f32 %v2254_v35  ;;  %v2731_v32 = vmul.f32 %v2699_v44, %v2187_v45  ;;  %v2702_v26 = vsub.f32 0.0, %v2190_v15  ;;  %v2203_v23 = vand.u32 2147483647, %v5796_v51 }
 0x1ef   : > { %4201 = vrcp.f32 %v2252_v17  ;;  %v2206_v47 = vand.u32 2147483647, %v5799_v56  ;;  %v2237_v22 = vmul.f32 0.3275911, %v2205_v5  ;;  %v5807_v58 = vmul.f32 0.70710677, %v5793_v7 }
 0x1f0   : > { %v2700_v25 = vsub.f32 0.0, %v2188_v24  ;;  %v2235_v38 = vmul.f32 0.3275911, %v2203_v23  ;;  %v2767_v29 = vmul.f32 1.442695, %v2733_v31  ;;  %v2717_v33 = vsub.f32 0.0, %v2205_v5 }
 0x1f1   : > { %v2238_v21 = vmul.f32 0.3275911, %v2206_v47  ;;  %v2269_v28 = vadd.f32 1.0, %v2237_v22  ;;  %v2204_v57 = vand.u32 2147483647, %v5807_v58  ;;  %v2734_v50 = vmul.f32 %v2702_v26, %v2190_v15 }
 0x1f2   : > { %v2763_v2 = vmul.f32 1.442695, %v2731_v32  ;;  %v2267_v39 = vadd.f32 1.0, %v2235_v38  ;;  %v2715_v59 = vsub.f32 0.0, %v2203_v23  ;;  %v2732_v52 = vmul.f32 %v2700_v25, %v2188_v24 }
 0x1f3   : > { %4203 = vrcp.f32 %v2269_v28  ;;  %v5812_v43 = vadd.f32 1.0, %v2238_v21  ;;  %v2236_v62 = vmul.f32 0.3275911, %v2204_v57  ;;  %v2749_v11 = vmul.f32 %v2717_v33, %v2205_v5 }
 0x1f4   : > { %4205 = vrcp.f32 %v2267_v39  ;;  %v2718_v55 = vsub.f32 0.0, %v2206_v47  ;;  %v2769_v46 = vmul.f32 1.442695, %v2734_v50  ;;  %v2747_v18 = vmul.f32 %v2715_v59, %v2203_v23 }
 0x1f5   : > { %4207 = vpow2.f32 %v2767_v29  ;;  %v5816_v15 = vadd.f32 1.0, %v2236_v62  ;;  %v2716_v24 = vsub.f32 0.0, %v2204_v57  ;;  %v2765_v13 = vmul.f32 1.442695, %v2732_v52 }
 0x1f6   : > { %v4196_v48 = vpop.eup %4195  ;;  %4209 = vrcp.f32 %v5812_v43  ;;  %v2799_v3 = vmul.f32 1.442695, %v2749_v11  ;;  %v2750_v44 = vmul.f32 %v2718_v55, %v2206_v47  ;;  %v2795_v26 = vmul.f32 1.442695, %v2747_v18 }
 0x1f7   : > { %v4198_v63 = vpop.eup %4197  ;;  %v2317_v41 = vmul.f32 %v4196_v48, %v2253_v10  ;;  %4211 = vrcp.f32 %v5816_v15  ;;  %v2748_v23 = vmul.f32 %v2716_v24, %v2204_v57  ;;  %v5832_v21 = vmul.f32 0.5, %v5763_v36 }
 0x1f8   : > { %v2315_v16 = vmul.f32 %v4198_v63, %v2251_v60  ;;  %v4200_v19 = vpop.eup %4199  ;;  %4213 = vpow2.f32 %v2763_v2  ;;  %v5839_v11 = vmul.f32 0.5, %v5768_v6  ;;  %vm2894_vm15 = vcmp.lt.f32.partialorder %v5772_v1, 0.0 }
 0x1f9   : > { %v2349_v14 = vsub.f32 2.0, %v2317_v41  ;;  %v2318_v8 = vmul.f32 %v4200_v19, %v2254_v35  ;;  %v4202_v10 = vpop.eup %4201  ;;  %4215 = vpow2.f32 %v2769_v46  ;;  %v2797_v59 = vmul.f32 1.442695, %v2748_v23 }
 0x1fa   : > { %v2347_v0 = vsub.f32 2.0, %v2315_v16  ;;  %v2316_v54 = vmul.f32 %v4202_v10, %v2252_v17  ;;  %4217 = vpow2.f32 %v2765_v13  ;;  %vm2892_vm1 = vcmp.lt.f32.partialorder %v5776_v27, 0.0 }
 0x1fb   : > { %v5814_v45 = vmul.f32 %v4196_v48, %v2349_v14  ;;  %v2350_v61 = vsub.f32 2.0, %v2318_v8  ;;  %4219 = vpow2.f32 %v2799_v3  ;;  %v2801_v48 = vmul.f32 1.442695, %v2750_v44 }
 0x1fc   : > { %v5818_v40 = vmul.f32 %v4198_v63, %v2347_v0  ;;  %v2348_v5 = vsub.f32 2.0, %v2316_v54  ;;  %4221 = vpow2.f32 %v2795_v26  ;;  %vm2909_vm2 = vcmp.lt.f32.partialorder %v5790_v9, 0.0 }
 0x1fd   : > { %v2413_v60 = vmul.f32 1.0614054, %v5814_v45  ;;  %v5824_v31 = vmul.f32 %v4200_v19, %v2350_v61  ;;  %v4204_v38 = vpop.eup %4203  ;;  %4223 = vpow2.f32 %v2801_v48  ;;  %vm2907_vm3 = vcmp.lt.f32.partialorder %v5796_v51, 0.0 }
 0x1fe   : > { %v2411_v4 = vmul.f32 1.0614054, %v5818_v40  ;;  %v5828_v25 = vmul.f32 %v4202_v10, %v2348_v5  ;;  %v4206_v29 = vpop.eup %4205  ;;  %v2333_v41 = vmul.f32 %v4204_v38, %v2269_v28  ;;  %4225 = vpow2.f32 %v2797_v59 }
 0x1ff   : > { %v2445_v35 = vadd.f32 -1.4531521, %v2413_v60  ;;  %v2414_v17 = vmul.f32 1.0614054, %v5824_v31  ;;  %v4208_v2 = vpop.eup %4207  ;;  %v2331_v16 = vmul.f32 %v4206_v29, %v2267_v39  ;;  %vm2910_vm4 = vcmp.lt.f32.partialorder %v5799_v56, 0.0 }
 0x200   : > { %v2443_v32 = vadd.f32 -1.4531521, %v2411_v4  ;;  %v2412_v57 = vmul.f32 1.0614054, %v5828_v25  ;;  %v2365_v36 = vsub.f32 2.0, %v2333_v41  ;;  %v4210_v19 = vpop.eup %4209  ;;  %vm2908_vm5 = vcmp.lt.f32.partialorder %v5807_v58, 0.0 }
 0x201   : > { %v2477_v22 = vmul.f32 %v2445_v35, %v5814_v45  ;;  %v2446_v63 = vadd.f32 -1.4531521, %v2414_v17  ;;  %v2363_v55 = vsub.f32 2.0, %v2331_v16  ;;  %v4212_v10 = vpop.eup %4211  ;;  %v2334_v60 = vmul.f32 %v4210_v19, %v5812_v43 }
 0x202   : > { %v2475_v47 = vmul.f32 %v2443_v32, %v5818_v40  ;;  %v2444_v62 = vadd.f32 -1.4531521, %v2412_v57  ;;  %v5842_v46 = vmul.f32 %v4204_v38, %v2365_v36  ;;  %v4214_v61 = vpop.eup %4213  ;;  %v2332_v32 = vmul.f32 %v4212_v10, %v5816_v15 }
 0x203   : > { %v2509_v33 = vadd.f32 1.4214138, %v2477_v22  ;;  %v2478_v52 = vmul.f32 %v2446_v63, %v5824_v31  ;;  %v5844_v24 = vmul.f32 %v4206_v29, %v2363_v55  ;;  %v4216_v3 = vpop.eup %4215  ;;  %v2366_v5 = vsub.f32 2.0, %v2334_v60 }
 0x204   : > { %v2507_v50 = vadd.f32 1.4214138, %v2475_v47  ;;  %v2476_v39 = vmul.f32 %v2444_v62, %v5828_v25  ;;  %v2429_v4 = vmul.f32 1.0614054, %v5842_v46  ;;  %v4218_v26 = vpop.eup %4217 }
 0x205   : > { %v2541_v14 = vmul.f32 %v2509_v33, %v5814_v45  ;;  %v2510_v8 = vadd.f32 1.4214138, %v2478_v52  ;;  %v2427_v35 = vmul.f32 1.0614054, %v5844_v24  ;;  %v5854_v38 = vpop.eup %4219  ;;  %v5857_v29 = vmul.f32 %v4210_v19, %v2366_v5 }
 0x206   : > { %v2539_v0 = vmul.f32 %v2507_v50, %v5818_v40  ;;  %v2508_v13 = vadd.f32 1.4214138, %v2476_v39  ;;  %v2461_v17 = vadd.f32 -1.4531521, %v2429_v4  ;;  %v2364_v33 = vsub.f32 2.0, %v2332_v32  ;;  %v5865_v16 = vpop.eup %4221 }
 0x207   : > { %v2573_v28 = vadd.f32 -0.28449672, %v2541_v14  ;;  %v2542_v6 = vmul.f32 %v2510_v8, %v5824_v31  ;;  %v2459_v48 = vadd.f32 -1.4531521, %v2427_v35  ;;  %v2430_v52 = vmul.f32 1.0614054, %v5857_v29  ;;  %v5877_v8 = vpop.eup %4223 }
 0x208   : > { %v2571_v18 = vadd.f32 -0.28449672, %v2539_v0  ;;  %v2540_v22 = vmul.f32 %v2508_v13, %v5828_v25  ;;  %v2493_v41 = vmul.f32 %v2461_v17, %v5842_v46  ;;  %v5870_v62 = vmul.f32 %v4212_v10, %v2364_v33  ;;  %v5885_v4 = vpop.eup %4225 }
 0x209   : > { %v2605_v54 = vmul.f32 %v2573_v28, %v5814_v45  ;;  %v2574_v43 = vadd.f32 -0.28449672, %v2542_v6  ;;  %v2491_v14 = vmul.f32 %v2459_v48, %v5844_v24 }
 0x20a   : > { %v2603_v44 = vmul.f32 %v2571_v18, %v5818_v40  ;;  %v2572_v57 = vadd.f32 -0.28449672, %v2540_v22  ;;  %v2525_v55 = vadd.f32 1.4214138, %v2493_v41  ;;  %v2462_v18 = vadd.f32 -1.4531521, %v2430_v52 }
 0x20b   : > { %v2637_v23 = vadd.f32 0.2548296, %v2605_v54  ;;  %v2606_v15 = vmul.f32 %v2574_v43, %v5824_v31  ;;  %v2428_v60 = vmul.f32 1.0614054, %v5870_v62 }
 0x20c   : > { %v2635_v47 = vadd.f32 0.2548296, %v2603_v44  ;;  %v2604_v0 = vmul.f32 %v2572_v57, %v5828_v25  ;;  %v2557_v6 = vmul.f32 %v2525_v55, %v5842_v46  ;;  %v2494_v35 = vmul.f32 %v2462_v18, %v5857_v29 }
 0x20d   : > { %v2669_v63 = vmul.f32 %v2637_v23, %v5814_v45  ;;  %v5863_v50 = vpop.f32.mrb[4].mxu0  ;;  %v2638_v19 = vadd.f32 0.2548296, %v2606_v15  ;;  %v2460_v5 = vadd.f32 -1.4531521, %v2428_v60 }
 0x20e   : > { %v2667_v59 = vmul.f32 %v2635_v47, %v5818_v40  ;;  %v5872_v45 = vpop.f32.mrb[5].mxu0  ;;  %v2523_v40 = vadd.f32 1.4214138, %v2491_v14  ;;  %v2589_v43 = vadd.f32 -0.28449672, %v2557_v6  ;;  %v5932_v27 = vadd.f32 %v5863_v50, %v5756_v53 }
 0x20f   : > { %v2829_v36 = vmul.f32 %v4208_v2, %v2669_v63  ;;  %v5875_v28 = vpop.f32.mrb[6].mxu0  ;;  %v2670_v54 = vmul.f32 %v2638_v19, %v5824_v31  ;;  %v2636_v2 = vadd.f32 0.2548296, %v2604_v0  ;;  %v2526_v47 = vadd.f32 1.4214138, %v2494_v35 }
 0x210   : > { %v2827_v39 = vmul.f32 %v4214_v61, %v2667_v59  ;;  %v5883_v13 = vpop.f32.mrb[7].mxu0  ;;  %v2555_v61 = vmul.f32 %v2523_v40, %v5844_v24  ;;  %v2492_v48 = vmul.f32 %v2460_v5, %v5870_v62  ;;  %v2621_v41 = vmul.f32 %v2589_v43, %v5842_v46 }
 0x211   : > { %v2861_v10 = vsub.f32 1.0, %v2829_v36  ;;  %v2830_v23 = vmul.f32 %v4216_v3, %v2670_v54  ;;  %v2668_v31 = vmul.f32 %v2636_v2, %v5828_v25  ;;  %v2558_v52 = vmul.f32 %v2526_v47, %v5857_v29 }
 0x212   : > { %v2859_v44 = vsub.f32 1.0, %v2827_v39  ;;  %v2587_v17 = vadd.f32 -0.28449672, %v2555_v61  ;;  %v2653_v55 = vadd.f32 0.2548296, %v2621_v41  ;;  %v2141_v47 = vmul.f32 0.5, %v5781_v12 }
 0x213   : > { %v2925_v32 = vsub.f32 0.0, %v2861_v10  ;;  %v2862_v15 = vsub.f32 1.0, %v2830_v23  ;;  %v2828_v57 = vmul.f32 %v4218_v26, %v2668_v31  ;;  %v2590_v18 = vadd.f32 -0.28449672, %v2558_v52 }
 0x214   : > { %v2923_v22 = vsub.f32 0.0, %v2859_v44  ;;  %v5892_v33 = vpop.f32.mrb[4].mxu1  ;;  %v2619_v14 = vmul.f32 %v2587_v17, %v5844_v24  ;;  %v2524_v60 = vadd.f32 1.4214138, %v2492_v48  ;;  %v2685_v2 = vmul.f32 %v2653_v55, %v5842_v46 }
 0x215   : > { %v2957_v63 = vsel %vm2893_vm13, %v2925_v32, %v2861_v10  ;;  %v5897_v59 = vpop.f32.mrb[5].mxu1  ;;  %v2926_v42 = vsub.f32 0.0, %v2862_v15  ;;  %v2860_v0 = vsub.f32 1.0, %v2828_v57  ;;  %v2622_v61 = vmul.f32 %v2590_v18, %v5857_v29 }
 0x216   : > { %v2989_v3 = vadd.f32 1.0, %v2957_v63  ;;  %v2955_v25 = vsel %vm2891_vm14, %v2923_v22, %v2859_v44  ;;  %v5904_v36 = vpop.f32.mrb[6].mxu1  ;;  %v2651_v40 = vadd.f32 0.2548296, %v2619_v14  ;;  %v2845_v32 = vmul.f32 %v5854_v38, %v2685_v2 }
 0x217   : > { %v2987_v19 = vadd.f32 1.0, %v2955_v25  ;;  %v5906_v26 = vpop.f32.mrb[7].mxu1  ;;  %v2958_v10 = vsel %vm2894_vm15, %v2926_v42, %v2862_v15  ;;  %v2924_v54 = vsub.f32 0.0, %v2860_v0  ;;  %v2654_v31 = vadd.f32 0.2548296, %v2622_v61 }
 0x218   : > { %v3021_v39 = vmul.f32 %v2989_v3, %v5804_v37  ;;  %v2990_v37 = vadd.f32 1.0, %v2958_v10  ;;  %v2683_v44 = vmul.f32 %v2651_v40, %v5844_v24  ;;  %v2877_v24 = vsub.f32 1.0, %v2845_v32 }
 0x219   : > { %v3019_v30 = vmul.f32 %v2987_v19, %v5809_v20  ;;  %v2956_v5 = vsel %vm2892_vm1, %v2924_v54, %v2860_v0  ;;  %v2556_v20 = vmul.f32 %v2524_v60, %v5870_v62  ;;  %v5936_v38 = vadd.f32 %v5756_v53, %v5872_v45 }
 0x21a   : > { %v3424_v6 = vpack.c.bf16 %v3021_v39, %v3021_v39  ;;  %v3022_v1 = vmul.f32 %v2990_v37, %v5832_v21  ;;  %v2988_v23 = vadd.f32 1.0, %v2956_v5  ;;  %v2843_v46 = vmul.f32 %v5865_v16, %v2683_v44 }
 0x21b   : > { %v3422_v35 = vpack.c.bf16 %v3019_v30, %v3019_v30  ;;  %v2588_v43 = vadd.f32 -0.28449672, %v2556_v20  ;;  %v2686_v16 = vmul.f32 %v2654_v31, %v5857_v29  ;;  %v2941_v48 = vsub.f32 0.0, %v2877_v24 }
 0x21c   : > { %3182 = vst.msk [vmem:[%s5912_s30 + $0x8] sm:$0xf] %vm3179_vm0, %v3424_v6  ;;  %v3425_v22 = vpack.c.bf16 %v3022_v1, %v3022_v1  ;;  %v3020_v21 = vmul.f32 %v2988_v23, %v5839_v11  ;;  %v2875_v17 = vsub.f32 1.0, %v2843_v46  ;;  %v5943_v15 = vmul.f32 0.70710677, %v5932_v27 }
 0x21d   : > { %3180 = vst.msk [vmem:[%s5912_s30] sm:$0xf] %vm3179_vm0, %v3422_v35  ;;  %v2620_v63 = vmul.f32 %v2588_v43, %v5870_v62  ;;  %v2846_v11 = vmul.f32 %v5877_v8, %v2686_v16  ;;  %v2973_v57 = vsel %vm2909_vm2, %v2941_v48, %v2877_v24  ;;  %v5954_v14 = vmul.f32 0.70710677, %v5936_v38 }
 0x21e   : > { %3183 = vst.msk [vmem:[%s5912_s30 + $0xc] sm:$0xf] %vm3179_vm0, %v3425_v22  ;;  %v3423_v50 = vpack.c.bf16 %v3020_v21, %v3020_v21  ;;  %v2939_v45 = vsub.f32 0.0, %v2875_v17  ;;  %v2193_v12 = vand.u32 2147483647, %v5943_v15  ;;  %v3005_v41 = vadd.f32 1.0, %v2973_v57 }
 0x21f   : > { %v2652_v29 = vadd.f32 0.2548296, %v2620_v63  ;;  %v2878_v25 = vsub.f32 1.0, %v2846_v11  ;;  %v2139_v52 = vmul.f32 0.5, %v5784_v49  ;;  %v2191_v0 = vand.u32 2147483647, %v5954_v14 }
 0x220   : > { %3181 = vst.msk [vmem:[%s5912_s30 + $0x4] sm:$0xf] %vm3179_vm0, %v3423_v50  ;;  %v2971_v3 = vsel %vm2907_vm3, %v2939_v45, %v2875_v17  ;;  %v2225_v8 = vmul.f32 0.3275911, %v2193_v12  ;;  %v3037_v42 = vmul.f32 %v3005_v41, %v2141_v47  ;;  %v2142_v60 = vmul.f32 0.5, %v5787_v34 }
 0x221   : > { %v3003_v9 = vadd.f32 1.0, %v2971_v3  ;;  %v2684_v19 = vmul.f32 %v2652_v29, %v5870_v62  ;;  %v2942_v51 = vsub.f32 0.0, %v2878_v25  ;;  %v2223_v30 = vmul.f32 0.3275911, %v2191_v0 }
 0x222   : > { %v2257_v40 = vadd.f32 1.0, %v2225_v8  ;;  %v3440_v18 = vpack.c.bf16 %v3037_v42, %v3037_v42  ;;  %v2705_v2 = vsub.f32 0.0, %v2193_v12  ;;  %v2024_v56 = vadd.f32 %v5875_v28, %v5756_v53 }
 0x223   : > { %v3035_v55 = vmul.f32 %v3003_v9, %v2139_v52  ;;  %v2844_v39 = vmul.f32 %v5885_v4, %v2684_v19  ;;  %v2974_v49 = vsel %vm2910_vm4, %v2942_v51, %v2878_v25  ;;  %v2255_v6 = vadd.f32 1.0, %v2223_v30 }
 0x224   : > { %v3006_v62 = vadd.f32 1.0, %v2974_v49  ;;  %4227 = vrcp.f32 %v2257_v40  ;;  %3198 = vst.msk [vmem:[%s5912_s30 + $0x48] sm:$0xf] %vm3179_vm0, %v3440_v18  ;;  %v5970_v34 = vadd.f32 %v5756_v53, %v5883_v13  ;;  %v5974_v44 = vadd.f32 %v5892_v33, %v5756_v53 }
 0x225   : > { %v3438_v10 = vpack.c.bf16 %v3035_v55, %v3035_v55  ;;  %v2876_v54 = vsub.f32 1.0, %v2844_v39  ;;  %v5977_v61 = vmul.f32 0.70710677, %v2024_v56  ;;  %4229 = vrcp.f32 %v2255_v6 }
 0x226   : > { %v3038_v4 = vmul.f32 %v3006_v62, %v2142_v60  ;;  %v2140_v28 = vmul.f32 0.5, %v5793_v7  ;;  %v2737_v20 = vmul.f32 %v2705_v2, %v2193_v12  ;;  %v5984_v13 = vmul.f32 0.70710677, %v5970_v34 }
 0x227   : > { %3196 = vst.msk [vmem:[%s5912_s30 + $0x40] sm:$0xf] %vm3179_vm0, %v3438_v10  ;;  %v2940_v37 = vsub.f32 0.0, %v2876_v54  ;;  %v2194_v1 = vand.u32 2147483647, %v5977_v61  ;;  %v5991_v46 = vadd.f32 %v5756_v53, %v5897_v59  ;;  %v2703_v7 = vsub.f32 0.0, %v2191_v0 }
 0x228   : > { %v3441_v35 = vpack.c.bf16 %v3038_v4, %v3038_v4  ;;  %v5987_v33 = vmul.f32 0.70710677, %v5974_v44  ;;  %v2192_v31 = vand.u32 2147483647, %v5984_v13  ;;  %v2775_v22 = vmul.f32 1.442695, %v2737_v20 }
 0x229   : > { %v2972_v5 = vsel %vm2908_vm5, %v2940_v37, %v2876_v54  ;;  %v2226_v23 = vmul.f32 0.3275911, %v2194_v1  ;;  %v2706_v16 = vsub.f32 0.0, %v2194_v1  ;;  %v5998_v50 = vmul.f32 0.5, %v5932_v27 }
 0x22a   : > { %v3004_v32 = vadd.f32 1.0, %v2972_v5  ;;  %3199 = vst.msk [vmem:[%s5912_s30 + $0x4c] sm:$0xf] %vm3179_vm0, %v3441_v35  ;;  %v2209_v24 = vand.u32 2147483647, %v5987_v33  ;;  %v2704_v48 = vsub.f32 0.0, %v2192_v31  ;;  %v2735_v11 = vmul.f32 %v2703_v7, %v2191_v0 }
 0x22b   : > { %v2258_v21 = vadd.f32 1.0, %v2226_v23  ;;  %v2224_v47 = vmul.f32 0.3275911, %v2192_v31  ;;  %v6001_v45 = vmul.f32 0.70710677, %v5991_v46  ;;  %v6007_v12 = vadd.f32 %v5904_v36, %v5756_v53 }
 0x22c   : > { %v3036_v58 = vmul.f32 %v3004_v32, %v2140_v28  ;;  %v2241_v63 = vmul.f32 0.3275911, %v2209_v24  ;;  %v6010_v3 = vmul.f32 0.5, %v5936_v38  ;;  %v2738_v52 = vmul.f32 %v2706_v16, %v2194_v1 }
 0x22d   : > { %4231 = vrcp.f32 %v2258_v21  ;;  %v2256_v57 = vadd.f32 1.0, %v2224_v47  ;;  %v2207_v27 = vand.u32 2147483647, %v6001_v45  ;;  %v2736_v9 = vmul.f32 %v2704_v48, %v2192_v31 }
 0x22e   : > { %v3439_v43 = vpack.c.bf16 %v3036_v58, %v3036_v58  ;;  %v4228_v17 = vpop.eup %4227  ;;  %v6003_v29 = vadd.f32 1.0, %v2241_v63  ;;  %4233 = vpow2.f32 %v2775_v22  ;;  %v2721_v19 = vsub.f32 0.0, %v2209_v24 }
 0x22f   : > { %v2321_v59 = vmul.f32 %v4228_v17, %v2257_v40  ;;  %v4230_v25 = vpop.eup %4229  ;;  %4235 = vrcp.f32 %v2256_v57  ;;  %v2239_v51 = vmul.f32 0.3275911, %v2207_v27  ;;  %v2771_v36 = vmul.f32 1.442695, %v2735_v11 }
 0x230   : > { %3197 = vst.msk [vmem:[%s5912_s30 + $0x44] sm:$0xf] %vm3179_vm0, %v3439_v43  ;;  %v2319_v42 = vmul.f32 %v4230_v25, %v2255_v6  ;;  %4237 = vrcp.f32 %v6003_v29  ;;  %v2719_v0 = vsub.f32 0.0, %v2207_v27  ;;  %v6017_v55 = vmul.f32 0.70710677, %v6007_v12 }
 0x231   : > { %v2353_v41 = vsub.f32 2.0, %v2321_v59  ;;  %v6021_v38 = vadd.f32 %v5756_v53, %v5906_v26  ;;  %v6024_v18 = vmul.f32 0.5, %v2024_v56  ;;  %v6026_v60 = vadd.f32 1.0, %v2239_v51 }
 0x232   : > { %v2351_v40 = vsub.f32 2.0, %v2319_v42  ;;  %v2777_v49 = vmul.f32 1.442695, %v2738_v52  ;;  %v2773_v30 = vmul.f32 1.442695, %v2736_v9  ;;  %v2753_v10 = vmul.f32 %v2721_v19, %v2209_v24 }
 0x233   : > { %v6013_v8 = vmul.f32 %v4228_v17, %v2353_v41  ;;  %v2210_v62 = vand.u32 2147483647, %v6017_v55  ;;  %4239 = vrcp.f32 %v6026_v60  ;;  %v6033_v26 = vmul.f32 0.70710677, %v6021_v38 }
 0x234   : > { %v6029_v2 = vmul.f32 %v4230_v25, %v2351_v40  ;;  %v6036_v6 = vmul.f32 0.5, %v5970_v34  ;;  %v2751_v56 = vmul.f32 %v2719_v0, %v2207_v27  ;;  %4241 = vpow2.f32 %v2771_v36 }
 0x235   : > { %v2417_v39 = vmul.f32 1.0614054, %v6013_v8  ;;  %v2242_v4 = vmul.f32 0.3275911, %v2210_v62  ;;  %v2722_v37 = vsub.f32 0.0, %v2210_v62  ;;  %4243 = vpow2.f32 %v2777_v49 }
 0x236   : > { %v2415_v28 = vmul.f32 1.0614054, %v6029_v2  ;;  %v2208_v32 = vand.u32 2147483647, %v6033_v26  ;;  %v2807_v1 = vmul.f32 1.442695, %v2753_v10  ;;  %4245 = vpow2.f32 %v2773_v30 }
 0x237   : > { %v2449_v54 = vadd.f32 -1.4531521, %v2417_v39  ;;  %v4232_v35 = vpop.eup %4231  ;;  %v6041_v58 = vadd.f32 1.0, %v2242_v4  ;;  %v2803_v17 = vmul.f32 1.442695, %v2751_v56  ;;  %v2754_v16 = vmul.f32 %v2722_v37, %v2210_v62 }
 0x238   : > { %v2322_v20 = vmul.f32 %v4232_v35, %v2258_v21  ;;  %v6043_v7 = vpop.eup %4233  ;;  %v2447_v31 = vadd.f32 -1.4531521, %v2415_v28  ;;  %v2240_v24 = vmul.f32 0.3275911, %v2208_v32  ;;  %v2720_v9 = vsub.f32 0.0, %v2208_v32 }
 0x239   : > { %v2481_v5 = vmul.f32 %v2449_v54, %v6013_v8  ;;  %v4236_v43 = vpop.eup %4235  ;;  %4247 = vrcp.f32 %v6041_v58  ;;  %v2809_v49 = vmul.f32 1.442695, %v2754_v16  ;;  %vm2897_vm6 = vcmp.lt.f32.partialorder %v5943_v15, 0.0 }
 0x23a   : > { %v2354_v22 = vsub.f32 2.0, %v2322_v20  ;;  %v4238_v21 = vpop.eup %4237  ;;  %v2479_v63 = vmul.f32 %v2447_v31, %v6029_v2  ;;  %v2320_v59 = vmul.f32 %v4236_v43, %v2256_v57  ;;  %v6050_v11 = vadd.f32 1.0, %v2240_v24 }
 0x23b   : > { %v2513_v34 = vadd.f32 1.4214138, %v2481_v5  ;;  %v2337_v52 = vmul.f32 %v4238_v21, %v6003_v29  ;;  %4249 = vpow2.f32 %v2807_v1  ;;  %v2752_v5 = vmul.f32 %v2720_v9, %v2208_v32 }
 0x23c   : > { %v6054_v25 = vmul.f32 %v4232_v35, %v2354_v22  ;;  %v2511_v36 = vadd.f32 1.4214138, %v2479_v63  ;;  %v2352_v0 = vsub.f32 2.0, %v2320_v59  ;;  %4251 = vrcp.f32 %v6050_v11 }
 0x23d   : > { %v3506_v23 = vpop.f32.mrb[8].mxu1  ;;  %v2545_v48 = vmul.f32 %v2513_v34, %v6013_v8  ;;  %v2369_v40 = vsub.f32 2.0, %v2337_v52  ;;  %4253 = vpow2.f32 %v2803_v17  ;;  %v4240_v29 = vpop.eup %4239  ;;  %vm2895_vm7 = vcmp.lt.f32.partialorder %v5954_v14, 0.0 }
 0x23e   : > { %v6046_v47 = vpop.f32.mrb[9].mxu1  ;;  %v2418_v39 = vmul.f32 1.0614054, %v6054_v25  ;;  %v2543_v62 = vmul.f32 %v2511_v36, %v6029_v2  ;;  %v6069_v54 = vmul.f32 %v4236_v43, %v2352_v0  ;;  %v2335_v35 = vmul.f32 %v4240_v29, %v6026_v60  ;;  %v4242_v28 = vpop.eup %4241 }
 0x23f   : > { %v6052_v27 = vpop.f32.mrb[10].mxu1  ;;  %v2577_v51 = vadd.f32 -0.28449672, %v2545_v48  ;;  %v6074_v37 = vmul.f32 %v4238_v21, %v2369_v40  ;;  %v6079_v31 = vadd.f32 %v3506_v23, %v5756_v53  ;;  %v6081_v24 = vpop.eup %4243  ;;  %4255 = vpow2.f32 %v2809_v49 }
 0x240   : > { %v3490_v41 = vpop.f32.mrb[8].mxu0  ;;  %v6059_v42 = vpop.f32.mrb[11].mxu1  ;;  %v2450_v4 = vadd.f32 -1.4531521, %v2418_v39  ;;  %v2575_v1 = vadd.f32 -0.28449672, %v2543_v62 }
 0x241   : > { %v6057_v19 = vpop.f32.mrb[9].mxu0  ;;  %v2609_v10 = vmul.f32 %v2577_v51, %v6013_v8  ;;  %v6072_v56 = vadd.f32 %v3490_v41, %v5756_v53  ;;  %v2416_v34 = vmul.f32 1.0614054, %v6069_v54  ;;  %v2433_v22 = vmul.f32 1.0614054, %v6074_v37  ;;  %v6086_v60 = vpop.eup %4245 }
 0x242   : > { %v6062_v57 = vpop.f32.mrb[10].mxu0  ;;  %v2482_v43 = vmul.f32 %v2450_v4, %v6054_v25  ;;  %v2367_v17 = vsub.f32 2.0, %v2335_v35  ;;  %v2607_v16 = vmul.f32 %v2575_v1, %v6029_v2  ;;  %v6095_v41 = vmul.f32 1.442695, %v2752_v5 }
 0x243   : > { %v6065_v30 = vpop.f32.mrb[11].mxu0  ;;  %v2641_v20 = vadd.f32 0.2548296, %v2609_v10  ;;  %v2448_v21 = vadd.f32 -1.4531521, %v2416_v34  ;;  %v4248_v23 = vpop.eup %4247  ;;  %vm2898_vm8 = vcmp.lt.f32.partialorder %v5977_v61, 0.0 }
 0x244   : > { %v6091_v53 = vmul.f32 0.70710677, %v6072_v56  ;;  %v2514_v48 = vadd.f32 1.4214138, %v2482_v43  ;;  %v2465_v63 = vadd.f32 -1.4531521, %v2433_v22  ;;  %v6093_v59 = vmul.f32 %v4240_v29, %v2367_v17 }
 0x245   : > { %v2673_v32 = vmul.f32 %v2641_v20, %v6013_v8  ;;  %v2639_v9 = vadd.f32 0.2548296, %v2607_v16  ;;  %v2480_v51 = vmul.f32 %v2448_v21, %v6069_v54  ;;  %v2338_v8 = vmul.f32 %v4248_v23, %v6041_v58  ;;  %v6100_v36 = vpop.eup %4249 }
 0x246   : > { %v2546_v0 = vmul.f32 %v2514_v48, %v6054_v25  ;;  %v2497_v39 = vmul.f32 %v2465_v63, %v6074_v37  ;;  %v2431_v40 = vmul.f32 1.0614054, %v6093_v59  ;;  %v6107_v49 = vand.u32 2147483647, %v6091_v53  ;;  %v4252_v29 = vpop.eup %4251 }
 0x247   : > { %v2833_v52 = vmul.f32 %v6043_v7, %v2673_v32  ;;  %v2671_v10 = vmul.f32 %v2639_v9, %v6029_v2  ;;  %v2512_v62 = vadd.f32 1.4214138, %v2480_v51  ;;  %v2370_v4 = vsub.f32 2.0, %v2338_v8  ;;  %v6110_v58 = vpop.eup %4253 }
 0x248   : > { %v2578_v35 = vadd.f32 -0.28449672, %v2546_v0  ;;  %v2529_v5 = vadd.f32 1.4214138, %v2497_v39  ;;  %v2463_v20 = vadd.f32 -1.4531521, %v2431_v40  ;;  %v2336_v1 = vmul.f32 %v4252_v29, %v6050_v11 }
 0x249   : > { %v2865_v7 = vsub.f32 1.0, %v2833_v52  ;;  %v2831_v43 = vmul.f32 %v4242_v28, %v2671_v10  ;;  %v2544_v22 = vmul.f32 %v2512_v62, %v6069_v54  ;;  %v6114_v17 = vmul.f32 %v4248_v23, %v2370_v4  ;;  %v6122_v9 = vpop.eup %4255 }
 0x24a   : > { %v2610_v32 = vmul.f32 %v2578_v35, %v6054_v25  ;;  %v2561_v16 = vmul.f32 %v2529_v5, %v6074_v37  ;;  %v2495_v2 = vmul.f32 %v2463_v20, %v6093_v59  ;;  %v2368_v21 = vsub.f32 2.0, %v2336_v1 }
 0x24b   : > { %v2929_v34 = vsub.f32 0.0, %v2865_v7  ;;  %v2863_v63 = vsub.f32 1.0, %v2831_v43  ;;  %v2576_v52 = vadd.f32 -0.28449672, %v2544_v22  ;;  %v2434_v11 = vmul.f32 1.0614054, %v6114_v17 }
 0x24c   : > { %v2642_v51 = vadd.f32 0.2548296, %v2610_v32  ;;  %v2593_v23 = vadd.f32 -0.28449672, %v2561_v16  ;;  %v6124_v8 = vmul.f32 %v4252_v29, %v2368_v21  ;;  %v2527_v40 = vadd.f32 1.4214138, %v2495_v2 }
 0x24d   : > { %v2961_v48 = vsel %vm2897_vm6, %v2929_v34, %v2865_v7  ;;  %v2927_v0 = vsub.f32 0.0, %v2863_v63  ;;  %v2608_v39 = vmul.f32 %v2576_v52, %v6069_v54  ;;  %v2466_v10 = vadd.f32 -1.4531521, %v2434_v11 }
 0x24e   : > { %v2993_v28 = vadd.f32 1.0, %v2961_v48  ;;  %v2674_v7 = vmul.f32 %v2642_v51, %v6054_v25  ;;  %v2625_v62 = vmul.f32 %v2593_v23, %v6074_v37  ;;  %v2432_v4 = vmul.f32 1.0614054, %v6124_v8 }
 0x24f   : > { %v2959_v29 = vsel %vm2895_vm7, %v2927_v0, %v2863_v63  ;;  %v2640_v35 = vadd.f32 0.2548296, %v2608_v39  ;;  %v2559_v5 = vmul.f32 %v2527_v40, %v6093_v59  ;;  %v2498_v20 = vmul.f32 %v2466_v10, %v6114_v17 }
 0x250   : > { %v3025_v15 = vmul.f32 %v2993_v28, %v5998_v50  ;;  %v2991_v34 = vadd.f32 1.0, %v2959_v29  ;;  %v2834_v43 = vmul.f32 %v6081_v24, %v2674_v7  ;;  %vm2896_vm9 = vcmp.lt.f32.partialorder %v5984_v13, 0.0 }
 0x251   : > { %v2657_v50 = vadd.f32 0.2548296, %v2625_v62  ;;  %v2672_v25 = vmul.f32 %v2640_v35, %v6069_v54  ;;  %v2591_v22 = vadd.f32 -0.28449672, %v2559_v5  ;;  %v2530_v32 = vadd.f32 1.4214138, %v2498_v20 }
 0x252   : > { %v3428_v1 = vpack.c.bf16 %v3025_v15, %v3025_v15  ;;  %v2464_v16 = vadd.f32 -1.4531521, %v2432_v4  ;;  %v3023_v14 = vmul.f32 %v2991_v34, %v6010_v3  ;;  %v2866_v2 = vsub.f32 1.0, %v2834_v43 }
 0x253   : > { %v2689_v21 = vmul.f32 %v2657_v50, %v6074_v37  ;;  %v2229_v48 = vmul.f32 0.3275911, %v6107_v49  ;;  %v2832_v24 = vmul.f32 %v6086_v60, %v2672_v25  ;;  %v2623_v63 = vmul.f32 %v2591_v22, %v6093_v59 }
 0x254   : > { %3186 = vst.msk [vmem:[%s5912_s30 + $0x18] sm:$0xf] %vm3179_vm0, %v3428_v1  ;;  %v2562_v52 = vmul.f32 %v2530_v32, %v6114_v17  ;;  %v2496_v54 = vmul.f32 %v2464_v16, %v6124_v8  ;;  %v3426_v11 = vpack.c.bf16 %v3023_v14, %v3023_v14  ;;  %v2930_v28 = vsub.f32 0.0, %v2866_v2  ;;  %v6178_v16 = vld [vmem:[%s6591_s4] ss:$0 sm:$0xff] }
 0x255   : > { %v2849_v51 = vmul.f32 %v6100_v36, %v2689_v21  ;;  %v2261_v23 = vadd.f32 1.0, %v2229_v48  ;;  %v2864_v3 = vsub.f32 1.0, %v2832_v24  ;;  %v2655_v0 = vadd.f32 0.2548296, %v2623_v63 }
 0x256   : > { %v2594_v39 = vadd.f32 -0.28449672, %v2562_v52  ;;  %4257 = vpow2.f32 %v6095_v41  ;;  %3184 = vst.msk [vmem:[%s5912_s30 + $0x10] sm:$0xf] %vm3179_vm0, %v3426_v11  ;;  %v2962_v37 = vsel %vm2898_vm8, %v2930_v28, %v2866_v2  ;;  %v2528_v40 = vadd.f32 1.4214138, %v2496_v54 }
 0x257   : > { %v2881_v60 = vsub.f32 1.0, %v2849_v51  ;;  %4259 = vrcp.f32 %v2261_v23  ;;  %v2994_v10 = vadd.f32 1.0, %v2962_v37  ;;  %v2928_v15 = vsub.f32 0.0, %v2864_v3 }
 0x258   : > { %v2687_v7 = vmul.f32 %v2655_v0, %v6093_v59  ;;  %v2626_v36 = vmul.f32 %v2594_v39, %v6114_v17  ;;  %vm2913_vm10 = vcmp.lt.f32.partialorder %v5987_v33, 0.0  ;;  %v2560_v4 = vmul.f32 %v2528_v40, %v6124_v8 }
 0x259   : > { %v2945_v62 = vsub.f32 0.0, %v2881_v60  ;;  %v6159_v41 = vmul.f32 0.70710677, %v6079_v31  ;;  %v3026_v61 = vmul.f32 %v2994_v10, %v6024_v18  ;;  %v2960_v29 = vsel %vm2896_vm9, %v2928_v15, %v2864_v3 }
 0x25a   : > { %v2847_v35 = vmul.f32 %v6110_v58, %v2687_v7  ;;  %v2658_v5 = vadd.f32 0.2548296, %v2626_v36  ;;  %v2992_v59 = vadd.f32 1.0, %v2960_v29  ;;  %v2145_v20 = vmul.f32 0.5, %v5974_v44 }
 0x25b   : > { %v2977_v1 = vsel %vm2913_vm10, %v2945_v62, %v2881_v60  ;;  %v2592_v33 = vadd.f32 -0.28449672, %v2560_v4  ;;  %v3429_v34 = vpack.c.bf16 %v3026_v61, %v3026_v61  ;;  %v6170_v13 = vand.u32 2147483647, %v6159_v41 }
 0x25c   : > { %v3009_v43 = vadd.f32 1.0, %v2977_v1  ;;  %v2879_v50 = vsub.f32 1.0, %v2847_v35  ;;  %v2690_v25 = vmul.f32 %v2658_v5, %v6114_v17  ;;  %v3024_v22 = vmul.f32 %v2992_v59, %v6036_v6 }
 0x25d   : > { %v2624_v18 = vmul.f32 %v2592_v33, %v6124_v8  ;;  %3187 = vst.msk [vmem:[%s5912_s30 + $0x1c] sm:$0xf] %vm3179_vm0, %v3429_v34  ;;  %v6182_v6 = vadd.f32 %v6178_v16, %v6057_v19  ;;  %vm2911_vm11 = vcmp.lt.f32.partialorder %v6001_v45, 0.0  ;;  %v2245_v2 = vmul.f32 0.3275911, %v6170_v13 }
 0x25e   : > { %v3041_v58 = vmul.f32 %v3009_v43, %v2145_v20  ;;  %v2943_v32 = vsub.f32 0.0, %v2879_v50  ;;  %v2850_v44 = vmul.f32 %v6122_v9, %v2690_v25  ;;  %v3427_v17 = vpack.c.bf16 %v3024_v22, %v3024_v22 }
 0x25f   : > { %v2656_v14 = vadd.f32 0.2548296, %v2624_v18  ;;  %v2709_v63 = vsub.f32 0.0, %v6107_v49  ;;  %v2143_v54 = vmul.f32 0.5, %v5991_v46  ;;  %v2277_v28 = vadd.f32 1.0, %v2245_v2 }
 0x260   : > { %v4258_v21 = vpop.eup %4257  ;;  %v3444_v48 = vpack.c.bf16 %v3041_v58, %v3041_v58  ;;  %v2975_v24 = vsel %vm2911_vm11, %v2943_v32, %v2879_v50  ;;  %v2882_v9 = vsub.f32 1.0, %v2850_v44  ;;  %3185 = vst.msk [vmem:[%s5912_s30 + $0x14] sm:$0xf] %vm3179_vm0, %v3427_v17  ;;  %vm2914_vm12 = vcmp.lt.f32.partialorder %v6017_v55, 0.0 }
 0x261   : > { %v4260_v52 = vpop.eup %4259  ;;  %v3007_v19 = vadd.f32 1.0, %v2975_v24  ;;  %v2688_v11 = vmul.f32 %v2656_v14, %v6124_v8  ;;  %v6195_v3 = vmul.f32 0.70710677, %v6182_v6  ;;  %4261 = vrcp.f32 %v2277_v28 }
 0x262   : > { %3202 = vst.msk [vmem:[%s5912_s30 + $0x58] sm:$0xf] %vm3179_vm0, %v3444_v48  ;;  %v2946_v45 = vsub.f32 0.0, %v2882_v9  ;;  %v2325_v51 = vmul.f32 %v4260_v52, %v2261_v23  ;;  %v6199_v46 = vadd.f32 %v6178_v16, %v6046_v47  ;;  %v2741_v60 = vmul.f32 %v2709_v63, %v6107_v49 }
 0x263   : > { %v3039_v0 = vmul.f32 %v3007_v19, %v2143_v54  ;;  %v2848_v39 = vmul.f32 %v4258_v21, %v2688_v11  ;;  %v2195_v40 = vand.u32 2147483647, %v6195_v3  ;;  %v2146_v23 = vmul.f32 0.5, %v6007_v12 }
 0x264   : > { %v2978_v37 = vsel %vm2914_vm12, %v2946_v45, %v2882_v9  ;;  %v2357_v8 = vsub.f32 2.0, %v2325_v51  ;;  %v2144_v7 = vmul.f32 0.5, %v6021_v38  ;;  %v6210_v61 = vmul.f32 0.70710677, %v6199_v46 }
 0x265   : > { %v3442_v55 = vpack.c.bf16 %v3039_v0, %v3039_v0  ;;  %v3010_v10 = vadd.f32 1.0, %v2978_v37  ;;  %v2880_v15 = vsub.f32 1.0, %v2848_v39  ;;  %v2227_v62 = vmul.f32 0.3275911, %v2195_v40 }
 0x266   : > { %v6205_v36 = vmul.f32 %v4260_v52, %v2357_v8  ;;  %v6214_v49 = vadd.f32 %v6178_v16, %v6062_v57  ;;  %vm2912_vm13 = vcmp.lt.f32.partialorder %v6033_v26, 0.0  ;;  %v2783_v38 = vmul.f32 1.442695, %v2741_v60 }
 0x267   : > { %3200 = vst.msk [vmem:[%s5912_s30 + $0x50] sm:$0xf] %vm3179_vm0, %v3442_v55  ;;  %v3042_v47 = vmul.f32 %v3010_v10, %v2146_v23  ;;  %v2944_v4 = vsub.f32 0.0, %v2880_v15  ;;  %v2259_v29 = vadd.f32 1.0, %v2227_v62  ;;  %v2725_v59 = vsub.f32 0.0, %v6170_v13 }
 0x268   : > { %v2421_v12 = vmul.f32 1.0614054, %v6205_v36  ;;  %v2211_v20 = vand.u32 2147483647, %v6210_v61  ;;  %v6224_v57 = vadd.f32 %v6178_v16, %v6052_v27  ;;  %v2707_v43 = vsub.f32 0.0, %v2195_v40 }
 0x269   : > { %v3445_v35 = vpack.c.bf16 %v3042_v47, %v3042_v47  ;;  %v2976_v5 = vsel %vm2912_vm13, %v2944_v4, %v2880_v15  ;;  %4263 = vrcp.f32 %v2259_v29  ;;  %v6231_v22 = vmul.f32 0.70710677, %v6214_v49 }
 0x26a   : > { %v3008_v33 = vadd.f32 1.0, %v2976_v5  ;;  %v2453_v34 = vadd.f32 -1.4531521, %v2421_v12  ;;  %v2243_v50 = vmul.f32 0.3275911, %v2211_v20  ;;  %v2723_v25 = vsub.f32 0.0, %v2211_v20 }
 0x26b   : > { %3203 = vst.msk [vmem:[%s5912_s30 + $0x5c] sm:$0xf] %vm3179_vm0, %v3445_v35  ;;  %v4262_v17 = vpop.eup %4261  ;;  %4265 = vpow2.f32 %v2783_v38  ;;  %v2757_v27 = vmul.f32 %v2725_v59, %v6170_v13  ;;  %v2198_v2 = vand.u32 2147483647, %v6231_v22  ;;  %v6243_v52 = vmul.f32 0.70710677, %v6224_v57 }
 0x26c   : > { %v3040_v18 = vmul.f32 %v3008_v33, %v2144_v7  ;;  %v2485_v58 = vmul.f32 %v2453_v34, %v6205_v36  ;;  %v2275_v14 = vadd.f32 1.0, %v2243_v50  ;;  %v2341_v63 = vmul.f32 %v4262_v17, %v2277_v28 }
 0x26d   : > { %v6220_v1 = vpop.f32.mrb[12].mxu1  ;;  %v2739_v19 = vmul.f32 %v2707_v43, %v2195_v40  ;;  %v2755_v11 = vmul.f32 %v2723_v25, %v2211_v20  ;;  %v2230_v45 = vmul.f32 0.3275911, %v2198_v2  ;;  %v2710_v39 = vsub.f32 0.0, %v2198_v2 }
 0x26e   : > { %v6226_v26 = vpop.f32.mrb[13].mxu1  ;;  %v3443_v24 = vpack.c.bf16 %v3040_v18, %v3040_v18  ;;  %v2517_v9 = vadd.f32 1.4214138, %v2485_v58  ;;  %4267 = vrcp.f32 %v2275_v14  ;;  %v2373_v0 = vsub.f32 2.0, %v2341_v63 }
 0x26f   : > { %v6234_v44 = vpop.f32.mrb[14].mxu1  ;;  %v2214_v37 = vand.u32 2147483647, %v6243_v52  ;;  %v2815_v28 = vmul.f32 1.442695, %v2757_v27  ;;  %v2262_v8 = vadd.f32 1.0, %v2230_v45  ;;  %v6255_v60 = vadd.f32 %v6178_v16, %v6065_v30 }
 0x270   : > { %v3494_v32 = vpop.f32.mrb[12].mxu0  ;;  %v6240_v48 = vpop.f32.mrb[15].mxu1  ;;  %3201 = vst.msk [vmem:[%s5912_s30 + $0x54] sm:$0xf] %vm3179_vm0, %v3443_v24  ;;  %v2549_v51 = vmul.f32 %v2517_v9, %v6205_v36  ;;  %v6258_v55 = vmul.f32 0.5, %v6079_v31  ;;  %v6260_v23 = vmul.f32 %v4262_v17, %v2373_v0  ;;  %v2742_v30 = vmul.f32 %v2710_v39, %v2198_v2 }
 0x271   : > { %v6238_v21 = vpop.f32.mrb[13].mxu0  ;;  %v2246_v10 = vmul.f32 0.3275911, %v2214_v37  ;;  %v2779_v15 = vmul.f32 1.442695, %v2739_v19  ;;  %4269 = vrcp.f32 %v2262_v8  ;;  %v2726_v31 = vsub.f32 0.0, %v2214_v37 }
 0x272   : > { %v6245_v54 = vpop.f32.mrb[14].mxu0  ;;  %v2581_v40 = vadd.f32 -0.28449672, %v2549_v51  ;;  %v2811_v7 = vmul.f32 1.442695, %v2755_v11  ;;  %4271 = vpow2.f32 %v2815_v28  ;;  %v2133_v59 = vmul.f32 0.5, %v6072_v56 }
 0x273   : > { %v6247_v13 = vpop.f32.mrb[15].mxu0  ;;  %v6263_v62 = vmul.f32 0.70710677, %v6255_v60  ;;  %v4264_v47 = vpop.eup %4263  ;;  %v2437_v12 = vmul.f32 1.0614054, %v6260_v23  ;;  %v2278_v38 = vadd.f32 1.0, %v2246_v10  ;;  %v6275_v25 = vadd.f32 %v6178_v16, %v6059_v42 }
 0x274   : > { %v2613_v4 = vmul.f32 %v2581_v40, %v6205_v36  ;;  %v2323_v35 = vmul.f32 %v4264_v47, %v2259_v29  ;;  %vm2901_vm14 = vcmp.lt.f32.partialorder %v6091_v53, 0.0  ;;  %v2785_v56 = vmul.f32 1.442695, %v2742_v30 }
 0x275   : > { %v6268_v5 = vand.u32 2147483647, %v6263_v62  ;;  %v2469_v33 = vadd.f32 -1.4531521, %v2437_v12  ;;  %4273 = vrcp.f32 %v2278_v38  ;;  %v4266_v34 = vpop.eup %4265  ;;  %v2758_v27 = vmul.f32 %v2726_v31, %v2214_v37 }
 0x276   : > { %v2645_v20 = vadd.f32 0.2548296, %v2613_v4  ;;  %v2355_v43 = vsub.f32 2.0, %v2323_v35  ;;  %4275 = vpow2.f32 %v2779_v15  ;;  %v6282_v24 = vadd.f32 %v6178_v16, %v3494_v32 }
 0x277   : > { %v2228_v50 = vmul.f32 0.3275911, %v6268_v5  ;;  %v2501_v18 = vmul.f32 %v2469_v33, %v6260_v23  ;;  %4277 = vpow2.f32 %v2811_v7  ;;  %v6285_v42 = vmul.f32 0.70710677, %v6275_v25 }
 0x278   : > { %v2677_v29 = vmul.f32 %v2645_v20, %v6205_v36  ;;  %v4268_v58 = vpop.eup %4267  ;;  %v6279_v17 = vmul.f32 %v4264_v47, %v2355_v43  ;;  %v6288_v36 = vmul.f32 0.5, %v6182_v6  ;;  %v6292_v45 = vmul.f32 0.5, %v6199_v46 }
 0x279   : > { %v2260_v2 = vadd.f32 1.0, %v2228_v50  ;;  %v2533_v63 = vadd.f32 1.4214138, %v2501_v18  ;;  %v2339_v19 = vmul.f32 %v4268_v58, %v2275_v14  ;;  %v2212_v39 = vand.u32 2147483647, %v6285_v42 }
 0x27a   : > { %v2837_v9 = vmul.f32 %v4266_v34, %v2677_v29  ;;  %v2419_v11 = vmul.f32 1.0614054, %v6279_v17  ;;  %v6296_v28 = vmul.f32 1.442695, %v2758_v27  ;;  %v6299_v6 = vmul.f32 0.70710677, %v6282_v24 }
 0x27b   : > { %4279 = vrcp.f32 %v2260_v2  ;;  %v2565_v0 = vmul.f32 %v2533_v63, %v6260_v23  ;;  %v2371_v32 = vsub.f32 2.0, %v2339_v19  ;;  %v4270_v37 = vpop.eup %4269  ;;  %v2708_v4 = vsub.f32 0.0, %v6268_v5 }
 0x27c   : > { %v2869_v51 = vsub.f32 1.0, %v2837_v9  ;;  %v2451_v14 = vadd.f32 -1.4531521, %v2419_v11  ;;  %4281 = vpow2.f32 %v2785_v56  ;;  %v2326_v46 = vmul.f32 %v4270_v37, %v2262_v8  ;;  %v4272_v7 = vpop.eup %4271 }
 0x27d   : > { %v2597_v10 = vadd.f32 -0.28449672, %v2565_v0  ;;  %v6301_v15 = vmul.f32 %v4268_v58, %v2371_v32  ;;  %v2244_v12 = vmul.f32 0.3275911, %v2212_v39  ;;  %v6306_v30 = vand.u32 2147483647, %v6299_v6 }
 0x27e   : > { %v2933_v40 = vsub.f32 0.0, %v2869_v51  ;;  %v2483_v47 = vmul.f32 %v2451_v14, %v6279_v17  ;;  %v2358_v34 = vsub.f32 2.0, %v2326_v46  ;;  %v2724_v63 = vsub.f32 0.0, %v2212_v39 }
 0x27f   : > { %v4274_v35 = vpop.eup %4273  ;;  %v2629_v20 = vmul.f32 %v2597_v10, %v6260_v23  ;;  %v2435_v33 = vmul.f32 1.0614054, %v6301_v15  ;;  %v2276_v18 = vadd.f32 1.0, %v2244_v12  ;;  %vm2917_vm15 = vcmp.lt.f32.partialorder %v6159_v41, 0.0 }
 0x280   : > { %v2965_v31 = vsel %vm2901_vm14, %v2933_v40, %v2869_v51  ;;  %v4276_v43 = vpop.eup %4275  ;;  %v2515_v50 = vadd.f32 1.4214138, %v2483_v47  ;;  %v2342_v29 = vmul.f32 %v4274_v35, %v2278_v38  ;;  %v6314_v9 = vmul.f32 %v4270_v37, %v2358_v34 }
 0x281   : > { %v2997_v8 = vadd.f32 1.0, %v2965_v31  ;;  %v6312_v56 = vpop.eup %4277  ;;  %v2661_v58 = vadd.f32 0.2548296, %v2629_v20  ;;  %v2467_v27 = vadd.f32 -1.4531521, %v2435_v33  ;;  %4283 = vrcp.f32 %v2276_v18 }
 0x282   : > { %v2547_v53 = vmul.f32 %v2515_v50, %v6279_v17  ;;  %v2374_v11 = vsub.f32 2.0, %v2342_v29  ;;  %v2422_v0 = vmul.f32 1.0614054, %v6314_v9  ;;  %v2740_v32 = vmul.f32 %v2708_v4, %v6268_v5 }
 0x283   : > { %v3029_v19 = vmul.f32 %v2997_v8, %v2133_v59  ;;  %v2693_v51 = vmul.f32 %v2661_v58, %v6260_v23  ;;  %v2499_v38 = vmul.f32 %v2467_v27, %v6301_v15  ;;  %v2233_v59 = vmul.f32 0.3275911, %v6306_v30 }
 0x284   : > { %v2579_v40 = vadd.f32 -0.28449672, %v2547_v53  ;;  %v6322_v10 = vmul.f32 %v4274_v35, %v2374_v11  ;;  %v2454_v12 = vadd.f32 -1.4531521, %v2422_v0  ;;  %v2756_v5 = vmul.f32 %v2724_v63, %v2212_v39 }
 0x285   : > { %v4280_v14 = vpop.eup %4279  ;;  %v3432_v37 = vpack.c.bf16 %v3029_v19, %v3029_v19  ;;  %v2853_v46 = vmul.f32 %v4272_v7, %v2693_v51  ;;  %v2531_v47 = vadd.f32 1.4214138, %v2499_v38  ;;  %v2265_v4 = vadd.f32 1.0, %v2233_v59 }
 0x286   : > { %v2324_v31 = vmul.f32 %v4280_v14, %v2260_v2  ;;  %v6325_v20 = vpop.eup %4281  ;;  %v2611_v23 = vmul.f32 %v2579_v40, %v6279_v17  ;;  %v2438_v33 = vmul.f32 1.0614054, %v6322_v10  ;;  %v2486_v8 = vmul.f32 %v2454_v12, %v6314_v9 }
 0x287   : > { %3190 = vst.msk [vmem:[%s5912_s30 + $0x28] sm:$0xf] %vm3179_vm0, %v3432_v37  ;;  %v2885_v34 = vsub.f32 1.0, %v2853_v46  ;;  %v2563_v35 = vmul.f32 %v2531_v47, %v6301_v15  ;;  %v2781_v58 = vmul.f32 1.442695, %v2740_v32  ;;  %4285 = vrcp.f32 %v2265_v4 }
 0x288   : > { %v2356_v50 = vsub.f32 2.0, %v2324_v31  ;;  %v2643_v7 = vadd.f32 0.2548296, %v2611_v23  ;;  %v2470_v29 = vadd.f32 -1.4531521, %v2438_v33  ;;  %vm2899_vm1 = vcmp.lt.f32.partialorder %v6195_v3, 0.0 }
 0x289   : > { %v2949_v2 = vsub.f32 0.0, %v2885_v34  ;;  %v2595_v27 = vadd.f32 -0.28449672, %v2563_v35  ;;  %v2518_v19 = vadd.f32 1.4214138, %v2486_v8  ;;  %4287 = vpow2.f32 %v6296_v28 }
 0x28a   : > { %v6334_v53 = vmul.f32 %v4280_v14, %v2356_v50  ;;  %v2675_v39 = vmul.f32 %v2643_v7, %v6279_v17  ;;  %v2502_v63 = vmul.f32 %v2470_v29, %v6322_v10  ;;  %v2813_v11 = vmul.f32 1.442695, %v2756_v5 }
 0x28b   : > { %v2981_v51 = vsel %vm2917_vm15, %v2949_v2, %v2885_v34  ;;  %v2627_v38 = vmul.f32 %v2595_v27, %v6301_v15  ;;  %v2550_v0 = vmul.f32 %v2518_v19, %v6314_v9  ;;  %v4284_v37 = vpop.eup %4283  ;;  %4289 = vpow2.f32 %v2781_v58 }
 0x28c   : > { %v2420_v32 = vmul.f32 1.0614054, %v6334_v53  ;;  %v3013_v40 = vadd.f32 1.0, %v2981_v51  ;;  %v2835_v14 = vmul.f32 %v4276_v43, %v2675_v39  ;;  %v2534_v59 = vadd.f32 1.4214138, %v2502_v63 }
 0x28d   : > { %v2659_v17 = vadd.f32 0.2548296, %v2627_v38  ;;  %v2582_v46 = vadd.f32 -0.28449672, %v2550_v0  ;;  %v2340_v12 = vmul.f32 %v4284_v37, %v2276_v18  ;;  %vm2915_vm2 = vcmp.lt.f32.partialorder %v6210_v61, 0.0 }
 0x28e   : > { %v2452_v47 = vadd.f32 -1.4531521, %v2420_v32  ;;  %v3045_v28 = vmul.f32 %v3013_v40, %v6258_v55  ;;  %v2867_v31 = vsub.f32 1.0, %v2835_v14  ;;  %v2566_v41 = vmul.f32 %v2534_v59, %v6322_v10 }
 0x28f   : > { %4291 = vpow2.f32 %v2813_v11  ;;  %v2691_v23 = vmul.f32 %v2659_v17, %v6301_v15  ;;  %v2614_v33 = vmul.f32 %v2582_v46, %v6314_v9  ;;  %v2372_v5 = vsub.f32 2.0, %v2340_v12 }
 0x290   : > { %v2484_v43 = vmul.f32 %v2452_v47, %v6334_v53  ;;  %v3448_v34 = vpack.c.bf16 %v3045_v28, %v3045_v28  ;;  %v2931_v35 = vsub.f32 0.0, %v2867_v31  ;;  %v2598_v8 = vadd.f32 -0.28449672, %v2566_v41 }
 0x291   : > { %v6352_v55 = vadd.f32 %v6178_v16, %v6220_v1  ;;  %v2851_v18 = vmul.f32 %v6312_v56, %v2691_v23  ;;  %v2646_v50 = vadd.f32 0.2548296, %v2614_v33  ;;  %v6355_v29 = vmul.f32 %v4284_v37, %v2372_v5  ;;  %v4286_v58 = vpop.eup %4285 }
 0x292   : > { %v2516_v7 = vadd.f32 1.4214138, %v2484_v43  ;;  %3206 = vst.msk [vmem:[%s5912_s30 + $0x68] sm:$0xf] %vm3179_vm0, %v3448_v34  ;;  %v2963_v15 = vsel %vm2899_vm1, %v2931_v35, %v2867_v31  ;;  %vm2902_vm3 = vcmp.lt.f32.partialorder %v6231_v22, 0.0  ;;  %v2630_v2 = vmul.f32 %v2598_v8, %v6322_v10 }
 0x293   : > { %v2713_v27 = vsub.f32 0.0, %v6306_v30  ;;  %v6365_v1 = vmul.f32 0.70710677, %v6352_v55  ;;  %v2995_v56 = vadd.f32 1.0, %v2963_v15  ;;  %v2883_v19 = vsub.f32 1.0, %v2851_v18  ;;  %v4288_v11 = vpop.eup %4287 }
 0x294   : > { %v2678_v39 = vmul.f32 %v2646_v50, %v6314_v9  ;;  %v2548_v63 = vmul.f32 %v2516_v7, %v6334_v53  ;;  %v2662_v51 = vadd.f32 0.2548296, %v2630_v2  ;;  %v2436_v3 = vmul.f32 1.0614054, %v6355_v29 }
 0x295   : > { %v2329_v38 = vmul.f32 %v4286_v58, %v2265_v4  ;;  %v6371_v0 = vand.u32 2147483647, %v6365_v1  ;;  %v3027_v32 = vmul.f32 %v2995_v56, %v6288_v36  ;;  %v2947_v37 = vsub.f32 0.0, %v2883_v19  ;;  %v4290_v59 = vpop.eup %4289 }
 0x296   : > { %v2838_v40 = vmul.f32 %v6325_v20, %v2678_v39  ;;  %v2580_v14 = vadd.f32 -0.28449672, %v2548_v63  ;;  %v2694_v9 = vmul.f32 %v2662_v51, %v6322_v10  ;;  %v2468_v17 = vadd.f32 -1.4531521, %v2436_v3 }
 0x297   : > { %v2361_v46 = vsub.f32 2.0, %v2329_v38  ;;  %v2249_v47 = vmul.f32 0.3275911, %v6371_v0  ;;  %v3430_v12 = vpack.c.bf16 %v3027_v32, %v3027_v32  ;;  %v2979_v4 = vsel %vm2915_vm2, %v2947_v37, %v2883_v19 }
 0x298   : > { %v2870_v28 = vsub.f32 1.0, %v2838_v40  ;;  %v2612_v31 = vmul.f32 %v2580_v14, %v6334_v53  ;;  %v3011_v41 = vadd.f32 1.0, %v2979_v4  ;;  %v2854_v23 = vmul.f32 %v4288_v11, %v2694_v9 }
 0x299   : > { %v4292_v36 = vpop.eup %4291  ;;  %v2500_v20 = vmul.f32 %v2468_v17, %v6355_v29  ;;  %v6381_v33 = vmul.f32 %v4286_v58, %v2361_v46  ;;  %3188 = vst.msk [vmem:[%s5912_s30 + $0x20] sm:$0xf] %vm3179_vm0, %v3430_v12  ;;  %v2745_v5 = vmul.f32 %v2713_v27, %v6306_v30  ;;  %v2281_v34 = vadd.f32 1.0, %v2249_v47 }
 0x29a   : > { %v2934_v10 = vsub.f32 0.0, %v2870_v28  ;;  %v2644_v43 = vadd.f32 0.2548296, %v2612_v31  ;;  %v3043_v61 = vmul.f32 %v3011_v41, %v6292_v45  ;;  %v2886_v35 = vsub.f32 1.0, %v2854_v23 }
 0x29b   : > { %v2532_v8 = vadd.f32 1.4214138, %v2500_v20  ;;  %v2425_v18 = vmul.f32 1.0614054, %v6381_v33  ;;  %v2134_v50 = vmul.f32 0.5, %v6214_v49  ;;  %4293 = vrcp.f32 %v2281_v34 }
 0x29c   : > { %v2966_v7 = vsel %vm2902_vm3, %v2934_v10, %v2870_v28  ;;  %v2676_v58 = vmul.f32 %v2644_v43, %v6334_v53  ;;  %v3446_v15 = vpack.c.bf16 %v3043_v61, %v3043_v61  ;;  %v2950_v56 = vsub.f32 0.0, %v2886_v35 }
 0x29d   : > { %v2998_v2 = vadd.f32 1.0, %v2966_v7  ;;  %v2564_v30 = vmul.f32 %v2532_v8, %v6355_v29  ;;  %vm2918_vm4 = vcmp.lt.f32.partialorder %v6243_v52, 0.0  ;;  %v2457_v27 = vadd.f32 -1.4531521, %v2425_v18 }
 0x29e   : > { %v2836_v45 = vmul.f32 %v4290_v59, %v2676_v58  ;;  %v2791_v19 = vmul.f32 1.442695, %v2745_v5  ;;  %3204 = vst.msk [vmem:[%s5912_s30 + $0x60] sm:$0xf] %vm3179_vm0, %v3446_v15  ;;  %v2982_v39 = vsel %vm2918_vm4, %v2950_v56, %v2886_v35  ;;  %v6398_v53 = vadd.f32 %v6178_v16, %v6238_v21 }
 0x29f   : > { %v3030_v49 = vmul.f32 %v2998_v2, %v2134_v50  ;;  %v2596_v22 = vadd.f32 -0.28449672, %v2564_v30  ;;  %v2150_v63 = vmul.f32 0.5, %v6224_v57  ;;  %v3014_v11 = vadd.f32 1.0, %v2982_v39 }
 0x2a0   : > { %v2868_v51 = vsub.f32 1.0, %v2836_v45  ;;  %v2489_v3 = vmul.f32 %v2457_v27, %v6381_v33  ;;  %v6404_v32 = vmul.f32 0.70710677, %v6398_v53  ;;  %v6408_v21 = vadd.f32 %v6178_v16, %v6226_v26 }
 0x2a1   : > { %v3433_v52 = vpack.c.bf16 %v3030_v49, %v3030_v49  ;;  %v2628_v38 = vmul.f32 %v2596_v22, %v6355_v29  ;;  %v3046_v37 = vmul.f32 %v3014_v11, %v2150_v63  ;;  %vm2900_vm5 = vcmp.lt.f32.partialorder %v6263_v62, 0.0 }
 0x2a2   : > { %v2932_v40 = vsub.f32 0.0, %v2868_v51  ;;  %v2521_v14 = vadd.f32 1.4214138, %v2489_v3  ;;  %4295 = vpow2.f32 %v2791_v19  ;;  %v6414_v59 = vand.u32 2147483647, %v6404_v32 }
 0x2a3   : > { %3191 = vst.msk [vmem:[%s5912_s30 + $0x2c] sm:$0xf] %vm3179_vm0, %v3433_v52  ;;  %v2660_v57 = vadd.f32 0.2548296, %v2628_v38  ;;  %v3449_v9 = vpack.c.bf16 %v3046_v37, %v3046_v37  ;;  %v2132_v47 = vmul.f32 0.5, %v6255_v60  ;;  %v2729_v31 = vsub.f32 0.0, %v6371_v0 }
 0x2a4   : > { %v2964_v17 = vsel %vm2900_vm5, %v2932_v40, %v2868_v51  ;;  %v2553_v46 = vmul.f32 %v2521_v14, %v6381_v33  ;;  %v2231_v26 = vmul.f32 0.3275911, %v6414_v59  ;;  %v6424_v41 = vmul.f32 0.70710677, %v6408_v21 }
 0x2a5   : > { %v2996_v12 = vadd.f32 1.0, %v2964_v17  ;;  %v2692_v4 = vmul.f32 %v2660_v57, %v6355_v29  ;;  %v4294_v28 = vpop.eup %4293  ;;  %3207 = vst.msk [vmem:[%s5912_s30 + $0x6c] sm:$0xf] %vm3179_vm0, %v3449_v9  ;;  %v6428_v23 = vadd.f32 %v6178_v16, %v6245_v54  ;;  %v2761_v50 = vmul.f32 %v2729_v31, %v6371_v0 }
 0x2a6   : > { %v2585_v62 = vadd.f32 -0.28449672, %v2553_v46  ;;  %v2345_v10 = vmul.f32 %v4294_v28, %v2281_v34  ;;  %v2263_v29 = vadd.f32 1.0, %v2231_v26  ;;  %v6432_v5 = vand.u32 2147483647, %v6424_v41 }
 0x2a7   : > { %v3028_v60 = vmul.f32 %v2996_v12, %v2132_v47  ;;  %v2852_v20 = vmul.f32 %v4292_v36, %v2692_v4  ;;  %v6441_v34 = vmul.f32 0.70710677, %v6428_v23  ;;  %vm2916_vm6 = vcmp.lt.f32.partialorder %v6285_v42, 0.0 }
 0x2a8   : > { %v2617_v43 = vmul.f32 %v2585_v62, %v6381_v33  ;;  %v2377_v8 = vsub.f32 2.0, %v2345_v10  ;;  %4297 = vrcp.f32 %v2263_v29  ;;  %v2247_v7 = vmul.f32 0.3275911, %v6432_v5 }
 0x2a9   : > { %v3431_v61 = vpack.c.bf16 %v3028_v60, %v3028_v60  ;;  %v2884_v35 = vsub.f32 1.0, %v2852_v20  ;;  %v6447_v2 = vadd.f32 %v6178_v16, %v6234_v44  ;;  %v2148_v56 = vmul.f32 0.5, %v6275_v25 }
 0x2aa   : > { %v2649_v18 = vadd.f32 0.2548296, %v2617_v43  ;;  %v6438_v36 = vmul.f32 %v4294_v28, %v2377_v8  ;;  %v2279_v15 = vadd.f32 1.0, %v2247_v7  ;;  %v6452_v27 = vand.u32 2147483647, %v6441_v34 }
 0x2ab   : > { %3189 = vst.msk [vmem:[%s5912_s30 + $0x24] sm:$0xf] %vm3179_vm0, %v3431_v61  ;;  %v2948_v54 = vsub.f32 0.0, %v2884_v35  ;;  %v2823_v39 = vmul.f32 1.442695, %v2761_v50  ;;  %v6457_v44 = vadd.f32 %v6178_v16, %v6247_v13  ;;  %vm2905_vm7 = vcmp.lt.f32.partialorder %v6299_v6, 0.0 }
 0x2ac   : > { %v2681_v58 = vmul.f32 %v2649_v18, %v6381_v33  ;;  %v4296_v0 = vpop.eup %4295  ;;  %v2441_v45 = vmul.f32 1.0614054, %v6438_v36  ;;  %4299 = vrcp.f32 %v2279_v15  ;;  %v2234_v33 = vmul.f32 0.3275911, %v6452_v27 }
 0x2ad   : > { %v2980_v30 = vsel %vm2916_vm6, %v2948_v54, %v2884_v35  ;;  %v6460_v63 = vmul.f32 0.70710677, %v6447_v2  ;;  %4301 = vpow2.f32 %v2823_v39  ;;  %v6468_v13 = vmul.f32 0.70710677, %v6457_v44 }
 0x2ae   : > { %v3012_v19 = vadd.f32 1.0, %v2980_v30  ;;  %v2841_v49 = vmul.f32 %v4296_v0, %v2681_v58  ;;  %v2473_v42 = vadd.f32 -1.4531521, %v2441_v45  ;;  %v2266_v51 = vadd.f32 1.0, %v2234_v33 }
 0x2af   : > { %v6464_v38 = vand.u32 2147483647, %v6460_v63  ;;  %v2711_v9 = vsub.f32 0.0, %v6414_v59  ;;  %v2137_v46 = vmul.f32 0.5, %v6282_v24  ;;  %v6477_v6 = vand.u32 2147483647, %v6468_v13 }
 0x2b0   : > { %v3044_v22 = vmul.f32 %v3012_v19, %v2148_v56  ;;  %v2873_v25 = vsub.f32 1.0, %v2841_v49  ;;  %v2505_v11 = vmul.f32 %v2473_v42, %v6438_v36  ;;  %4303 = vrcp.f32 %v2266_v51 }
 0x2b1   : > { %v2250_v17 = vmul.f32 0.3275911, %v6464_v38  ;;  %v6481_v28 = vadd.f32 %v6178_v16, %v6240_v48  ;;  %v2232_v60 = vmul.f32 0.3275911, %v6477_v6  ;;  %v2743_v24 = vmul.f32 %v2711_v9, %v6414_v59 }
 0x2b2   : > { %v3447_v3 = vpack.c.bf16 %v3044_v22, %v3044_v22  ;;  %v2937_v52 = vsub.f32 0.0, %v2873_v25  ;;  %v4298_v37 = vpop.eup %4297  ;;  %v2537_v40 = vadd.f32 1.4214138, %v2505_v11  ;;  %v2727_v35 = vsub.f32 0.0, %v6432_v5 }
 0x2b3   : > { %v2327_v57 = vmul.f32 %v4298_v37, %v2263_v29  ;;  %v2282_v26 = vadd.f32 1.0, %v2250_v17  ;;  %v2264_v16 = vadd.f32 1.0, %v2232_v60  ;;  %v6491_v48 = vmul.f32 0.70710677, %v6481_v28 }
 0x2b4   : > { %3205 = vst.msk [vmem:[%s5912_s30 + $0x64] sm:$0xf] %vm3179_vm0, %v3447_v3  ;;  %v2969_v14 = vsel %vm2905_vm7, %v2937_v52, %v2873_v25  ;;  %v2569_v12 = vmul.f32 %v2537_v40, %v6438_v36  ;;  %v2787_v0 = vmul.f32 1.442695, %v2743_v24  ;;  %v2759_v30 = vmul.f32 %v2727_v35, %v6432_v5 }
 0x2b5   : > { %v3001_v47 = vadd.f32 1.0, %v2969_v14  ;;  %v2359_v4 = vsub.f32 2.0, %v2327_v57  ;;  %4305 = vrcp.f32 %v2282_v26  ;;  %v6496_v59 = vand.u32 2147483647, %v6491_v48 }
 0x2b6   : > { %v2601_v31 = vadd.f32 -0.28449672, %v2569_v12  ;;  %v4300_v20 = vpop.eup %4299  ;;  %4307 = vrcp.f32 %v2264_v16  ;;  %v2714_v49 = vsub.f32 0.0, %v6452_v27  ;;  %v2819_v52 = vmul.f32 1.442695, %v2759_v30 }
 0x2b7   : > { %v3033_v62 = vmul.f32 %v3001_v47, %v2137_v46  ;;  %v6484_v10 = vmul.f32 %v4298_v37, %v2359_v4  ;;  %v2343_v61 = vmul.f32 %v4300_v20, %v2279_v15  ;;  %v4302_v7 = vpop.eup %4301  ;;  %v2248_v39 = vmul.f32 0.3275911, %v6496_v59 }
 0x2b8   : > { %v2633_v43 = vmul.f32 %v2601_v31, %v6438_v36  ;;  %4309 = vpow2.f32 %v2787_v0  ;;  %v2730_v17 = vsub.f32 0.0, %v6464_v38  ;;  %v2153_v46 = vmul.f32 0.5, %v6352_v55 }
 0x2b9   : > { %v3436_v29 = vpack.c.bf16 %v3033_v62, %v3033_v62  ;;  %v2423_v8 = vmul.f32 1.0614054, %v6484_v10  ;;  %v2375_v50 = vsub.f32 2.0, %v2343_v61  ;;  %v2280_v11 = vadd.f32 1.0, %v2248_v39 }
 0x2ba   : > { %v2665_v18 = vadd.f32 0.2548296, %v2633_v43  ;;  %v4304_v58 = vpop.eup %4303  ;;  %vm2921_vm8 = vcmp.lt.f32.partialorder %v6365_v1, 0.0  ;;  %v2762_v55 = vmul.f32 %v2730_v17, %v6464_v38  ;;  %vm2903_vm9 = vcmp.lt.f32.partialorder %v6404_v32, 0.0 }
 0x2bb   : > { %3194 = vst.msk [vmem:[%s5912_s30 + $0x38] sm:$0xf] %vm3179_vm0, %v3436_v29  ;;  %v2455_v54 = vadd.f32 -1.4531521, %v2423_v8  ;;  %v6499_v56 = vmul.f32 %v4300_v20, %v2375_v50  ;;  %v2330_v19 = vmul.f32 %v4304_v58, %v2266_v51  ;;  %v2746_v51 = vmul.f32 %v2714_v49, %v6452_v27 }
 0x2bc   : > { %v2697_v15 = vmul.f32 %v2665_v18, %v6438_v36  ;;  %4311 = vrcp.f32 %v2280_v11  ;;  %v2712_v18 = vsub.f32 0.0, %v6477_v6  ;;  %vm2919_vm10 = vcmp.lt.f32.partialorder %v6424_v41, 0.0 }
 0x2bd   : > { %v2487_v45 = vmul.f32 %v2455_v54, %v6484_v10  ;;  %v2439_v33 = vmul.f32 1.0614054, %v6499_v56  ;;  %v2362_v25 = vsub.f32 2.0, %v2330_v19  ;;  %4313 = vpow2.f32 %v2819_v52 }
 0x2be   : > { %v2857_v42 = vmul.f32 %v4302_v7, %v2697_v15  ;;  %v2793_v29 = vmul.f32 1.442695, %v2746_v51  ;;  %vm2906_vm11 = vcmp.lt.f32.partialorder %v6441_v34, 0.0  ;;  %vm2922_vm12 = vcmp.lt.f32.partialorder %v6460_v63, 0.0 }
 0x2bf   : > { %v2519_v22 = vadd.f32 1.4214138, %v2487_v45  ;;  %v2471_v36 = vadd.f32 -1.4531521, %v2439_v33  ;;  %v4306_v37 = vpop.eup %4305  ;;  %v6507_v40 = vmul.f32 %v4304_v58, %v2362_v25  ;;  %v2744_v33 = vmul.f32 %v2712_v18, %v6477_v6 }
 0x2c0   : > { %v2889_v3 = vsub.f32 1.0, %v2857_v42  ;;  %v2346_v9 = vmul.f32 %v4306_v37, %v2282_v26  ;;  %v4308_v60 = vpop.eup %4307  ;;  %4315 = vpow2.f32 %v2793_v29  ;;  %v2825_v42 = vmul.f32 1.442695, %v2762_v55 }
 0x2c1   : > { %v2551_v5 = vmul.f32 %v2519_v22, %v6484_v10  ;;  %v2503_v57 = vmul.f32 %v2471_v36, %v6499_v56  ;;  %v2426_v12 = vmul.f32 1.0614054, %v6507_v40  ;;  %v2328_v1 = vmul.f32 %v4308_v60, %v2264_v16 }
 0x2c2   : > { %v2953_v14 = vsub.f32 0.0, %v2889_v3  ;;  %v2378_v31 = vsub.f32 2.0, %v2346_v9  ;;  %v4310_v30 = vpop.eup %4309  ;;  %4317 = vpow2.f32 %v2825_v42  ;;  %vm2904_vm13 = vcmp.lt.f32.partialorder %v6468_v13, 0.0 }
 0x2c3   : > { %v2583_v47 = vadd.f32 -0.28449672, %v2551_v5  ;;  %v2535_v62 = vadd.f32 1.4214138, %v2503_v57  ;;  %v2458_v24 = vadd.f32 -1.4531521, %v2426_v12 }
 0x2c4   : > { %v2985_v4 = vsel %vm2921_vm8, %v2953_v14, %v2889_v3  ;;  %v6517_v43 = vmul.f32 %v4306_v37, %v2378_v31  ;;  %v2360_v54 = vsub.f32 2.0, %v2328_v1  ;;  %v2728_v37 = vsub.f32 0.0, %v6496_v59 }
 0x2c5   : > { %v3017_v27 = vadd.f32 1.0, %v2985_v4  ;;  %v2615_v20 = vmul.f32 %v2583_v47, %v6484_v10  ;;  %v2567_v26 = vmul.f32 %v2535_v62, %v6499_v56  ;;  %v2490_v8 = vmul.f32 %v2458_v24, %v6507_v40 }
 0x2c6   : > { %v2442_v7 = vmul.f32 1.0614054, %v6517_v43  ;;  %v6525_v16 = vmul.f32 %v4308_v60, %v2360_v54  ;;  %v4312_v19 = vpop.eup %4311  ;;  %v2135_v62 = vmul.f32 0.5, %v6398_v53  ;;  %v2760_v60 = vmul.f32 %v2728_v37, %v6496_v59 }
 0x2c7   : > { %v3049_v61 = vmul.f32 %v3017_v27, %v2153_v46  ;;  %v2647_v35 = vadd.f32 0.2548296, %v2615_v20  ;;  %v2599_v50 = vadd.f32 -0.28449672, %v2567_v26  ;;  %v2522_v0 = vadd.f32 1.4214138, %v2490_v8  ;;  %v4314_v5 = vpop.eup %4313 }
 0x2c8   : > { %v2474_v38 = vadd.f32 -1.4531521, %v2442_v7  ;;  %v2424_v25 = vmul.f32 1.0614054, %v6525_v16  ;;  %v2344_v3 = vmul.f32 %v4312_v19, %v2280_v11  ;;  %v2789_v46 = vmul.f32 1.442695, %v2744_v33 }
 0x2c9   : > { %v3452_v58 = vpack.c.bf16 %v3049_v61, %v3049_v61  ;;  %v2679_v15 = vmul.f32 %v2647_v35, %v6484_v10  ;;  %v2631_v45 = vmul.f32 %v2599_v50, %v6499_v56  ;;  %v2554_v39 = vmul.f32 %v2522_v0, %v6507_v40 }
 0x2ca   : > { %v2506_v10 = vmul.f32 %v2474_v38, %v6517_v43  ;;  %v2456_v57 = vadd.f32 -1.4531521, %v2424_v25  ;;  %v2376_v9 = vsub.f32 2.0, %v2344_v3  ;;  %4319 = vpow2.f32 %v2789_v46  ;;  %v4316_v1 = vpop.eup %4315 }
 0x2cb   : > { %3210 = vst.msk [vmem:[%s5912_s30 + $0x78] sm:$0xf] %vm3179_vm0, %v3452_v58  ;;  %v2839_v49 = vmul.f32 %v4310_v30, %v2679_v15  ;;  %v2663_v22 = vadd.f32 0.2548296, %v2631_v45  ;;  %v2586_v52 = vadd.f32 -0.28449672, %v2554_v39 }
 0x2cc   : > { %v2538_v14 = vadd.f32 1.4214138, %v2506_v10  ;;  %v2488_v12 = vmul.f32 %v2456_v57, %v6525_v16  ;;  %v6539_v4 = vmul.f32 %v4312_v19, %v2376_v9  ;;  %v2821_v18 = vmul.f32 1.442695, %v2760_v60  ;;  %v4318_v41 = vpop.eup %4317 }
 0x2cd   : > { %v2871_v36 = vsub.f32 1.0, %v2839_v49  ;;  %v2695_v51 = vmul.f32 %v2663_v22, %v6499_v56  ;;  %v2618_v6 = vmul.f32 %v2586_v52, %v6507_v40  ;;  %v2151_v58 = vmul.f32 0.5, %v6408_v21 }
 0x2ce   : > { %v2570_v11 = vmul.f32 %v2538_v14, %v6517_v43  ;;  %v2520_v29 = vadd.f32 1.4214138, %v2488_v12  ;;  %v2440_v55 = vmul.f32 1.0614054, %v6539_v4  ;;  %4321 = vpow2.f32 %v2821_v18 }
 0x2cf   : > { %v2935_v17 = vsub.f32 0.0, %v2871_v36  ;;  %v2855_v47 = vmul.f32 %v4314_v5, %v2695_v51  ;;  %v2650_v31 = vadd.f32 0.2548296, %v2618_v6  ;;  %v2138_v25 = vmul.f32 0.5, %v6428_v23 }
 0x2d0   : > { %v2602_v24 = vadd.f32 -0.28449672, %v2570_v11  ;;  %v2552_v32 = vmul.f32 %v2520_v29, %v6525_v16  ;;  %v2472_v8 = vadd.f32 -1.4531521, %v2440_v55  ;;  %vm2920_vm14 = vcmp.lt.f32.partialorder %v6491_v48, 0.0 }
 0x2d1   : > { %v2967_v56 = vsel %vm2903_vm9, %v2935_v17, %v2871_v36  ;;  %v2887_v20 = vsub.f32 1.0, %v2855_v47  ;;  %v2682_v26 = vmul.f32 %v2650_v31, %v6507_v40  ;;  %v2154_v17 = vmul.f32 0.5, %v6447_v2 }
 0x2d2   : > { %v2999_v27 = vadd.f32 1.0, %v2967_v56  ;;  %v2634_v53 = vmul.f32 %v2602_v24, %v6517_v43  ;;  %v2584_v40 = vadd.f32 -0.28449672, %v2552_v32  ;;  %v2504_v30 = vmul.f32 %v2472_v8, %v6539_v4 }
 0x2d3   : > { %v2951_v35 = vsub.f32 0.0, %v2887_v20  ;;  %v2842_v59 = vmul.f32 %v4316_v1, %v2682_v26  ;;  %v2136_v56 = vmul.f32 0.5, %v6457_v44 }
 0x2d4   : > { %v3031_v61 = vmul.f32 %v2999_v27, %v2135_v62  ;;  %v2666_v54 = vadd.f32 0.2548296, %v2634_v53  ;;  %v2616_v38 = vmul.f32 %v2584_v40, %v6525_v16  ;;  %v2536_v39 = vadd.f32 1.4214138, %v2504_v30  ;;  %v4320_v52 = vpop.eup %4319 }
 0x2d5   : > { %v2983_v7 = vsel %vm2919_vm10, %v2951_v35, %v2887_v20  ;;  %v2874_v0 = vsub.f32 1.0, %v2842_v59 }
 0x2d6   : > { %v3434_v50 = vpack.c.bf16 %v3031_v61, %v3031_v61  ;;  %v3015_v15 = vadd.f32 1.0, %v2983_v7  ;;  %v2698_v45 = vmul.f32 %v2666_v54, %v6517_v43  ;;  %v2648_v33 = vadd.f32 0.2548296, %v2616_v38 }
 0x2d7   : > { %v2938_v49 = vsub.f32 0.0, %v2874_v0  ;;  %v2568_v10 = vmul.f32 %v2536_v39, %v6539_v4 }
 0x2d8   : > { %3192 = vst.msk [vmem:[%s5912_s30 + $0x30] sm:$0xf] %vm3179_vm0, %v3434_v50  ;;  %v3047_v19 = vmul.f32 %v3015_v15, %v2151_v58  ;;  %v2858_v42 = vmul.f32 %v4318_v41, %v2698_v45  ;;  %v2680_v36 = vmul.f32 %v2648_v33, %v6525_v16  ;;  %v4322_v63 = vpop.eup %4321 }
 0x2d9   : > { %v2970_v22 = vsel %vm2906_vm11, %v2938_v49, %v2874_v0  ;;  %v2600_v37 = vadd.f32 -0.28449672, %v2568_v10 }
 0x2da   : > { %v3450_v21 = vpack.c.bf16 %v3047_v19, %v3047_v19  ;;  %v3002_v3 = vadd.f32 1.0, %v2970_v22  ;;  %v2890_v43 = vsub.f32 1.0, %v2858_v42  ;;  %v2840_v51 = vmul.f32 %v4320_v52, %v2680_v36 }
 0x2db   : > { %v2632_v14 = vmul.f32 %v2600_v37, %v6539_v4 }
 0x2dc   : > { %3208 = vst.msk [vmem:[%s5912_s30 + $0x70] sm:$0xf] %vm3179_vm0, %v3450_v21  ;;  %v3034_v5 = vmul.f32 %v3002_v3, %v2138_v25  ;;  %v2954_v34 = vsub.f32 0.0, %v2890_v43  ;;  %v2872_v23 = vsub.f32 1.0, %v2840_v51 }
 0x2dd   : > { %v2664_v46 = vadd.f32 0.2548296, %v2632_v14 }
 0x2de   : > { %v3437_v57 = vpack.c.bf16 %v3034_v5, %v3034_v5  ;;  %v2986_v9 = vsel %vm2922_vm12, %v2954_v34, %v2890_v43  ;;  %v2936_v16 = vsub.f32 0.0, %v2872_v23 }
 0x2df   : > { %v3018_v6 = vadd.f32 1.0, %v2986_v9  ;;  %v2696_v11 = vmul.f32 %v2664_v46, %v6539_v4  ;;  %v2152_v4 = vmul.f32 0.5, %v6481_v28 }
 0x2e0   : > { %3195 = vst.msk [vmem:[%s5912_s30 + $0x3c] sm:$0xf] %vm3179_vm0, %v3437_v57  ;;  %v2968_v12 = vsel %vm2904_vm13, %v2936_v16, %v2872_v23 }
 0x2e1   : > { %v3050_v47 = vmul.f32 %v3018_v6, %v2154_v17  ;;  %v3000_v31 = vadd.f32 1.0, %v2968_v12  ;;  %v2856_v60 = vmul.f32 %v4322_v63, %v2696_v11 }
 0x2e3   : > { %v3453_v62 = vpack.c.bf16 %v3050_v47, %v3050_v47  ;;  %v3032_v2 = vmul.f32 %v3000_v31, %v2136_v56  ;;  %v2888_v27 = vsub.f32 1.0, %v2856_v60 }
 0x2e5   : > { %3211 = vst.msk [vmem:[%s5912_s30 + $0x7c] sm:$0xf] %vm3179_vm0, %v3453_v62  ;;  %v3435_v20 = vpack.c.bf16 %v3032_v2, %v3032_v2  ;;  %v2952_v24 = vsub.f32 0.0, %v2888_v27 }
 0x2e7   : > { %3193 = vst.msk [vmem:[%s5912_s30 + $0x34] sm:$0xf] %vm3179_vm0, %v3435_v20  ;;  %v2984_v13 = vsel %vm2920_vm14, %v2952_v24, %v2888_v27 }
 0x2e8   : > { %v3016_v29 = vadd.f32 1.0, %v2984_v13 }
 0x2ea   : > { %v3048_v26 = vmul.f32 %v3016_v29, %v2152_v4 }
 0x2ec   : > { %v3451_v55 = vpack.c.bf16 %v3048_v26, %v3048_v26 }
 0x2ee   : > { %3209 = vst.msk [vmem:[%s5912_s30 + $0x74] sm:$0xf] %vm3179_vm0, %v3451_v55 }
 0x2ef PF: > { %s15_s20 = sadd.s32 1, %s4346_s20   ;;  %s6719_s18 = smov %s4342_s19 }
 0x2f0   : > { %p12_p5 = scmp.ge.s32.totalorder %s15_s20, 4   ;;  %s6720_s19 = smov %s6722_s21 }
 0x2f2   :  { %14 = sbr.rel (!%p12_p5) target bundleno = 2 (0x2), region = 76 }

// kernel: resblock_forward.7
= control target key start
LH: loop header
LB: loop body
LE: loop exit
PB: predicated region body
PF: predicated region fallthrough
CT: control target
= control target key end

     0   :  { %s6431_s30 = smov 0   ;;  %s6433_s10 = smov 0   ;;  %s10249_s0 = inlined_call_operand.vmem [shape: bf16[2,16,16,2], index: 0, kind: input, shape index: {}, may-alias: {0,1,2}]   ;;  %s10250_s1 = inlined_call_operand.vmem [shape: bf16[2,16,16,2], index: 1, kind: input, shape index: {}, may-alias: {0,1,2}]   ;;  %s10251_s2 = inlined_call_operand.vmem [shape: bf16[2,16,16,2], index: 2, kind: input, shape index: {}, may-alias: {0,1,2}]   ;;  %s10252_s3 = inlined_call_operand.vmem [shape: bf16[2,16,16,2], index: 3, kind: input, shape index: {}, may-alias: {3,4,5}]   ;;  %s10253_s4 = inlined_call_operand.vmem [shape: bf16[2,16,16,2], index: 4, kind: input, shape index: {}, may-alias: {3,4,5}]   ;;  %s10254_s5 = inlined_call_operand.vmem [shape: bf16[2,16,16,2], index: 5, kind: input, shape index: {}, may-alias: {3,4,5}]   ;;  %s10255_s6 = inlined_call_operand.vmem [shape: bf16[36,4], index: 6, kind: input, shape index: {}]   ;;  %s10256_s7 = inlined_call_operand.vmem [shape: f32[1,4], index: 7, kind: input, shape index: {}]   ;;  %s10257_s8 = inlined_call_operand.vmem [shape: f32[2,16,16,4], index: 8, kind: input, shape index: {}]   ;;  %s10258_s9 = inlined_call_operand.vmem [shape: f32[2,16,16,4], index: 9, kind: output, shape index: {}]  }
   0x1   :  { %s6435_s11 = smov 0  }
   0x2 LB: > { %s31_s12 = sadd.s32 1, %s6359_s10  ;;  %p4608_p0 = scmp.ge.s32.totalorder %s6363_s11, 1  ;;  %s6363_s11 = sphi %s6435_s11, %s19_s11   ;;  %s6359_s10 = sphi %s6433_s10, %s11154_s10   ;;  %s6355_s30 = sphi %s6431_s30, %s11153_s30  }
   0x3   : > { %p33_p1 = scmp.ge.s32.totalorder %s31_s12, 2  ;;  %p473_p2 = scmp.lt.s32.totalorder %s6363_s11, 3 }
   0x5   : > { %s11156_s12 = smov (%p33_p1, %s31_s12), 0  ;;  %p474_p3 = pnand %p4608_p0, %p473_p2 }
   0x7   : > { %477 = sbr.rel (%p474_p3) target bundleno = 1004 (0x3ec), region = 56 }
   0xe   : > { %p592_p4 = scmp.lt.s32.totalorder %s6355_s30, 1  ;;  %vm819_vm0 = vcmask 1040384   ;;  %vm1248_vm1 = vcmask 1046528   ;;  %s6365_s17 = smov 2   ;;  %vm1425_vm2 = vcmask 1045504   ;;  %vm3079_vm3 = vcmask 15360  }
   0xf   : > { %s6366_s21 = smov 4   ;;  %s6367_s22 = smov 6   ;;  %vm3112_vm4 = vcmask 31744   ;;  %vm3145_vm5 = vcmask 48128   ;;  %vm3178_vm6 = vcmask 64512   ;;  %vm3211_vm7 = vcmask 80896  }
  0x10   : > { %s11158_s30 = smov (!%p592_p4, %s6355_s30), 1  ;;  %s6368_s23 = smov 8   ;;  %vm3244_vm8 = vcmask 97280   ;;  %vm3277_vm9 = vcmask 113664   ;;  %vm3310_vm10 = vcmask 130048   ;;  %vm3343_vm11 = vcmask 146432  }
  0x11   : > { %s6452_s13 = sshll.u32 %s11158_s30, 7  ;;  %s6369_s24 = smov 10   ;;  %vm3376_vm12 = vcmask 162816   ;;  %vm3409_vm13 = vcmask 179200   ;;  %vm3442_vm14 = vcmask 195584   ;;  %vm4121_vm15 = vcmask 1041408  }
  0x12   : > { %s6458_s16 = scalar_lea.vmem %s10249_s0, %s6452_s13  ;;  %s614_s20 = scalar_lea.vmem %s10250_s1, %s6452_s13 }
  0x13   : > { %v4803_v0 = vld [vmem:[%s6458_s16 + $0x8] sm:$0xff]   ;;  %v4658_v1 = vld [vmem:[%s6458_s16] sm:$0xff]   ;;  %v4804_v2 = vld [vmem:[%s6458_s16 + $0x10] sm:$0xff]   ;;  %s6370_s25 = smov 12   ;;  %s4650_s26 = sadd.s32 120, %s6452_s13 }
  0x14   : > { %v4663_v3 = vunpack.c.l.bf16 %v4803_v0  ;;  %v4664_v4 = vunpack.c.h.bf16 %v4803_v0  ;;  %v4659_v5 = vunpack.c.l.bf16 %v4658_v1  ;;  %v4660_v6 = vunpack.c.h.bf16 %v4658_v1  ;;  %v4805_v7 = vld [vmem:[%s6458_s16 + $0x18] sm:$0xff]   ;;  %v4806_v44 = vld [vmem:[%s6458_s16 + $0x20] sm:$0xff]   ;;  %v4807_v48 = vld [vmem:[%s6458_s16 + $0x28] sm:$0xff]   ;;  %s631_s29 = scalar_lea.vmem %s10251_s2, %s4650_s26  ;;  %s6371_s14 = smov 14  }
  0x15   : > { %v4667_v8 = vunpack.c.l.bf16 %v4804_v2  ;;  %v4668_v9 = vunpack.c.h.bf16 %v4804_v2  ;;  %v4671_v10 = vunpack.c.l.bf16 %v4805_v7  ;;  %v4672_v11 = vunpack.c.h.bf16 %v4805_v7  ;;  %v4808_v53 = vld [vmem:[%s6458_s16 + $0x30] sm:$0xff]   ;;  %v4809_v62 = vld [vmem:[%s6458_s16 + $0x38] sm:$0xff]   ;;  %s659_s18 = scalar_lea.vmem %s10253_s4, %s6452_s13  ;;  %s6376_s27 = smov 24  }
  0x16   : > { %v826_v12 = vrot.slane %v4663_v3, 7  ;;  %v827_v13 = vrot.slane %v4664_v4, 7  ;;  %v823_v14 = vrot.slane %v4659_v5, 7  ;;  %v824_v15 = vrot.slane %v4660_v6, 7 }
  0x17   : > { %v829_v16 = vrot.slane %v4667_v8, 7  ;;  %v830_v17 = vrot.slane %v4668_v9, 7  ;;  %v832_v18 = vrot.slane %v4671_v10, 7  ;;  %v833_v19 = vrot.slane %v4672_v11, 7 }
  0x18   : > { %v6465_v20 = vsel %vm819_vm0, %v826_v12, %v827_v13  ;;  %v6468_v21 = vsel %vm819_vm0, 0.0, %v826_v12  ;;  %v6471_v22 = vsel %vm819_vm0, %v827_v13, 0.0  ;;  %v6474_v23 = vsel %vm819_vm0, %v823_v14, %v824_v15 }
  0x19   : > { %10559 = vst [vmem:[#allocation2_spill] sm:$0xff] %v6465_v20  ;;  %10560 = vst [vmem:[#allocation3_spill] sm:$0xff] %v6468_v21  ;;  %v1259_v24 = vrot.slane %v6468_v21, 1  ;;  %v1260_v25 = vrot.slane %v6465_v20, 1  ;;  %v1262_v26 = vrot.slane %v6471_v22, 1  ;;  %v6481_v28 = vsel %vm819_vm0, 0.0, %v823_v14 }
  0x1a   : > { %10561 = vst [vmem:[#allocation4_spill] sm:$0xff] %v6474_v23  ;;  %10562 = vst [vmem:[#allocation5_spill] sm:$0xff] %v6481_v28  ;;  %v6484_v29 = vsel %vm819_vm0, %v824_v15, 0.0  ;;  %v1255_v30 = vrot.slane %v6474_v23, 1  ;;  %v6488_v31 = vsel %vm819_vm0, %v829_v16, %v830_v17  ;;  %v1254_v34 = vrot.slane %v6481_v28, 1 }
  0x1b   : > { %10563 = vst [vmem:[#allocation6_spill] sm:$0xff] %v6488_v31  ;;  %v1261_v32 = vsel %vm1248_vm1, %v1259_v24, %v1260_v25  ;;  %v1263_v33 = vsel %vm1248_vm1, %v1260_v25, %v1262_v26  ;;  %v1257_v35 = vrot.slane %v6484_v29, 1  ;;  %v6498_v38 = vsel %vm819_vm0, 0.0, %v829_v16 }
  0x1c   : > { %v6494_v36 = vpack.i.bf16 %v1263_v33, %v1261_v32  ;;  %10564 = vst [vmem:[#allocation7_spill] sm:$0xff] %v6498_v38  ;;  %v6501_v39 = vsel %vm819_vm0, %v830_v17, 0.0  ;;  %v1256_v40 = vsel %vm1248_vm1, %v1254_v34, %v1255_v30  ;;  %v1264_v42 = vrot.slane %v6498_v38, 1 }
  0x1d   : > { %v1258_v41 = vsel %vm1248_vm1, %v1255_v30, %v1257_v35  ;;  %v1265_v43 = vrot.slane %v6488_v31, 1  ;;  %v1267_v46 = vrot.slane %v6501_v39, 1  ;;  %v6514_v47 = vsel %vm819_vm0, %v832_v18, %v833_v19  ;;  %v4810_v35 = vld [vmem:[%s6458_s16 + $0x40] sm:$0xff]  }
  0x1e   : > { %4944 = vrot.lane.b32.xlu1 %v6494_v36, %s6365_s17  ;;  %v6510_v45 = vpack.i.bf16 %v1258_v41, %v1256_v40  ;;  %v6519_v50 = vsel %vm819_vm0, 0.0, %v832_v18  ;;  %v6522_v51 = vsel %vm819_vm0, %v833_v19, 0.0  ;;  %v1270_v52 = vrot.slane %v6514_v47, 1 }
  0x1f   : > { %v1266_v49 = vsel %vm1248_vm1, %v1264_v42, %v1265_v43  ;;  %v1268_v54 = vsel %vm1248_vm1, %v1265_v43, %v1267_v46  ;;  %v1269_v55 = vrot.slane %v6519_v50, 1  ;;  %v1272_v56 = vrot.slane %v6522_v51, 1 }
  0x20   : > { %10565 = vst [vmem:[#allocation8_spill] sm:$0xff] %v6510_v45  ;;  %4939 = vrot.lane.b32.xlu0 %v6510_v45, %s6365_s17  ;;  %v4675_v57 = vunpack.c.l.bf16 %v4806_v44  ;;  %v6531_v58 = vpack.i.bf16 %v1268_v54, %v1266_v49  ;;  %v4676_v59 = vunpack.c.h.bf16 %v4806_v44  ;;  %v4679_v60 = vunpack.c.l.bf16 %v4807_v48  ;;  %v4722_v44 = vld [vmem:[%s614_s20] sm:$0xff]  }
  0x21   : > { %v4680_v61 = vunpack.c.h.bf16 %v4807_v48  ;;  %v1271_v63 = vsel %vm1248_vm1, %v1269_v55, %v1270_v52  ;;  %v1273_v0 = vsel %vm1248_vm1, %v1270_v52, %v1272_v56  ;;  %v4683_v2 = vunpack.c.l.bf16 %v4808_v53 }
  0x22   : > { %10566 = vst [vmem:[#allocation9_spill] sm:$0xff] %v6531_v58  ;;  %v835_v1 = vrot.slane %v4675_v57, 7  ;;  %4949 = vrot.lane.b32.xlu1 %v6531_v58, %s6365_s17  ;;  %v6538_v3 = vpack.i.bf16 %v1273_v0, %v1271_v63  ;;  %v836_v4 = vrot.slane %v4676_v59, 7  ;;  %v838_v5 = vrot.slane %v4679_v60, 7 }
  0x23   : > { %v839_v6 = vrot.slane %v4680_v61, 7  ;;  %v4684_v8 = vunpack.c.h.bf16 %v4808_v53  ;;  %v841_v9 = vrot.slane %v4683_v2, 7  ;;  %v4687_v10 = vunpack.c.l.bf16 %v4809_v62  ;;  %v4812_v2 = vld [vmem:[%s6458_s16 + $0x50] sm:$0xff]  }
  0x24   : > { %v6541_v7 = vsel %vm819_vm0, 0.0, %v835_v1  ;;  %4954 = vrot.lane.b32.xlu0 %v6538_v3, %s6365_s17  ;;  %v6546_v11 = vsel %vm819_vm0, %v835_v1, %v836_v4  ;;  %v6549_v12 = vsel %vm819_vm0, %v836_v4, 0.0  ;;  %v6558_v17 = vsel %vm819_vm0, 0.0, %v838_v5 }
  0x25   : > { %v1274_v13 = vrot.slane %v6541_v7, 1  ;;  %v6553_v14 = vsel %vm819_vm0, %v838_v5, %v839_v6  ;;  %v1275_v15 = vrot.slane %v6546_v11, 1  ;;  %v1277_v16 = vrot.slane %v6549_v12, 1 }
  0x26   : > { %v6561_v18 = vsel %vm819_vm0, %v839_v6, 0.0  ;;  %v1279_v19 = vrot.slane %v6558_v17, 1  ;;  %v1280_v24 = vrot.slane %v6553_v14, 1  ;;  %v842_v26 = vrot.slane %v4684_v8, 7 }
  0x27   : > { %v1282_v25 = vrot.slane %v6561_v18, 1  ;;  %v1276_v30 = vsel %vm1248_vm1, %v1274_v13, %v1275_v15  ;;  %v1278_v32 = vsel %vm1248_vm1, %v1275_v15, %v1277_v16  ;;  %v6573_v33 = vsel %vm819_vm0, 0.0, %v841_v9 }
  0x28   : > { %v4688_v34 = vunpack.c.h.bf16 %v4809_v62  ;;  %v6576_v40 = vpack.i.bf16 %v1278_v32, %v1276_v30  ;;  %v1281_v41 = vsel %vm1248_vm1, %v1279_v19, %v1280_v24  ;;  %v6581_v43 = vsel %vm819_vm0, %v841_v9, %v842_v26 }
  0x29   : > { %v1283_v42 = vsel %vm1248_vm1, %v1280_v24, %v1282_v25  ;;  %v6586_v48 = vsel %vm819_vm0, %v842_v26, 0.0  ;;  %v1284_v49 = vrot.slane %v6573_v33, 1  ;;  %v1285_v52 = vrot.slane %v6581_v43, 1  ;;  %v4811_v26 = vld [vmem:[%s6458_s16 + $0x48] sm:$0xff]  }
  0x2a   : > { %10567 = vst [vmem:[#allocation10_spill] sm:$0xff] %v6576_v40  ;;  %v6583_v46 = vpack.i.bf16 %v1283_v42, %v1281_v41  ;;  %4959 = vrot.lane.b32.xlu1 %v6576_v40, %s6365_s17  ;;  %v1287_v53 = vrot.slane %v6586_v48, 1  ;;  %v844_v54 = vrot.slane %v4687_v10, 7  ;;  %v845_v55 = vrot.slane %v4688_v34, 7 }
  0x2b   : > { %v4691_v56 = vunpack.c.l.bf16 %v4810_v35  ;;  %v1286_v57 = vsel %vm1248_vm1, %v1284_v49, %v1285_v52  ;;  %v4692_v59 = vunpack.c.h.bf16 %v4810_v35  ;;  %v4723_v60 = vunpack.c.l.bf16 %v4722_v44 }
  0x2c   : > { %10568 = vst [vmem:[#allocation11_spill] sm:$0xff] %v6583_v46  ;;  %4964 = vrot.lane.b32.xlu0 %v6583_v46, %s6365_s17  ;;  %v4724_v61 = vunpack.c.h.bf16 %v4722_v44  ;;  %v1288_v62 = vsel %vm1248_vm1, %v1285_v52, %v1287_v53  ;;  %v6598_v63 = vsel %vm819_vm0, %v844_v54, %v845_v55  ;;  %v6601_v0 = vsel %vm819_vm0, 0.0, %v844_v54 }
  0x2d   : > { %10569 = vst [vmem:[#allocation12_spill] sm:$0xff] %v6598_v63  ;;  %10570 = vst [vmem:[#allocation13_spill] sm:$0xff] %v6601_v0  ;;  %v6604_v1 = vsel %vm819_vm0, %v845_v55, 0.0  ;;  %v6607_v4 = vpack.i.bf16 %v1288_v62, %v1286_v57  ;;  %v1289_v5 = vrot.slane %v6601_v0, 1  ;;  %v1290_v6 = vrot.slane %v6598_v63, 1 }
  0x2e   : > { %v1292_v8 = vrot.slane %v6604_v1, 1  ;;  %v847_v9 = vrot.slane %v4691_v56, 7  ;;  %v848_v10 = vrot.slane %v4692_v59, 7  ;;  %v779_v13 = vmul.f32 0.0, %v4723_v60 }
  0x2f   : > { %10571 = vst [vmem:[#allocation14_spill] sm:$0xff] %v6607_v4  ;;  %v780_v15 = vmul.f32 0.0, %v4724_v61  ;;  %4969 = vrot.lane.b32.xlu1 %v6607_v4, %s6365_s17  ;;  %v1291_v16 = vsel %vm1248_vm1, %v1289_v5, %v1290_v6  ;;  %v4699_v24 = vunpack.c.l.bf16 %v4812_v2  ;;  %v4700_v25 = vunpack.c.h.bf16 %v4812_v2 }
  0x30   : > { %v1293_v19 = vsel %vm1248_vm1, %v1290_v6, %v1292_v8  ;;  %v6620_v32 = vsel %vm819_vm0, %v847_v9, %v848_v10  ;;  %v6623_v34 = vsel %vm819_vm0, 0.0, %v847_v9  ;;  %v6626_v35 = vsel %vm819_vm0, %v848_v10, 0.0 }
  0x31   : > { %v6617_v30 = vpack.i.bf16 %v1293_v19, %v1291_v16  ;;  %10573 = vst [vmem:[#allocation16_spill] sm:$0xff] %v6620_v32  ;;  %10574 = vst [vmem:[#allocation17_spill] sm:$0xff] %v6623_v34  ;;  %v1294_v41 = vrot.slane %v6623_v34, 1  ;;  %v1295_v42 = vrot.slane %v6620_v32, 1  ;;  %v1297_v44 = vrot.slane %v6626_v35, 1 }
  0x32   : > { %v820_v49 = vrot.slane %v779_v13, 7  ;;  %v821_v52 = vrot.slane %v780_v15, 7  ;;  %v853_v53 = vrot.slane %v4699_v24, 7  ;;  %v854_v54 = vrot.slane %v4700_v25, 7  ;;  %v4814_v13 = vld [vmem:[%s6458_s16 + $0x60] sm:$0xff]  }
  0x33   : > { %10572 = vst [vmem:[#allocation15_spill] sm:$0xff] %v6617_v30  ;;  %4974 = vrot.lane.b32.xlu0 %v6617_v30, %s6365_s17  ;;  %v4695_v55 = vunpack.c.l.bf16 %v4811_v26  ;;  %v1296_v56 = vsel %vm1248_vm1, %v1294_v41, %v1295_v42  ;;  %v1298_v57 = vsel %vm1248_vm1, %v1295_v42, %v1297_v44  ;;  %v4696_v60 = vunpack.c.h.bf16 %v4811_v26 }
  0x34   : > { %v6636_v59 = vsel %vm819_vm0, 0.0, %v820_v49  ;;  %v6638_v61 = vpack.i.bf16 %v1298_v57, %v1296_v56  ;;  %v6641_v62 = vsel %vm819_vm0, %v820_v49, %v821_v52  ;;  %v6644_v2 = vsel %vm819_vm0, %v821_v52, 0.0  ;;  %v4816_v56 = vld [vmem:[%s6458_s16 + $0x70] sm:$0xff]  }
  0x35   : > { %10575 = vst [vmem:[#allocation18_spill] sm:$0xff] %v6636_v59  ;;  %10577 = vst [vmem:[#allocation20_spill] sm:$0xff] %v6641_v62  ;;  %v1249_v5 = vrot.slane %v6636_v59, 1  ;;  %v1250_v6 = vrot.slane %v6641_v62, 1  ;;  %v1252_v8 = vrot.slane %v6644_v2, 1  ;;  %v6650_v9 = vsel %vm819_vm0, %v853_v53, %v854_v54 }
  0x36   : > { %10576 = vst [vmem:[#allocation19_spill] sm:$0xff] %v6638_v61  ;;  %10578 = vst [vmem:[#allocation21_spill] sm:$0xff] %v6650_v9  ;;  %v6653_v10 = vsel %vm819_vm0, 0.0, %v853_v53  ;;  %4979 = vrot.lane.b32.xlu1 %v6638_v61, %s6365_s17  ;;  %v6659_v15 = vsel %vm819_vm0, %v854_v54, 0.0  ;;  %v1305_v19 = vrot.slane %v6650_v9, 1  ;;  %v850_v24 = vrot.slane %v4695_v55, 7 }
  0x37   : > { %10579 = vst [vmem:[#allocation22_spill] sm:$0xff] %v6653_v10  ;;  %v1304_v16 = vrot.slane %v6653_v10, 1  ;;  %v1251_v25 = vsel %vm1248_vm1, %v1249_v5, %v1250_v6  ;;  %v1253_v26 = vsel %vm1248_vm1, %v1250_v6, %v1252_v8  ;;  %v1307_v41 = vrot.slane %v6659_v15, 1  ;;  %v4813_v54 = vld [vmem:[%s6458_s16 + $0x58] sm:$0xff]  }
  0x38   : > { %v851_v42 = vrot.slane %v4696_v60, 7  ;;  %v4983_v44 = vpack.i.bf16 %v1253_v26, %v1251_v25  ;;  %v6668_v52 = vsel %vm819_vm0, 0.0, %v850_v24  ;;  %v4707_v53 = vunpack.c.l.bf16 %v4814_v13 }
  0x39   : > { %v1306_v49 = vsel %vm1248_vm1, %v1304_v16, %v1305_v19  ;;  %10580 = vst [vmem:[#allocation23_spill] sm:$0xff] %v6668_v52  ;;  %v1308_v57 = vsel %vm1248_vm1, %v1305_v19, %v1307_v41  ;;  %v1299_v6 = vrot.slane %v6668_v52, 1  ;;  %v4708_v25 = vunpack.c.h.bf16 %v4814_v13 }
  0x3a   : > { %v6674_v55 = vsel %vm819_vm0, %v850_v24, %v851_v42  ;;  %v6677_v5 = vsel %vm819_vm0, %v851_v42, 0.0  ;;  %4984 = vrot.lane.b32.xlu0 %v4983_v44, %s6365_s17  ;;  %v6681_v60 = vpack.i.bf16 %v1308_v57, %v1306_v49  ;;  %v859_v26 = vrot.slane %v4707_v53, 7 }
  0x3b   : > { %10581 = vst [vmem:[#allocation24_spill] sm:$0xff] %v6674_v55  ;;  %v1300_v8 = vrot.slane %v6674_v55, 1  ;;  %v1302_v16 = vrot.slane %v6677_v5, 1  ;;  %v4703_v27 = vunpack.c.l.bf16 %v4813_v54  ;;  %v4704_v19 = vunpack.c.h.bf16 %v4813_v54 }
  0x3c   : > { %10582 = vst [vmem:[#allocation25_spill] sm:$0xff] %v6681_v60  ;;  %v4715_v41 = vunpack.c.l.bf16 %v4816_v56  ;;  %4994 = vrot.lane.b32.xlu1 %v6681_v60, %s6365_s17  ;;  %v860_v37 = vrot.slane %v4708_v25, 7  ;;  %v4716_v44 = vunpack.c.h.bf16 %v4816_v56  ;;  %v6692_v57 = vsel %vm819_vm0, 0.0, %v859_v26 }
  0x3d   : > { %v1301_v24 = vsel %vm1248_vm1, %v1299_v6, %v1300_v8  ;;  %v1303_v42 = vsel %vm1248_vm1, %v1300_v8, %v1302_v16  ;;  %v856_v13 = vrot.slane %v4703_v27, 7  ;;  %v857_v53 = vrot.slane %v4704_v19, 7 }
  0x3e   : > { %v6689_v49 = vpack.i.bf16 %v1303_v42, %v1301_v24  ;;  %v6695_v54 = vsel %vm819_vm0, %v859_v26, %v860_v37  ;;  %v6698_v61 = vsel %vm819_vm0, %v860_v37, 0.0  ;;  %v1314_v6 = vrot.slane %v6692_v57, 1 }
  0x3f   : > { %v865_v8 = vrot.slane %v4715_v41, 7  ;;  %v1315_v56 = vrot.slane %v6695_v54, 1  ;;  %v1317_v16 = vrot.slane %v6698_v61, 1  ;;  %v6706_v27 = vsel %vm819_vm0, %v856_v13, %v857_v53 }
  0x40   : > { %10583 = vst [vmem:[#allocation26_spill] sm:$0xff] %v6689_v49  ;;  %4989 = vrot.lane.b32.xlu0 %v6689_v49, %s6365_s17  ;;  %10584 = vst [vmem:[#allocation27_spill] sm:$0xff] %v6706_v27  ;;  %v6709_v25 = vsel %vm819_vm0, 0.0, %v856_v13  ;;  %v6712_v37 = vsel %vm819_vm0, %v857_v53, 0.0  ;;  %v1310_v19 = vrot.slane %v6706_v27, 1  ;;  %v866_v41 = vrot.slane %v4716_v44, 7 }
  0x41   : > { %10585 = vst [vmem:[#allocation28_spill] sm:$0xff] %v6709_v25  ;;  %v1309_v26 = vrot.slane %v6709_v25, 1  ;;  %v1316_v24 = vsel %vm1248_vm1, %v1314_v6, %v1315_v56  ;;  %v1318_v42 = vsel %vm1248_vm1, %v1315_v56, %v1317_v16  ;;  %v1312_v60 = vrot.slane %v6712_v37, 1  ;;  %v4815_v49 = vld [vmem:[%s6458_s16 + $0x68] sm:$0xff]  }
  0x42   : > { %v6720_v4 = vsel %vm819_vm0, 0.0, %v865_v8  ;;  %v6723_v13 = vpack.i.bf16 %v1318_v42, %v1316_v24  ;;  %v6727_v40 = vsel %vm819_vm0, %v865_v8, %v866_v41  ;;  %v6730_v30 = vsel %vm819_vm0, %v866_v41, 0.0 }
  0x43   : > { %10586 = vst [vmem:[#allocation29_spill] sm:$0xff] %v6720_v4  ;;  %v1311_v53 = vsel %vm1248_vm1, %v1309_v26, %v1310_v19  ;;  %10588 = vst [vmem:[#allocation31_spill] sm:$0xff] %v6727_v40  ;;  %v1313_v44 = vsel %vm1248_vm1, %v1310_v19, %v1312_v60  ;;  %v1324_v6 = vrot.slane %v6720_v4, 1  ;;  %v1325_v56 = vrot.slane %v6727_v40, 1 }
  0x44   : > { %10587 = vst [vmem:[#allocation30_spill] sm:$0xff] %v6723_v13  ;;  %v1327_v16 = vrot.slane %v6730_v30, 1  ;;  %5004 = vrot.lane.b32.xlu1 %v6723_v13, %s6365_s17  ;;  %v6738_v24 = vpack.i.bf16 %v1313_v44, %v1311_v53  ;;  %v4711_v26 = vunpack.c.l.bf16 %v4815_v49  ;;  %v4712_v42 = vunpack.c.h.bf16 %v4815_v49 }
  0x45   : > { %v1431_v8 = vrot.slane %v6481_v28, 2  ;;  %v1326_v41 = vsel %vm1248_vm1, %v1324_v6, %v1325_v56  ;;  %v1432_v60 = vrot.slane %v6474_v23, 2  ;;  %v1426_v19 = vrot.slane %v6636_v59, 2 }
  0x46   : > { %10589 = vst [vmem:[#allocation32_spill] sm:$0xff] %v6738_v24  ;;  %v1328_v58 = vsel %vm1248_vm1, %v1325_v56, %v1327_v16  ;;  %4999 = vrot.lane.b32.xlu0 %v6738_v24, %s6365_s17  ;;  %v862_v13 = vrot.slane %v4711_v26, 7  ;;  %v863_v53 = vrot.slane %v4712_v42, 7  ;;  %v1427_v44 = vrot.slane %v6641_v62, 2 }
  0x47   : > { %v6747_v46 = vpack.i.bf16 %v1328_v58, %v1326_v41  ;;  %v1433_v49 = vsel %vm1425_vm2, %v1431_v8, %v1432_v60  ;;  %v10591_v45 = vrot.slane %v6484_v29, 2  ;;  %v1429_v56 = vrot.slane %v6644_v2, 2 }
  0x48   : > { %v1441_v16 = vrot.slane %v6498_v38, 2  ;;  %v6759_v58 = vsel %vm819_vm0, %v862_v13, %v863_v53  ;;  %v6762_v26 = vsel %vm819_vm0, 0.0, %v862_v13  ;;  %v6765_v42 = vsel %vm819_vm0, %v863_v53, 0.0 }
  0x49   : > { %10590 = vst [vmem:[#allocation33_spill] sm:$0xff] %v6747_v46  ;;  %v1435_v6 = vsel %vm1425_vm2, %v1432_v60, %v10591_v45  ;;  %5014 = vrot.lane.b32.xlu1 %v6747_v46, %s6365_s17  ;;  %10592 = vst [vmem:[#allocation34_spill] sm:$0xff] %v6759_v58  ;;  %v1319_v29 = vrot.slane %v6762_v26, 1  ;;  %v1320_v45 = vrot.slane %v6759_v58, 1  ;;  %v1322_v2 = vrot.slane %v6765_v42, 1 }
  0x4a   : > { %10593 = vst [vmem:[#allocation35_spill] sm:$0xff] %v6762_v26  ;;  %v6767_v8 = vpack.i.bf16 %v1435_v6, %v1433_v49  ;;  %v1428_v41 = vsel %vm1425_vm2, %v1426_v19, %v1427_v44  ;;  %v1430_v60 = vsel %vm1425_vm2, %v1427_v44, %v1429_v56  ;;  %v1442_v59 = vrot.slane %v6488_v31, 2 }
  0x4b   : > { %v1444_v13 = vrot.slane %v6501_v39, 2  ;;  %v1436_v62 = vrot.slane %v6468_v21, 2  ;;  %v1321_v53 = vsel %vm1248_vm1, %v1319_v29, %v1320_v45  ;;  %v1323_v49 = vsel %vm1248_vm1, %v1320_v45, %v1322_v2 }
  0x4c   : > { %v1437_v6 = vrot.slane %v6465_v20, 2  ;;  %v6780_v46 = vpack.i.bf16 %v1323_v49, %v1321_v53  ;;  %v1443_v19 = vsel %vm1425_vm2, %v1441_v16, %v1442_v59  ;;  %v1451_v39 = vrot.slane %v6541_v7, 2 }
  0x4d   : > { %5024 = vrot.lane.b32.xlu1 %v6767_v8, %s6366_s21  ;;  %v1445_v44 = vsel %vm1425_vm2, %v1442_v59, %v1444_v13  ;;  %v5018_v56 = vpack.i.bf16 %v1430_v60, %v1428_v41  ;;  %v1452_v45 = vrot.slane %v6546_v11, 2  ;;  %v10595_v2 = vrot.slane %v6471_v22, 2 }
  0x4e   : > { %v6787_v24 = vpack.i.bf16 %v1445_v44, %v1443_v19  ;;  %v1438_v29 = vsel %vm1425_vm2, %v1436_v62, %v1437_v6  ;;  %5009 = vrot.lane.b32.xlu0 %v6780_v46, %s6365_s17  ;;  %v1454_v16 = vrot.slane %v6549_v12, 2  ;;  %v1446_v59 = vrot.slane %v6519_v50, 2 }
  0x4f   : > { %v1440_v53 = vsel %vm1425_vm2, %v1437_v6, %v10595_v2  ;;  %v1447_v13 = vrot.slane %v6514_v47, 2  ;;  %v1453_v41 = vsel %vm1425_vm2, %v1451_v39, %v1452_v45  ;;  %v1449_v60 = vrot.slane %v6522_v51, 2 }
  0x50   : > { %10594 = vst [vmem:[#allocation36_spill] sm:$0xff] %v6787_v24  ;;  %v1461_v62 = vrot.slane %v6573_v33, 2  ;;  %v1462_v49 = vrot.slane %v6581_v43, 2  ;;  %v1455_v22 = vsel %vm1425_vm2, %v1452_v45, %v1454_v16  ;;  %v1464_v6 = vrot.slane %v6586_v48, 2 }
  0x51   : > { %5034 = vrot.lane.b32.xlu1 %v6787_v24, %s6366_s21  ;;  %v6807_v12 = vpack.i.bf16 %v1440_v53, %v1438_v29  ;;  %v6809_v19 = vpack.i.bf16 %v1455_v22, %v1453_v41  ;;  %v1448_v44 = vsel %vm1425_vm2, %v1446_v59, %v1447_v13  ;;  %v1450_v51 = vsel %vm1425_vm2, %v1447_v13, %v1449_v60 }
  0x52   : > { %v1463_v39 = vsel %vm1425_vm2, %v1461_v62, %v1462_v49  ;;  %5019 = vrot.lane.b32.xlu0 %v5018_v56, %s6366_s21  ;;  %v1465_v2 = vsel %vm1425_vm2, %v1462_v49, %v1464_v6  ;;  %v1456_v24 = vrot.slane %v6558_v17, 2  ;;  %v1471_v45 = vrot.slane %v6623_v34, 2 }
  0x53   : > { %v1457_v48 = vrot.slane %v6553_v14, 2  ;;  %v1459_v29 = vrot.slane %v6561_v18, 2  ;;  %v1472_v53 = vrot.slane %v6620_v32, 2  ;;  %v1474_v16 = vrot.slane %v6626_v35, 2 }
  0x54   : > { %v6824_v56 = vpack.i.bf16 %v1465_v2, %v1463_v39  ;;  %v1481_v41 = vrot.slane %v6653_v10, 2  ;;  %v6831_v60 = vpack.i.bf16 %v1450_v51, %v1448_v44  ;;  %v1466_v18 = vrot.slane %v6601_v0, 2 }
  0x55   : > { %5044 = vrot.lane.b32.xlu1 %v6809_v19, %s6366_s21  ;;  %v1473_v59 = vsel %vm1425_vm2, %v1471_v45, %v1472_v53  ;;  %v1475_v13 = vsel %vm1425_vm2, %v1472_v53, %v1474_v16  ;;  %v1467_v35 = vrot.slane %v6598_v63, 2  ;;  %v1482_v62 = vrot.slane %v6650_v9, 2 }
  0x56   : > { %5029 = vrot.lane.b32.xlu0 %v6807_v12, %s6366_s21  ;;  %v1458_v49 = vsel %vm1425_vm2, %v1456_v24, %v1457_v48  ;;  %v1460_v22 = vsel %vm1425_vm2, %v1457_v48, %v1459_v29  ;;  %v1469_v6 = vrot.slane %v6604_v1, 2  ;;  %v1484_v39 = vrot.slane %v6659_v15, 2 }
  0x57   : > { %v6842_v2 = vpack.i.bf16 %v1475_v13, %v1473_v59  ;;  %v1491_v44 = vrot.slane %v6692_v57, 2  ;;  %v1492_v51 = vrot.slane %v6695_v54, 2  ;;  %v1483_v45 = vsel %vm1425_vm2, %v1481_v41, %v1482_v62 }
  0x58   : > { %v1485_v53 = vsel %vm1425_vm2, %v1482_v62, %v1484_v39  ;;  %v1494_v24 = vrot.slane %v6698_v61, 2  ;;  %v6851_v1 = vpack.i.bf16 %v1460_v22, %v1458_v49  ;;  %v1468_v15 = vsel %vm1425_vm2, %v1466_v18, %v1467_v35 }
  0x59   : > { %5054 = vrot.lane.b32.xlu1 %v6824_v56, %s6366_s21  ;;  %10596 = vst [vmem:[#allocation37_spill] sm:$0xff] %v6842_v2  ;;  %v1470_v48 = vsel %vm1425_vm2, %v1467_v35, %v1469_v6  ;;  %v1476_v29 = vrot.slane %v6668_v52, 2  ;;  %v1477_v16 = vrot.slane %v6674_v55, 2  ;;  %v1479_v59 = vrot.slane %v6677_v5, 2 }
  0x5a   : > { %5039 = vrot.lane.b32.xlu0 %v6831_v60, %s6366_s21  ;;  %10597 = vst [vmem:[#allocation38_spill] sm:$0xff] %v6851_v1  ;;  %v6860_v61 = vpack.i.bf16 %v1485_v53, %v1483_v45  ;;  %v1493_v13 = vsel %vm1425_vm2, %v1491_v44, %v1492_v51  ;;  %v1495_v41 = vsel %vm1425_vm2, %v1492_v51, %v1494_v24  ;;  %v1501_v18 = vrot.slane %v6720_v4, 2 }
  0x5b   : > { %v1502_v35 = vrot.slane %v6727_v40, 2  ;;  %v1504_v62 = vrot.slane %v6730_v30, 2  ;;  %v6869_v5 = vpack.i.bf16 %v1470_v48, %v1468_v15  ;;  %v1486_v49 = vrot.slane %v6709_v25, 2  ;;  %v4817_v30 = vld [vmem:[%s6458_s16 + $0x78] sm:$0xff]  }
  0x5c   : > { %10598 = vst [vmem:[#allocation39_spill] sm:$0xff] %v6860_v61  ;;  %v1487_v22 = vrot.slane %v6706_v27, 2  ;;  %v1489_v6 = vrot.slane %v6712_v37, 2  ;;  %v1478_v39 = vsel %vm1425_vm2, %v1476_v29, %v1477_v16  ;;  %v1480_v44 = vsel %vm1425_vm2, %v1477_v16, %v1479_v59 }
  0x5d   : > { %5064 = vrot.lane.b32.xlu1 %v6842_v2, %s6366_s21  ;;  %10599 = vst [vmem:[#allocation40_spill] sm:$0xff] %v6869_v5  ;;  %v6878_v51 = vpack.i.bf16 %v1495_v41, %v1493_v13  ;;  %v1503_v45 = vsel %vm1425_vm2, %v1501_v18, %v1502_v35  ;;  %v1505_v53 = vsel %vm1425_vm2, %v1502_v35, %v1504_v62  ;;  %v1496_v48 = vrot.slane %v6762_v26, 2 }
  0x5e   : > { %5049 = vrot.lane.b32.xlu0 %v6851_v1, %s6366_s21  ;;  %v6885_v24 = vpack.i.bf16 %v1480_v44, %v1478_v39  ;;  %v1488_v37 = vsel %vm1425_vm2, %v1486_v49, %v1487_v22  ;;  %v1490_v15 = vsel %vm1425_vm2, %v1487_v22, %v1489_v6  ;;  %v1497_v29 = vrot.slane %v6759_v58, 2 }
  0x5f   : > { %10600 = vst [vmem:[#allocation41_spill] sm:$0xff] %v6878_v51  ;;  %v1499_v16 = vrot.slane %v6765_v42, 2  ;;  %v4719_v59 = vunpack.c.l.bf16 %v4817_v30  ;;  %v4720_v13 = vunpack.c.h.bf16 %v4817_v30  ;;  %v6894_v41 = vpack.i.bf16 %v1505_v53, %v1503_v45 }
  0x60   : > { %10601 = vst [vmem:[#allocation42_spill] sm:$0xff] %v6885_v24  ;;  %v6898_v62 = vpack.i.bf16 %v1490_v15, %v1488_v37  ;;  %v1498_v49 = vsel %vm1425_vm2, %v1496_v48, %v1497_v29  ;;  %v6904_v42 = vpack.i.bf16 %v6465_v20, %v6468_v21  ;;  %v10617_v21 = vld [vmem:[#allocation19_spill] sm:$0xff] }
  0x61   : > { %5074 = vrot.lane.b32.xlu1 %v6860_v61, %s6366_s21  ;;  %10602 = vst [vmem:[#allocation43_spill] sm:$0xff] %v6894_v41  ;;  %v868_v18 = vrot.slane %v4719_v59, 7  ;;  %v869_v35 = vrot.slane %v4720_v13, 7  ;;  %v1500_v22 = vsel %vm1425_vm2, %v1497_v29, %v1499_v16  ;;  %v6921_v29 = vpack.i.bf16 %v6514_v47, %v6519_v50 }
  0x62   : > { %5059 = vrot.lane.b32.xlu0 %v6869_v5, %s6366_s21  ;;  %10603 = vst [vmem:[#allocation44_spill] sm:$0xff] %v6898_v62  ;;  %v6913_v37 = vpack.i.bf16 %v1500_v22, %v1498_v49  ;;  %v5098_v59 = vpack.i.bf16 %v6474_v23, %v6481_v28  ;;  %v6933_v49 = vpack.i.bf16 %v6553_v14, %v6558_v17  ;;  %v10615_v28 = vld [vmem:[#allocation14_spill] sm:$0xff]  ;;  %v10616_v23 = vld [vmem:[#allocation32_spill] sm:$0xff] }
  0x63   : > { %v870_v6 = vsel %vm819_vm0, %v868_v18, %v869_v35  ;;  %v942_v39 = vsel %vm819_vm0, 0.0, %v868_v18  ;;  %v960_v44 = vsel %vm819_vm0, %v869_v35, 0.0 }
  0x64   : > { %v1700_v30 = vrot.slane %v942_v39, 1  ;;  %v1701_v45 = vrot.slane %v870_v6, 1  ;;  %v1703_v53 = vrot.slane %v960_v44, 1  ;;  %10604 = vst [vmem:[#allocation45_spill] sm:$0xff] %v6913_v37  ;;  %v1801_v13 = vrot.slane %v942_v39, 2 }
  0x65   : > { %5084 = vrot.lane.b32.xlu1 %v6878_v51, %s6366_s21  ;;  %v1802_v18 = vrot.slane %v870_v6, 2  ;;  %v1804_v35 = vrot.slane %v960_v44, 2  ;;  %v6948_v44 = vpack.i.bf16 %v6598_v63, %v6601_v0  ;;  %v10613_v63 = vld [vmem:[#allocation10_spill] sm:$0xff] }
  0x66   : > { %5069 = vrot.lane.b32.xlu0 %v6885_v24, %s6366_s21  ;;  %v1702_v15 = vsel %vm1248_vm1, %v1700_v30, %v1701_v45  ;;  %v1704_v48 = vsel %vm1248_vm1, %v1701_v45, %v1703_v53  ;;  %v6940_v45 = vpack.i.bf16 %v6488_v31, %v6498_v38  ;;  %v10614_v38 = vld [vmem:[#allocation26_spill] sm:$0xff] }
  0x67   : > { %v6923_v16 = vpack.i.bf16 %v1704_v48, %v1702_v15  ;;  %v1803_v22 = vsel %vm1425_vm2, %v1801_v13, %v1802_v18  ;;  %v1805_v30 = vsel %vm1425_vm2, %v1802_v18, %v1804_v35  ;;  %v6950_v15 = vpack.i.bf16 %v870_v6, %v942_v39 }
  0x68   : > { %v6942_v53 = vpack.i.bf16 %v1805_v30, %v1803_v22  ;;  %v6956_v48 = vpack.i.bf16 %v6546_v11, %v6541_v7  ;;  %v6968_v6 = vpack.i.bf16 %v6581_v43, %v6573_v33  ;;  %v6974_v39 = vpack.i.bf16 %v6706_v27, %v6709_v25 }
  0x69   : > { %5094 = vrot.lane.b32.xlu1 %v6894_v41, %s6366_s21  ;;  %v6980_v13 = vpack.i.bf16 %v6620_v32, %v6623_v34  ;;  %v6986_v18 = vpack.i.bf16 %v6759_v58, %v6762_v26  ;;  %v6992_v35 = vpack.i.bf16 %v6650_v9, %v6653_v10  ;;  %v7000_v22 = vpack.i.bf16 %v6695_v54, %v6692_v57  ;;  %v10608_v10 = vld [vmem:[#allocation11_spill] sm:$0xff]  ;;  %v10609_v9 = vld [vmem:[#allocation9_spill] sm:$0xff]  ;;  %v10620_v26 = vld [vmem:[#allocation30_spill] sm:$0xff] }
  0x6a   : > { %5079 = vrot.lane.b32.xlu0 %v6898_v62, %s6366_s21  ;;  %10605 = vst [vmem:[#allocation46_spill] sm:$0xff] %v6942_v53  ;;  %v7008_v30 = vpack.i.bf16 %v6727_v40, %v6720_v4  ;;  %v10611_v32 = vld [vmem:[#allocation15_spill] sm:$0xff]  ;;  %v10622_v4 = vld [vmem:[#allocation33_spill] sm:$0xff] }
  0x6d   : > { %5104 = vrot.lane.b32.xlu1 %v6904_v42, %s6367_s22 }
  0x6e   : > { %5089 = vrot.lane.b32.xlu0 %v6913_v37, %s6366_s21  ;;  %s7205_s21 = scalar_lea.vmem %s10252_s3, %s6452_s13  ;;  %s6377_s13 = smov 26  }
  0x71   : > { %5114 = vrot.lane.b32.xlu1 %v6921_v29, %s6367_s22 }
  0x72   : > { %5099 = vrot.lane.b32.xlu0 %v5098_v59, %s6367_s22  ;;  %v6962_v59 = vpack.i.bf16 %v6674_v55, %v6668_v52  ;;  %v10606_v52 = vld [vmem:[#allocation8_spill] sm:$0xff] }
  0x75   : > { %5124 = vrot.lane.b32.xlu1 %v6933_v49, %s6367_s22 }
  0x76   : > { %5109 = vrot.lane.b32.xlu0 %v6940_v45, %s6367_s22 }
  0x79   : > { %5134 = vrot.lane.b32.xlu1 %v6948_v44, %s6367_s22 }
  0x7a   : > { %5119 = vrot.lane.b32.xlu0 %v6956_v48, %s6367_s22 }
  0x7d   : > { %5144 = vrot.lane.b32.xlu1 %v6962_v59, %s6367_s22 }
  0x7e   : > { %5129 = vrot.lane.b32.xlu0 %v6968_v6, %s6367_s22 }
  0x81   : > { %5154 = vrot.lane.b32.xlu1 %v6974_v39, %s6367_s22 }
  0x82   : > { %5139 = vrot.lane.b32.xlu0 %v6980_v13, %s6367_s22 }
  0x85   : > { %5164 = vrot.lane.b32.xlu1 %v6986_v18, %s6367_s22 }
  0x86   : > { %5149 = vrot.lane.b32.xlu0 %v6992_v35, %s6367_s22 }
  0x89   : > { %5174 = vrot.lane.b32.xlu1 %v6950_v15, %s6367_s22 }
  0x8a   : > { %5159 = vrot.lane.b32.xlu0 %v7000_v22, %s6367_s22 }
  0x8d   : > { %5184 = vrot.lane.b32.xlu1 %v6494_v36, %s6368_s23 }
  0x8e   : > { %5169 = vrot.lane.b32.xlu0 %v7008_v30, %s6367_s22  ;;  %s6372_s22 = smov 16  }
  0x90   : > { %v7015_v55 = vpop.permute.xlu1 %4944 }
  0x91   : > { %5194 = vrot.lane.b32.xlu1 %v6538_v3, %s6368_s23  ;;  %10607 = vst [vmem:[#allocation8_spill] sm:$0xff] %v7015_v55 }
  0x92   : > { %5179 = vrot.lane.b32.xlu0 %v10606_v52, %s6368_s23  ;;  %v7019_v34 = vpop.permute.xlu0 %4939 }
  0x93   : > { %10610 = vst [vmem:[#allocation11_spill] sm:$0xff] %v7019_v34 }
  0x94   : > { %v7022_v0 = vpop.permute.xlu1 %4949 }
  0x95   : > { %5204 = vrot.lane.b32.xlu1 %v10608_v10, %s6368_s23  ;;  %10612 = vst [vmem:[#allocation9_spill] sm:$0xff] %v7022_v0  ;;  %v10618_v0 = vld [vmem:[#allocation25_spill] sm:$0xff] }
  0x96   : > { %5189 = vrot.lane.b32.xlu0 %v10609_v9, %s6368_s23  ;;  %v7026_v31 = vpop.permute.xlu0 %4954 }
  0x99   : > { %5214 = vrot.lane.b32.xlu1 %v10611_v32, %s6368_s23 }
  0x9a   : > { %5199 = vrot.lane.b32.xlu0 %v10613_v63, %s6368_s23 }
  0x9c   : > { %v7029_v52 = vpop.permute.xlu1 %4959 }
  0x9d   : > { %5224 = vrot.lane.b32.xlu1 %v10614_v38, %s6368_s23 }
  0x9e   : > { %5209 = vrot.lane.b32.xlu0 %v10615_v28, %s6368_s23  ;;  %v7033_v20 = vpop.permute.xlu0 %4964 }
  0xa1   : > { %5234 = vrot.lane.b32.xlu1 %v10616_v23, %s6368_s23  ;;  %v7036_v34 = vpop.permute.xlu1 %4969 }
  0xa2   : > { %5219 = vrot.lane.b32.xlu0 %v10617_v21, %s6368_s23 }
  0xa5   : > { %5244 = vrot.lane.b32.xlu1 %v6780_v46, %s6368_s23  ;;  %v7040_v55 = vpop.permute.xlu0 %4974 }
  0xa6   : > { %5229 = vrot.lane.b32.xlu0 %v10618_v0, %s6368_s23  ;;  %10619 = vst [vmem:[#allocation15_spill] sm:$0xff] %v7040_v55 }
  0xa8   : > { %v7043_v58 = vpop.permute.xlu1 %4979 }
  0xa9   : > { %5254 = vrot.lane.b32.xlu1 %v6923_v16, %s6368_s23  ;;  %10621 = vst [vmem:[#allocation10_spill] sm:$0xff] %v7043_v58  ;;  %v10626_v58 = vld [vmem:[#allocation36_spill] sm:$0xff] }
  0xaa   : > { %5239 = vrot.lane.b32.xlu0 %v10620_v26, %s6368_s23 }
  0xac   : > { %v7048_v40 = vpop.permute.xlu0 %4984 }
  0xad   : > { %5264 = vrot.lane.b32.xlu1 %v6807_v12, %s6369_s24  ;;  %10623 = vst [vmem:[#allocation26_spill] sm:$0xff] %v7048_v40 }
  0xae   : > { %5249 = vrot.lane.b32.xlu0 %v10622_v4, %s6368_s23  ;;  %v7052_v25 = vpop.permute.xlu1 %4994  ;;  %s6373_s23 = smov 18  }
  0xaf   : > { %10624 = vst [vmem:[#allocation14_spill] sm:$0xff] %v7052_v25 }
  0xb1   : > { %5274 = vrot.lane.b32.xlu1 %v6831_v60, %s6369_s24 }
  0xb2   : > { %5259 = vrot.lane.b32.xlu0 %v6767_v8, %s6369_s24  ;;  %v7056_v55 = vpop.permute.xlu0 %4989 }
  0xb3   : > { %10625 = vst [vmem:[#allocation32_spill] sm:$0xff] %v7056_v55 }
  0xb5   : > { %5284 = vrot.lane.b32.xlu1 %v6851_v1, %s6369_s24 }
  0xb6   : > { %5269 = vrot.lane.b32.xlu0 %v10626_v58, %s6369_s24  ;;  %v7062_v27 = vpop.permute.xlu1 %5004 }
  0xb8   : > { %v7068_v25 = vpop.permute.xlu0 %4999 }
  0xb9   : > { %5294 = vrot.lane.b32.xlu1 %v6869_v5, %s6369_s24 }
  0xba   : > { %5279 = vrot.lane.b32.xlu0 %v6809_v19, %s6369_s24 }
  0xbb   : > { %v7070_v40 = vpop.permute.xlu1 %5014 }
  0xbd   : > { %5304 = vrot.lane.b32.xlu1 %v6885_v24, %s6369_s24 }
  0xbe   : > { %5289 = vrot.lane.b32.xlu0 %v6824_v56, %s6369_s24 }
  0xbf   : > { %v7076_v8 = vpop.permute.xlu1 %5024 }
  0xc0   : > { %10627 = vst [vmem:[#allocation19_spill] sm:$0xff] %v7076_v8  ;;  %v7078_v55 = vpop.permute.xlu0 %5009 }
  0xc1   : > { %10628 = vst [vmem:[#allocation25_spill] sm:$0xff] %v7078_v55  ;;  %5314 = vrot.lane.b32.xlu1 %v6898_v62, %s6369_s24  ;;  %v4966_v55 = vunpack.i.l.bf16 %v7033_v20 }
  0xc2   : > { %5299 = vrot.lane.b32.xlu0 %v6842_v2, %s6369_s24 }
  0xc3   : > { %v7084_v5 = vpop.permute.xlu1 %5034 }
  0xc4   : > { %10629 = vst [vmem:[#allocation30_spill] sm:$0xff] %v7084_v5  ;;  %v7086_v1 = vpop.permute.xlu0 %5019 }
  0xc5   : > { %10630 = vst [vmem:[#allocation33_spill] sm:$0xff] %v7086_v1  ;;  %5324 = vrot.lane.b32.xlu1 %v6913_v37, %s6369_s24 }
  0xc6   : > { %5309 = vrot.lane.b32.xlu0 %v6860_v61, %s6369_s24 }
  0xc7   : > { %v7092_v8 = vpop.permute.xlu1 %5044 }
  0xc8   : > { %v7094_v24 = vpop.permute.xlu0 %5029 }
  0xc9   : > { %10631 = vst [vmem:[#allocation36_spill] sm:$0xff] %v7094_v24  ;;  %5334 = vrot.lane.b32.xlu1 %v6942_v53, %s6369_s24  ;;  %v4726_v53 = vld [vmem:[%s631_s29] sm:$0xff]  }
  0xca   : > { %5319 = vrot.lane.b32.xlu0 %v6878_v51, %s6369_s24 }
  0xcb   : > { %v7100_v62 = vpop.permute.xlu1 %5054 }
  0xcc   : > { %v7102_v5 = vpop.permute.xlu0 %5039 }
  0xcd   : > { %5344 = vrot.lane.b32.xlu1 %v6940_v45, %s6370_s25 }
  0xce   : > { %5329 = vrot.lane.b32.xlu0 %v6894_v41, %s6369_s24  ;;  %v4728_v41 = vunpack.c.h.bf16 %v4726_v53  ;;  %s6374_s24 = smov 20  }
  0xcf   : > { %v7109_v1 = vpop.permute.xlu1 %5064 }
  0xd0   : > { %10632 = vst [vmem:[#allocation47_spill] sm:$0xff] %v7109_v1  ;;  %v7116_v24 = vpop.permute.xlu0 %5049  ;;  %v4727_v1 = vunpack.c.l.bf16 %v4726_v53 }
  0xd1   : > { %5354 = vrot.lane.b32.xlu1 %v6956_v48, %s6370_s25  ;;  %v782_v48 = vmul.f32 0.0, %v4728_v41 }
  0xd2   : > { %5339 = vrot.lane.b32.xlu0 %v6904_v42, %s6370_s25  ;;  %v781_v42 = vmul.f32 0.0, %v4727_v1 }
  0xd3   : > { %v7122_v45 = vpop.permute.xlu1 %5074  ;;  %v872_v53 = vrot.slane %v782_v48, 7 }
  0xd4   : > { %10633 = vst [vmem:[#allocation48_spill] sm:$0xff] %v7122_v45  ;;  %v7124_v37 = vpop.permute.xlu0 %5059 }
  0xd5   : > { %10634 = vst [vmem:[#allocation49_spill] sm:$0xff] %v7124_v37  ;;  %5364 = vrot.lane.b32.xlu1 %v6968_v6, %s6370_s25 }
  0xd6   : > { %5349 = vrot.lane.b32.xlu0 %v6921_v29, %s6370_s25  ;;  %v871_v29 = vrot.slane %v781_v42, 7 }
  0xd7   : > { %v7130_v51 = vpop.permute.xlu1 %5084 }
  0xd8   : > { %v7132_v61 = vpop.permute.xlu0 %5069  ;;  %v7153_v1 = vsel %vm819_vm0, %v871_v29, %v872_v53  ;;  %v7156_v41 = vsel %vm819_vm0, 0.0, %v871_v29 }
  0xd9   : > { %10635 = vst [vmem:[#allocation50_spill] sm:$0xff] %v7132_v61  ;;  %5374 = vrot.lane.b32.xlu1 %v6980_v13, %s6370_s25  ;;  %v2001_v29 = vrot.slane %v7153_v1, 1 }
  0xda   : > { %5359 = vrot.lane.b32.xlu0 %v6933_v49, %s6370_s25 }
  0xdb   : > { %v7138_v37 = vpop.permute.xlu1 %5094 }
  0xdc   : > { %v7140_v6 = vpop.permute.xlu0 %5079 }
  0xdd   : > { %5384 = vrot.lane.b32.xlu1 %v6992_v35, %s6370_s25 }
  0xde   : > { %5369 = vrot.lane.b32.xlu0 %v6948_v44, %s6370_s25  ;;  %v5413_v44 = vpack.i.bf16 %v7153_v1, %v7156_v41 }
  0xdf   : > { %v7146_v61 = vpop.permute.xlu1 %5104 }
  0xe0   : > { %10636 = vst [vmem:[#allocation51_spill] sm:$0xff] %v7146_v61  ;;  %v7148_v13 = vpop.permute.xlu0 %5089 }
  0xe1   : > { %10637 = vst [vmem:[#allocation52_spill] sm:$0xff] %v7148_v13  ;;  %5394 = vrot.lane.b32.xlu1 %v7000_v22, %s6370_s25 }
  0xe2   : > { %5379 = vrot.lane.b32.xlu0 %v6962_v59, %s6370_s25  ;;  %v7178_v59 = vsel %vm819_vm0, %v872_v53, 0.0 }
  0xe3   : > { %v7160_v49 = vpop.permute.xlu1 %5114 }
  0xe4   : > { %10638 = vst [vmem:[#allocation53_spill] sm:$0xff] %v7160_v49  ;;  %v7162_v35 = vpop.permute.xlu0 %5099  ;;  %v4730_v49 = vld [vmem:[%s7205_s21] sm:$0xff]  }
  0xe5   : > { %10639 = vst [vmem:[#allocation54_spill] sm:$0xff] %v7162_v35  ;;  %5404 = vrot.lane.b32.xlu1 %v7008_v30, %s6370_s25  ;;  %v2102_v35 = vrot.slane %v7153_v1, 2  ;;  %v4956_v1 = vunpack.i.l.bf16 %v7026_v31 }
  0xe6   : > { %5389 = vrot.lane.b32.xlu0 %v6974_v39, %s6370_s25  ;;  %v2000_v39 = vrot.slane %v7156_v41, 1 }
  0xe7   : > { %v7170_v22 = vpop.permute.xlu1 %5124 }
  0xe8   : > { %v7172_v42 = vpop.permute.xlu0 %5109 }
  0xe9   : > { %10640 = vst [vmem:[#allocation55_spill] sm:$0xff] %v7172_v42  ;;  %5414 = vrot.lane.b32.xlu1 %v5413_v44, %s6370_s25  ;;  %v2003_v44 = vrot.slane %v7178_v59, 1  ;;  %v7208_v42 = vsel %vm1248_vm1, %v2000_v39, %v2001_v29  ;;  %v4967_v39 = vunpack.i.h.bf16 %v7033_v20  ;;  %v4971_v20 = vunpack.i.l.bf16 %v7036_v34 }
  0xea   : > { %5399 = vrot.lane.b32.xlu0 %v6986_v18, %s6370_s25 }
  0xeb   : > { %v7180_v30 = vpop.permute.xlu1 %5134 }
  0xec   : > { %v7182_v48 = vpop.permute.xlu0 %5119 }
  0xed   : > { %5424 = vrot.lane.b32.xlu1 %v10609_v9, %s6371_s14  ;;  %v4794_v9 = vld [vmem:[%s659_s18] sm:$0xff]  }
  0xee   : > { %5409 = vrot.lane.b32.xlu0 %v6950_v15, %s6370_s25  ;;  %v7211_v15 = vsel %vm1248_vm1, %v2001_v29, %v2003_v44  ;;  %v4795_v61 = vunpack.c.l.bf16 %v4794_v9  ;;  %v4796_v45 = vunpack.c.h.bf16 %v4794_v9  ;;  %v4731_v29 = vunpack.c.l.bf16 %v4730_v49  ;;  %s6375_s25 = smov 22  }
  0xef   : > { %v7195_v18 = vpop.permute.xlu1 %5144  ;;  %v4732_v44 = vunpack.c.h.bf16 %v4730_v49  ;;  %v4962_v9 = vunpack.i.h.bf16 %v7029_v52 }
  0xf0   : > { %10641 = vst [vmem:[#allocation56_spill] sm:$0xff] %v7195_v18  ;;  %v7197_v53 = vpop.permute.xlu0 %5129  ;;  %v2101_v18 = vrot.slane %v7156_v41, 2  ;;  %v4957_v41 = vunpack.i.h.bf16 %v7026_v31 }
  0xf1   : > { %5434 = vrot.lane.b32.xlu1 %v10613_v63, %s6371_s14  ;;  %v7257_v49 = vrot.slane %v4732_v44, 7 }
  0xf2   : > { %5419 = vrot.lane.b32.xlu0 %v6494_v36, %s6371_s14  ;;  %v7244_v31 = vsel %vm3079_vm3, %v6514_v47, %v4957_v41  ;;  %v3091_v47 = vsel %vm3079_vm3, %v6546_v11, %v4962_v9  ;;  %v4819_v11 = vld [vmem:[%s7205_s21 + $0x10] sm:$0xff]   ;;  %v4821_v9 = vld [vmem:[%s7205_s21 + $0x20] sm:$0xff]  }
  0xf3   : > { %v7217_v63 = vpop.permute.xlu1 %5154 }
  0xf4   : > { %10642 = vst [vmem:[#allocation57_spill] sm:$0xff] %v7217_v63  ;;  %v7220_v13 = vpop.permute.xlu0 %5139  ;;  %v7233_v63 = vmul.f32 0.0, %v4796_v45 }
  0xf5   : > { %10643 = vst [vmem:[#allocation58_spill] sm:$0xff] %v7220_v13  ;;  %5444 = vrot.lane.b32.xlu1 %v10615_v28, %s6371_s14  ;;  %v1034_v13 = vmul.f32 0.0, %v4795_v61  ;;  %v4961_v28 = vunpack.i.l.bf16 %v7029_v52  ;;  %v4972_v61 = vunpack.i.h.bf16 %v7036_v34  ;;  %v2104_v52 = vrot.slane %v7178_v59, 2 }
  0xf6   : > { %5429 = vrot.lane.b32.xlu0 %v6538_v3, %s6371_s14  ;;  %10644 = vst [vmem:[#allocation59_spill] sm:$0xff] %v7233_v63  ;;  %v7248_v3 = vsel %vm3079_vm3, %v6519_v50, %v4956_v1  ;;  %v10341_v41 = vrot.slane %v7233_v63, 7  ;;  %v7266_v34 = vsel %vm3079_vm3, %v6553_v14, %v4967_v39  ;;  %v4740_v39 = vunpack.c.h.bf16 %v4819_v11 }
  0xf7   : > { %v7230_v36 = vpop.permute.xlu1 %5164  ;;  %v1074_v50 = vrot.slane %v1034_v13, 7  ;;  %v3090_v59 = vsel %vm3079_vm3, %v6541_v7, %v4961_v28  ;;  %v7279_v13 = vsel %vm3079_vm3, %v6581_v43, %v4972_v61  ;;  %v7282_v7 = vsel %vm1425_vm2, %v2101_v18, %v2102_v35 }
  0xf8   : > { %v7238_v2 = vpop.permute.xlu0 %5149  ;;  %v7285_v14 = vsel %vm1425_vm2, %v2102_v35, %v2104_v52  ;;  %v4818_v35 = vld [vmem:[%s7205_s21 + $0x8] sm:$0xff]   ;;  %v7337_v61 = vrot.slane %v4740_v39, 7  ;;  %v5006_v39 = vunpack.i.l.bf16 %v7062_v27 }
  0xf9   : > { %10645 = vst [vmem:[#allocation60_spill] sm:$0xff] %v7238_v2  ;;  %5454 = vrot.lane.b32.xlu1 %v10617_v21, %s6371_s14  ;;  %v1077_v21 = vrot.slane %v4731_v29, 7  ;;  %v7309_v18 = vsel %vm819_vm0, 0.0, %v1074_v50  ;;  %v4735_v52 = vunpack.c.l.bf16 %v4818_v35  ;;  %v4748_v2 = vunpack.c.h.bf16 %v4821_v9 }
  0xfa   : > { %5439 = vrot.lane.b32.xlu0 %v10608_v10, %s6371_s14  ;;  %v7270_v10 = vsel %vm3079_vm3, %v6558_v17, %v4966_v55  ;;  %v7289_v17 = vsel %vm3079_vm3, %v6573_v33, %v4971_v20  ;;  %v7306_v33 = vsel %vm819_vm0, %v1074_v50, %v10341_v41  ;;  %v4736_v20 = vunpack.c.h.bf16 %v4818_v35 }
  0xfb   : > { %v7255_v45 = vpop.permute.xlu1 %5174  ;;  %v7297_v43 = vsel %vm819_vm0, %v1077_v21, %v7257_v49  ;;  %v7300_v55 = vsel %vm819_vm0, 0.0, %v1077_v21  ;;  %v7324_v21 = vld [vmem:[%s7205_s21 + $0x18] sm:$0xff]   ;;  %v5047_v50 = vunpack.i.h.bf16 %v7092_v8  ;;  %v4747_v35 = vunpack.c.l.bf16 %v4821_v9 }
  0xfc   : > { %v7272_v1 = vpop.permute.xlu0 %5159  ;;  %10647 = vst [vmem:[#allocation62_spill] sm:$0xff] %v7297_v43  ;;  %10648 = vst [vmem:[#allocation63_spill] sm:$0xff] %v7300_v55  ;;  %v7320_v28 = vpack.i.bf16 %v7297_v43, %v7300_v55  ;;  %v5127_v43 = vunpack.i.h.bf16 %v7170_v22  ;;  %v7349_v44 = vrot.slane %v4735_v52, 7  ;;  %v7351_v9 = vrot.slane %v4736_v20, 7 }
  0xfd   : > { %5464 = vrot.lane.b32.xlu1 %v10618_v0, %s6371_s14 }
  0xfe   : > { %5449 = vrot.lane.b32.xlu0 %v10611_v32, %s6371_s14  ;;  %v4739_v32 = vunpack.c.l.bf16 %v4819_v11  ;;  %10649 = vst [vmem:[#allocation64_spill] sm:$0xff] %v7320_v28  ;;  %v5046_v11 = vunpack.i.l.bf16 %v7092_v8  ;;  %v5126_v8 = vunpack.i.l.bf16 %v7170_v22 }
  0xff   : > { %v7293_v0 = vpop.permute.xlu1 %5184 }
 0x100   : > { %10646 = vst [vmem:[#allocation61_spill] sm:$0xff] %v7293_v0  ;;  %v7311_v29 = vpop.permute.xlu0 %5169  ;;  %v7335_v0 = vrot.slane %v4739_v32, 7  ;;  %v5007_v32 = vunpack.i.h.bf16 %v7062_v27  ;;  %v3123_v22 = vsel %vm3112_vm4, %v3090_v59, %v5046_v11  ;;  %v5041_v27 = vunpack.i.l.bf16 %v7102_v5 }
 0x101   : > { %5474 = vrot.lane.b32.xlu1 %v10620_v26, %s6371_s14  ;;  %v3156_v20 = vsel %vm3145_vm5, %v3123_v22, %v5126_v8  ;;  %v5137_v59 = vunpack.i.h.bf16 %v7180_v30  ;;  %v5122_v8 = vunpack.i.h.bf16 %v7182_v48 }
 0x102   : > { %5459 = vrot.lane.b32.xlu0 %v10614_v38, %s6371_s14  ;;  %v5042_v38 = vunpack.i.h.bf16 %v7102_v5 }
 0x103   : > { %v7330_v26 = vpop.permute.xlu1 %5194 }
 0x104   : > { %10650 = vst [vmem:[#allocation65_spill] sm:$0xff] %v7330_v26  ;;  %v7341_v55 = vpop.permute.xlu0 %5179  ;;  %v3124_v26 = vsel %vm3112_vm4, %v3091_v47, %v5047_v50  ;;  %v5136_v50 = vunpack.i.l.bf16 %v7180_v30 }
 0x105   : > { %10651 = vst [vmem:[#allocation66_spill] sm:$0xff] %v7341_v55  ;;  %5484 = vrot.lane.b32.xlu1 %v10622_v4, %s6371_s14  ;;  %v5057_v55 = vunpack.i.h.bf16 %v7100_v62  ;;  %v5056_v4 = vunpack.i.l.bf16 %v7100_v62  ;;  %v3157_v47 = vsel %vm3145_vm5, %v3124_v26, %v5127_v43  ;;  %v7379_v43 = vrot.slane %v4748_v2, 7 }
 0x106   : > { %5469 = vrot.lane.b32.xlu0 %v10616_v23, %s6371_s14  ;;  %v10653_v23 = vpack.i.bf16 %v7211_v15, %v7208_v42  ;;  %v5121_v42 = vunpack.i.l.bf16 %v7182_v48  ;;  %v3122_v2 = vsel %vm3112_vm4, %v7244_v31, %v5042_v38 }
 0x107   : > { %v5205_v41 = vpop.permute.xlu1 %5204  ;;  %v3128_v30 = vsel %vm3112_vm4, %v7279_v13, %v5057_v55  ;;  %v3127_v26 = vsel %vm3112_vm4, %v7289_v17, %v5056_v4  ;;  %v5052_v13 = vunpack.i.h.bf16 %v7116_v24  ;;  %v5051_v17 = vunpack.i.l.bf16 %v7116_v24 }
 0x108   : > { %v5207_v52 = vunpack.i.h.bf16 %v5205_v41  ;;  %v5206_v63 = vunpack.i.l.bf16 %v5205_v41  ;;  %v7365_v11 = vpop.permute.xlu0 %5189  ;;  %v7377_v41 = vrot.slane %v4747_v35, 7  ;;  %v3160_v55 = vsel %vm3145_vm5, %v3127_v26, %v5136_v50 }
 0x109   : > { %10652 = vst [vmem:[#allocation67_spill] sm:$0xff] %v7365_v11  ;;  %5494 = vrot.lane.b32.xlu1 %v10653_v23, %s6371_s14  ;;  %v3161_v48 = vsel %vm3145_vm5, %v3128_v30, %v5137_v59  ;;  %v3155_v24 = vsel %vm3145_vm5, %v3122_v2, %v5122_v8  ;;  %v5001_v59 = vunpack.i.l.bf16 %v7068_v25  ;;  %v3107_v30 = vsel %vm3079_vm3, %v6695_v54, %v5007_v32  ;;  %v10657_v2 = vld [vmem:[#allocation28_spill] sm:$0xff] }
 0x10a   : > { %v7372_v62 = vsel %vm3178_vm6, %v3156_v20, %v5206_v63  ;;  %v7375_v5 = vsel %vm3178_vm6, %v3157_v47, %v5207_v52  ;;  %5479 = vrot.lane.b32.xlu0 %v6780_v46, %s6371_s14  ;;  %v3121_v63 = vsel %vm3112_vm4, %v7248_v3, %v5041_v27  ;;  %v5132_v52 = vunpack.i.h.bf16 %v7197_v53 }
 0x10b   : > { %v5215_v15 = vpop.permute.xlu1 %5214  ;;  %v3154_v38 = vsel %vm3145_vm5, %v3121_v63, %v5121_v42  ;;  %v5131_v20 = vunpack.i.l.bf16 %v7197_v53  ;;  %v5002_v47 = vunpack.i.h.bf16 %v7068_v25  ;;  %v3106_v53 = vsel %vm3079_vm3, %v6692_v57, %v5006_v39  ;;  %v7442_v63 = vld [vmem:[%s7205_s21 + $0x30] sm:$0xff]  }
 0x10c   : > { %v5217_v35 = vunpack.i.h.bf16 %v5215_v15  ;;  %v5216_v22 = vunpack.i.l.bf16 %v5215_v15  ;;  %v5200_v4 = vpop.permute.xlu0 %5199  ;;  %v5016_v26 = vunpack.i.l.bf16 %v7070_v40  ;;  %v3125_v25 = vsel %vm3112_vm4, %v7270_v10, %v5051_v17  ;;  %v10656_v10 = vld [vmem:[#allocation27_spill] sm:$0xff] }
 0x10d   : > { %5504 = vrot.lane.b32.xlu1 %v10626_v58, %s6372_s22  ;;  %v5202_v46 = vunpack.i.h.bf16 %v5200_v4  ;;  %v5201_v3 = vunpack.i.l.bf16 %v5200_v4  ;;  %v3126_v42 = vsel %vm3112_vm4, %v7266_v34, %v5052_v13  ;;  %v5087_v32 = vunpack.i.h.bf16 %v7130_v51 }
 0x10e   : > { %v7400_v27 = vsel %vm3178_vm6, %v3160_v55, %v5216_v22  ;;  %v7403_v31 = vsel %vm3178_vm6, %v3161_v48, %v5217_v35  ;;  %5489 = vrot.lane.b32.xlu0 %v6923_v16, %s6371_s14  ;;  %v5017_v16 = vunpack.i.h.bf16 %v7070_v40  ;;  %v5086_v57 = vunpack.i.l.bf16 %v7130_v51  ;;  %s676_s14 = scalar_lea.vmem %s10254_s5, %s4650_s26  ;;  %s6378_s26 = smov 28  }
 0x10f   : > { %v7411_v58 = vpop.permute.xlu1 %5224  ;;  %v7416_v50 = vsel %vm3178_vm6, %v3154_v38, %v5201_v3  ;;  %v7419_v23 = vsel %vm3178_vm6, %v3155_v24, %v5202_v46  ;;  %v3158_v39 = vsel %vm3145_vm5, %v3125_v25, %v5131_v20  ;;  %v3159_v40 = vsel %vm3145_vm5, %v3126_v42, %v5132_v52  ;;  %v10661_v3 = vld [vmem:[#allocation31_spill] sm:$0xff]  ;;  %v10662_v24 = vld [vmem:[#allocation29_spill] sm:$0xff] }
 0x110   : > { %10654 = vst [vmem:[#allocation68_spill] sm:$0xff] %v7411_v58  ;;  %v5210_v8 = vpop.permute.xlu0 %5209  ;;  %v3105_v34 = vsel %vm3079_vm3, %v10656_v10, %v5002_v47  ;;  %v3104_v35 = vsel %vm3079_vm3, %v10657_v2, %v5001_v59  ;;  %v5167_v13 = vunpack.i.h.bf16 %v7230_v36  ;;  %v10659_v55 = vunpack.c.l.bf16 %v7324_v21 }
 0x111   : > { %5514 = vrot.lane.b32.xlu1 %v6809_v19, %s6372_s22  ;;  %v5212_v15 = vunpack.i.h.bf16 %v5210_v8  ;;  %v5211_v54 = vunpack.i.l.bf16 %v5210_v8  ;;  %v10660_v4 = vunpack.c.h.bf16 %v7324_v21  ;;  %v3111_v38 = vsel %vm3079_vm3, %v10661_v3, %v5017_v16 }
 0x112   : > { %5499 = vrot.lane.b32.xlu0 %v6807_v12, %s6372_s22  ;;  %v5166_v12 = vunpack.i.l.bf16 %v7230_v36  ;;  %v7462_v48 = vrot.slane %v10659_v55, 7  ;;  %v3110_v52 = vsel %vm3079_vm3, %v10662_v24, %v5016_v26  ;;  %v4755_v36 = vunpack.c.l.bf16 %v7442_v63 }
 0x113   : > { %v7439_v19 = vpop.permute.xlu1 %5234  ;;  %v7449_v22 = vsel %vm3178_vm6, %v3158_v39, %v5211_v54  ;;  %v7452_v51 = vsel %vm3178_vm6, %v3159_v40, %v5212_v15  ;;  %v7466_v46 = vrot.slane %v10660_v4, 7  ;;  %v4756_v20 = vunpack.c.h.bf16 %v7442_v63 }
 0x114   : > { %10655 = vst [vmem:[#allocation69_spill] sm:$0xff] %v7439_v19  ;;  %v7456_v17 = vpop.permute.xlu0 %5219  ;;  %v3139_v47 = vsel %vm3112_vm4, %v3106_v53, %v5086_v57  ;;  %v5097_v59 = vunpack.i.h.bf16 %v7138_v37  ;;  %v5096_v21 = vunpack.i.l.bf16 %v7138_v37  ;;  %v5082_v16 = vunpack.i.h.bf16 %v7140_v6  ;;  %v10664_v37 = vld [vmem:[#allocation37_spill] sm:$0xff] }
 0x115   : > { %10658 = vst [vmem:[#allocation27_spill] sm:$0xff] %v7456_v17  ;;  %5524 = vrot.lane.b32.xlu1 %v6824_v56, %s6372_s22  ;;  %v3140_v56 = vsel %vm3112_vm4, %v3107_v30, %v5087_v32  ;;  %v5081_v26 = vunpack.i.l.bf16 %v7140_v6  ;;  %v3172_v15 = vsel %vm3145_vm5, %v3139_v47, %v5166_v12  ;;  %v5177_v53 = vunpack.i.h.bf16 %v7255_v45 }
 0x116   : > { %5509 = vrot.lane.b32.xlu0 %v6831_v60, %s6372_s22  ;;  %v3173_v30 = vsel %vm3145_vm5, %v3140_v56, %v5167_v13  ;;  %v5176_v54 = vunpack.i.l.bf16 %v7255_v45  ;;  %v10665_v60 = vld [vmem:[#allocation25_spill] sm:$0xff]  ;;  %v3144_v63 = vsel %vm3112_vm4, %v3111_v38, %v5097_v59  ;;  %v3143_v45 = vsel %vm3112_vm4, %v3110_v52, %v5096_v21  ;;  %v10666_v13 = vld [vmem:[#allocation38_spill] sm:$0xff]  ;;  %v10667_v56 = vld [vmem:[#allocation52_spill] sm:$0xff] }
 0x117   : > { %v5245_v8 = vpop.permute.xlu1 %5244  ;;  %v5012_v57 = vunpack.i.h.bf16 %v10665_v60  ;;  %v5011_v39 = vunpack.i.l.bf16 %v10665_v60  ;;  %v5162_v10 = vunpack.i.h.bf16 %v7272_v1  ;;  %v5161_v2 = vunpack.i.l.bf16 %v7272_v1  ;;  %v10668_v1 = vld [vmem:[#allocation39_spill] sm:$0xff] }
 0x118   : > { %v5247_v25 = vunpack.i.h.bf16 %v5245_v8  ;;  %v5246_v42 = vunpack.i.l.bf16 %v5245_v8  ;;  %v7486_v32 = vpop.permute.xlu0 %5229  ;;  %v3137_v55 = vsel %vm3112_vm4, %v3104_v35, %v5081_v26  ;;  %v3138_v4 = vsel %vm3112_vm4, %v3105_v34, %v5082_v16  ;;  %v4822_v8 = vld [vmem:[%s7205_s21 + $0x28] sm:$0xff]  }
 0x119   : > { %10663 = vst [vmem:[#allocation28_spill] sm:$0xff] %v7486_v32  ;;  %5534 = vrot.lane.b32.xlu1 %v10664_v37, %s6372_s22  ;;  %v5092_v47 = vunpack.i.h.bf16 %v10667_v56  ;;  %v5091_v38 = vunpack.i.l.bf16 %v10667_v56  ;;  %v3176_v52 = vsel %vm3145_vm5, %v3143_v45, %v5176_v54  ;;  %v3177_v59 = vsel %vm3145_vm5, %v3144_v63, %v5177_v53  ;;  %v10669_v53 = vld [vmem:[#allocation40_spill] sm:$0xff]  ;;  %v4828_v32 = vld [vmem:[%s7205_s21 + $0x58] sm:$0xff]  }
 0x11a   : > { %v7493_v6 = vsel %vm3178_vm6, %v3172_v15, %v5246_v42  ;;  %v7496_v40 = vsel %vm3178_vm6, %v3173_v30, %v5247_v25  ;;  %5519 = vrot.lane.b32.xlu0 %v10666_v13, %s6372_s22  ;;  %v3170_v26 = vsel %vm3145_vm5, %v3137_v55, %v5161_v2  ;;  %v3171_v42 = vsel %vm3145_vm5, %v3138_v4, %v5162_v10  ;;  %v4825_v2 = vld [vmem:[%s7205_s21 + $0x40] sm:$0xff]   ;;  %v10673_v4 = vld [vmem:[#allocation41_spill] sm:$0xff] }
 0x11b   : > { %v5255_v12 = vpop.permute.xlu1 %5254  ;;  %v5172_v15 = vunpack.i.h.bf16 %v7311_v29  ;;  %v5171_v30 = vunpack.i.l.bf16 %v7311_v29  ;;  %v4751_v63 = vunpack.c.l.bf16 %v4822_v8  ;;  %v4752_v45 = vunpack.c.h.bf16 %v4822_v8  ;;  %v10671_v13 = vld [vmem:[#allocation34_spill] sm:$0xff] }
 0x11c   : > { %v5257_v3 = vunpack.i.h.bf16 %v5255_v12  ;;  %v5256_v24 = vunpack.i.l.bf16 %v5255_v12  ;;  %v5240_v21 = vpop.permute.xlu0 %5239  ;;  %v3109_v10 = vsel %vm3079_vm3, %v10671_v13, %v5012_v57  ;;  %v10672_v12 = vld [vmem:[#allocation35_spill] sm:$0xff]  ;;  %v7587_v13 = vsel %vm819_vm0, 0.0, %v7377_v41 }
 0x11d   : > { %5544 = vrot.lane.b32.xlu1 %v10668_v1, %s6372_s22  ;;  %v5242_v25 = vunpack.i.h.bf16 %v5240_v21  ;;  %v5241_v35 = vunpack.i.l.bf16 %v5240_v21  ;;  %v3108_v29 = vsel %vm3079_vm3, %v10672_v12, %v5011_v39  ;;  %v10674_v39 = vld [vmem:[#allocation42_spill] sm:$0xff]  ;;  %10684 = vst [vmem:[#allocation35_spill] sm:$0xff] %v7587_v13 }
 0x11e   : > { %v7514_v34 = vsel %vm3178_vm6, %v3176_v52, %v5256_v24  ;;  %v7517_v16 = vsel %vm3178_vm6, %v3177_v59, %v5257_v3  ;;  %5529 = vrot.lane.b32.xlu0 %v10669_v53, %s6372_s22  ;;  %v1095_v3 = vrot.slane %v4755_v36, 7  ;;  %v7540_v24 = vrot.slane %v4756_v20, 7 }
 0x11f   : > { %v7525_v54 = vpop.permute.xlu1 %5264  ;;  %v7528_v37 = vsel %vm3178_vm6, %v3170_v26, %v5241_v35  ;;  %v7531_v60 = vsel %vm3178_vm6, %v3171_v42, %v5242_v25  ;;  %v3141_v56 = vsel %vm3112_vm4, %v3108_v29, %v5091_v38  ;;  %v3142_v52 = vsel %vm3112_vm4, %v3109_v10, %v5092_v47  ;;  %v10679_v42 = vld [vmem:[#allocation43_spill] sm:$0xff] }
 0x120   : > { %10670 = vst [vmem:[#allocation31_spill] sm:$0xff] %v7525_v54  ;;  %v5250_v55 = vpop.permute.xlu0 %5249  ;;  %v3174_v1 = vsel %vm3145_vm5, %v3141_v56, %v5171_v30  ;;  %v3175_v57 = vsel %vm3145_vm5, %v3142_v52, %v5172_v15  ;;  %v4763_v25 = vunpack.c.l.bf16 %v4825_v2  ;;  %v4764_v35 = vunpack.c.h.bf16 %v4825_v2 }
 0x121   : > { %5554 = vrot.lane.b32.xlu1 %v10673_v4, %s6372_s22  ;;  %v5252_v59 = vunpack.i.h.bf16 %v5250_v55  ;;  %v5251_v21 = vunpack.i.l.bf16 %v5250_v55  ;;  %v7559_v47 = vsel %vm819_vm0, %v7335_v0, %v7337_v61  ;;  %v7563_v38 = vsel %vm819_vm0, 0.0, %v7335_v0 }
 0x122   : > { %5539 = vrot.lane.b32.xlu0 %v10674_v39, %s6372_s22  ;;  %10676 = vst [vmem:[#allocation37_spill] sm:$0xff] %v7559_v47  ;;  %10677 = vst [vmem:[#allocation25_spill] sm:$0xff] %v7563_v38  ;;  %v7572_v15 = vsel %vm819_vm0, %v7349_v44, %v7351_v9  ;;  %v7576_v30 = vsel %vm819_vm0, 0.0, %v7349_v44  ;;  %v1092_v53 = vrot.slane %v4751_v63, 7  ;;  %v7578_v2 = vrot.slane %v4752_v45, 7  ;;  %v10687_v63 = vld [vmem:[#allocation44_spill] sm:$0xff] }
 0x123   : > { %v7548_v8 = vpop.permute.xlu1 %5274  ;;  %v7551_v36 = vsel %vm3178_vm6, %v3174_v1, %v5251_v21  ;;  %v7554_v20 = vsel %vm3178_vm6, %v3175_v57, %v5252_v59  ;;  %10680 = vst [vmem:[#allocation52_spill] sm:$0xff] %v7572_v15  ;;  %10681 = vst [vmem:[#allocation39_spill] sm:$0xff] %v7576_v30  ;;  %v7583_v0 = vsel %vm819_vm0, %v7377_v41, %v7379_v43  ;;  %v7596_v44 = vsel %vm819_vm0, 0.0, %v7462_v48  ;;  %v4824_v59 = vld [vmem:[%s7205_s21 + $0x38] sm:$0xff]  }
 0x124   : > { %10675 = vst [vmem:[#allocation29_spill] sm:$0xff] %v7548_v8  ;;  %v7565_v26 = vpop.permute.xlu0 %5259  ;;  %10682 = vst [vmem:[#allocation40_spill] sm:$0xff] %v7578_v2  ;;  %v7592_v10 = vsel %vm819_vm0, %v7462_v48, %v7466_v46  ;;  %v7602_v12 = vsel %vm819_vm0, %v1095_v3, %v7540_v24  ;;  %v7605_v41 = vsel %vm819_vm0, 0.0, %v1095_v3  ;;  %v1101_v29 = vrot.slane %v4763_v25, 7  ;;  %v10702_v48 = vld [vmem:[#allocation45_spill] sm:$0xff] }
 0x125   : > { %10678 = vst [vmem:[#allocation38_spill] sm:$0xff] %v7565_v26  ;;  %5564 = vrot.lane.b32.xlu1 %v10679_v42, %s6372_s22  ;;  %10683 = vst [vmem:[#allocation34_spill] sm:$0xff] %v7583_v0  ;;  %v7607_v55 = vrot.slane %v4764_v35, 7  ;;  %v7612_v52 = vpack.i.bf16 %v7559_v47, %v7563_v38  ;;  %v10693_v3 = vpack.i.bf16 %v7285_v14, %v7282_v7  ;;  %v4827_v35 = vld [vmem:[%s7205_s21 + $0x50] sm:$0xff]  }
 0x126   : > { %10685 = vst [vmem:[#allocation41_spill] sm:$0xff] %v7592_v10  ;;  %10686 = vst [vmem:[#allocation42_spill] sm:$0xff] %v7596_v44  ;;  %5549 = vrot.lane.b32.xlu0 %v10687_v63, %s6372_s22  ;;  %v7623_v1 = vpack.i.bf16 %v7572_v15, %v7576_v30  ;;  %v7627_v57 = vpack.i.bf16 %v7583_v0, %v7587_v13  ;;  %v7631_v39 = vpack.i.bf16 %v7592_v10, %v7596_v44 }
 0x127   : > { %v5285_v45 = vpop.permute.xlu1 %5284  ;;  %10688 = vst [vmem:[#allocation43_spill] sm:$0xff] %v7602_v12  ;;  %10689 = vst [vmem:[#allocation44_spill] sm:$0xff] %v7605_v41  ;;  %v7635_v25 = vsel %vm819_vm0, %v1092_v53, %v7578_v2  ;;  %v7648_v42 = vpack.i.bf16 %v7602_v12, %v7605_v41  ;;  %v7651_v63 = vsel %vm819_vm0, 0.0, %v1092_v53  ;;  %v4771_v53 = vunpack.c.l.bf16 %v4827_v35 }
 0x128   : > { %10690 = vst [vmem:[#allocation70_spill] sm:$0xff] %v7607_v55  ;;  %v5287_v4 = vunpack.i.h.bf16 %v5285_v45  ;;  %v5286_v56 = vunpack.i.l.bf16 %v5285_v45  ;;  %10691 = vst [vmem:[#allocation71_spill] sm:$0xff] %v7612_v52  ;;  %v7615_v21 = vpop.permute.xlu0 %5269  ;;  %v4826_v45 = vld [vmem:[%s7205_s21 + $0x48] sm:$0xff]   ;;  %v4772_v54 = vunpack.c.h.bf16 %v4827_v35  ;;  %v10706_v35 = vld [vmem:[#allocation46_spill] sm:$0xff] }
 0x129   : > { %10692 = vst [vmem:[#allocation72_spill] sm:$0xff] %v7615_v21  ;;  %5574 = vrot.lane.b32.xlu1 %v10693_v3, %s6372_s22  ;;  %10694 = vst [vmem:[#allocation73_spill] sm:$0xff] %v7623_v1  ;;  %v4829_v3 = vld [vmem:[%s7205_s21 + $0x60] sm:$0xff]   ;;  %v4768_v19 = vunpack.c.h.bf16 %v4826_v45 }
 0x12a   : > { %10695 = vst [vmem:[#allocation74_spill] sm:$0xff] %v7627_v57  ;;  %10696 = vst [vmem:[#allocation75_spill] sm:$0xff] %v7631_v39  ;;  %v7640_v7 = vsel %vm3211_vm7, %v7372_v62, %v5286_v56  ;;  %v7644_v14 = vsel %vm3211_vm7, %v7375_v5, %v5287_v4  ;;  %5559 = vrot.lane.b32.xlu0 %v10702_v48, %s6372_s22  ;;  %v7659_v62 = vsel %vm819_vm0, %v1101_v29, %v7607_v55  ;;  %v4831_v55 = vld [vmem:[%s7205_s21 + $0x70] sm:$0xff]  }
 0x12b   : > { %10697 = vst [vmem:[#allocation76_spill] sm:$0xff] %v7635_v25  ;;  %10698 = vst [vmem:[#allocation77_spill] sm:$0xff] %v7640_v7  ;;  %v5295_v21 = vpop.permute.xlu1 %5294  ;;  %v7662_v5 = vsel %vm819_vm0, 0.0, %v1101_v29  ;;  %v4759_v4 = vunpack.c.l.bf16 %v4824_v59  ;;  %v4760_v56 = vunpack.c.h.bf16 %v4824_v59  ;;  %v4767_v48 = vunpack.c.l.bf16 %v4826_v45 }
 0x12c   : > { %10699 = vst [vmem:[#allocation78_spill] sm:$0xff] %v7644_v14  ;;  %10700 = vst [vmem:[#allocation79_spill] sm:$0xff] %v7648_v42  ;;  %v5297_v8 = vunpack.i.h.bf16 %v5295_v21  ;;  %v5296_v26 = vunpack.i.l.bf16 %v5295_v21  ;;  %v5280_v17 = vpop.permute.xlu0 %5279  ;;  %v4779_v58 = vunpack.c.l.bf16 %v4829_v3  ;;  %v4780_v11 = vunpack.c.h.bf16 %v4829_v3 }
 0x12d   : > { %10701 = vst [vmem:[#allocation80_spill] sm:$0xff] %v7651_v63  ;;  %10703 = vst [vmem:[#allocation45_spill] sm:$0xff] %v7659_v62  ;;  %5584 = vrot.lane.b32.xlu1 %v7320_v28, %s6373_s23  ;;  %v5282_v29 = vunpack.i.h.bf16 %v5280_v17  ;;  %v5281_v2 = vunpack.i.l.bf16 %v5280_v17  ;;  %v1098_v45 = vrot.slane %v4759_v4, 7  ;;  %v7680_v14 = vrot.slane %v4760_v56, 7 }
 0x12e   : > { %10704 = vst [vmem:[#allocation81_spill] sm:$0xff] %v7662_v5  ;;  %v7670_v59 = vsel %vm3211_vm7, %v7400_v27, %v5296_v26  ;;  %v7674_v21 = vsel %vm3211_vm7, %v7403_v31, %v5297_v8  ;;  %5569 = vrot.lane.b32.xlu0 %v10706_v35, %s6372_s22  ;;  %v4775_v3 = vunpack.c.l.bf16 %v4828_v32  ;;  %v4776_v7 = vunpack.c.h.bf16 %v4828_v32  ;;  %v4830_v26 = vld [vmem:[%s7205_s21 + $0x68] sm:$0xff]   ;;  %s6380_s22 = smov 32  }
 0x12f   : > { %10705 = vst [vmem:[#allocation82_spill] sm:$0xff] %v7674_v21  ;;  %v7678_v28 = vpop.permute.xlu1 %5304  ;;  %v7684_v17 = vsel %vm3211_vm7, %v7416_v50, %v5281_v2  ;;  %v7688_v27 = vsel %vm3211_vm7, %v7419_v23, %v5282_v29  ;;  %v4787_v31 = vunpack.c.l.bf16 %v4831_v55  ;;  %v4788_v8 = vunpack.c.h.bf16 %v4831_v55 }
 0x130   : > { %10707 = vst [vmem:[#allocation46_spill] sm:$0xff] %v7678_v28  ;;  %10708 = vst [vmem:[#allocation83_spill] sm:$0xff] %v7684_v17  ;;  %v5290_v21 = vpop.permute.xlu0 %5289  ;;  %v1107_v4 = vrot.slane %v4771_v53, 7  ;;  %v7693_v56 = vrot.slane %v4772_v54, 7  ;;  %v1104_v35 = vrot.slane %v4767_v48, 7  ;;  %v7695_v32 = vrot.slane %v4768_v19, 7 }
 0x131   : > { %5594 = vrot.lane.b32.xlu1 %v7612_v52, %s6373_s23  ;;  %v5292_v28 = vunpack.i.h.bf16 %v5290_v21  ;;  %v5291_v50 = vunpack.i.l.bf16 %v5290_v21  ;;  %v1113_v2 = vrot.slane %v4779_v58, 7  ;;  %v7697_v17 = vrot.slane %v4780_v11, 7 }
 0x132   : > { %v10710_v23 = vpack.i.bf16 %v7306_v33, %v7309_v18  ;;  %v1110_v29 = vrot.slane %v4775_v3, 7  ;;  %v7705_v52 = vrot.slane %v4776_v7, 7  ;;  %v4783_v54 = vunpack.c.l.bf16 %v4830_v26 }
 0x133   : > { %10709 = vst [vmem:[#allocation84_spill] sm:$0xff] %v7697_v17  ;;  %v7703_v55 = vpop.permute.xlu1 %5314  ;;  %v4784_v53 = vunpack.c.h.bf16 %v4830_v26  ;;  %v7709_v19 = vsel %vm3211_vm7, %v7449_v22, %v5291_v50  ;;  %v7713_v11 = vsel %vm3211_vm7, %v7452_v51, %v5292_v28  ;;  %v1119_v58 = vrot.slane %v4787_v31, 7 }
 0x134   : > { %5579 = vrot.lane.b32.xlu0 %v10710_v23, %s6373_s23  ;;  %10711 = vst [vmem:[#allocation85_spill] sm:$0xff] %v7703_v55  ;;  %10712 = vst [vmem:[#allocation86_spill] sm:$0xff] %v7705_v52  ;;  %v7715_v48 = vrot.slane %v4788_v8, 7  ;;  %v7717_v21 = vpop.permute.xlu0 %5299  ;;  %v7723_v7 = vsel %vm819_vm0, %v1098_v45, %v7680_v14  ;;  %v7726_v3 = vsel %vm819_vm0, 0.0, %v1098_v45  ;;  %v7730_v22 = vsel %vm819_vm0, %v1107_v4, %v7693_v56 }
 0x135   : > { %10714 = vst [vmem:[#allocation88_spill] sm:$0xff] %v7717_v21  ;;  %5604 = vrot.lane.b32.xlu1 %v7627_v57, %s6373_s23  ;;  %10715 = vst [vmem:[#allocation89_spill] sm:$0xff] %v7723_v7  ;;  %v7733_v28 = vsel %vm819_vm0, 0.0, %v1107_v4  ;;  %v7737_v51 = vsel %vm819_vm0, %v1104_v35, %v7695_v32  ;;  %v7740_v31 = vsel %vm819_vm0, 0.0, %v1104_v35  ;;  %v7744_v8 = vsel %vm819_vm0, %v1113_v2, %v7697_v17 }
 0x136   : > { %10713 = vst [vmem:[#allocation87_spill] sm:$0xff] %v7715_v48  ;;  %10716 = vst [vmem:[#allocation90_spill] sm:$0xff] %v7726_v3  ;;  %v7747_v45 = vsel %vm819_vm0, 0.0, %v1113_v2  ;;  %v7753_v4 = vsel %vm819_vm0, %v1110_v29, %v7705_v52  ;;  %v7756_v50 = vsel %vm819_vm0, 0.0, %v1110_v29  ;;  %v1116_v35 = vrot.slane %v4783_v54, 7 }
 0x137   : > { %10717 = vst [vmem:[#allocation91_spill] sm:$0xff] %v7730_v22  ;;  %10718 = vst [vmem:[#allocation92_spill] sm:$0xff] %v7733_v28  ;;  %v5325_v26 = vpop.permute.xlu1 %5324  ;;  %v7758_v23 = vrot.slane %v4784_v53, 7  ;;  %v7762_v2 = vsel %vm819_vm0, %v1119_v58, %v7715_v48  ;;  %v7765_v57 = vsel %vm819_vm0, 0.0, %v1119_v58  ;;  %v7773_v29 = vpack.i.bf16 %v7635_v25, %v7651_v63 }
 0x138   : > { %10719 = vst [vmem:[#allocation93_spill] sm:$0xff] %v7737_v51  ;;  %10720 = vst [vmem:[#allocation94_spill] sm:$0xff] %v7740_v31  ;;  %5589 = vrot.lane.b32.xlu0 %v7623_v1, %s6373_s23  ;;  %v5327_v21 = vunpack.i.h.bf16 %v5325_v26  ;;  %v5326_v55 = vunpack.i.l.bf16 %v5325_v26  ;;  %v7767_v1 = vpop.permute.xlu0 %5309  ;;  %v7777_v54 = vpack.i.bf16 %v7659_v62, %v7662_v5  ;;  %v7781_v53 = vpack.i.bf16 %v7723_v7, %v7726_v3 }
 0x139   : > { %10721 = vst [vmem:[#allocation95_spill] sm:$0xff] %v7744_v8  ;;  %10722 = vst [vmem:[#allocation96_spill] sm:$0xff] %v7747_v45  ;;  %5614 = vrot.lane.b32.xlu1 %v7648_v42, %s6373_s23  ;;  %v7785_v58 = vpack.i.bf16 %v7730_v22, %v7733_v28  ;;  %v7797_v42 = vpack.i.bf16 %v7737_v51, %v7740_v31  ;;  %v7801_v48 = vpack.i.bf16 %v7744_v8, %v7747_v45  ;;  %v10741_v8 = vld [vmem:[#allocation59_spill] sm:$0xff]  ;;  %v10745_v45 = vld [vmem:[#allocation62_spill] sm:$0xff] }
 0x13a   : > { %10723 = vst [vmem:[#allocation97_spill] sm:$0xff] %v7753_v4  ;;  %10724 = vst [vmem:[#allocation98_spill] sm:$0xff] %v7756_v50  ;;  %v7789_v26 = vsel %vm3211_vm7, %v7493_v6, %v5326_v55  ;;  %v7807_v6 = vpack.i.bf16 %v7753_v4, %v7756_v50  ;;  %v7815_v55 = vsel %vm819_vm0, %v1116_v35, %v7758_v23  ;;  %v10742_v4 = vrot.slane %v10741_v8, 7 }
 0x13b   : > { %10725 = vst [vmem:[#allocation99_spill] sm:$0xff] %v7758_v23  ;;  %10726 = vst [vmem:[#allocation100_spill] sm:$0xff] %v7762_v2  ;;  %v5335_v52 = vpop.permute.xlu1 %5334  ;;  %v10744_v23 = vld [vmem:[#allocation63_spill] sm:$0xff]  ;;  %v2336_v17 = vrot.slane %v10745_v45, 1 }
 0x13c   : > { %10727 = vst [vmem:[#allocation101_spill] sm:$0xff] %v7765_v57  ;;  %10728 = vst [vmem:[#allocation102_spill] sm:$0xff] %v7767_v1  ;;  %v7793_v1 = vsel %vm3211_vm7, %v7496_v40, %v5327_v21  ;;  %5599 = vrot.lane.b32.xlu0 %v7631_v39, %s6373_s23  ;;  %v7811_v40 = vpack.i.bf16 %v7762_v2, %v7765_v57  ;;  %v7819_v21 = vsel %vm819_vm0, %v7257_v49, 0.0  ;;  %v7822_v39 = vsel %vm819_vm0, 0.0, %v1116_v35  ;;  %v5320_v2 = vpop.permute.xlu0 %5319 }
 0x13d   : > { %10729 = vst [vmem:[#allocation103_spill] sm:$0xff] %v7773_v29  ;;  %10730 = vst [vmem:[#allocation104_spill] sm:$0xff] %v7777_v54  ;;  %v7827_v50 = vsel %vm819_vm0, %v10742_v4, 0.0  ;;  %5624 = vrot.lane.b32.xlu1 %v7777_v54, %s6373_s23  ;;  %v2335_v57 = vrot.slane %v10744_v23, 1  ;;  %v7835_v49 = vsel %vm819_vm0, %v7337_v61, 0.0  ;;  %v5322_v8 = vunpack.i.h.bf16 %v5320_v2 }
 0x13e   : > { %10731 = vst [vmem:[#allocation105_spill] sm:$0xff] %v7781_v53  ;;  %10732 = vst [vmem:[#allocation106_spill] sm:$0xff] %v7785_v58  ;;  %v5321_v35 = vunpack.i.l.bf16 %v5320_v2  ;;  %v2338_v61 = vrot.slane %v7819_v21, 1  ;;  %v2345_v23 = vrot.slane %v7563_v38, 1  ;;  %v7858_v2 = vsel %vm819_vm0, %v7379_v43, 0.0 }
 0x13f   : > { %10733 = vst [vmem:[#allocation107_spill] sm:$0xff] %v7789_v26  ;;  %10734 = vst [vmem:[#allocation108_spill] sm:$0xff] %v7793_v1  ;;  %v5337_v1 = vunpack.i.h.bf16 %v5335_v52  ;;  %v5336_v26 = vunpack.i.l.bf16 %v5335_v52  ;;  %v7839_v52 = vsel %vm819_vm0, %v7351_v9, 0.0  ;;  %v7851_v45 = vpop.permute.xlu1 %5344  ;;  %v2333_v9 = vrot.slane %v7827_v50, 1 }
 0x140   : > { %10735 = vst [vmem:[#allocation109_spill] sm:$0xff] %v7797_v42  ;;  %10736 = vst [vmem:[#allocation110_spill] sm:$0xff] %v7801_v48  ;;  %5609 = vrot.lane.b32.xlu0 %v7773_v29, %s6373_s23  ;;  %v2340_v43 = vrot.slane %v7576_v30, 1  ;;  %v2341_v29 = vrot.slane %v7572_v15, 1  ;;  %v2339_v30 = vsel %vm1248_vm1, %v2336_v17, %v2338_v61  ;;  %v10748_v15 = vrot.slane %v7306_v33, 1 }
 0x141   : > { %10737 = vst [vmem:[#allocation111_spill] sm:$0xff] %v7807_v6  ;;  %10738 = vst [vmem:[#allocation112_spill] sm:$0xff] %v7811_v40  ;;  %v7843_v4 = vsel %vm3211_vm7, %v7514_v34, %v5336_v26  ;;  %v7847_v54 = vsel %vm3211_vm7, %v7517_v16, %v5337_v1  ;;  %v7862_v34 = vsel %vm3211_vm7, %v7528_v37, %v5321_v35  ;;  %v2346_v1 = vrot.slane %v7559_v47, 1 }
 0x142   : > { %10739 = vst [vmem:[#allocation113_spill] sm:$0xff] %v7815_v55  ;;  %10740 = vst [vmem:[#allocation114_spill] sm:$0xff] %v7822_v39  ;;  %v7866_v16 = vsel %vm3211_vm7, %v7531_v60, %v5322_v8  ;;  %5634 = vrot.lane.b32.xlu1 %v7785_v58, %s6373_s23  ;;  %v2355_v35 = vrot.slane %v7587_v13, 1  ;;  %v2356_v8 = vrot.slane %v7583_v0, 1  ;;  %v2337_v58 = vsel %vm1248_vm1, %v2335_v57, %v2336_v17 }
 0x143   : > { %10743 = vst [vmem:[#allocation59_spill] sm:$0xff] %v7827_v50  ;;  %10746 = vst [vmem:[#allocation115_spill] sm:$0xff] %v7851_v45  ;;  %v5330_v45 = vpop.permute.xlu0 %5329  ;;  %v7880_v26 = vpop.permute.xlu1 %5354  ;;  %v10749_v37 = vrot.slane %v7309_v18, 1  ;;  %v7906_v17 = vsel %vm819_vm0, %v7466_v46, 0.0  ;;  %v10753_v46 = vrot.slane %v7839_v52, 1 }
 0x144   : > { %v5332_v50 = vunpack.i.h.bf16 %v5330_v45  ;;  %v5331_v60 = vunpack.i.l.bf16 %v5330_v45  ;;  %5619 = vrot.lane.b32.xlu0 %v7781_v53, %s6373_s23  ;;  %10747 = vst [vmem:[#allocation116_spill] sm:$0xff] %v7880_v26  ;;  %v10750_v45 = vmov %v10748_v15 }
 0x145   : > { %v7889_v13 = vsel %vm1248_vm1, %v10749_v37, %v10748_v15  ;;  %v7894_v47 = vsel %vm1248_vm1, %v10750_v45, %v2333_v9  ;;  %v7910_v15 = vsel %vm819_vm0, %v7540_v24, 0.0  ;;  %v10752_v9 = vrot.slane %v7835_v49, 1 }
 0x146   : > { %v7898_v53 = vsel %vm3211_vm7, %v7551_v36, %v5331_v60  ;;  %v7902_v57 = vsel %vm3211_vm7, %v7554_v20, %v5332_v50  ;;  %5644 = vrot.lane.b32.xlu1 %v7801_v48, %s6373_s23  ;;  %v2347_v36 = vsel %vm1248_vm1, %v2345_v23, %v2346_v1  ;;  %v2342_v50 = vsel %vm1248_vm1, %v2340_v43, %v2341_v29 }
 0x147   : > { %v7912_v61 = vpop.permute.xlu0 %5339  ;;  %v2349_v20 = vsel %vm1248_vm1, %v2346_v1, %v10752_v9  ;;  %v2344_v37 = vsel %vm1248_vm1, %v2341_v29, %v10753_v46  ;;  %v2357_v24 = vsel %vm1248_vm1, %v2355_v35, %v2356_v8  ;;  %v10754_v60 = vrot.slane %v7858_v2, 1  ;;  %v5365_v1 = vpop.permute.xlu1 %5364 }
 0x148   : > { %10751 = vst [vmem:[#allocation117_spill] sm:$0xff] %v7912_v61  ;;  %v2350_v61 = vrot.slane %v7596_v44, 1  ;;  %v2351_v23 = vrot.slane %v7592_v10, 1  ;;  %5629 = vrot.lane.b32.xlu0 %v7797_v42, %s6373_s23  ;;  %v2365_v9 = vrot.slane %v7605_v41, 1  ;;  %v2366_v29 = vrot.slane %v7602_v12, 1 }
 0x149   : > { %v2359_v45 = vsel %vm1248_vm1, %v2356_v8, %v10754_v60  ;;  %v5367_v46 = vunpack.i.h.bf16 %v5365_v1  ;;  %v5366_v26 = vunpack.i.l.bf16 %v5365_v1  ;;  %v7938_v8 = vpack.i.bf16 %v7815_v55, %v7822_v39  ;;  %v10761_v1 = vld [vmem:[#allocation77_spill] sm:$0xff] }
 0x14a   : > { %v7940_v60 = vpack.i.bf16 %v2339_v30, %v2337_v58  ;;  %5654 = vrot.lane.b32.xlu1 %v7811_v40, %s6373_s23  ;;  %v5658_v43 = vpack.i.bf16 %v7894_v47, %v7889_v13  ;;  %v7948_v42 = vpack.i.bf16 %v2349_v20, %v2347_v36  ;;  %v7950_v10 = vpack.i.bf16 %v2344_v37, %v2342_v50  ;;  %v10762_v30 = vld [vmem:[#allocation78_spill] sm:$0xff]  ;;  %v10763_v40 = vld [vmem:[#allocation40_spill] sm:$0xff] }
 0x14b   : > { %10755 = vst [vmem:[#allocation118_spill] sm:$0xff] %v7938_v8  ;;  %v7942_v48 = vpop.permute.xlu0 %5349  ;;  %v7952_v35 = vpack.i.bf16 %v2359_v45, %v2357_v24  ;;  %v7956_v44 = vsel %vm3244_vm8, %v10761_v1, %v5366_v26  ;;  %v7960_v58 = vsel %vm3244_vm8, %v10762_v30, %v5367_v46  ;;  %v7967_v47 = vsel %vm819_vm0, %v10763_v40, 0.0  ;;  %v5375_v13 = vpop.permute.xlu1 %5374  ;;  %v10766_v46 = vld [vmem:[#allocation70_spill] sm:$0xff] }
 0x14c   : > { %10756 = vst [vmem:[#allocation119_spill] sm:$0xff] %v7940_v60  ;;  %10757 = vst [vmem:[#allocation120_spill] sm:$0xff] %v7942_v48  ;;  %v7963_v48 = vsel %vm1248_vm1, %v2350_v61, %v2351_v23  ;;  %5639 = vrot.lane.b32.xlu0 %v7807_v6, %s6373_s23  ;;  %v10764_v36 = vrot.slane %v7906_v17, 1  ;;  %v2367_v20 = vsel %vm1248_vm1, %v2365_v9, %v2366_v29  ;;  %v10765_v50 = vrot.slane %v7910_v15, 1  ;;  %v10769_v6 = vld [vmem:[#allocation82_spill] sm:$0xff] }
 0x14d   : > { %10758 = vst [vmem:[#allocation121_spill] sm:$0xff] %v7948_v42  ;;  %10759 = vst [vmem:[#allocation122_spill] sm:$0xff] %v7950_v10  ;;  %v2360_v61 = vrot.slane %v7651_v63, 1  ;;  %v5377_v24 = vunpack.i.h.bf16 %v5375_v13  ;;  %v5376_v45 = vunpack.i.l.bf16 %v5375_v13  ;;  %v2361_v40 = vrot.slane %v7635_v25, 1 }
 0x14e   : > { %10760 = vst [vmem:[#allocation123_spill] sm:$0xff] %v7952_v35  ;;  %v2354_v26 = vsel %vm1248_vm1, %v2351_v23, %v10764_v36  ;;  %v2369_v37 = vsel %vm1248_vm1, %v2366_v29, %v10765_v50  ;;  %v7982_v1 = vsel %vm819_vm0, %v10766_v46, 0.0  ;;  %5664 = vrot.lane.b32.xlu1 %v7940_v60, %s6374_s24  ;;  %v2375_v9 = vrot.slane %v7662_v5, 1 }
 0x14f   : > { %10767 = vst [vmem:[#allocation77_spill] sm:$0xff] %v7982_v1  ;;  %v5360_v30 = vpop.permute.xlu0 %5359  ;;  %v7990_v29 = vsel %vm819_vm0, %v7680_v14, 0.0  ;;  %v7994_v13 = vsel %vm819_vm0, %v7693_v56, 0.0  ;;  %v7998_v46 = vsel %vm3244_vm8, %v7670_v59, %v5376_v45  ;;  %v8002_v60 = vsel %vm3244_vm8, %v10769_v6, %v5377_v24  ;;  %v8006_v23 = vpop.permute.xlu1 %5384  ;;  %v10771_v59 = vld [vmem:[#allocation83_spill] sm:$0xff] }
 0x150   : > { %10768 = vst [vmem:[#allocation78_spill] sm:$0xff] %v7990_v29  ;;  %v5362_v36 = vunpack.i.h.bf16 %v5360_v30  ;;  %v5361_v50 = vunpack.i.l.bf16 %v5360_v30  ;;  %5649 = vrot.lane.b32.xlu0 %v7938_v8, %s6373_s23  ;;  %10770 = vst [vmem:[#allocation40_spill] sm:$0xff] %v8006_v23  ;;  %v2376_v14 = vrot.slane %v7659_v62, 1  ;;  %v2370_v25 = vrot.slane %v7726_v3, 1  ;;  %s4655_s23 = sshll.u32 %s11158_s30, 8 }
 0x151   : > { %v8013_v30 = vsel %vm819_vm0, %v7695_v32, 0.0  ;;  %v2371_v24 = vrot.slane %v7723_v7, 1  ;;  %v2385_v56 = vrot.slane %v7733_v28, 1  ;;  %v2386_v32 = vrot.slane %v7730_v22, 1 }
 0x152   : > { %v8017_v45 = vsel %vm3244_vm8, %v10771_v59, %v5361_v50  ;;  %v8021_v6 = vsel %vm3244_vm8, %v7688_v27, %v5362_v36  ;;  %5674 = vrot.lane.b32.xlu1 %v7948_v42, %s6374_s24  ;;  %v2380_v50 = vrot.slane %v7740_v31, 1  ;;  %v2381_v27 = vrot.slane %v7737_v51, 1 }
 0x153   : > { %v5370_v23 = vpop.permute.xlu0 %5369  ;;  %v8034_v8 = vpop.permute.xlu1 %5394  ;;  %v8036_v7 = vpack.i.bf16 %v2369_v37, %v2367_v20  ;;  %v2362_v42 = vsel %vm1248_vm1, %v2360_v61, %v2361_v40  ;;  %v10774_v22 = vrot.slane %v7967_v47, 1  ;;  %v2377_v28 = vsel %vm1248_vm1, %v2375_v9, %v2376_v14  ;;  %v10781_v9 = vld [vmem:[#allocation84_spill] sm:$0xff] }
 0x154   : > { %v5372_v59 = vunpack.i.h.bf16 %v5370_v23  ;;  %v5371_v63 = vunpack.i.l.bf16 %v5370_v23  ;;  %5659 = vrot.lane.b32.xlu0 %v5658_v43, %s6374_s24  ;;  %10772 = vst [vmem:[#allocation70_spill] sm:$0xff] %v8034_v8  ;;  %v10775_v43 = vrot.slane %v7982_v1, 1  ;;  %v2372_v37 = vsel %vm1248_vm1, %v2370_v25, %v2371_v24 }
 0x155   : > { %10773 = vst [vmem:[#allocation82_spill] sm:$0xff] %v8036_v7  ;;  %v2364_v3 = vsel %vm1248_vm1, %v2361_v40, %v10774_v22  ;;  %v10777_v22 = vrot.slane %v7990_v29, 1  ;;  %v8072_v25 = vsel %vm819_vm0, %v10781_v9, 0.0 }
 0x156   : > { %v8045_v23 = vsel %vm3244_vm8, %v7709_v19, %v5371_v63  ;;  %v8049_v36 = vsel %vm3244_vm8, %v7713_v11, %v5372_v59  ;;  %v2379_v20 = vsel %vm1248_vm1, %v2376_v14, %v10775_v43  ;;  %5684 = vrot.lane.b32.xlu1 %v7952_v35, %s6374_s24  ;;  %v8063_v19 = vsel %vm1248_vm1, %v2385_v56, %v2386_v32 }
 0x157   : > { %v8055_v61 = vpop.permute.xlu0 %5379  ;;  %v2374_v63 = vsel %vm1248_vm1, %v2371_v24, %v10777_v22  ;;  %10778 = vst [vmem:[#allocation124_spill] sm:$0xff] %v8063_v19  ;;  %v10779_v11 = vrot.slane %v7994_v13, 1  ;;  %10782 = vst [vmem:[#allocation84_spill] sm:$0xff] %v8072_v25  ;;  %v8075_v14 = vsel %vm1248_vm1, %v2380_v50, %v2381_v27  ;;  %v10784_v59 = vrot.slane %v8013_v30, 1  ;;  %v10786_v24 = vld [vmem:[#allocation96_spill] sm:$0xff]  ;;  %v10787_v22 = vld [vmem:[#allocation95_spill] sm:$0xff] }
 0x158   : > { %10776 = vst [vmem:[#allocation83_spill] sm:$0xff] %v8055_v61  ;;  %10783 = vst [vmem:[#allocation126_spill] sm:$0xff] %v8075_v14  ;;  %v2395_v56 = vrot.slane %v10786_v24, 1  ;;  %v2396_v61 = vrot.slane %v10787_v22, 1  ;;  %5669 = vrot.lane.b32.xlu0 %v7950_v10, %s6374_s24  ;;  %v8090_v50 = vpack.i.bf16 %v2364_v3, %v2362_v42  ;;  %v8092_v9 = vpack.i.bf16 %v2379_v20, %v2377_v28  ;;  %v10790_v24 = vld [vmem:[#allocation86_spill] sm:$0xff]  ;;  %v10795_v28 = vld [vmem:[#allocation87_spill] sm:$0xff] }
 0x159   : > { %v8068_v40 = vsel %vm1248_vm1, %v2386_v32, %v10779_v11  ;;  %v8080_v43 = vsel %vm1248_vm1, %v2381_v27, %v10784_v59  ;;  %v8088_v32 = vpack.i.bf16 %v2354_v26, %v7963_v48  ;;  %v5405_v11 = vpop.permute.xlu1 %5404  ;;  %v8097_v22 = vsel %vm819_vm0, %v10790_v24, 0.0  ;;  %v10796_v20 = vld [vmem:[#allocation107_spill] sm:$0xff]  ;;  %v10800_v59 = vld [vmem:[#allocation98_spill] sm:$0xff] }
 0x15a   : > { %10780 = vst [vmem:[#allocation125_spill] sm:$0xff] %v8068_v40  ;;  %10785 = vst [vmem:[#allocation127_spill] sm:$0xff] %v8080_v43  ;;  %v5407_v35 = vunpack.i.h.bf16 %v5405_v11  ;;  %v5406_v27 = vunpack.i.l.bf16 %v5405_v11  ;;  %5694 = vrot.lane.b32.xlu1 %v8036_v7, %s6374_s24  ;;  %v8103_v48 = vpack.i.bf16 %v2374_v63, %v2372_v37  ;;  %v8107_v42 = vpack.i.bf16 %v8068_v40, %v8063_v19  ;;  %v10798_v11 = vld [vmem:[#allocation108_spill] sm:$0xff]  ;;  %v10801_v40 = vld [vmem:[#allocation97_spill] sm:$0xff] }
 0x15b   : > { %10788 = vst [vmem:[#allocation128_spill] sm:$0xff] %v8088_v32  ;;  %10789 = vst [vmem:[#allocation129_spill] sm:$0xff] %v8092_v9  ;;  %v8099_v8 = vpop.permute.xlu0 %5389  ;;  %v8111_v3 = vpack.i.bf16 %v8080_v43, %v8075_v14  ;;  %v8115_v26 = vsel %vm819_vm0, %v10795_v28, 0.0  ;;  %v8126_v63 = vsel %vm1248_vm1, %v2395_v56, %v2396_v61  ;;  %v2391_v28 = vrot.slane %v10801_v40, 1  ;;  %v10802_v19 = vld [vmem:[#allocation101_spill] sm:$0xff]  ;;  %v10807_v40 = vld [vmem:[#allocation63_spill] sm:$0xff] }
 0x15c   : > { %10791 = vst [vmem:[#allocation86_spill] sm:$0xff] %v8099_v8  ;;  %10792 = vst [vmem:[#allocation130_spill] sm:$0xff] %v8103_v48  ;;  %v8119_v24 = vsel %vm3244_vm8, %v10796_v20, %v5406_v27  ;;  %v8123_v37 = vsel %vm3244_vm8, %v10798_v11, %v5407_v35  ;;  %v2390_v8 = vrot.slane %v10800_v59, 1  ;;  %5679 = vrot.lane.b32.xlu0 %v8088_v32, %s6374_s24  ;;  %v2405_v27 = vrot.slane %v10802_v19, 1  ;;  %v10803_v20 = vld [vmem:[#allocation100_spill] sm:$0xff]  ;;  %v10806_v32 = vld [vmem:[#allocation99_spill] sm:$0xff] }
 0x15d   : > { %10793 = vst [vmem:[#allocation131_spill] sm:$0xff] %v8107_v42  ;;  %10794 = vst [vmem:[#allocation132_spill] sm:$0xff] %v8111_v3  ;;  %v5415_v7 = vpop.permute.xlu1 %5414  ;;  %v2406_v43 = vrot.slane %v10803_v20, 1  ;;  %v10804_v11 = vrot.slane %v8072_v25, 1  ;;  %v10463_v59 = vrot.slane %v8115_v26, 1  ;;  %v8145_v14 = vsel %vm819_vm0, %v10806_v32, 0.0 }
 0x15e   : > { %10797 = vst [vmem:[#allocation87_spill] sm:$0xff] %v8119_v24  ;;  %10799 = vst [vmem:[#allocation107_spill] sm:$0xff] %v8123_v37  ;;  %v5417_v10 = vunpack.i.h.bf16 %v5415_v7  ;;  %v5416_v35 = vunpack.i.l.bf16 %v5415_v7  ;;  %5704 = vrot.lane.b32.xlu1 %v8092_v9, %s6374_s24  ;;  %v2511_v19 = vrot.slane %v10807_v40, 2  ;;  %v10808_v20 = vld [vmem:[#allocation62_spill] sm:$0xff]  ;;  %v2514_v7 = vrot.slane %v7819_v21, 2 }
 0x15f   : > { %v8138_v56 = vsel %vm1248_vm1, %v2396_v61, %v10804_v11  ;;  %v5400_v37 = vpop.permute.xlu0 %5399  ;;  %v2512_v24 = vrot.slane %v10808_v20, 2  ;;  %v8167_v21 = vsel %vm1248_vm1, %v2390_v8, %v2391_v28  ;;  %v8188_v8 = vsel %vm1248_vm1, %v2406_v43, %v10463_v59  ;;  %v10814_v59 = vld [vmem:[#allocation37_spill] sm:$0xff] }
 0x160   : > { %10805 = vst [vmem:[#allocation108_spill] sm:$0xff] %v8138_v56  ;;  %v5402_v25 = vunpack.i.h.bf16 %v5400_v37  ;;  %v5401_v29 = vunpack.i.l.bf16 %v5400_v37  ;;  %v8152_v61 = vsel %vm3244_vm8, %v7843_v4, %v5416_v35  ;;  %v8156_v11 = vsel %vm3244_vm8, %v7847_v54, %v5417_v10  ;;  %5689 = vrot.lane.b32.xlu0 %v8090_v50, %s6374_s24  ;;  %10813 = vst [vmem:[#allocation133_spill] sm:$0xff] %v8188_v8 }
 0x161   : > { %v8160_v32 = vpop.permute.xlu1 %5424  ;;  %v8164_v40 = vpack.i.bf16 %v8138_v56, %v8126_v63  ;;  %v10811_v37 = vrot.slane %v8097_v22, 1  ;;  %v8175_v10 = vsel %vm1248_vm1, %v2405_v27, %v2406_v43  ;;  %v2400_v35 = vrot.slane %v7822_v39, 1 }
 0x162   : > { %10809 = vst [vmem:[#allocation99_spill] sm:$0xff] %v8160_v32  ;;  %10812 = vst [vmem:[#allocation62_spill] sm:$0xff] %v8175_v10  ;;  %v8179_v54 = vsel %vm3244_vm8, %v7862_v34, %v5401_v29  ;;  %v8183_v20 = vsel %vm3244_vm8, %v7866_v16, %v5402_v25  ;;  %5714 = vrot.lane.b32.xlu1 %v8107_v42, %s6374_s24  ;;  %v2401_v27 = vrot.slane %v7815_v55, 1  ;;  %v2521_v43 = vrot.slane %v7563_v38, 2 }
 0x163   : > { %10810 = vst [vmem:[#allocation63_spill] sm:$0xff] %v8164_v40  ;;  %v8172_v4 = vsel %vm1248_vm1, %v2391_v28, %v10811_v37  ;;  %v5410_v28 = vpop.permute.xlu0 %5409  ;;  %v2513_v29 = vsel %vm1425_vm2, %v2511_v19, %v2512_v24  ;;  %v2515_v16 = vsel %vm1425_vm2, %v2512_v24, %v2514_v7  ;;  %v2522_v32 = vrot.slane %v10814_v59, 2 }
 0x164   : > { %v5412_v25 = vunpack.i.h.bf16 %v5410_v28  ;;  %v5411_v37 = vunpack.i.l.bf16 %v5410_v28  ;;  %5699 = vrot.lane.b32.xlu0 %v8103_v48, %s6374_s24  ;;  %v2551_v42 = vrot.slane %v7662_v5, 2  ;;  %v2552_v56 = vrot.slane %v7659_v62, 2 }
 0x165   : > { %v8201_v9 = vpop.permute.xlu1 %5434  ;;  %v2554_v34 = vrot.slane %v7982_v1, 2  ;;  %v2556_v19 = vrot.slane %v7740_v31, 2  ;;  %v2557_v28 = vrot.slane %v7737_v51, 2  ;;  %v8223_v5 = vpack.i.bf16 %v8172_v4, %v8167_v21  ;;  %v10821_v1 = vld [vmem:[#allocation35_spill] sm:$0xff] }
 0x166   : > { %10815 = vst [vmem:[#allocation134_spill] sm:$0xff] %v8201_v9  ;;  %v8209_v24 = vsel %vm3244_vm8, %v7898_v53, %v5411_v37  ;;  %v8213_v7 = vsel %vm3244_vm8, %v7902_v57, %v5412_v25  ;;  %v2559_v9 = vrot.slane %v8013_v30, 2  ;;  %5724 = vrot.lane.b32.xlu1 %v8164_v40, %s6374_s24  ;;  %v8227_v53 = vpack.i.bf16 %v8188_v8, %v8175_v10  ;;  %v10820_v40 = vld [vmem:[#allocation59_spill] sm:$0xff] }
 0x167   : > { %v8217_v38 = vpop.permute.xlu0 %5419  ;;  %10817 = vst [vmem:[#allocation136_spill] sm:$0xff] %v8223_v5  ;;  %v8230_v57 = vsel %vm1248_vm1, %v2400_v35, %v2401_v27  ;;  %v2524_v25 = vrot.slane %v7835_v49, 2  ;;  %v10819_v37 = vrot.slane %v8145_v14, 1  ;;  %v2509_v59 = vrot.slane %v10820_v40, 2 }
 0x168   : > { %10816 = vst [vmem:[#allocation135_spill] sm:$0xff] %v8217_v38  ;;  %10818 = vst [vmem:[#allocation137_spill] sm:$0xff] %v8227_v53  ;;  %v8238_v38 = vpack.i.bf16 %v2515_v16, %v2513_v29  ;;  %v2523_v31 = vsel %vm1425_vm2, %v2521_v43, %v2522_v32  ;;  %5709 = vrot.lane.b32.xlu0 %v8111_v3, %s6374_s24  ;;  %v2531_v35 = vrot.slane %v10821_v1, 2  ;;  %v2532_v8 = vrot.slane %v7583_v0, 2 }
 0x169   : > { %v8236_v62 = vsel %vm1248_vm1, %v2401_v27, %v10819_v37  ;;  %v5445_v51 = vpop.permute.xlu1 %5444  ;;  %v2553_v48 = vsel %vm1425_vm2, %v2551_v42, %v2552_v56  ;;  %v2555_v10 = vsel %vm1425_vm2, %v2552_v56, %v2554_v34  ;;  %v2558_v29 = vsel %vm1425_vm2, %v2556_v19, %v2557_v28 }
 0x16a   : > { %v5447_v27 = vunpack.i.h.bf16 %v5445_v51  ;;  %v5446_v37 = vunpack.i.l.bf16 %v5445_v51  ;;  %v2560_v40 = vsel %vm1425_vm2, %v2557_v28, %v2559_v9  ;;  %5734 = vrot.lane.b32.xlu1 %v8227_v53, %s6374_s24  ;;  %v2525_v43 = vsel %vm1425_vm2, %v2522_v32, %v2524_v25  ;;  %v10828_v25 = vld [vmem:[#allocation52_spill] sm:$0xff] }
 0x16b   : > { %v8250_v16 = vpop.permute.xlu0 %5429  ;;  %v2534_v1 = vrot.slane %v7858_v2, 2  ;;  %v8256_v0 = vpack.i.bf16 %v2555_v10, %v2553_v48  ;;  %v8258_v42 = vpack.i.bf16 %v2560_v40, %v2558_v29  ;;  %v8270_v56 = vpack.i.bf16 %v8236_v62, %v8230_v57 }
 0x16c   : > { %10822 = vst [vmem:[#allocation59_spill] sm:$0xff] %v8250_v16  ;;  %v8262_v51 = vsel %vm3277_vm9, %v7956_v44, %v5446_v37  ;;  %v8266_v9 = vsel %vm3277_vm9, %v7960_v58, %v5447_v27  ;;  %v10824_v32 = vrot.slane %v7306_v33, 2  ;;  %v10825_v34 = vrot.slane %v7309_v18, 2  ;;  %5719 = vrot.lane.b32.xlu0 %v8223_v5, %s6374_s24  ;;  %v10827_v58 = vld [vmem:[#allocation39_spill] sm:$0xff] }
 0x16d   : > { %10823 = vst [vmem:[#allocation138_spill] sm:$0xff] %v8270_v56  ;;  %v5455_v10 = vpop.permute.xlu1 %5454  ;;  %v2516_v28 = vrot.slane %v10827_v58, 2  ;;  %v2517_v27 = vrot.slane %v10828_v25, 2  ;;  %v2519_v37 = vrot.slane %v7839_v52, 2  ;;  %v8285_v53 = vpack.i.bf16 %v2525_v43, %v2523_v31  ;;  %v10831_v43 = vld [vmem:[#allocation42_spill] sm:$0xff] }
 0x16e   : > { %v2508_v48 = vsel %vm1425_vm2, %v10825_v34, %v10824_v32  ;;  %v10826_v44 = vmov %v10824_v32  ;;  %v5457_v29 = vunpack.i.h.bf16 %v5455_v10  ;;  %v5456_v40 = vunpack.i.l.bf16 %v5455_v10  ;;  %5744 = vrot.lane.b32.xlu1 %v8238_v38, %s6375_s25 }
 0x16f   : > { %v2510_v19 = vsel %vm1425_vm2, %v10826_v44, %v2509_v59  ;;  %10829 = vst [vmem:[#allocation139_spill] sm:$0xff] %v8285_v53  ;;  %v2533_v18 = vsel %vm1425_vm2, %v2531_v35, %v2532_v8  ;;  %v5440_v32 = vpop.permute.xlu0 %5439  ;;  %v2535_v33 = vsel %vm1425_vm2, %v2532_v8, %v2534_v1  ;;  %v2541_v59 = vrot.slane %v7605_v41, 2  ;;  %v10832_v41 = vld [vmem:[#allocation41_spill] sm:$0xff] }
 0x170   : > { %v2542_v34 = vrot.slane %v7602_v12, 2  ;;  %v2544_v44 = vrot.slane %v7910_v15, 2  ;;  %v5442_v16 = vunpack.i.h.bf16 %v5440_v32  ;;  %v5441_v5 = vunpack.i.l.bf16 %v5440_v32  ;;  %5729 = vrot.lane.b32.xlu0 %v8270_v56, %s6374_s24 }
 0x171   : > { %v8296_v31 = vsel %vm3277_vm9, %v7998_v46, %v5456_v40  ;;  %v8300_v35 = vsel %vm3277_vm9, %v8002_v60, %v5457_v29  ;;  %v5738_v1 = vpack.i.bf16 %v2510_v19, %v2508_v48  ;;  %v8304_v8 = vpop.permute.xlu1 %5464  ;;  %v2526_v10 = vrot.slane %v10831_v43, 2 }
 0x172   : > { %10830 = vst [vmem:[#allocation140_spill] sm:$0xff] %v8304_v8  ;;  %v2527_v12 = vrot.slane %v10832_v41, 2  ;;  %v2529_v32 = vrot.slane %v7906_v17, 2  ;;  %v8311_v46 = vsel %vm3277_vm9, %v8017_v45, %v5441_v5  ;;  %v8315_v60 = vsel %vm3277_vm9, %v8021_v6, %v5442_v16  ;;  %5754 = vrot.lane.b32.xlu1 %v8285_v53, %s6375_s25  ;;  %v10834_v8 = vld [vmem:[#allocation80_spill] sm:$0xff] }
 0x173   : > { %v2518_v29 = vsel %vm1425_vm2, %v2516_v28, %v2517_v27  ;;  %v2520_v48 = vsel %vm1425_vm2, %v2517_v27, %v2519_v37  ;;  %v5450_v19 = vpop.permute.xlu0 %5449  ;;  %v8321_v40 = vpack.i.bf16 %v2535_v33, %v2533_v18  ;;  %v2543_v56 = vsel %vm1425_vm2, %v2541_v59, %v2542_v34  ;;  %v10835_v6 = vld [vmem:[#allocation76_spill] sm:$0xff] }
 0x174   : > { %v2536_v43 = vrot.slane %v10834_v8, 2  ;;  %v5452_v5 = vunpack.i.h.bf16 %v5450_v19  ;;  %v5451_v45 = vunpack.i.l.bf16 %v5450_v19  ;;  %v2545_v41 = vsel %vm1425_vm2, %v2542_v34, %v2544_v44  ;;  %5739 = vrot.lane.b32.xlu0 %v5738_v1, %s6375_s25  ;;  %v10845_v53 = vld [vmem:[#allocation96_spill] sm:$0xff] }
 0x175   : > { %10833 = vst [vmem:[#allocation141_spill] sm:$0xff] %v8321_v40  ;;  %v2537_v16 = vrot.slane %v10835_v6, 2  ;;  %v8328_v28 = vpack.i.bf16 %v2520_v48, %v2518_v29  ;;  %v8330_v27 = vpop.permute.xlu1 %5474  ;;  %v2528_v37 = vsel %vm1425_vm2, %v2526_v10, %v2527_v12  ;;  %v2530_v18 = vsel %vm1425_vm2, %v2527_v12, %v2529_v32  ;;  %v10839_v10 = vld [vmem:[#allocation92_spill] sm:$0xff]  ;;  %v10840_v12 = vld [vmem:[#allocation91_spill] sm:$0xff]  ;;  %v10844_v6 = vld [vmem:[#allocation78_spill] sm:$0xff] }
 0x176   : > { %10836 = vst [vmem:[#allocation142_spill] sm:$0xff] %v8330_v27  ;;  %v2539_v33 = vrot.slane %v7967_v47, 2  ;;  %v8337_v59 = vsel %vm3277_vm9, %v8045_v23, %v5451_v45  ;;  %v8341_v34 = vsel %vm3277_vm9, %v8049_v36, %v5452_v5  ;;  %5764 = vrot.lane.b32.xlu1 %v8321_v40, %s6375_s25  ;;  %v8347_v1 = vpack.i.bf16 %v2545_v41, %v2543_v56  ;;  %v10842_v45 = vld [vmem:[#allocation90_spill] sm:$0xff]  ;;  %v10843_v41 = vld [vmem:[#allocation89_spill] sm:$0xff] }
 0x177   : > { %v8343_v44 = vpop.permute.xlu0 %5459  ;;  %v2561_v29 = vrot.slane %v10839_v10, 2  ;;  %v2562_v32 = vrot.slane %v10840_v12, 2  ;;  %v2564_v48 = vrot.slane %v7994_v13, 2  ;;  %v8352_v19 = vpack.i.bf16 %v2530_v18, %v2528_v37  ;;  %v10846_v37 = vld [vmem:[#allocation95_spill] sm:$0xff] }
 0x178   : > { %10837 = vst [vmem:[#allocation143_spill] sm:$0xff] %v8343_v44  ;;  %10838 = vst [vmem:[#allocation144_spill] sm:$0xff] %v8347_v1  ;;  %v2538_v23 = vsel %vm1425_vm2, %v2536_v43, %v2537_v16  ;;  %5749 = vrot.lane.b32.xlu0 %v8328_v28, %s6375_s25  ;;  %v2540_v5 = vsel %vm1425_vm2, %v2537_v16, %v2539_v33  ;;  %v2546_v8 = vrot.slane %v10842_v45, 2  ;;  %v2547_v56 = vrot.slane %v10843_v41, 2  ;;  %v10848_v33 = vld [vmem:[#allocation84_spill] sm:$0xff]  ;;  %v10849_v41 = vld [vmem:[#allocation87_spill] sm:$0xff] }
 0x179   : > { %10841 = vst [vmem:[#allocation145_spill] sm:$0xff] %v8352_v19  ;;  %v5485_v36 = vpop.permute.xlu1 %5484  ;;  %v2549_v40 = vrot.slane %v10844_v6, 2  ;;  %v2571_v12 = vrot.slane %v10845_v53, 2  ;;  %v2572_v18 = vrot.slane %v10846_v37, 2  ;;  %v2563_v43 = vsel %vm1425_vm2, %v2561_v29, %v2562_v32 }
 0x17a   : > { %v5487_v27 = vunpack.i.h.bf16 %v5485_v36  ;;  %v5486_v44 = vunpack.i.l.bf16 %v5485_v36  ;;  %5774 = vrot.lane.b32.xlu1 %v8347_v1, %s6375_s25  ;;  %v2565_v16 = vsel %vm1425_vm2, %v2562_v32, %v2564_v48  ;;  %v2574_v45 = vrot.slane %v10848_v33, 2  ;;  %v10850_v36 = vld [vmem:[#allocation107_spill] sm:$0xff] }
 0x17b   : > { %v8363_v10 = vpop.permute.xlu0 %5469  ;;  %v2548_v29 = vsel %vm1425_vm2, %v2546_v8, %v2547_v56  ;;  %v2550_v32 = vsel %vm1425_vm2, %v2547_v56, %v2549_v40  ;;  %v8384_v25 = vpack.i.bf16 %v2565_v16, %v2563_v43  ;;  %v2584_v8 = vrot.slane %v8115_v26, 2  ;;  %v10857_v16 = vld [vmem:[#allocation97_spill] sm:$0xff] }
 0x17c   : > { %10847 = vst [vmem:[#allocation146_spill] sm:$0xff] %v8363_v10  ;;  %v8372_v58 = vsel %vm3277_vm9, %v10849_v41, %v5486_v44  ;;  %v8376_v53 = vsel %vm3277_vm9, %v10850_v36, %v5487_v27  ;;  %5759 = vrot.lane.b32.xlu0 %v8352_v19, %s6375_s25  ;;  %v8380_v10 = vpack.i.bf16 %v2540_v5, %v2538_v23  ;;  %v10852_v36 = vld [vmem:[#allocation101_spill] sm:$0xff]  ;;  %v10853_v5 = vld [vmem:[#allocation100_spill] sm:$0xff] }
 0x17d   : > { %v5495_v1 = vpop.permute.xlu1 %5494  ;;  %v2573_v44 = vsel %vm1425_vm2, %v2571_v12, %v2572_v18  ;;  %v2575_v27 = vsel %vm1425_vm2, %v2572_v18, %v2574_v45  ;;  %v2581_v23 = vrot.slane %v10852_v36, 2  ;;  %v2582_v19 = vrot.slane %v10853_v5, 2  ;;  %v10856_v18 = vld [vmem:[#allocation98_spill] sm:$0xff] }
 0x17e   : > { %10851 = vst [vmem:[#allocation84_spill] sm:$0xff] %v8380_v10  ;;  %v5497_v48 = vunpack.i.h.bf16 %v5495_v1  ;;  %v5496_v37 = vunpack.i.l.bf16 %v5495_v1  ;;  %5784 = vrot.lane.b32.xlu1 %v8256_v0, %s6375_s25  ;;  %v8403_v45 = vpack.i.bf16 %v2550_v32, %v2548_v29  ;;  %v2566_v43 = vrot.slane %v10856_v18, 2 }
 0x17f   : > { %v5480_v41 = vpop.permute.xlu0 %5479  ;;  %v2567_v5 = vrot.slane %v10857_v16, 2  ;;  %v8420_v29 = vpack.i.bf16 %v2575_v27, %v2573_v44  ;;  %v2585_v36 = vsel %vm1425_vm2, %v2582_v19, %v2584_v8 }
 0x180   : > { %v5482_v3 = vunpack.i.h.bf16 %v5480_v41  ;;  %v5481_v40 = vunpack.i.l.bf16 %v5480_v41  ;;  %v8395_v1 = vsel %vm3277_vm9, %v8152_v61, %v5496_v37  ;;  %v8399_v12 = vsel %vm3277_vm9, %v8156_v11, %v5497_v48  ;;  %5769 = vrot.lane.b32.xlu0 %v8380_v10, %s6375_s25  ;;  %10854 = vst [vmem:[#allocation87_spill] sm:$0xff] %v8403_v45 }
 0x181   : > { %v8405_v56 = vpop.permute.xlu1 %5504  ;;  %v2569_v41 = vrot.slane %v8097_v22, 2  ;;  %10858 = vst [vmem:[#allocation97_spill] sm:$0xff] %v8420_v29 }
 0x182   : > { %10855 = vst [vmem:[#allocation107_spill] sm:$0xff] %v8405_v56  ;;  %v8412_v61 = vsel %vm3277_vm9, %v8179_v54, %v5481_v40  ;;  %v8416_v11 = vsel %vm3277_vm9, %v8183_v20, %v5482_v3  ;;  %5794 = vrot.lane.b32.xlu1 %v8384_v25, %s6375_s25  ;;  %v2583_v56 = vsel %vm1425_vm2, %v2581_v23, %v2582_v19  ;;  %v2576_v40 = vrot.slane %v7822_v39, 2 }
 0x183   : > { %v5490_v37 = vpop.permute.xlu0 %5489  ;;  %v2568_v3 = vsel %vm1425_vm2, %v2566_v43, %v2567_v5  ;;  %v2570_v20 = vsel %vm1425_vm2, %v2567_v5, %v2569_v41  ;;  %v2577_v19 = vrot.slane %v7815_v55, 2  ;;  %v2579_v23 = vrot.slane %v8145_v14, 2 }
 0x184   : > { %v5492_v32 = vunpack.i.h.bf16 %v5490_v37  ;;  %v5491_v48 = vunpack.i.l.bf16 %v5490_v37  ;;  %5779 = vrot.lane.b32.xlu0 %v8403_v45, %s6375_s25  ;;  %v8445_v5 = vpack.i.bf16 %v2585_v36, %v2583_v56 }
 0x185   : > { %v8426_v54 = vpop.permute.xlu1 %5514  ;;  %v2578_v37 = vsel %vm1425_vm2, %v2576_v40, %v2577_v19 }
 0x186   : > { %10859 = vst [vmem:[#allocation147_spill] sm:$0xff] %v8426_v54  ;;  %v8433_v44 = vsel %vm3277_vm9, %v8209_v24, %v5491_v48  ;;  %v8437_v27 = vsel %vm3277_vm9, %v8213_v7, %v5492_v32  ;;  %5804 = vrot.lane.b32.xlu1 %v8420_v29, %s6375_s25  ;;  %10861 = vst [vmem:[#allocation149_spill] sm:$0xff] %v8445_v5  ;;  %v8449_v24 = vpack.i.bf16 %v2570_v20, %v2568_v3 }
 0x187   : > { %v8441_v8 = vpop.permute.xlu0 %5499  ;;  %v2580_v32 = vsel %vm1425_vm2, %v2577_v19, %v2579_v23 }
 0x188   : > { %10860 = vst [vmem:[#allocation148_spill] sm:$0xff] %v8441_v8  ;;  %5789 = vrot.lane.b32.xlu0 %v8258_v42, %s6375_s25  ;;  %10862 = vst [vmem:[#allocation150_spill] sm:$0xff] %v8449_v24  ;;  %v8467_v3 = vpack.i.bf16 %v2580_v32, %v2578_v37 }
 0x189   : > { %v5525_v43 = vpop.permute.xlu1 %5524 }
 0x18a   : > { %v5527_v41 = vunpack.i.h.bf16 %v5525_v43  ;;  %v5526_v7 = vunpack.i.l.bf16 %v5525_v43  ;;  %5814 = vrot.lane.b32.xlu1 %v8445_v5, %s6375_s25  ;;  %10864 = vst [vmem:[#allocation152_spill] sm:$0xff] %v8467_v3  ;;  %v10865_v43 = vld [vmem:[#allocation73_spill] sm:$0xff] }
 0x18b   : > { %v8453_v48 = vpop.permute.xlu0 %5509 }
 0x18c   : > { %10863 = vst [vmem:[#allocation151_spill] sm:$0xff] %v8453_v48  ;;  %v8459_v36 = vsel %vm3310_vm10, %v8262_v51, %v5526_v7  ;;  %v8463_v56 = vsel %vm3310_vm10, %v8266_v9, %v5527_v41  ;;  %5799 = vrot.lane.b32.xlu0 %v8449_v24, %s6375_s25 }
 0x18d   : > { %v5535_v20 = vpop.permute.xlu1 %5534 }
 0x18e   : > { %v5537_v40 = vunpack.i.h.bf16 %v5535_v20  ;;  %v5536_v19 = vunpack.i.l.bf16 %v5535_v20  ;;  %5824 = vrot.lane.b32.xlu1 %v10865_v43, %s6376_s27 }
 0x18f   : > { %v5520_v23 = vpop.permute.xlu0 %5519 }
 0x190   : > { %v5522_v45 = vunpack.i.h.bf16 %v5520_v23  ;;  %v5521_v51 = vunpack.i.l.bf16 %v5520_v23  ;;  %v8473_v7 = vsel %vm3310_vm10, %v8296_v31, %v5536_v19  ;;  %v8477_v9 = vsel %vm3310_vm10, %v8300_v35, %v5537_v40  ;;  %5809 = vrot.lane.b32.xlu0 %v8467_v3, %s6375_s25  ;;  %v10867_v31 = vld [vmem:[#allocation75_spill] sm:$0xff]  ;;  %v10868_v40 = vld [vmem:[#allocation64_spill] sm:$0xff] }
 0x191   : > { %v8481_v41 = vpop.permute.xlu1 %5544 }
 0x192   : > { %10866 = vst [vmem:[#allocation73_spill] sm:$0xff] %v8481_v41  ;;  %v8485_v37 = vsel %vm3310_vm10, %v8311_v46, %v5521_v51  ;;  %v8489_v32 = vsel %vm3310_vm10, %v8315_v60, %v5522_v45  ;;  %5834 = vrot.lane.b32.xlu1 %v10867_v31, %s6376_s27  ;;  %v10871_v45 = vld [vmem:[#allocation103_spill] sm:$0xff] }
 0x193   : > { %v5530_v20 = vpop.permute.xlu0 %5529  ;;  %v10872_v51 = vld [vmem:[#allocation71_spill] sm:$0xff] }
 0x194   : > { %v5532_v19 = vunpack.i.h.bf16 %v5530_v20  ;;  %v5531_v35 = vunpack.i.l.bf16 %v5530_v20  ;;  %5819 = vrot.lane.b32.xlu0 %v10868_v40, %s6376_s27 }
 0x195   : > { %v8495_v23 = vpop.permute.xlu1 %5554 }
 0x196   : > { %10869 = vst [vmem:[#allocation64_spill] sm:$0xff] %v8495_v23  ;;  %v8499_v5 = vsel %vm3310_vm10, %v8337_v59, %v5531_v35  ;;  %v8503_v46 = vsel %vm3310_vm10, %v8341_v34, %v5532_v19  ;;  %5844 = vrot.lane.b32.xlu1 %v10871_v45, %s6376_s27  ;;  %v10874_v59 = vld [vmem:[#allocation105_spill] sm:$0xff]  ;;  %v10875_v35 = vld [vmem:[#allocation74_spill] sm:$0xff] }
 0x197   : > { %v8505_v60 = vpop.permute.xlu0 %5539 }
 0x198   : > { %10870 = vst [vmem:[#allocation153_spill] sm:$0xff] %v8505_v60  ;;  %5829 = vrot.lane.b32.xlu0 %v10872_v51, %s6376_s27 }
 0x199   : > { %v5565_v20 = vpop.permute.xlu1 %5564 }
 0x19a   : > { %v5567_v40 = vunpack.i.h.bf16 %v5565_v20  ;;  %v5566_v41 = vunpack.i.l.bf16 %v5565_v20  ;;  %5854 = vrot.lane.b32.xlu1 %v10874_v59, %s6376_s27 }
 0x19b   : > { %v8511_v23 = vpop.permute.xlu0 %5549 }
 0x19c   : > { %10873 = vst [vmem:[#allocation71_spill] sm:$0xff] %v8511_v23  ;;  %v8517_v34 = vsel %vm3310_vm10, %v8372_v58, %v5566_v41  ;;  %v8521_v19 = vsel %vm3310_vm10, %v8376_v53, %v5567_v40  ;;  %5839 = vrot.lane.b32.xlu0 %v10875_v35, %s6376_s27  ;;  %v10876_v23 = vld [vmem:[#allocation109_spill] sm:$0xff]  ;;  %v10877_v41 = vld [vmem:[#allocation79_spill] sm:$0xff] }
 0x19d   : > { %v5575_v60 = vpop.permute.xlu1 %5574 }
 0x19e   : > { %v5577_v48 = vunpack.i.h.bf16 %v5575_v60  ;;  %v5576_v8 = vunpack.i.l.bf16 %v5575_v60  ;;  %5864 = vrot.lane.b32.xlu1 %v10876_v23, %s6376_s27 }
 0x19f   : > { %v5560_v20 = vpop.permute.xlu0 %5559 }
 0x1a0   : > { %v5562_v54 = vunpack.i.h.bf16 %v5560_v20  ;;  %v5561_v59 = vunpack.i.l.bf16 %v5560_v20  ;;  %v8529_v58 = vsel %vm3310_vm10, %v8395_v1, %v5576_v8  ;;  %v8533_v53 = vsel %vm3310_vm10, %v8399_v12, %v5577_v48  ;;  %5849 = vrot.lane.b32.xlu0 %v10877_v41, %s6376_s27  ;;  %v10879_v1 = vld [vmem:[#allocation111_spill] sm:$0xff]  ;;  %v10880_v48 = vld [vmem:[#allocation104_spill] sm:$0xff] }
 0x1a1   : > { %v8537_v40 = vpop.permute.xlu1 %5584 }
 0x1a2   : > { %10878 = vst [vmem:[#allocation109_spill] sm:$0xff] %v8537_v40  ;;  %v8541_v60 = vsel %vm3310_vm10, %v8412_v61, %v5561_v59  ;;  %v8545_v20 = vsel %vm3310_vm10, %v8416_v11, %v5562_v54  ;;  %5874 = vrot.lane.b32.xlu1 %v10879_v1, %s6376_s27  ;;  %v10883_v54 = vld [vmem:[#allocation122_spill] sm:$0xff]  ;;  %v10884_v59 = vld [vmem:[#allocation127_spill] sm:$0xff] }
 0x1a3   : > { %v5570_v45 = vpop.permute.xlu0 %5569 }
 0x1a4   : > { %v5572_v8 = vunpack.i.h.bf16 %v5570_v45  ;;  %v5571_v12 = vunpack.i.l.bf16 %v5570_v45  ;;  %5859 = vrot.lane.b32.xlu0 %v10880_v48, %s6376_s27  ;;  %v10885_v45 = vrot.slane %v8013_v30, 1  ;;  %v10886_v48 = vld [vmem:[#allocation106_spill] sm:$0xff] }
 0x1a5   : > { %v8551_v41 = vpop.permute.xlu1 %5594 }
 0x1a6   : > { %10881 = vst [vmem:[#allocation154_spill] sm:$0xff] %v8551_v41  ;;  %v8555_v40 = vsel %vm3310_vm10, %v8433_v44, %v5571_v12  ;;  %v8559_v61 = vsel %vm3310_vm10, %v8437_v27, %v5572_v8  ;;  %5884 = vrot.lane.b32.xlu1 %v10883_v54, %s6365_s17  ;;  %v5893_v3 = vpack.i.bf16 %v10885_v45, %v10884_v59  ;;  %v10888_v27 = vrot.slane %v7835_v49, 1  ;;  %v10889_v8 = vld [vmem:[#allocation124_spill] sm:$0xff] }
 0x1a7   : > { %v8561_v11 = vpop.permute.xlu0 %5579  ;;  %v10891_v45 = vrot.slane %v7839_v52, 1 }
 0x1a8   : > { %10882 = vst [vmem:[#allocation155_spill] sm:$0xff] %v8561_v11  ;;  %5869 = vrot.lane.b32.xlu0 %v10886_v48, %s6376_s27  ;;  %v5903_v11 = vpack.i.bf16 %v10889_v8, %v10888_v27 }
 0x1a9   : > { %v5605_v41 = vpop.permute.xlu1 %5604 }
 0x1aa   : > { %v5607_v10 = vunpack.i.h.bf16 %v5605_v41  ;;  %v5606_v44 = vunpack.i.l.bf16 %v5605_v41  ;;  %5894 = vrot.lane.b32.xlu1 %v5893_v3, %s6365_s17  ;;  %v10890_v41 = vld [vmem:[#allocation110_spill] sm:$0xff] }
 0x1ab   : > { %v8570_v12 = vpop.permute.xlu0 %5589 }
 0x1ac   : > { %10887 = vst [vmem:[#allocation122_spill] sm:$0xff] %v8570_v12  ;;  %v8578_v39 = vsel %vm3343_vm11, %v8459_v36, %v5606_v44  ;;  %v8582_v59 = vsel %vm3343_vm11, %v8463_v56, %v5607_v10  ;;  %5879 = vrot.lane.b32.xlu0 %v10890_v41, %s6376_s27  ;;  %v10892_v12 = vld [vmem:[#allocation126_spill] sm:$0xff]  ;;  %v10901_v41 = vrot.slane %v7858_v2, 1 }
 0x1ad   : > { %v5888_v55 = vpack.i.bf16 %v10892_v12, %v10891_v45  ;;  %v5615_v3 = vpop.permute.xlu1 %5614  ;;  %v4798_v12 = vld [vmem:[%s676_s14] sm:$0xff]   ;;  %v10896_v45 = vld [vmem:[#allocation121_spill] sm:$0xff] }
 0x1ae   : > { %v5617_v29 = vunpack.i.h.bf16 %v5615_v3  ;;  %v5616_v35 = vunpack.i.l.bf16 %v5615_v3  ;;  %5904 = vrot.lane.b32.xlu1 %v5903_v11, %s6365_s17  ;;  %v10898_v3 = vrot.slane %v7994_v13, 1 }
 0x1af   : > { %v5600_v1 = vpop.permute.xlu0 %5599 }
 0x1b0   : > { %v5602_v27 = vunpack.i.h.bf16 %v5600_v1  ;;  %v5601_v36 = vunpack.i.l.bf16 %v5600_v1  ;;  %v8592_v44 = vsel %vm3343_vm11, %v8473_v7, %v5616_v35  ;;  %v8596_v10 = vsel %vm3343_vm11, %v8477_v9, %v5617_v29  ;;  %5889 = vrot.lane.b32.xlu0 %v5888_v55, %s6365_s17  ;;  %v10894_v9 = vld [vmem:[#allocation128_spill] sm:$0xff] }
 0x1b1   : > { %v8604_v56 = vpop.permute.xlu1 %5624  ;;  %v10895_v35 = vrot.slane %v8097_v22, 1 }
 0x1b2   : > { %10893 = vst [vmem:[#allocation127_spill] sm:$0xff] %v8604_v56  ;;  %v8608_v1 = vsel %vm3343_vm11, %v8485_v37, %v5601_v36  ;;  %v8612_v7 = vsel %vm3343_vm11, %v8489_v32, %v5602_v27  ;;  %5914 = vrot.lane.b32.xlu1 %v10894_v9, %s6365_s17  ;;  %v10897_v37 = vld [vmem:[#allocation125_spill] sm:$0xff] }
 0x1b3   : > { %v5610_v29 = vpop.permute.xlu0 %5609  ;;  %v5923_v11 = vpack.i.bf16 %v10895_v35, %v8172_v4  ;;  %v5908_v36 = vpack.i.bf16 %v10898_v3, %v10897_v37  ;;  %v4832_v4 = vld [vmem:[%s7205_s21 + $0x78] sm:$0xff]   ;;  %v4799_v35 = vunpack.c.l.bf16 %v4798_v12  ;;  %v5933_v37 = vpack.i.bf16 %v8126_v63, %v10901_v41 }
 0x1b4   : > { %v5612_v55 = vunpack.i.h.bf16 %v5610_v29  ;;  %v5611_v8 = vunpack.i.l.bf16 %v5610_v29  ;;  %5899 = vrot.lane.b32.xlu0 %v10896_v45, %s6365_s17  ;;  %v4800_v3 = vunpack.c.h.bf16 %v4798_v12 }
 0x1b5   : > { %v8624_v32 = vpop.permute.xlu1 %5634  ;;  %v1036_v18 = vmul.f32 0.0, %v4799_v35 }
 0x1b6   : > { %10899 = vst [vmem:[#allocation106_spill] sm:$0xff] %v8624_v32  ;;  %v8628_v27 = vsel %vm3343_vm11, %v8499_v5, %v5611_v8  ;;  %v8632_v56 = vsel %vm3343_vm11, %v8503_v46, %v5612_v55  ;;  %5924 = vrot.lane.b32.xlu1 %v5923_v11, %s6365_s17  ;;  %v10902_v5 = vrot.slane %v7906_v17, 1  ;;  %v4791_v46 = vunpack.c.l.bf16 %v4832_v4 }
 0x1b7   : > { %v8635_v29 = vpop.permute.xlu0 %5619  ;;  %v4792_v55 = vunpack.c.h.bf16 %v4832_v4  ;;  %v8656_v11 = vmul.f32 0.0, %v4800_v3  ;;  %v1125_v35 = vrot.slane %v1036_v18, 7 }
 0x1b8   : > { %10900 = vst [vmem:[#allocation124_spill] sm:$0xff] %v8635_v29  ;;  %5909 = vrot.lane.b32.xlu0 %v5908_v36, %s6365_s17  ;;  %v5918_v8 = vpack.i.bf16 %v8167_v21, %v10902_v5  ;;  %v1122_v12 = vrot.slane %v4791_v46, 7  ;;  %v10906_v46 = vld [vmem:[#allocation108_spill] sm:$0xff] }
 0x1b9   : > { %v5645_v32 = vpop.permute.xlu1 %5644  ;;  %v1123_v36 = vrot.slane %v4792_v55, 7  ;;  %v1126_v18 = vrot.slane %v8656_v11, 7  ;;  %v10907_v55 = vrot.slane %v10848_v33, 1 }
 0x1ba   : > { %v5647_v31 = vunpack.i.h.bf16 %v5645_v32  ;;  %v5646_v24 = vunpack.i.l.bf16 %v5645_v32  ;;  %5934 = vrot.lane.b32.xlu1 %v5933_v37, %s6365_s17 }
 0x1bb   : > { %v8645_v29 = vpop.permute.xlu0 %5629 }
 0x1bc   : > { %10903 = vst [vmem:[#allocation126_spill] sm:$0xff] %v8645_v29  ;;  %v8650_v63 = vsel %vm3343_vm11, %v8517_v34, %v5646_v24  ;;  %v8654_v41 = vsel %vm3343_vm11, %v8521_v19, %v5647_v31  ;;  %5919 = vrot.lane.b32.xlu0 %v5918_v8, %s6365_s17  ;;  %v10904_v24 = vrot.slane %v8145_v14, 1  ;;  %v10905_v8 = vld [vmem:[#allocation123_spill] sm:$0xff] }
 0x1bd   : > { %v5655_v21 = vpop.permute.xlu1 %5654 }
 0x1be   : > { %v5657_v32 = vunpack.i.h.bf16 %v5655_v21  ;;  %v5656_v4 = vunpack.i.l.bf16 %v5655_v21  ;;  %5944 = vrot.lane.b32.xlu1 %v8090_v50, %s6365_s17  ;;  %v5953_v34 = vpack.i.bf16 %v10904_v24, %v8236_v62  ;;  %v5938_v21 = vpack.i.bf16 %v10907_v55, %v10906_v46  ;;  %v10912_v24 = vld [vmem:[#allocation62_spill] sm:$0xff] }
 0x1bf   : > { %v5640_v5 = vpop.permute.xlu0 %5639 }
 0x1c0   : > { %v5642_v31 = vunpack.i.h.bf16 %v5640_v5  ;;  %v5641_v19 = vunpack.i.l.bf16 %v5640_v5  ;;  %v8666_v37 = vsel %vm3343_vm11, %v8529_v58, %v5656_v4  ;;  %v8670_v3 = vsel %vm3343_vm11, %v8533_v53, %v5657_v32  ;;  %5929 = vrot.lane.b32.xlu0 %v10905_v8, %s6365_s17 }
 0x1c1   : > { %v8678_v62 = vpop.permute.xlu1 %5664  ;;  %v8681_v5 = vsel %vm819_vm0, %v1122_v12, %v1123_v36  ;;  %v8684_v58 = vsel %vm819_vm0, %v1123_v36, 0.0  ;;  %v10911_v4 = vrot.slane %v7910_v15, 1 }
 0x1c2   : > { %10908 = vst [vmem:[#allocation128_spill] sm:$0xff] %v8678_v62  ;;  %10909 = vst [vmem:[#allocation121_spill] sm:$0xff] %v8681_v5  ;;  %v8688_v53 = vsel %vm3343_vm11, %v8541_v60, %v5641_v19  ;;  %v8692_v11 = vsel %vm3343_vm11, %v8545_v20, %v5642_v31  ;;  %5954 = vrot.lane.b32.xlu1 %v5953_v34, %s6365_s17  ;;  %v2781_v36 = vrot.slane %v8681_v5, 1  ;;  %v2783_v62 = vrot.slane %v8684_v58, 1 }
 0x1c3   : > { %10910 = vst [vmem:[#allocation125_spill] sm:$0xff] %v8684_v58  ;;  %v5650_v32 = vpop.permute.xlu0 %5649  ;;  %v5963_v46 = vpack.i.bf16 %v10912_v24, %v10911_v4  ;;  %v10913_v60 = vrot.slane %v7967_v47, 1  ;;  %v8707_v34 = vsel %vm819_vm0, %v1125_v35, %v1126_v18  ;;  %v8710_v19 = vsel %vm819_vm0, 0.0, %v1125_v35  ;;  %v10923_v58 = vld [vmem:[#allocation133_spill] sm:$0xff] }
 0x1c4   : > { %v5652_v55 = vunpack.i.h.bf16 %v5650_v32  ;;  %v5651_v29 = vunpack.i.l.bf16 %v5650_v32  ;;  %5939 = vrot.lane.b32.xlu0 %v5938_v21, %s6365_s17  ;;  %10915 = vst [vmem:[#allocation108_spill] sm:$0xff] %v8707_v34  ;;  %10916 = vst [vmem:[#allocation62_spill] sm:$0xff] %v8710_v19  ;;  %v8727_v24 = vsel %vm1248_vm1, %v2781_v36, %v2783_v62  ;;  %v3575_v35 = vrot.slane %v8710_v19, 1 }
 0x1c5   : > { %v5948_v20 = vpack.i.bf16 %v8230_v57, %v10913_v60  ;;  %v8704_v31 = vpop.permute.xlu1 %5674  ;;  %v8724_v57 = vsel %vm819_vm0, 0.0, %v1122_v12  ;;  %10919 = vst [vmem:[#allocation158_spill] sm:$0xff] %v8727_v24  ;;  %v3576_v60 = vrot.slane %v8707_v34, 1  ;;  %v10921_v12 = vld [vmem:[#allocation130_spill] sm:$0xff] }
 0x1c6   : > { %10914 = vst [vmem:[#allocation123_spill] sm:$0xff] %v8704_v31  ;;  %v8714_v32 = vsel %vm3343_vm11, %v8555_v40, %v5651_v29  ;;  %v8718_v4 = vsel %vm3343_vm11, %v8559_v61, %v5652_v55  ;;  %5964 = vrot.lane.b32.xlu1 %v5963_v46, %s6365_s17  ;;  %10918 = vst [vmem:[#allocation157_spill] sm:$0xff] %v8724_v57  ;;  %v2780_v55 = vrot.slane %v8724_v57, 1  ;;  %v10922_v34 = vld [vmem:[#allocation82_spill] sm:$0xff] }
 0x1c7   : > { %v8720_v21 = vpop.permute.xlu0 %5659  ;;  %v5983_v46 = vpack.i.bf16 %v2783_v62, %v8727_v24 }
 0x1c8   : > { %10917 = vst [vmem:[#allocation156_spill] sm:$0xff] %v8720_v21  ;;  %5949 = vrot.lane.b32.xlu0 %v5948_v20, %s6365_s17  ;;  %v8753_v24 = vsel %vm1248_vm1, %v2780_v55, %v2781_v36  ;;  %v10928_v36 = vrot.slane %v10844_v6, 1 }
 0x1c9   : > { %v5685_v40 = vpop.permute.xlu1 %5684 }
 0x1ca   : > { %v5687_v29 = vunpack.i.h.bf16 %v5685_v40  ;;  %v5686_v61 = vunpack.i.l.bf16 %v5685_v40  ;;  %5974 = vrot.lane.b32.xlu1 %v10921_v12, %s6365_s17  ;;  %v3577_v40 = vsel %vm1248_vm1, %v3575_v35, %v3576_v60  ;;  %v8759_v35 = vsel %vm819_vm0, %v1126_v18, 0.0 }
 0x1cb   : > { %v8733_v31 = vpop.permute.xlu0 %5669  ;;  %10927 = vst [vmem:[#allocation133_spill] sm:$0xff] %v8759_v35  ;;  %v5978_v55 = vpack.i.bf16 %v8753_v24, %v10928_v36  ;;  %vm3475_vm0 = vcmask 211968  }
 0x1cc   : > { %10920 = vst [vmem:[#allocation159_spill] sm:$0xff] %v8733_v31  ;;  %v8740_v19 = vsel %vm3376_vm12, %v8578_v39, %v5686_v61  ;;  %v8744_v20 = vsel %vm3376_vm12, %v8582_v59, %v5687_v29  ;;  %5959 = vrot.lane.b32.xlu0 %v10922_v34, %s6365_s17  ;;  %v10924_v31 = vrot.slane %v8115_v26, 1  ;;  %v10925_v59 = vld [vmem:[#allocation77_spill] sm:$0xff] }
 0x1cd   : > { %v5695_v12 = vpop.permute.xlu1 %5694  ;;  %v10926_v29 = vrot.slane %v10925_v59, 1 }
 0x1ce   : > { %v5968_v21 = vpack.i.bf16 %v10924_v31, %v10923_v58  ;;  %v5697_v5 = vunpack.i.h.bf16 %v5695_v12  ;;  %v5696_v62 = vunpack.i.l.bf16 %v5695_v12  ;;  %5984 = vrot.lane.b32.xlu1 %v5983_v46, %s6365_s17  ;;  %v3578_v46 = vrot.slane %v8759_v35, 1 }
 0x1cf   : > { %v5680_v39 = vpop.permute.xlu0 %5679  ;;  %v5993_v61 = vpack.i.bf16 %v3577_v40, %v10926_v29 }
 0x1d0   : > { %v5682_v34 = vunpack.i.h.bf16 %v5680_v39  ;;  %v5681_v57 = vunpack.i.l.bf16 %v5680_v39  ;;  %v8763_v58 = vsel %vm3376_vm12, %v8592_v44, %v5696_v62  ;;  %v8767_v31 = vsel %vm3376_vm12, %v8596_v10, %v5697_v5  ;;  %5969 = vrot.lane.b32.xlu0 %v5968_v21, %s6365_s17  ;;  %v10931_v39 = vld [vmem:[#allocation129_spill] sm:$0xff] }
 0x1d1   : > { %v8773_v12 = vpop.permute.xlu1 %5704 }
 0x1d2   : > { %v8777_v18 = vsel %vm3376_vm12, %v8608_v1, %v5681_v57  ;;  %v8781_v44 = vsel %vm3376_vm12, %v8612_v7, %v5682_v34  ;;  %5994 = vrot.lane.b32.xlu1 %v5993_v61, %s6365_s17  ;;  %v3579_v7 = vsel %vm1248_vm1, %v3576_v60, %v3578_v46  ;;  %v10930_v57 = vld [vmem:[#allocation119_spill] sm:$0xff] }
 0x1d3   : > { %v5690_v10 = vpop.permute.xlu0 %5689  ;;  %v5998_v29 = vpack.i.bf16 %v3578_v46, %v3579_v7 }
 0x1d4   : > { %v5692_v5 = vunpack.i.h.bf16 %v5690_v10  ;;  %v5691_v21 = vunpack.i.l.bf16 %v5690_v10  ;;  %5979 = vrot.lane.b32.xlu0 %v5978_v55, %s6365_s17 }
 0x1d5   : > { %v8786_v40 = vpop.permute.xlu1 %5714 }
 0x1d6   : > { %10929 = vst [vmem:[#allocation160_spill] sm:$0xff] %v8786_v40  ;;  %v8790_v62 = vsel %vm3376_vm12, %v8628_v27, %v5691_v21  ;;  %v8794_v1 = vsel %vm3376_vm12, %v8632_v56, %v5692_v5  ;;  %6004 = vrot.lane.b32.xlu1 %v10930_v57, %s6377_s13  ;;  %v10975_v40 = vld [vmem:[#allocation30_spill] sm:$0xff] }
 0x1d7   : > { %v8797_v34 = vpop.permute.xlu0 %5699 }
 0x1d8   : > { %5989 = vrot.lane.b32.xlu0 %v10931_v39, %s6365_s17 }
 0x1d9   : > { %v5725_v61 = vpop.permute.xlu1 %5724 }
 0x1da   : > { %v5727_v36 = vunpack.i.h.bf16 %v5725_v61  ;;  %v5726_v27 = vunpack.i.l.bf16 %v5725_v61  ;;  %6014 = vrot.lane.b32.xlu1 %v10883_v54, %s6377_s13 }
 0x1db   : > { %v8803_v55 = vpop.permute.xlu0 %5709 }
 0x1dc   : > { %10932 = vst [vmem:[#allocation119_spill] sm:$0xff] %v8803_v55  ;;  %v8809_v56 = vsel %vm3376_vm12, %v8650_v63, %v5726_v27  ;;  %v8813_v60 = vsel %vm3376_vm12, %v8654_v41, %v5727_v36  ;;  %5999 = vrot.lane.b32.xlu0 %v5998_v29, %s6365_s17  ;;  %v10933_v27 = vld [vmem:[#allocation132_spill] sm:$0xff]  ;;  %s6379_s17 = smov 30  }
 0x1dd   : > { %v5735_v10 = vpop.permute.xlu1 %5734 }
 0x1de   : > { %v5737_v46 = vunpack.i.h.bf16 %v5735_v10  ;;  %v5736_v5 = vunpack.i.l.bf16 %v5735_v10  ;;  %6024 = vrot.lane.b32.xlu1 %v8238_v38, %s6378_s26 }
 0x1df   : > { %v5720_v21 = vpop.permute.xlu0 %5719 }
 0x1e0   : > { %v5722_v7 = vunpack.i.h.bf16 %v5720_v21  ;;  %v5721_v54 = vunpack.i.l.bf16 %v5720_v21  ;;  %v3407_v63 = vsel %vm3376_vm12, %v8666_v37, %v5736_v5  ;;  %v3408_v57 = vsel %vm3376_vm12, %v8670_v3, %v5737_v46  ;;  %6009 = vrot.lane.b32.xlu0 %v10931_v39, %s6377_s13 }
 0x1e1   : > { %v8824_v41 = vpop.permute.xlu1 %5744 }
 0x1e2   : > { %v3401_v29 = vsel %vm3376_vm12, %v8688_v53, %v5721_v54  ;;  %v3402_v61 = vsel %vm3376_vm12, %v8692_v11, %v5722_v7  ;;  %6034 = vrot.lane.b32.xlu1 %v8328_v28, %s6378_s26 }
 0x1e3   : > { %v5730_v38 = vpop.permute.xlu0 %5729 }
 0x1e4   : > { %v5732_v36 = vunpack.i.h.bf16 %v5730_v38  ;;  %v5731_v37 = vunpack.i.l.bf16 %v5730_v38  ;;  %6019 = vrot.lane.b32.xlu0 %v10933_v27, %s6377_s13 }
 0x1e5   : > { %v8834_v3 = vpop.permute.xlu1 %5754 }
 0x1e6   : > { %10934 = vst [vmem:[#allocation129_spill] sm:$0xff] %v8834_v3  ;;  %v3405_v39 = vsel %vm3376_vm12, %v8714_v32, %v5731_v37  ;;  %v3406_v53 = vsel %vm3376_vm12, %v8718_v4, %v5732_v36  ;;  %6044 = vrot.lane.b32.xlu1 %v10865_v43, %s6379_s17 }
 0x1e7   : > { %v8840_v10 = vpop.permute.xlu0 %5739 }
 0x1e8   : > { %10935 = vst [vmem:[#allocation132_spill] sm:$0xff] %v8840_v10  ;;  %6029 = vrot.lane.b32.xlu0 %v8256_v0, %s6378_s26 }
 0x1e9   : > { %v5765_v28 = vpop.permute.xlu1 %5764 }
 0x1ea   : > { %v5767_v11 = vunpack.i.h.bf16 %v5765_v28  ;;  %v5766_v46 = vunpack.i.l.bf16 %v5765_v28  ;;  %6054 = vrot.lane.b32.xlu1 %v10872_v51, %s6379_s17 }
 0x1eb   : > { %v8846_v5 = vpop.permute.xlu0 %5749 }
 0x1ec   : > { %10936 = vst [vmem:[#allocation161_spill] sm:$0xff] %v8846_v5  ;;  %v8852_v32 = vsel %vm3409_vm13, %v8740_v19, %v5766_v46  ;;  %v8856_v4 = vsel %vm3409_vm13, %v8744_v20, %v5767_v11  ;;  %6039 = vrot.lane.b32.xlu0 %v8258_v42, %s6378_s26  ;;  %v10973_v5 = vld [vmem:[#allocation19_spill] sm:$0xff] }
 0x1ed   : > { %10937 = vst [vmem:[#allocation162_spill] sm:$0xff] %v8852_v32  ;;  %10938 = vst [vmem:[#allocation163_spill] sm:$0xff] %v8856_v4  ;;  %v5775_v0 = vpop.permute.xlu1 %5774  ;;  %v5026_v3 = vunpack.i.l.bf16 %v10973_v5 }
 0x1ee   : > { %v5777_v43 = vunpack.i.h.bf16 %v5775_v0  ;;  %v5776_v21 = vunpack.i.l.bf16 %v5775_v0 }
 0x1ef   : > { %v5760_v7 = vpop.permute.xlu0 %5759 }
 0x1f0   : > { %v5762_v54 = vunpack.i.h.bf16 %v5760_v7  ;;  %v5761_v38 = vunpack.i.l.bf16 %v5760_v7  ;;  %v8862_v51 = vsel %vm3409_vm13, %v8763_v58, %v5776_v21  ;;  %v8866_v19 = vsel %vm3409_vm13, %v8767_v31, %v5777_v43  ;;  %6049 = vrot.lane.b32.xlu0 %v10876_v23, %s6379_s17 }
 0x1f1   : > { %v8870_v20 = vpop.permute.xlu1 %5784 }
 0x1f2   : > { %10939 = vst [vmem:[#allocation164_spill] sm:$0xff] %v8870_v20  ;;  %v8874_v42 = vsel %vm3409_vm13, %v8777_v18, %v5761_v38  ;;  %v8878_v36 = vsel %vm3409_vm13, %v8781_v44, %v5762_v54 }
 0x1f3   : > { %10940 = vst [vmem:[#allocation165_spill] sm:$0xff] %v8874_v42  ;;  %10941 = vst [vmem:[#allocation166_spill] sm:$0xff] %v8878_v36  ;;  %v5770_v37 = vpop.permute.xlu0 %5769  ;;  %v10958_v36 = vld [vmem:[#allocation10_spill] sm:$0xff] }
 0x1f4   : > { %v5772_v58 = vunpack.i.h.bf16 %v5770_v37  ;;  %v5771_v27 = vunpack.i.l.bf16 %v5770_v37  ;;  %6059 = vrot.lane.b32.xlu0 %v10886_v48, %s6379_s17  ;;  %v4982_v42 = vunpack.i.h.bf16 %v10958_v36 }
 0x1f5   : > { %v8882_v31 = vpop.permute.xlu1 %5794 }
 0x1f6   : > { %10942 = vst [vmem:[#allocation167_spill] sm:$0xff] %v8882_v31  ;;  %v8886_v23 = vsel %vm3409_vm13, %v8790_v62, %v5771_v27  ;;  %v8890_v18 = vsel %vm3409_vm13, %v8794_v1, %v5772_v58 }
 0x1f7   : > { %v8892_v28 = vpop.permute.xlu0 %5779 }
 0x1f8   : > { %10943 = vst [vmem:[#allocation168_spill] sm:$0xff] %v8892_v28 }
 0x1f9   : > { %v5805_v44 = vpop.permute.xlu1 %5804 }
 0x1fa   : > { %v5807_v11 = vunpack.i.h.bf16 %v5805_v44  ;;  %v5806_v46 = vunpack.i.l.bf16 %v5805_v44 }
 0x1fb   : > { %v8894_v0 = vpop.permute.xlu0 %5789 }
 0x1fc   : > { %10944 = vst [vmem:[#allocation169_spill] sm:$0xff] %v8894_v0  ;;  %v8898_v48 = vsel %vm3409_vm13, %v8809_v56, %v5806_v46  ;;  %v8902_v43 = vsel %vm3409_vm13, %v8813_v60, %v5807_v11 }
 0x1fd   : > { %10945 = vst [vmem:[#allocation170_spill] sm:$0xff] %v8898_v48  ;;  %10946 = vst [vmem:[#allocation171_spill] sm:$0xff] %v8902_v43  ;;  %v5815_v62 = vpop.permute.xlu1 %5814 }
 0x1fe   : > { %v5817_v21 = vunpack.i.h.bf16 %v5815_v62  ;;  %v5816_v7 = vunpack.i.l.bf16 %v5815_v62  ;;  %v10950_v62 = vld [vmem:[#allocation8_spill] sm:$0xff] }
 0x1ff   : > { %v5800_v1 = vpop.permute.xlu0 %5799  ;;  %v4947_v48 = vunpack.i.h.bf16 %v10950_v62 }
 0x200   : > { %v5802_v54 = vunpack.i.h.bf16 %v5800_v1  ;;  %v5801_v38 = vunpack.i.l.bf16 %v5800_v1  ;;  %v8905_v37 = vsel %vm3409_vm13, %v3407_v63, %v5816_v7  ;;  %v8908_v58 = vsel %vm3409_vm13, %v3408_v57, %v5817_v21  ;;  %v10952_v7 = vld [vmem:[#allocation11_spill] sm:$0xff] }
 0x201   : > { %10947 = vst [vmem:[#allocation172_spill] sm:$0xff] %v8905_v37  ;;  %10948 = vst [vmem:[#allocation173_spill] sm:$0xff] %v8908_v58  ;;  %v8910_v27 = vpop.permute.xlu1 %5824  ;;  %v4946_v1 = vunpack.i.l.bf16 %v10950_v62  ;;  %v4942_v57 = vunpack.i.h.bf16 %v10952_v7  ;;  %v4941_v21 = vunpack.i.l.bf16 %v10952_v7  ;;  %v10960_v7 = vld [vmem:[#allocation2_spill] sm:$0xff] }
 0x202   : > { %10949 = vst [vmem:[#allocation174_spill] sm:$0xff] %v8910_v27  ;;  %v8913_v56 = vsel %vm3409_vm13, %v3401_v29, %v5801_v38  ;;  %v8916_v60 = vsel %vm3409_vm13, %v3402_v61, %v5802_v54  ;;  %v10955_v61 = vld [vmem:[#allocation9_spill] sm:$0xff] }
 0x203   : > { %v5810_v44 = vpop.permute.xlu0 %5809  ;;  %v4952_v54 = vunpack.i.h.bf16 %v10955_v61  ;;  %v4951_v38 = vunpack.i.l.bf16 %v10955_v61 }
 0x204   : > { %v5812_v11 = vunpack.i.h.bf16 %v5810_v44  ;;  %v5811_v46 = vunpack.i.l.bf16 %v5810_v44  ;;  %v10956_v44 = vld [vmem:[#allocation15_spill] sm:$0xff] }
 0x205   : > { %v8920_v63 = vpop.permute.xlu1 %5834  ;;  %v4977_v58 = vunpack.i.h.bf16 %v10956_v44  ;;  %v4976_v62 = vunpack.i.l.bf16 %v10956_v44  ;;  %v10964_v44 = vld [vmem:[#allocation6_spill] sm:$0xff] }
 0x206   : > { %10951 = vst [vmem:[#allocation8_spill] sm:$0xff] %v8920_v63  ;;  %v8925_v37 = vsel %vm3409_vm13, %v3405_v39, %v5811_v46  ;;  %v8928_v29 = vsel %vm3409_vm13, %v3406_v53, %v5812_v11  ;;  %v3085_v39 = vsel %vm3079_vm3, %v10960_v7, %v4947_v48  ;;  %v10961_v46 = vld [vmem:[#allocation3_spill] sm:$0xff]  ;;  %v10962_v11 = vld [vmem:[#allocation4_spill] sm:$0xff]  ;;  %v3087_v32 = vsel %vm3079_vm3, %v10964_v44, %v4952_v54  ;;  %v10967_v48 = vld [vmem:[#allocation13_spill] sm:$0xff] }
 0x207   : > { %10953 = vst [vmem:[#allocation11_spill] sm:$0xff] %v8925_v37  ;;  %10954 = vst [vmem:[#allocation175_spill] sm:$0xff] %v8928_v29  ;;  %v8934_v43 = vpop.permute.xlu0 %5819  ;;  %v8943_v53 = vsel %vm3079_vm3, %v10961_v46, %v4946_v1  ;;  %v3083_v61 = vsel %vm3079_vm3, %v10962_v11, %v4942_v57  ;;  %v10963_v29 = vld [vmem:[#allocation5_spill] sm:$0xff]  ;;  %v10965_v63 = vld [vmem:[#allocation7_spill] sm:$0xff]  ;;  %v8959_v1 = vsel %vm3079_vm3, %v10967_v48, %v4976_v62 }
 0x208   : > { %10957 = vst [vmem:[#allocation9_spill] sm:$0xff] %v8934_v43  ;;  %v3082_v37 = vsel %vm3079_vm3, %v10963_v29, %v4941_v21  ;;  %v3086_v0 = vsel %vm3079_vm3, %v10965_v63, %v4951_v38  ;;  %v10969_v57 = vld [vmem:[#allocation16_spill] sm:$0xff]  ;;  %v4981_v21 = vunpack.i.l.bf16 %v10958_v36  ;;  %v10970_v29 = vld [vmem:[#allocation26_spill] sm:$0xff]  ;;  %v10974_v36 = vld [vmem:[#allocation33_spill] sm:$0xff]  ;;  %v5037_v43 = vunpack.i.h.bf16 %v10975_v40 }
 0x209   : > { %v8937_v4 = vpop.permute.xlu1 %5844  ;;  %v3099_v46 = vsel %vm3079_vm3, %v10969_v57, %v4982_v42  ;;  %v4987_v54 = vunpack.i.h.bf16 %v10970_v29  ;;  %v4986_v11 = vunpack.i.l.bf16 %v10970_v29  ;;  %v10971_v63 = vld [vmem:[#allocation14_spill] sm:$0xff]  ;;  %v5021_v55 = vunpack.i.l.bf16 %v10974_v36 }
 0x20a   : > { %10959 = vst [vmem:[#allocation15_spill] sm:$0xff] %v8937_v4  ;;  %v10966_v4 = vld [vmem:[#allocation12_spill] sm:$0xff]  ;;  %v4997_v38 = vunpack.i.h.bf16 %v10971_v63  ;;  %v5036_v29 = vunpack.i.l.bf16 %v10975_v40  ;;  %v10981_v40 = vld [vmem:[#allocation18_spill] sm:$0xff] }
 0x20b   : > { %v8955_v31 = vsel %vm3079_vm3, %v10966_v4, %v4977_v58  ;;  %v8961_v7 = vpop.permute.xlu0 %5829  ;;  %v4996_v4 = vunpack.i.l.bf16 %v10971_v63  ;;  %v10972_v58 = vld [vmem:[#allocation32_spill] sm:$0xff]  ;;  %v10977_v63 = vld [vmem:[#allocation17_spill] sm:$0xff]  ;;  %v3080_v59 = vsel %vm3079_vm3, %v10981_v40, %v4986_v11 }
 0x20c   : > { %10968 = vst [vmem:[#allocation10_spill] sm:$0xff] %v8961_v7  ;;  %v4992_v44 = vunpack.i.h.bf16 %v10972_v58  ;;  %v4991_v62 = vunpack.i.l.bf16 %v10972_v58  ;;  %v5027_v7 = vunpack.i.h.bf16 %v10973_v5  ;;  %v3098_v28 = vsel %vm3079_vm3, %v10977_v63, %v4981_v21  ;;  %v10983_v21 = vld [vmem:[#allocation22_spill] sm:$0xff] }
 0x20d   : > { %v5855_v48 = vpop.permute.xlu1 %5854  ;;  %v5022_v58 = vunpack.i.h.bf16 %v10974_v36  ;;  %v3102_v36 = vsel %vm3079_vm3, %v10983_v21, %v4996_v4  ;;  %v3113_v11 = vsel %vm3112_vm4, %v3080_v59, %v5021_v55 }
 0x20e   : > { %v5857_v42 = vunpack.i.h.bf16 %v5855_v48  ;;  %v5856_v57 = vunpack.i.l.bf16 %v5855_v48  ;;  %v10980_v48 = vld [vmem:[#allocation20_spill] sm:$0xff] }
 0x20f   : > { %v8977_v27 = vpop.permute.xlu0 %5839  ;;  %v3081_v35 = vsel %vm3079_vm3, %v10980_v48, %v4987_v54  ;;  %v3116_v54 = vsel %vm3112_vm4, %v3083_v61, %v5027_v7  ;;  %v3120_v48 = vsel %vm3112_vm4, %v3087_v32, %v5037_v43  ;;  %v10991_v32 = vld [vmem:[#allocation49_spill] sm:$0xff] }
 0x210   : > { %10976 = vst [vmem:[#allocation2_spill] sm:$0xff] %v8977_v27  ;;  %v8984_v20 = vsel %vm3442_vm14, %v8862_v51, %v5856_v57  ;;  %v8988_v5 = vsel %vm3442_vm14, %v8866_v19, %v5857_v42  ;;  %v10982_v27 = vld [vmem:[#allocation21_spill] sm:$0xff]  ;;  %v10985_v51 = vld [vmem:[#allocation24_spill] sm:$0xff]  ;;  %v3115_v42 = vsel %vm3112_vm4, %v3082_v37, %v5026_v3  ;;  %v3114_v21 = vsel %vm3112_vm4, %v3081_v35, %v5022_v58  ;;  %v10994_v58 = vld [vmem:[#allocation50_spill] sm:$0xff] }
 0x211   : > { %10978 = vst [vmem:[#allocation3_spill] sm:$0xff] %v8984_v20  ;;  %10979 = vst [vmem:[#allocation4_spill] sm:$0xff] %v8988_v5  ;;  %v3103_v6 = vsel %vm3079_vm3, %v10982_v27, %v4997_v38  ;;  %v8998_v63 = vpop.permute.xlu1 %5864  ;;  %v3101_v57 = vsel %vm3079_vm3, %v10985_v51, %v4992_v44  ;;  %v10986_v20 = vld [vmem:[#allocation23_spill] sm:$0xff]  ;;  %v3119_v27 = vsel %vm3112_vm4, %v3086_v0, %v5036_v29  ;;  %v10987_v38 = vld [vmem:[#allocation36_spill] sm:$0xff]  ;;  %v5062_v0 = vunpack.i.h.bf16 %v10991_v32 }
 0x212   : > { %10984 = vst [vmem:[#allocation5_spill] sm:$0xff] %v8998_v63  ;;  %v3100_v19 = vsel %vm3079_vm3, %v10986_v20, %v4991_v62  ;;  %v5032_v4 = vunpack.i.h.bf16 %v10987_v38  ;;  %v5031_v44 = vunpack.i.l.bf16 %v10987_v38  ;;  %v10988_v20 = vld [vmem:[#allocation47_spill] sm:$0xff]  ;;  %v10989_v37 = vld [vmem:[#allocation48_spill] sm:$0xff]  ;;  %v5061_v43 = vunpack.i.l.bf16 %v10991_v32 }
 0x213   : > { %v5850_v40 = vpop.permute.xlu0 %5849  ;;  %v5067_v62 = vunpack.i.h.bf16 %v10988_v20  ;;  %v5066_v3 = vunpack.i.l.bf16 %v10988_v20  ;;  %v5077_v61 = vunpack.i.h.bf16 %v10989_v37  ;;  %v5076_v59 = vunpack.i.l.bf16 %v10989_v37  ;;  %v10995_v20 = vld [vmem:[#allocation51_spill] sm:$0xff] }
 0x214   : > { %v5852_v51 = vunpack.i.h.bf16 %v5850_v40  ;;  %v5851_v5 = vunpack.i.l.bf16 %v5850_v40  ;;  %v3118_v29 = vsel %vm3112_vm4, %v3085_v39, %v5032_v4  ;;  %v5072_v38 = vunpack.i.h.bf16 %v10994_v58 }
 0x215   : > { %v9016_v55 = vpop.permute.xlu1 %5874  ;;  %v5071_v40 = vunpack.i.l.bf16 %v10994_v58  ;;  %v5106_v37 = vunpack.i.l.bf16 %v10995_v20  ;;  %v3117_v32 = vsel %vm3112_vm4, %v8943_v53, %v5031_v44  ;;  %v3131_v39 = vsel %vm3112_vm4, %v3098_v28, %v5066_v3  ;;  %v10998_v58 = vld [vmem:[#allocation54_spill] sm:$0xff] }
 0x216   : > { %10990 = vst [vmem:[#allocation6_spill] sm:$0xff] %v9016_v55  ;;  %v9022_v35 = vsel %vm3442_vm14, %v8886_v23, %v5851_v5  ;;  %v9026_v7 = vsel %vm3442_vm14, %v8890_v18, %v5852_v51  ;;  %v5107_v23 = vunpack.i.h.bf16 %v10995_v20  ;;  %v10997_v5 = vld [vmem:[#allocation53_spill] sm:$0xff]  ;;  %v3132_v51 = vsel %vm3112_vm4, %v3099_v46, %v5067_v62  ;;  %v11001_v20 = vld [vmem:[#allocation56_spill] sm:$0xff] }
 0x217   : > { %10992 = vst [vmem:[#allocation7_spill] sm:$0xff] %v9022_v35  ;;  %10993 = vst [vmem:[#allocation12_spill] sm:$0xff] %v9026_v7  ;;  %v9032_v55 = vpop.permute.xlu0 %5859  ;;  %v5117_v35 = vunpack.i.h.bf16 %v10997_v5  ;;  %v5116_v18 = vunpack.i.l.bf16 %v10997_v5  ;;  %v3136_v4 = vsel %vm3112_vm4, %v3103_v6, %v5077_v61  ;;  %v5101_v7 = vunpack.i.l.bf16 %v10998_v58 }
 0x218   : > { %10996 = vst [vmem:[#allocation13_spill] sm:$0xff] %v9032_v55  ;;  %v6338_v55 = vld [vmem:[%s10255_s6] sm:$0xff]   ;;  %v3129_v53 = vsel %vm3112_vm4, %v8959_v1, %v5061_v43  ;;  %v9050_v44 = vsel %vm3112_vm4, %v8955_v31, %v5062_v0  ;;  %v3135_v46 = vsel %vm3112_vm4, %v3102_v36, %v5076_v59  ;;  %v5102_v28 = vunpack.i.h.bf16 %v10998_v58 }
 0x219   : > { %v5885_v63 = vpop.permute.xlu1 %5884  ;;  %v9055_v6 = vsel %vm3112_vm4, %v3100_v19, %v5071_v40  ;;  %v9058_v62 = vsel %vm3112_vm4, %v3101_v57, %v5072_v38  ;;  %v9061_v3 = vsel %vm3145_vm5, %v3115_v42, %v5106_v37  ;;  %4852 = vmatprep.subr.bf16.mxu0 %v6338_v55  ;;  %4890 = vmatprep.subr.bf16.mxu1 %v6338_v55  ;;  %v11000_v19 = vld [vmem:[#allocation55_spill] sm:$0xff] }
 0x21a   : > { %v9066_v31 = vsel %vm3145_vm5, %v3116_v54, %v5107_v23  ;;  %v9069_v1 = vsel %vm3145_vm5, %v3119_v27, %v5116_v18  ;;  %v9072_v36 = vsel %vm3145_vm5, %v3120_v48, %v5117_v35  ;;  %4853 = vmatpush3.bf16.msra.mxu0 %v6338_v55  ;;  %4893 = vmatpush3.bf16.msra.mxu1 %v6338_v55  ;;  %v5112_v42 = vunpack.i.h.bf16 %v11000_v19  ;;  %v11002_v55 = vld [vmem:[#allocation57_spill] sm:$0xff]  ;;  %v6339_v23 = vld [vmem:[%s10255_s6 + $0x8] sm:$0xff]  }
 0x21b   : > { %v9063_v61 = vpop.permute.xlu0 %5869  ;;  %v9075_v57 = vsel %vm3145_vm5, %v3113_v11, %v5101_v7  ;;  %v5111_v59 = vunpack.i.l.bf16 %v11000_v19  ;;  %v5887_v0 = vunpack.i.h.bf16 %v5885_v63  ;;  %v9080_v54 = vsel %vm3145_vm5, %v3114_v21, %v5102_v28  ;;  %v11003_v21 = vld [vmem:[#allocation93_spill] sm:$0xff]  ;;  %4854 = vmatprep.subr.bf16.mxu0 %v6339_v23  ;;  %4891 = vmatprep.subr.bf16.mxu1 %v6339_v23 }
 0x21c   : > { %10999 = vst [vmem:[#allocation16_spill] sm:$0xff] %v9063_v61  ;;  %v5886_v38 = vunpack.i.l.bf16 %v5885_v63  ;;  %v5147_v48 = vunpack.i.h.bf16 %v11001_v20  ;;  %v5146_v35 = vunpack.i.l.bf16 %v11001_v20  ;;  %v5157_v37 = vunpack.i.h.bf16 %v11002_v55 }
 0x21d   : > { %v5895_v43 = vpop.permute.xlu1 %5894  ;;  %v5156_v11 = vunpack.i.l.bf16 %v11002_v55  ;;  %v9094_v28 = vsel %vm3145_vm5, %v3117_v32, %v5111_v59  ;;  %v9097_v19 = vsel %vm3145_vm5, %v3118_v29, %v5112_v42  ;;  %v11005_v55 = vld [vmem:[#allocation52_spill] sm:$0xff] }
 0x21e   : > { %v5897_v27 = vunpack.i.h.bf16 %v5895_v43  ;;  %v5896_v40 = vunpack.i.l.bf16 %v5895_v43  ;;  %v11004_v43 = vld [vmem:[#allocation58_spill] sm:$0xff]  ;;  %v3725_v61 = vsel %vm3079_vm3, %v11005_v55, %v5887_v0  ;;  %4855 = vmatpush3.bf16.msra.mxu0 %v6339_v23  ;;  %4894 = vmatpush3.bf16.msra.mxu1 %v6339_v23  ;;  %v9113_v42 = vsel %vm3145_vm5, %v3131_v39, %v5146_v35 }
 0x21f   : > { %v5880_v7 = vpop.permute.xlu0 %5879  ;;  %v5141_v20 = vunpack.i.l.bf16 %v11004_v43  ;;  %v9116_v59 = vsel %vm3145_vm5, %v3132_v51, %v5147_v48  ;;  %v3821_v51 = vrot.slane %v3725_v61, 1  ;;  %v5142_v35 = vunpack.i.h.bf16 %v11004_v43 }
 0x220   : > { %v5882_v5 = vunpack.i.h.bf16 %v5880_v7  ;;  %v5881_v18 = vunpack.i.l.bf16 %v5880_v7  ;;  %v3750_v63 = vsel %vm3079_vm3, %v8013_v30, %v5897_v27  ;;  %v3749_v58 = vsel %vm3079_vm3, %v11003_v21, %v5896_v40  ;;  %v11006_v7 = vld [vmem:[#allocation39_spill] sm:$0xff] }
 0x221   : > { %v5905_v10 = vpop.permute.xlu1 %5904  ;;  %v3724_v30 = vsel %vm3079_vm3, %v11006_v7, %v5886_v38  ;;  %v3863_v0 = vrot.slane %v3750_v63, 1  ;;  %v3861_v40 = vrot.slane %v3749_v58, 1  ;;  %v9128_v39 = vsel %vm3145_vm5, %v3129_v53, %v5141_v20  ;;  %v11007_v63 = vld [vmem:[#allocation94_spill] sm:$0xff]  ;;  %v11008_v20 = vld [vmem:[#allocation60_spill] sm:$0xff] }
 0x222   : > { %v9106_v27 = vsel %vm3442_vm14, %v8913_v56, %v5881_v18  ;;  %v9110_v32 = vsel %vm3442_vm14, %v8916_v60, %v5882_v5  ;;  %v5906_v29 = vunpack.i.l.bf16 %v5905_v10  ;;  %v6340_v56 = vld [vmem:[%s10255_s6 + $0x10] ss:$0 sps:$4 sm:$0x33]   ;;  %v9122_v18 = vsel %vm3145_vm5, %v3135_v46, %v5156_v11 }
 0x223   : > { %v5890_v38 = vpop.permute.xlu0 %5889  ;;  %v9125_v60 = vsel %vm3145_vm5, %v3136_v4, %v5157_v37  ;;  %v3820_v48 = vrot.slane %v3724_v30, 1  ;;  %4896 = vmatprep.subr.msk.bf16.mxu0 %vm4121_vm15, %v6340_v56  ;;  %4897 = vmatprep.subr.msk.bf16.mxu1 %vm4121_vm15, %v6340_v56  ;;  %v3864_v61 = vsel %vm1248_vm1, %v3861_v40, %v3863_v0  ;;  %v4123_v58 = vsel %vm4121_vm15, %v6340_v56, 0 }
 0x224   : > { %v5892_v23 = vunpack.i.h.bf16 %v5890_v38  ;;  %v5891_v5 = vunpack.i.l.bf16 %v5890_v38  ;;  %v3729_v4 = vsel %vm3079_vm3, %v7835_v49, %v5906_v29  ;;  %v5151_v55 = vunpack.i.l.bf16 %v11008_v20  ;;  %4857 = vmatpush3.bf16.msra.mxu0 %v4123_v58  ;;  %4895 = vmatpush3.bf16.msra.mxu1 %v4123_v58 }
 0x225   : > { %v5907_v43 = vunpack.i.h.bf16 %v5905_v10  ;;  %v3828_v38 = vrot.slane %v3729_v4, 1  ;;  %v3822_v49 = vsel %vm1248_vm1, %v3820_v48, %v3821_v51  ;;  %v9148_v10 = vsel %vm3145_vm5, %v9050_v44, %v5142_v35  ;;  %v11011_v48 = vld [vmem:[#allocation92_spill] sm:$0xff]  ;;  %v11012_v44 = vld [vmem:[#allocation61_spill] sm:$0xff] }
 0x226   : > { %v3748_v21 = vsel %vm3079_vm3, %v11007_v63, %v5892_v23  ;;  %v3726_v46 = vsel %vm3079_vm3, %v7839_v52, %v5891_v5  ;;  %v11009_v23 = vld [vmem:[#allocation37_spill] sm:$0xff]  ;;  %v5187_v35 = vunpack.i.h.bf16 %v11012_v44 }
 0x227   : > { %v3860_v37 = vrot.slane %v3748_v21, 1  ;;  %v3823_v11 = vrot.slane %v3726_v46, 1  ;;  %v5900_v53 = vpop.permute.xlu0 %5899  ;;  %v11010_v63 = vld [vmem:[#allocation25_spill] sm:$0xff]  ;;  %v5152_v46 = vunpack.i.h.bf16 %v11008_v20 }
 0x228   : > { %v5902_v7 = vunpack.i.h.bf16 %v5900_v53  ;;  %v5901_v30 = vunpack.i.l.bf16 %v5900_v53 }
 0x229   : > { %v3862_v52 = vsel %vm1248_vm1, %v3860_v37, %v3861_v40  ;;  %v3824_v29 = vsel %vm1248_vm1, %v3821_v51, %v3823_v11  ;;  %v9153_v51 = vsel %vm3145_vm5, %v9055_v6, %v5151_v55  ;;  %v3751_v11 = vsel %vm3079_vm3, %v11011_v48, %v5907_v43  ;;  %v11013_v6 = vld [vmem:[#allocation65_spill] sm:$0xff] }
 0x22a   : > { %v3728_v5 = vsel %vm3079_vm3, %v11009_v23, %v5902_v7  ;;  %v3727_v0 = vsel %vm3079_vm3, %v11010_v63, %v5901_v30  ;;  %v6068_v56 = vpack.i.bf16 %v3864_v61, %v3862_v52  ;;  %v6063_v21 = vpack.i.bf16 %v3824_v29, %v3822_v49  ;;  %v11014_v52 = vld [vmem:[#allocation91_spill] sm:$0xff] }
 0x22b   : > { %v3826_v4 = vrot.slane %v3728_v5, 1  ;;  %v3825_v40 = vrot.slane %v3727_v0, 1  ;;  %v5910_v37 = vpop.permute.xlu0 %5909  ;;  %v5186_v61 = vunpack.i.l.bf16 %v11012_v44  ;;  %v5197_v55 = vunpack.i.h.bf16 %v11013_v6  ;;  %v5915_v44 = vpop.permute.xlu1 %5914 }
 0x22c   : > { %v5912_v53 = vunpack.i.h.bf16 %v5910_v37  ;;  %v5911_v58 = vunpack.i.l.bf16 %v5910_v37  ;;  %6069 = vrot.lane.b32.xlu0 %v6068_v56, %s6380_s22  ;;  %6064 = vrot.lane.b32.xlu1 %v6063_v21, %s6380_s22  ;;  %v5196_v30 = vunpack.i.l.bf16 %v11013_v6  ;;  %v3865_v29 = vrot.slane %v3751_v11, 1  ;;  %v11015_v56 = vld [vmem:[#allocation66_spill] sm:$0xff]  ;;  %v11018_v6 = vld [vmem:[#allocation69_spill] sm:$0xff] }
 0x22d   : > { %v3827_v20 = vsel %vm1248_vm1, %v3825_v40, %v3826_v4  ;;  %v3829_v7 = vsel %vm1248_vm1, %v3826_v4, %v3828_v38  ;;  %v3167_v0 = vsel %vm3145_vm5, %v9058_v62, %v5152_v46  ;;  %v5182_v21 = vunpack.i.h.bf16 %v11015_v56  ;;  %v11016_v4 = vld [vmem:[#allocation67_spill] sm:$0xff]  ;;  %v11017_v46 = vld [vmem:[#allocation68_spill] sm:$0xff] }
 0x22e   : > { %v3753_v43 = vsel %vm3079_vm3, %v7994_v13, %v5912_v53  ;;  %v3752_v49 = vsel %vm3079_vm3, %v11014_v52, %v5911_v58  ;;  %v6073_v63 = vpack.i.bf16 %v3829_v7, %v3827_v20  ;;  %v5181_v38 = vunpack.i.l.bf16 %v11015_v56  ;;  %v11023_v56 = vld [vmem:[#allocation29_spill] sm:$0xff] }
 0x22f   : > { %v3868_v23 = vrot.slane %v3753_v43, 1  ;;  %v3866_v5 = vrot.slane %v3752_v49, 1  ;;  %v5191_v40 = vunpack.i.l.bf16 %v11016_v4  ;;  %v5192_v37 = vunpack.i.h.bf16 %v11016_v4  ;;  %v5925_v4 = vpop.permute.xlu1 %5924 }
 0x230   : > { %6074 = vrot.lane.b32.xlu1 %v6073_v63, %s6380_s22  ;;  %v3181_v11 = vsel %vm3178_vm6, %v9061_v3, %v5186_v61  ;;  %v3182_v62 = vsel %vm3178_vm6, %v9066_v31, %v5187_v35  ;;  %v5227_v53 = vunpack.i.h.bf16 %v11017_v46  ;;  %v5226_v58 = vunpack.i.l.bf16 %v11017_v46  ;;  %v11022_v63 = vld [vmem:[#allocation38_spill] sm:$0xff]  ;;  %v11025_v46 = vld [vmem:[#allocation72_spill] sm:$0xff] }
 0x231   : > { %v3867_v13 = vsel %vm1248_vm1, %v3865_v29, %v3866_v5  ;;  %v3869_v48 = vsel %vm1248_vm1, %v3866_v5, %v3868_v23  ;;  %v3185_v20 = vsel %vm3178_vm6, %v9069_v1, %v5196_v30  ;;  %v3186_v7 = vsel %vm3178_vm6, %v9072_v36, %v5197_v55  ;;  %v11019_v30 = vld [vmem:[#allocation27_spill] sm:$0xff] }
 0x232   : > { %v5236_v43 = vunpack.i.l.bf16 %v11018_v6  ;;  %v6078_v52 = vpack.i.bf16 %v3869_v48, %v3867_v13  ;;  %v3179_v3 = vsel %vm3178_vm6, %v9075_v57, %v5181_v38  ;;  %v3180_v31 = vsel %vm3178_vm6, %v9080_v54, %v5182_v21  ;;  %v11021_v23 = vld [vmem:[#allocation31_spill] sm:$0xff] }
 0x233   : > { %v3183_v35 = vsel %vm3178_vm6, %v9094_v28, %v5191_v40  ;;  %v5237_v61 = vunpack.i.h.bf16 %v11018_v6  ;;  %v3184_v1 = vsel %vm3178_vm6, %v9097_v19, %v5192_v37  ;;  %v5221_v49 = vunpack.i.l.bf16 %v11019_v30  ;;  %v11020_v28 = vld [vmem:[#allocation28_spill] sm:$0xff]  ;;  %v5920_v40 = vpop.permute.xlu0 %5919  ;;  %v11024_v37 = vld [vmem:[#allocation131_spill] sm:$0xff] }
 0x234   : > { %6079 = vrot.lane.b32.xlu0 %v6078_v52, %s6380_s22  ;;  %6084 = vrot.lane.b32.xlu1 %v10896_v45, %s6377_s13  ;;  %v3197_v36 = vsel %vm3178_vm6, %v9113_v42, %v5226_v58  ;;  %v3198_v57 = vsel %vm3178_vm6, %v9116_v59, %v5227_v53  ;;  %v5222_v54 = vunpack.i.h.bf16 %v11019_v30  ;;  %v5231_v55 = vunpack.i.l.bf16 %v11020_v28 }
 0x235   : > { %v9210_v19 = vsel %vm3178_vm6, %v9122_v18, %v5236_v43  ;;  %v5232_v29 = vunpack.i.h.bf16 %v11020_v28  ;;  %v5267_v5 = vunpack.i.h.bf16 %v11021_v23  ;;  %v5266_v45 = vunpack.i.l.bf16 %v11021_v23 }
 0x236   : > { %v9217_v42 = vsel %vm3178_vm6, %v9125_v60, %v5237_v61  ;;  %v5261_v59 = vunpack.i.l.bf16 %v11022_v63  ;;  %v5277_v21 = vunpack.i.h.bf16 %v11023_v56  ;;  %v5276_v38 = vunpack.i.l.bf16 %v11023_v56 }
 0x237   : > { %v9224_v18 = vsel %vm3178_vm6, %v9128_v39, %v5221_v49  ;;  %v9232_v60 = vsel %vm3178_vm6, %v9148_v10, %v5222_v54  ;;  %v9236_v13 = vsel %vm3178_vm6, %v9153_v51, %v5231_v55  ;;  %v5262_v48 = vunpack.i.h.bf16 %v11022_v63  ;;  %v5935_v54 = vpop.permute.xlu1 %5934  ;;  %v5930_v28 = vpop.permute.xlu0 %5929 }
 0x238   : > { %6089 = vrot.lane.b32.xlu0 %v11024_v37, %s6377_s13  ;;  %6094 = vrot.lane.b32.xlu1 %v10894_v9, %s6377_s13  ;;  %v5271_v53 = vunpack.i.l.bf16 %v11025_v46  ;;  %v9241_v39 = vsel %vm3178_vm6, %v3167_v0, %v5232_v29  ;;  %v9244_v58 = vsel %vm3211_vm7, %v3181_v11, %v5266_v45  ;;  %v9247_v9 = vsel %vm3211_vm7, %v3182_v62, %v5267_v5  ;;  %v11026_v11 = vld [vmem:[#allocation136_spill] sm:$0xff]  ;;  %v11027_v62 = vld [vmem:[#allocation139_spill] sm:$0xff]  ;;  %v11029_v5 = vld [vmem:[#allocation41_spill] sm:$0xff] }
 0x239   : > { %v5272_v10 = vunpack.i.h.bf16 %v11025_v46  ;;  %v9251_v6 = vsel %vm3211_vm7, %v3179_v3, %v5261_v59  ;;  %v9254_v51 = vsel %vm3211_vm7, %v3185_v20, %v5276_v38  ;;  %v9257_v43 = vsel %vm3211_vm7, %v3186_v7, %v5277_v21  ;;  %v11028_v20 = vld [vmem:[#allocation46_spill] sm:$0xff] }
 0x23a   : > { %v5917_v52 = vunpack.i.h.bf16 %v5915_v44  ;;  %v5916_v0 = vunpack.i.l.bf16 %v5915_v44  ;;  %v5921_v61 = vunpack.i.l.bf16 %v5920_v40  ;;  %v9264_v30 = vsel %vm3211_vm7, %v3180_v31, %v5262_v48  ;;  %v11030_v59 = vld [vmem:[#allocation42_spill] sm:$0xff] }
 0x23b   : > { %v9267_v3 = vsel %vm3211_vm7, %v3183_v35, %v5271_v53  ;;  %v5307_v49 = vunpack.i.h.bf16 %v11028_v20  ;;  %v5306_v7 = vunpack.i.l.bf16 %v11028_v20  ;;  %v9272_v44 = vsel %vm3211_vm7, %v3184_v1, %v5272_v10  ;;  %v11031_v1 = vld [vmem:[#allocation145_spill] sm:$0xff]  ;;  %v11035_v20 = vld [vmem:[#allocation150_spill] sm:$0xff] }
 0x23c   : > { %6099 = vrot.lane.b32.xlu0 %v11026_v11, %s6377_s13  ;;  %6104 = vrot.lane.b32.xlu1 %v11027_v62, %s6378_s26  ;;  %v5936_v55 = vunpack.i.l.bf16 %v5935_v54  ;;  %v5932_v29 = vunpack.i.h.bf16 %v5930_v28  ;;  %v5931_v23 = vunpack.i.l.bf16 %v5930_v28  ;;  %v3731_v45 = vsel %vm3079_vm3, %v11029_v5, %v5917_v52 }
 0x23d   : > { %v5927_v31 = vunpack.i.h.bf16 %v5925_v4  ;;  %v5926_v63 = vunpack.i.l.bf16 %v5925_v4  ;;  %v3730_v35 = vsel %vm3079_vm3, %v11030_v59, %v5916_v0  ;;  %v5922_v56 = vunpack.i.h.bf16 %v5920_v40  ;;  %v11032_v40 = vld [vmem:[#allocation34_spill] sm:$0xff] }
 0x23e   : > { %v3732_v21 = vsel %vm3079_vm3, %v7906_v17, %v5921_v61  ;;  %v9285_v38 = vsel %vm3211_vm7, %v3197_v36, %v5306_v7  ;;  %v9288_v37 = vsel %vm3211_vm7, %v3198_v57, %v5307_v49  ;;  %v3831_v4 = vrot.slane %v3731_v45, 1  ;;  %v11033_v17 = vld [vmem:[#allocation35_spill] sm:$0xff]  ;;  %v5940_v57 = vpop.permute.xlu0 %5939  ;;  %v11034_v0 = vld [vmem:[#allocation98_spill] sm:$0xff]  ;;  %v11037_v7 = vld [vmem:[#allocation85_spill] sm:$0xff] }
 0x23f   : > { %v3735_v48 = vsel %vm3079_vm3, %v7858_v2, %v5936_v55  ;;  %v3734_v46 = vsel %vm3079_vm3, %v11032_v40, %v5932_v29  ;;  %v3733_v53 = vsel %vm3079_vm3, %v11033_v17, %v5931_v23  ;;  %v3756_v10 = vsel %vm3079_vm3, %v8097_v22, %v5927_v31  ;;  %v11036_v49 = vld [vmem:[#allocation75_spill] sm:$0xff]  ;;  %v11042_v17 = vld [vmem:[#allocation74_spill] sm:$0xff] }
 0x240   : > { %6109 = vrot.lane.b32.xlu0 %v8384_v25, %s6378_s26  ;;  %6114 = vrot.lane.b32.xlu1 %v11031_v1, %s6378_s26  ;;  %v3830_v25 = vrot.slane %v3730_v35, 1  ;;  %v3755_v36 = vsel %vm3079_vm3, %v10857_v16, %v5926_v63  ;;  %v3833_v52 = vrot.slane %v3732_v21, 1  ;;  %v3754_v61 = vsel %vm3079_vm3, %v11034_v0, %v5922_v56  ;;  %v11038_v16 = vld [vmem:[#allocation88_spill] sm:$0xff] }
 0x241   : > { %v5937_v11 = vunpack.i.h.bf16 %v5935_v54  ;;  %v5942_v2 = vunpack.i.h.bf16 %v5940_v57  ;;  %v5941_v62 = vunpack.i.l.bf16 %v5940_v57  ;;  %v5316_v28 = vunpack.i.l.bf16 %v11037_v7  ;;  %v11039_v56 = vld [vmem:[#allocation96_spill] sm:$0xff] }
 0x242   : > { %v3838_v22 = vrot.slane %v3735_v48, 1  ;;  %v3836_v55 = vrot.slane %v3734_v46, 1  ;;  %v3835_v29 = vrot.slane %v3733_v53, 1  ;;  %v5302_v23 = vunpack.i.h.bf16 %v11038_v16  ;;  %v11040_v48 = vld [vmem:[#allocation95_spill] sm:$0xff]  ;;  %v11043_v53 = vld [vmem:[#allocation102_spill] sm:$0xff] }
 0x243   : > { %v5317_v5 = vunpack.i.h.bf16 %v11037_v7  ;;  %v3873_v45 = vrot.slane %v3756_v10, 1  ;;  %v3871_v31 = vrot.slane %v3755_v36, 1  ;;  %v3870_v54 = vrot.slane %v3754_v61, 1  ;;  %v11041_v46 = vld [vmem:[#allocation111_spill] sm:$0xff]  ;;  %v11045_v7 = vld [vmem:[#allocation116_spill] sm:$0xff] }
 0x244   : > { %6119 = vrot.lane.b32.xlu0 %v11035_v20, %s6378_s26  ;;  %6124 = vrot.lane.b32.xlu1 %v11036_v49, %s6379_s17  ;;  %v3832_v63 = vsel %vm1248_vm1, %v3830_v25, %v3831_v4  ;;  %v3834_v59 = vsel %vm1248_vm1, %v3831_v4, %v3833_v52  ;;  %v5301_v35 = vunpack.i.l.bf16 %v11038_v16  ;;  %v3757_v21 = vsel %vm3079_vm3, %v11039_v56, %v5937_v11  ;;  %v11044_v52 = vld [vmem:[#allocation115_spill] sm:$0xff]  ;;  %v11047_v16 = vld [vmem:[#allocation117_spill] sm:$0xff] }
 0x245   : > { %v3759_v1 = vsel %vm3079_vm3, %v10848_v33, %v5942_v2  ;;  %v3758_v40 = vsel %vm3079_vm3, %v11040_v48, %v5941_v62  ;;  %v3234_v4 = vsel %vm3211_vm7, %v9210_v19, %v5316_v28  ;;  %v5312_v25 = vunpack.i.h.bf16 %v11043_v53 }
 0x246   : > { %v3837_v10 = vsel %vm1248_vm1, %v3835_v29, %v3836_v55  ;;  %v3839_v36 = vsel %vm1248_vm1, %v3836_v55, %v3838_v22  ;;  %v5311_v33 = vunpack.i.l.bf16 %v11043_v53  ;;  %v5346_v57 = vunpack.i.l.bf16 %v11044_v52  ;;  %v11046_v22 = vld [vmem:[#allocation110_spill] sm:$0xff] }
 0x247   : > { %v6143_v0 = vpack.i.bf16 %v3834_v59, %v3832_v63  ;;  %v3874_v61 = vsel %vm1248_vm1, %v3871_v31, %v3873_v45  ;;  %v3875_v11 = vrot.slane %v3757_v21, 1  ;;  %v3878_v2 = vrot.slane %v3759_v1, 1 }
 0x248   : > { %6129 = vrot.lane.b32.xlu0 %v11041_v46, %s6379_s17  ;;  %6134 = vrot.lane.b32.xlu1 %v11042_v17, %s6379_s17  ;;  %v3876_v62 = vrot.slane %v3758_v40, 1  ;;  %v3872_v20 = vsel %vm1248_vm1, %v3870_v54, %v3871_v31  ;;  %v3235_v19 = vsel %vm3211_vm7, %v9217_v42, %v5317_v5  ;;  %v5347_v49 = vunpack.i.h.bf16 %v11044_v52  ;;  %v11049_v40 = vld [vmem:[#allocation40_spill] sm:$0xff] }
 0x249   : > { %v5356_v28 = vunpack.i.l.bf16 %v11045_v7  ;;  %v6153_v55 = vpack.i.bf16 %v3839_v36, %v3837_v10  ;;  %v3228_v29 = vsel %vm3211_vm7, %v9224_v18, %v5301_v35  ;;  %v5342_v45 = vunpack.i.h.bf16 %v11047_v16  ;;  %v11048_v18 = vld [vmem:[#allocation120_spill] sm:$0xff]  ;;  %v11051_v36 = vld [vmem:[#allocation83_spill] sm:$0xff] }
 0x24a   : > { %v5341_v31 = vunpack.i.l.bf16 %v11047_v16  ;;  %v5357_v54 = vunpack.i.h.bf16 %v11045_v7  ;;  %v3229_v42 = vsel %vm3211_vm7, %v9232_v60, %v5302_v23  ;;  %v3232_v5 = vsel %vm3211_vm7, %v9236_v13, %v5311_v33  ;;  %v5950_v7 = vpop.permute.xlu0 %5949 }
 0x24b   : > { %v3233_v63 = vsel %vm3211_vm7, %v9241_v39, %v5312_v25  ;;  %v6148_v59 = vpack.i.bf16 %v3874_v61, %v3872_v20  ;;  %v3247_v56 = vsel %vm3244_vm8, %v9244_v58, %v5346_v57  ;;  %v5351_v35 = vunpack.i.l.bf16 %v11048_v18 }
 0x24c   : > { %6139 = vrot.lane.b32.xlu0 %v11046_v22, %s6379_s17  ;;  %6144 = vrot.lane.b32.xlu1 %v6143_v0, %s6380_s22  ;;  %v3877_v21 = vsel %vm1248_vm1, %v3875_v11, %v3876_v62  ;;  %v3879_v1 = vsel %vm1248_vm1, %v3876_v62, %v3878_v2  ;;  %v3248_v48 = vsel %vm3244_vm8, %v9247_v9, %v5347_v49  ;;  %v5352_v13 = vunpack.i.h.bf16 %v11048_v18  ;;  %v11053_v0 = vld [vmem:[#allocation118_spill] sm:$0xff]  ;;  %v5945_v49 = vpop.permute.xlu1 %5944 }
 0x24d   : > { %v3251_v60 = vsel %vm3244_vm8, %v9254_v51, %v5356_v28  ;;  %v3245_v39 = vsel %vm3244_vm8, %v9251_v6, %v5341_v31  ;;  %v3246_v58 = vsel %vm3244_vm8, %v9264_v30, %v5342_v45  ;;  %v3252_v23 = vsel %vm3244_vm8, %v9257_v43, %v5357_v54  ;;  %v11050_v51 = vld [vmem:[#allocation70_spill] sm:$0xff]  ;;  %v11056_v31 = vld [vmem:[#allocation135_spill] sm:$0xff] }
 0x24e   : > { %v5386_v9 = vunpack.i.l.bf16 %v11049_v40  ;;  %v5387_v46 = vunpack.i.h.bf16 %v11049_v40  ;;  %v5397_v17 = vunpack.i.h.bf16 %v11050_v51  ;;  %v5396_v53 = vunpack.i.l.bf16 %v11050_v51  ;;  %v11052_v30 = vld [vmem:[#allocation86_spill] sm:$0xff]  ;;  %v5960_v51 = vpop.permute.xlu0 %5959 }
 0x24f   : > { %v6158_v25 = vpack.i.bf16 %v3879_v1, %v3877_v21  ;;  %v3249_v10 = vsel %vm3244_vm8, %v9267_v3, %v5351_v35  ;;  %v5382_v6 = vunpack.i.h.bf16 %v11051_v36  ;;  %v5381_v33 = vunpack.i.l.bf16 %v11051_v36  ;;  %v11054_v3 = vld [vmem:[#allocation99_spill] sm:$0xff]  ;;  %v11055_v62 = vld [vmem:[#allocation134_spill] sm:$0xff] }
 0x250   : > { %6149 = vrot.lane.b32.xlu0 %v6148_v59, %s6380_s22  ;;  %6154 = vrot.lane.b32.xlu1 %v6153_v55, %s6380_s22  ;;  %v5391_v52 = vunpack.i.l.bf16 %v11052_v30  ;;  %v3250_v43 = vsel %vm3244_vm8, %v9272_v44, %v5352_v13  ;;  %v5392_v57 = vunpack.i.h.bf16 %v11052_v30  ;;  %v3263_v61 = vsel %vm3244_vm8, %v9285_v38, %v5386_v9  ;;  %v11060_v13 = vld [vmem:[#allocation143_spill] sm:$0xff]  ;;  %v11061_v40 = vld [vmem:[#allocation142_spill] sm:$0xff] }
 0x251   : > { %v5427_v11 = vunpack.i.h.bf16 %v11054_v3  ;;  %v5426_v2 = vunpack.i.l.bf16 %v11054_v3  ;;  %v5436_v20 = vunpack.i.l.bf16 %v11055_v62  ;;  %v3264_v44 = vsel %vm3244_vm8, %v9288_v37, %v5387_v46  ;;  %v5955_v46 = vpop.permute.xlu1 %5954 }
 0x252   : > { %v3267_v28 = vsel %vm3244_vm8, %v3234_v4, %v5396_v53  ;;  %v3268_v22 = vsel %vm3244_vm8, %v3235_v19, %v5397_v17  ;;  %v5437_v55 = vunpack.i.h.bf16 %v11055_v62  ;;  %v3261_v16 = vsel %vm3244_vm8, %v3228_v29, %v5381_v33  ;;  %v11057_v4 = vld [vmem:[#allocation63_spill] sm:$0xff]  ;;  %v11062_v17 = vld [vmem:[#allocation138_spill] sm:$0xff] }
 0x253   : > { %v3262_v38 = vsel %vm3244_vm8, %v3229_v42, %v5382_v6  ;;  %v9395_v45 = vsel %vm3244_vm8, %v3232_v5, %v5391_v52  ;;  %v5421_v54 = vunpack.i.l.bf16 %v11056_v31  ;;  %v9399_v59 = vsel %vm3244_vm8, %v3233_v63, %v5392_v57  ;;  %v11058_v5 = vld [vmem:[#allocation59_spill] sm:$0xff]  ;;  %v11065_v62 = vld [vmem:[#allocation146_spill] sm:$0xff] }
 0x254   : > { %6159 = vrot.lane.b32.xlu0 %v6158_v25, %s6380_s22  ;;  %6164 = vrot.lane.b32.xlu1 %v11053_v0, %s6376_s27  ;;  %v5422_v37 = vunpack.i.h.bf16 %v11056_v31  ;;  %v9407_v19 = vsel %vm3277_vm9, %v3247_v56, %v5426_v2  ;;  %v9410_v29 = vsel %vm3277_vm9, %v3248_v48, %v5427_v11  ;;  %v9413_v42 = vsel %vm3277_vm9, %v3251_v60, %v5436_v20  ;;  %v11063_v11 = vld [vmem:[#allocation141_spill] sm:$0xff] }
 0x255   : > { %v5431_v63 = vunpack.i.l.bf16 %v11058_v5  ;;  %v9417_v18 = vsel %vm3277_vm9, %v3252_v23, %v5437_v55  ;;  %v5432_v35 = vunpack.i.h.bf16 %v11058_v5  ;;  %v9423_v56 = vsel %vm3277_vm9, %v3245_v39, %v5421_v54  ;;  %v5965_v55 = vpop.permute.xlu1 %5964 }
 0x256   : > { %v5461_v48 = vunpack.i.l.bf16 %v11060_v13  ;;  %v5477_v9 = vunpack.i.h.bf16 %v11061_v40  ;;  %v5476_v60 = vunpack.i.l.bf16 %v11061_v40  ;;  %v9429_v23 = vsel %vm3277_vm9, %v3246_v58, %v5422_v37 }
 0x257   : > { %v9436_v39 = vsel %vm3277_vm9, %v3249_v10, %v5431_v63  ;;  %v5462_v53 = vunpack.i.h.bf16 %v11060_v13  ;;  %v5947_v25 = vunpack.i.h.bf16 %v5945_v49  ;;  %v5946_v36 = vunpack.i.l.bf16 %v5945_v49  ;;  %v11066_v49 = vld [vmem:[#allocation76_spill] sm:$0xff] }
 0x258   : > { %6169 = vrot.lane.b32.xlu0 %v10905_v8, %s6377_s13  ;;  %6174 = vrot.lane.b32.xlu1 %v11057_v4, %s6377_s13  ;;  %v11059_v8 = vld [vmem:[#allocation140_spill] sm:$0xff]  ;;  %v9440_v6 = vsel %vm3277_vm9, %v3250_v43, %v5432_v35  ;;  %v9449_v30 = vsel %vm3277_vm9, %v3261_v16, %v5461_v48  ;;  %v9452_v10 = vsel %vm3277_vm9, %v3267_v28, %v5476_v60  ;;  %v5956_v57 = vunpack.i.l.bf16 %v5955_v46  ;;  %v5970_v16 = vpop.permute.xlu0 %5969  ;;  %v11068_v4 = vld [vmem:[#allocation113_spill] sm:$0xff]  ;;  %v11069_v35 = vld [vmem:[#allocation114_spill] sm:$0xff] }
 0x259   : > { %v5467_v21 = vunpack.i.h.bf16 %v11059_v8  ;;  %v5466_v1 = vunpack.i.l.bf16 %v11059_v8  ;;  %v9455_v52 = vsel %vm3277_vm9, %v3268_v22, %v5477_v9  ;;  %v5952_v3 = vunpack.i.h.bf16 %v5950_v7  ;;  %v11067_v28 = vld [vmem:[#allocation80_spill] sm:$0xff] }
 0x25a   : > { %v5951_v43 = vunpack.i.l.bf16 %v5950_v7  ;;  %v9462_v2 = vsel %vm3277_vm9, %v3262_v38, %v5462_v53  ;;  %v5472_v20 = vunpack.i.h.bf16 %v11065_v62  ;;  %v3736_v22 = vsel %vm3079_vm3, %v11067_v28, %v5946_v36  ;;  %v11070_v13 = vld [vmem:[#allocation84_spill] sm:$0xff] }
 0x25b   : > { %v9443_v33 = vsel %vm3277_vm9, %v3263_v61, %v5466_v1  ;;  %v9446_v58 = vsel %vm3277_vm9, %v3264_v44, %v5467_v21  ;;  %v11064_v61 = vld [vmem:[#allocation97_spill] sm:$0xff]  ;;  %v3737_v44 = vsel %vm3079_vm3, %v11066_v49, %v5947_v25  ;;  %v5967_v31 = vunpack.i.h.bf16 %v5965_v55 }
 0x25c   : > { %6179 = vrot.lane.b32.xlu0 %v8090_v50, %s6377_s13  ;;  %6184 = vrot.lane.b32.xlu1 %v11062_v17, %s6377_s13  ;;  %v5957_v50 = vunpack.i.h.bf16 %v5955_v46  ;;  %v5972_v54 = vunpack.i.h.bf16 %v5970_v16  ;;  %v5971_v37 = vunpack.i.l.bf16 %v5970_v16  ;;  %v3761_v38 = vsel %vm3079_vm3, %v11068_v4, %v5956_v57  ;;  %v11072_v17 = vld [vmem:[#allocation101_spill] sm:$0xff]  ;;  %v9502_v16 = vpop.permute.xlu0 %5979 }
 0x25d   : > { %v5966_v5 = vunpack.i.l.bf16 %v5965_v55  ;;  %v5962_v63 = vunpack.i.h.bf16 %v5960_v51  ;;  %v3760_v8 = vsel %vm3079_vm3, %v11069_v35, %v5952_v3  ;;  %v3738_v21 = vsel %vm3079_vm3, %v7967_v47, %v5951_v43  ;;  %v11073_v47 = vld [vmem:[#allocation100_spill] sm:$0xff]  ;;  %v11074_v3 = vld [vmem:[#allocation43_spill] sm:$0xff] }
 0x25e   : > { %v3762_v7 = vsel %vm3079_vm3, %v8145_v14, %v5957_v50  ;;  %v5961_v1 = vunpack.i.l.bf16 %v5960_v51  ;;  %v11071_v14 = vld [vmem:[#allocation152_spill] sm:$0xff]  ;;  %v5471_v48 = vunpack.i.l.bf16 %v11065_v62  ;;  %v3841_v40 = vrot.slane %v3737_v44, 1  ;;  %v11077_v44 = vld [vmem:[#allocation103_spill] sm:$0xff] }
 0x25f   : > { %v3840_v9 = vrot.slane %v3736_v22, 1  ;;  %v3883_v60 = vrot.slane %v3762_v7, 1  ;;  %v3881_v46 = vrot.slane %v3761_v38, 1  ;;  %v3763_v53 = vsel %vm3079_vm3, %v11072_v17, %v5967_v31  ;;  %v11076_v62 = vld [vmem:[#allocation44_spill] sm:$0xff]  ;;  %v9500_v22 = vpop.permute.xlu1 %5974 }
 0x260   : > { %6189 = vrot.lane.b32.xlu0 %v11063_v11, %s6378_s26  ;;  %6194 = vrot.lane.b32.xlu1 %v11064_v61, %s6378_s26  ;;  %v3765_v25 = vsel %vm3079_vm3, %v8115_v26, %v5972_v54  ;;  %v3764_v51 = vsel %vm3079_vm3, %v11073_v47, %v5971_v37  ;;  %v3880_v36 = vrot.slane %v3760_v8, 1  ;;  %v3843_v50 = vrot.slane %v3738_v21, 1  ;;  %v11075_v11 = vld [vmem:[#allocation107_spill] sm:$0xff] }
 0x261   : > { %v3741_v57 = vsel %vm3079_vm3, %v7910_v15, %v5966_v5  ;;  %v3740_v43 = vsel %vm3079_vm3, %v11074_v3, %v5962_v63  ;;  %v5506_v61 = vunpack.i.l.bf16 %v11075_v11  ;;  %v3739_v49 = vsel %vm3079_vm3, %v11076_v62, %v5961_v1  ;;  %v11078_v8 = vld [vmem:[#allocation147_spill] sm:$0xff]  ;;  %v11084_v62 = vld [vmem:[#allocation153_spill] sm:$0xff] }
 0x262   : > { %v5507_v26 = vunpack.i.h.bf16 %v11075_v11  ;;  %v3885_v28 = vrot.slane %v3763_v53, 1  ;;  %v3888_v15 = vrot.slane %v3765_v25, 1  ;;  %v3886_v55 = vrot.slane %v3764_v51, 1  ;;  %v11079_v1 = vld [vmem:[#allocation79_spill] sm:$0xff]  ;;  %v11083_v25 = vld [vmem:[#allocation73_spill] sm:$0xff] }
 0x263   : > { %v3298_v7 = vsel %vm3277_vm9, %v9395_v45, %v5471_v48  ;;  %v3848_v31 = vrot.slane %v3741_v57, 1  ;;  %v3846_v54 = vrot.slane %v3740_v43, 1  ;;  %v3842_v37 = vsel %vm1248_vm1, %v3840_v9, %v3841_v40  ;;  %v11081_v48 = vld [vmem:[#allocation148_spill] sm:$0xff]  ;;  %v11082_v9 = vld [vmem:[#allocation151_spill] sm:$0xff]  ;;  %v9529_v51 = vpop.permute.xlu1 %5984 }
 0x264   : > { %6199 = vrot.lane.b32.xlu0 %v11070_v13, %s6378_s26  ;;  %6204 = vrot.lane.b32.xlu1 %v11071_v14, %s6378_s26  ;;  %v3845_v4 = vrot.slane %v3739_v49, 1  ;;  %v3844_v38 = vsel %vm1248_vm1, %v3841_v40, %v3843_v50  ;;  %v3884_v5 = vsel %vm1248_vm1, %v3881_v46, %v3883_v60  ;;  %v3299_v63 = vsel %vm3277_vm9, %v9399_v59, %v5472_v20  ;;  %v11080_v13 = vld [vmem:[#allocation112_spill] sm:$0xff] }
 0x265   : > { %v3313_v35 = vsel %vm3310_vm10, %v9407_v19, %v5506_v61  ;;  %v5517_v21 = vunpack.i.h.bf16 %v11078_v8  ;;  %v5516_v45 = vunpack.i.l.bf16 %v11078_v8  ;;  %v3314_v14 = vsel %vm3310_vm10, %v9410_v29, %v5507_v26 }
 0x266   : > { %v5501_v40 = vunpack.i.l.bf16 %v11081_v48  ;;  %v3887_v59 = vsel %vm1248_vm1, %v3885_v28, %v3886_v55  ;;  %v3889_v20 = vsel %vm1248_vm1, %v3886_v55, %v3888_v15  ;;  %v5502_v19 = vunpack.i.h.bf16 %v11081_v48  ;;  %v11086_v15 = vld [vmem:[#allocation71_spill] sm:$0xff] }
 0x267   : > { %v5512_v60 = vunpack.i.h.bf16 %v11082_v9  ;;  %v5511_v53 = vunpack.i.l.bf16 %v11082_v9  ;;  %v5546_v47 = vunpack.i.l.bf16 %v11083_v25  ;;  %v3847_v29 = vsel %vm1248_vm1, %v3845_v4, %v3846_v54 }
 0x268   : > { %6209 = vrot.lane.b32.xlu0 %v11077_v44, %s6379_s17  ;;  %6214 = vrot.lane.b32.xlu1 %v11053_v0, %s6379_s17  ;;  %v3882_v0 = vsel %vm1248_vm1, %v3880_v36, %v3881_v46  ;;  %v6228_v46 = vpack.i.bf16 %v3844_v38, %v3842_v37  ;;  %v9531_v36 = vpop.permute.xlu0 %5989  ;;  %v3849_v50 = vsel %vm1248_vm1, %v3846_v54, %v3848_v31  ;;  %v5547_v43 = vunpack.i.h.bf16 %v11083_v25  ;;  %v11085_v44 = vld [vmem:[#allocation64_spill] sm:$0xff]  ;;  %v11087_v38 = vld [vmem:[#allocation109_spill] sm:$0xff] }
 0x269   : > { %v6233_v17 = vpack.i.bf16 %v3884_v5, %v3882_v0  ;;  %v9537_v57 = vsel %vm3310_vm10, %v9413_v42, %v5516_v45  ;;  %v9541_v3 = vsel %vm3310_vm10, %v9417_v18, %v5517_v21  ;;  %v6243_v11 = vpack.i.bf16 %v3889_v20, %v3887_v59  ;;  %v11089_v5 = vld [vmem:[#allocation121_spill] sm:$0xff]  ;;  %v9586_v45 = vpop.permute.xlu1 %5994 }
 0x26a   : > { %v3311_v61 = vsel %vm3310_vm10, %v9423_v56, %v5501_v40  ;;  %v5541_v49 = vunpack.i.l.bf16 %v11084_v62  ;;  %v5557_v26 = vunpack.i.h.bf16 %v11085_v44  ;;  %v5556_v42 = vunpack.i.l.bf16 %v11085_v44 }
 0x26b   : > { %v3312_v18 = vsel %vm3310_vm10, %v9429_v23, %v5502_v19  ;;  %v5542_v28 = vunpack.i.h.bf16 %v11084_v62  ;;  %v5551_v55 = vunpack.i.l.bf16 %v11086_v15  ;;  %v6238_v31 = vpack.i.bf16 %v3849_v50, %v3847_v29 }
 0x26c   : > { %6219 = vrot.lane.b32.xlu0 %v11079_v1, %s6379_s17  ;;  %6224 = vrot.lane.b32.xlu1 %v11080_v13, %s6379_s17  ;;  %v9557_v54 = vsel %vm3310_vm10, %v9436_v39, %v5511_v53  ;;  %v9561_v56 = vsel %vm3310_vm10, %v9440_v6, %v5512_v60  ;;  %v3329_v37 = vsel %vm3310_vm10, %v9443_v33, %v5546_v47  ;;  %v5552_v4 = vunpack.i.h.bf16 %v11086_v15  ;;  %v11088_v39 = vld [vmem:[#allocation157_spill] sm:$0xff]  ;;  %v9588_v1 = vpop.permute.xlu0 %5999  ;;  %v11092_v60 = vld [vmem:[#allocation124_spill] sm:$0xff]  ;;  %v11097_v15 = vld [vmem:[#allocation82_spill] sm:$0xff] }
 0x26d   : > { %v3330_v23 = vsel %vm3310_vm10, %v9446_v58, %v5547_v43  ;;  %v5586_v0 = vunpack.i.l.bf16 %v11087_v38  ;;  %v9573_v8 = vpack.i.bf16 %v11089_v5, %v11088_v39  ;;  %v3327_v6 = vsel %vm3310_vm10, %v9449_v30, %v5541_v49  ;;  %v11090_v30 = vld [vmem:[#allocation155_spill] sm:$0xff]  ;;  %v11094_v47 = vld [vmem:[#allocation128_spill] sm:$0xff] }
 0x26e   : > { %v9579_v33 = vsel %vm3310_vm10, %v9452_v10, %v5556_v42  ;;  %v9583_v58 = vsel %vm3310_vm10, %v9455_v52, %v5557_v26  ;;  %v5587_v21 = vunpack.i.h.bf16 %v11087_v38  ;;  %v3328_v48 = vsel %vm3310_vm10, %v9462_v2, %v5542_v28  ;;  %v11091_v52 = vld [vmem:[#allocation127_spill] sm:$0xff]  ;;  %v9621_v26 = vpop.permute.xlu1 %6004  ;;  %v11096_v28 = vld [vmem:[#allocation122_spill] sm:$0xff] }
 0x26f   : > { %v9593_v40 = vsel %vm3310_vm10, %v3298_v7, %v5551_v55  ;;  %v5582_v59 = vunpack.i.h.bf16 %v11090_v30  ;;  %v5581_v10 = vunpack.i.l.bf16 %v11090_v30  ;;  %v9598_v20 = vsel %vm3310_vm10, %v3299_v63, %v5552_v4  ;;  %v11093_v63 = vld [vmem:[#allocation154_spill] sm:$0xff]  ;;  %v11098_v55 = vld [vmem:[#allocation137_spill] sm:$0xff] }
 0x270   : > { %6229 = vrot.lane.b32.xlu0 %v6228_v46, %s6380_s22  ;;  %6234 = vrot.lane.b32.xlu1 %v6233_v17, %s6380_s22  ;;  %v5627_v19 = vunpack.i.h.bf16 %v11091_v52  ;;  %v5626_v9 = vunpack.i.l.bf16 %v11091_v52  ;;  %v5621_v46 = vunpack.i.l.bf16 %v11092_v60  ;;  %v3346_v17 = vsel %vm3343_vm11, %v3313_v35, %v5586_v0  ;;  %v9623_v42 = vpop.permute.xlu0 %6009  ;;  %v11100_v0 = vld [vmem:[#allocation125_spill] sm:$0xff] }
 0x271   : > { %v5622_v2 = vunpack.i.h.bf16 %v11092_v60  ;;  %v3347_v7 = vsel %vm3343_vm11, %v3314_v14, %v5587_v21  ;;  %v5597_v53 = vunpack.i.h.bf16 %v11093_v63  ;;  %v5596_v25 = vunpack.i.l.bf16 %v11093_v63  ;;  %v11101_v60 = vld [vmem:[#allocation132_spill] sm:$0xff] }
 0x272   : > { %v5666_v29 = vunpack.i.l.bf16 %v11094_v47  ;;  %v3344_v50 = vsel %vm3343_vm11, %v3311_v61, %v5581_v10  ;;  %v3345_v35 = vsel %vm3343_vm11, %v3312_v18, %v5582_v59  ;;  %v5667_v43 = vunpack.i.h.bf16 %v11094_v47 }
 0x273   : > { %v3363_v49 = vsel %vm3343_vm11, %v3330_v23, %v5627_v19  ;;  %v3360_v14 = vsel %vm3343_vm11, %v3327_v6, %v5621_v46  ;;  %v5592_v61 = vunpack.i.h.bf16 %v11096_v28  ;;  %v3361_v18 = vsel %vm3343_vm11, %v3328_v48, %v5622_v2 }
 0x274   : > { %6239 = vrot.lane.b32.xlu0 %v6238_v31, %s6380_s22  ;;  %6244 = vrot.lane.b32.xlu1 %v6243_v11, %s6380_s22  ;;  %v11095_v11 = vld [vmem:[#allocation156_spill] sm:$0xff]  ;;  %v11099_v31 = vld [vmem:[#allocation158_spill] sm:$0xff]  ;;  %v3379_v4 = vsel %vm3376_vm12, %v3346_v17, %v5666_v29  ;;  %v2881_v23 = vrot.slane %v11088_v39, 2  ;;  %v2882_v38 = vrot.slane %v11089_v5, 2  ;;  %v2884_v6 = vrot.slane %v11100_v0, 2  ;;  %v9654_v47 = vpop.permute.xlu0 %6019 }
 0x275   : > { %v5661_v62 = vunpack.i.l.bf16 %v11095_v11  ;;  %v5662_v44 = vunpack.i.h.bf16 %v11095_v11  ;;  %v3380_v21 = vsel %vm3376_vm12, %v3347_v7, %v5667_v43  ;;  %v5707_v30 = vunpack.i.h.bf16 %v8773_v12  ;;  %v11102_v17 = vld [vmem:[#allocation130_spill] sm:$0xff]  ;;  %v9652_v7 = vpop.permute.xlu1 %6014 }
 0x276   : > { %v5706_v59 = vunpack.i.l.bf16 %v8773_v12  ;;  %v5701_v52 = vunpack.i.l.bf16 %v8797_v34  ;;  %v5746_v19 = vunpack.i.l.bf16 %v8824_v41  ;;  %v5741_v46 = vunpack.i.l.bf16 %v11101_v60 }
 0x277   : > { %v3377_v48 = vsel %vm3376_vm12, %v3344_v50, %v5661_v62  ;;  %v3378_v10 = vsel %vm3376_vm12, %v3345_v35, %v5662_v44  ;;  %v5977_v2 = vunpack.i.h.bf16 %v9500_v22  ;;  %v5976_v12 = vunpack.i.l.bf16 %v9500_v22 }
 0x278   : > { %6249 = vrot.lane.b32.xlu0 %v11080_v13, %s6376_s27  ;;  %6254 = vrot.lane.b32.xlu1 %v9573_v8, %s6376_s27  ;;  %v3362_v13 = vsel %vm3343_vm11, %v3329_v37, %v5626_v9  ;;  %v6273_v37 = vpack.i.bf16 %v11099_v31, %v8753_v24  ;;  %v5702_v24 = vunpack.i.h.bf16 %v8797_v34  ;;  %v5747_v9 = vunpack.i.h.bf16 %v8824_v41  ;;  %v11105_v31 = vld [vmem:[#allocation89_spill] sm:$0xff]  ;;  %s10100_s27 = scalar_lea.vmem %s10257_s8, %s4655_s23 }
 0x279   : > { %v2883_v34 = vsel %vm1425_vm2, %v2881_v23, %v2882_v38  ;;  %v2885_v29 = vsel %vm1425_vm2, %v2882_v38, %v2884_v6  ;;  %v9659_v41 = vsel %vm3376_vm12, %v3362_v13, %v5706_v59  ;;  %v9662_v50 = vsel %vm3376_vm12, %v3363_v49, %v5707_v30 }
 0x27a   : > { %v5987_v35 = vunpack.i.h.bf16 %v9529_v51  ;;  %v5986_v43 = vunpack.i.l.bf16 %v9529_v51  ;;  %v9667_v22 = vsel %vm3376_vm12, %v3360_v14, %v5701_v52  ;;  %v9670_v11 = vsel %vm3376_vm12, %v3361_v18, %v5702_v24  ;;  %v11104_v51 = vld [vmem:[#allocation149_spill] sm:$0xff]  ;;  %v9703_v52 = vpop.permute.xlu1 %6024 }
 0x27b   : > { %v9673_v62 = vsel %vm3409_vm13, %v3379_v4, %v5746_v19  ;;  %v5982_v44 = vunpack.i.h.bf16 %v9502_v16  ;;  %v9677_v13 = vsel %vm3409_vm13, %v3380_v21, %v5747_v9  ;;  %v5981_v49 = vunpack.i.l.bf16 %v9502_v16  ;;  %v11106_v4 = vld [vmem:[#allocation90_spill] sm:$0xff]  ;;  %v9705_v19 = vpop.permute.xlu0 %6029 }
 0x27c   : > { %6259 = vrot.lane.b32.xlu0 %v11097_v15, %s6377_s13  ;;  %6264 = vrot.lane.b32.xlu1 %v11098_v55, %s6377_s13  ;;  %v11103_v15 = vld [vmem:[#allocation144_spill] sm:$0xff]  ;;  %v6293_v14 = vpack.i.bf16 %v2885_v29, %v2883_v34  ;;  %v5742_v18 = vunpack.i.h.bf16 %v11101_v60  ;;  %v9686_v55 = vsel %vm3409_vm13, %v3377_v48, %v5741_v46  ;;  %v3742_v23 = vsel %vm3079_vm3, %v11106_v4, %v5976_v12  ;;  %v11109_v12 = vld [vmem:[#allocation62_spill] sm:$0xff]  ;;  %v11110_v29 = vld [vmem:[#allocation77_spill] sm:$0xff] }
 0x27d   : > { %v3768_v16 = vsel %vm3079_vm3, %v11100_v0, %v5987_v35  ;;  %v3767_v38 = vsel %vm3079_vm3, %v11089_v5, %v5986_v43  ;;  %v5997_v6 = vunpack.i.h.bf16 %v9586_v45  ;;  %v5996_v21 = vunpack.i.l.bf16 %v9586_v45  ;;  %v11107_v0 = vld [vmem:[#allocation78_spill] sm:$0xff]  ;;  %v11108_v45 = vld [vmem:[#allocation87_spill] sm:$0xff]  ;;  %v11116_v4 = vld [vmem:[#allocation105_spill] sm:$0xff] }
 0x27e   : > { %v3766_v48 = vsel %vm3079_vm3, %v11088_v39, %v5982_v44  ;;  %v5992_v30 = vunpack.i.h.bf16 %v9531_v36  ;;  %v5991_v59 = vunpack.i.l.bf16 %v9531_v36  ;;  %v6002_v24 = vunpack.i.h.bf16 %v9588_v1 }
 0x27f   : > { %v3744_v5 = vsel %vm3079_vm3, %v11107_v0, %v5981_v49  ;;  %v6001_v9 = vunpack.i.l.bf16 %v9588_v1  ;;  %v3411_v39 = vsel %vm3409_vm13, %v3378_v10, %v5742_v18  ;;  %v3850_v36 = vrot.slane %v3742_v23, 1  ;;  %v11111_v1 = vld [vmem:[#allocation45_spill] sm:$0xff] }
 0x280   : > { %6269 = vrot.lane.b32.xlu0 %v11102_v17, %s6377_s13  ;;  %6274 = vrot.lane.b32.xlu1 %v6273_v37, %s6377_s13  ;;  %v3743_v37 = vsel %vm3079_vm3, %v11105_v31, %v5977_v2  ;;  %v3893_v46 = vrot.slane %v3768_v16, 1  ;;  %v3891_v17 = vrot.slane %v3767_v38, 1  ;;  %v3890_v2 = vrot.slane %v3766_v48, 1  ;;  %v11112_v49 = vld [vmem:[#allocation81_spill] sm:$0xff]  ;;  %v11115_v31 = vld [vmem:[#allocation108_spill] sm:$0xff]  ;;  %s10113_s13 = scalar_lea.vmem %s10258_s9, %s4655_s23 }
 0x281   : > { %v3851_v60 = vrot.slane %v3743_v37, 1  ;;  %v3769_v34 = vsel %vm3079_vm3, %v11109_v12, %v5997_v6  ;;  %v3747_v35 = vsel %vm3079_vm3, %v11110_v29, %v5996_v21  ;;  %v3853_v43 = vrot.slane %v3744_v5, 1  ;;  %v11117_v38 = vld [vmem:[#allocation168_spill] sm:$0xff] }
 0x282   : > { %v3746_v44 = vsel %vm3079_vm3, %v11111_v1, %v5992_v30  ;;  %v3770_v37 = vsel %vm3079_vm3, %v11115_v31, %v6001_v9  ;;  %v6313_v23 = vpack.i.bf16 %v11115_v31, %v11109_v12  ;;  %v5781_v6 = vunpack.i.l.bf16 %v11117_v38  ;;  %v9735_v30 = vpop.permute.xlu1 %6034  ;;  %v11118_v1 = vld [vmem:[#allocation174_spill] sm:$0xff] }
 0x283   : > { %v3895_v21 = vrot.slane %v3769_v34, 1  ;;  %v3858_v48 = vrot.slane %v3747_v35, 1  ;;  %v3852_v9 = vsel %vm1248_vm1, %v3850_v36, %v3851_v60  ;;  %v3892_v12 = vsel %vm1248_vm1, %v3890_v2, %v3891_v17  ;;  %v11119_v36 = vld [vmem:[#allocation104_spill] sm:$0xff] }
 0x284   : > { %6279 = vrot.lane.b32.xlu0 %v11103_v15, %s6378_s26  ;;  %6284 = vrot.lane.b32.xlu1 %v11104_v51, %s6378_s26  ;;  %v3745_v15 = vsel %vm3079_vm3, %v11112_v49, %v5991_v59  ;;  %v11113_v51 = vld [vmem:[#allocation133_spill] sm:$0xff]  ;;  %v9737_v59 = vpop.permute.xlu0 %6039  ;;  %v3894_v29 = vsel %vm1248_vm1, %v3891_v17, %v3893_v46  ;;  %v5782_v35 = vunpack.i.h.bf16 %v11117_v38  ;;  %v5826_v49 = vunpack.i.l.bf16 %v11118_v1 }
 0x285   : > { %v3771_v10 = vsel %vm3079_vm3, %v11113_v51, %v6002_v24  ;;  %v3856_v24 = vrot.slane %v3746_v44, 1  ;;  %v3855_v0 = vrot.slane %v3745_v15, 1  ;;  %v5827_v44 = vunpack.i.h.bf16 %v11118_v1  ;;  %v11120_v46 = vld [vmem:[#allocation9_spill] sm:$0xff] }
 0x286   : > { %v3898_v5 = vrot.slane %v3771_v10, 1  ;;  %vm3508_vm2 = vcmask 228352   ;;  %v5822_v17 = vunpack.i.h.bf16 %v11120_v46  ;;  %v5821_v2 = vunpack.i.l.bf16 %v11120_v46 }
 0x287   : > { %v3446_v38 = vsel %vm3442_vm14, %v9677_v13, %v5827_v44  ;;  %vm3541_vm3 = vcmask 244736   ;;  %vm4072_vm5 = vcmask 293888   ;;  %v3349_v63 = vsel %vm3343_vm11, %v9561_v56, %v5592_v61 }
 0x288   : > { %6289 = vrot.lane.b32.xlu0 %v11108_v45, %s6378_s26  ;;  %6294 = vrot.lane.b32.xlu1 %v6293_v14, %s6378_s26  ;;  %v11114_v14 = vld [vmem:[#allocation164_spill] sm:$0xff]  ;;  %v3854_v45 = vsel %vm1248_vm1, %v3851_v60, %v3853_v43  ;;  %v11121_v43 = vld [vmem:[#allocation13_spill] sm:$0xff]  ;;  %v6050_v31 = vpop.permute.xlu0 %6049 }
 0x289   : > { %v5786_v18 = vunpack.i.l.bf16 %v11114_v14  ;;  %v5787_v16 = vunpack.i.h.bf16 %v11114_v14  ;;  %v5862_v15 = vunpack.i.h.bf16 %v11121_v43  ;;  %v5861_v51 = vunpack.i.l.bf16 %v11121_v43 }
 0x28a   : > { %v6318_v10 = vpack.i.bf16 %v3854_v45, %v3852_v9  ;;  %v6323_v14 = vpack.i.bf16 %v3894_v29, %v3892_v12  ;;  %v6027_v45 = vunpack.i.h.bf16 %v9703_v52  ;;  %v6011_v12 = vunpack.i.l.bf16 %v9623_v42 }
 0x28b   : > { %v9745_v34 = vsel %vm3409_vm13, %v9659_v41, %v5786_v18  ;;  %v9755_v60 = vsel %vm3409_vm13, %v9662_v50, %v5787_v16  ;;  %v3426_v41 = vsel %vm3409_vm13, %v9667_v22, %v5781_v6  ;;  %v6045_v18 = vpop.permute.xlu1 %6044  ;;  %v3859_v50 = vsel %vm1248_vm1, %v3856_v24, %v3858_v48  ;;  %v11122_v48 = vld [vmem:[#allocation5_spill] sm:$0xff] }
 0x28c   : > { %6299 = vrot.lane.b32.xlu0 %v11116_v4, %s6379_s17  ;;  %6304 = vrot.lane.b32.xlu1 %v9573_v8, %s6379_s17  ;;  %v3896_v8 = vrot.slane %v3770_v37, 1  ;;  %v3857_v37 = vsel %vm1248_vm1, %v3855_v0, %v3856_v24  ;;  %v3445_v16 = vsel %vm3442_vm14, %v9673_v62, %v5826_v49  ;;  %v3443_v6 = vsel %vm3442_vm14, %v9686_v55, %v5821_v2  ;;  %v9792_v49 = vpop.permute.xlu0 %6059 }
 0x28d   : > { %v5867_v24 = vunpack.i.h.bf16 %v11122_v48  ;;  %v6007_v0 = vunpack.i.h.bf16 %v9621_v26  ;;  %v6006_v62 = vunpack.i.l.bf16 %v9621_v26  ;;  %v3459_v9 = vsel %vm3442_vm14, %v3426_v41, %v5861_v51 }
 0x28e   : > { %v3897_v4 = vsel %vm1248_vm1, %v3895_v21, %v3896_v8  ;;  %v3899_v22 = vsel %vm1248_vm1, %v3896_v8, %v3898_v5  ;;  %v3444_v21 = vsel %vm3442_vm14, %v3411_v39, %v5822_v17  ;;  %v6328_v5 = vpack.i.bf16 %v3859_v50, %v3857_v37 }
 0x28f   : > { %v6333_v13 = vpack.i.bf16 %v3899_v22, %v3897_v4  ;;  %v6026_v55 = vunpack.i.l.bf16 %v9703_v52  ;;  %v6012_v39 = vunpack.i.h.bf16 %v9623_v42  ;;  %vm3996_vm1 = vcmask 261120   ;;  %v6055_v44 = vpop.permute.xlu1 %6054 }
 0x290   : > { %6309 = vrot.lane.b32.xlu0 %v11119_v36, %s6379_s17  ;;  %6314 = vrot.lane.b32.xlu1 %v6313_v23, %s6379_s17  ;;  %v3427_v23 = vsel %vm3409_vm13, %v9670_v11, %v5782_v35  ;;  %v5866_v11 = vunpack.i.l.bf16 %v11122_v48  ;;  %v6032_v26 = vunpack.i.h.bf16 %v9705_v19  ;;  %v6031_v29 = vunpack.i.l.bf16 %v9705_v19 }
 0x291   : > { %v3460_v8 = vsel %vm3442_vm14, %v3427_v23, %v5862_v15  ;;  %v6047_v35 = vunpack.i.h.bf16 %v6045_v18  ;;  %v6046_v1 = vunpack.i.l.bf16 %v6045_v18  ;;  %v3476_v52 = vsel %vm3475_vm0, %v3443_v6, %v6006_v62 }
 0x292   : > { %v3477_v36 = vsel %vm3475_vm0, %v3444_v21, %v6007_v0  ;;  %v6017_v42 = vunpack.i.h.bf16 %v9652_v7  ;;  %v6016_v41 = vunpack.i.l.bf16 %v9652_v7  ;;  %v3509_v46 = vsel %vm3508_vm2, %v3476_v52, %v6026_v55 }
 0x293   : > { %v3510_v17 = vsel %vm3508_vm2, %v3477_v36, %v6027_v45  ;;  %v6052_v2 = vunpack.i.h.bf16 %v6050_v31  ;;  %v6051_v43 = vunpack.i.l.bf16 %v6050_v31  ;;  %v3492_v19 = vsel %vm3475_vm0, %v3459_v9, %v6011_v12 }
 0x294   : > { %6319 = vrot.lane.b32.xlu0 %v6318_v10, %s6380_s22  ;;  %6324 = vrot.lane.b32.xlu1 %v6323_v14, %s6380_s22  ;;  %v3493_v15 = vsel %vm3475_vm0, %v3460_v8, %v6012_v39  ;;  %v6037_v51 = vunpack.i.h.bf16 %v9735_v30  ;;  %v6036_v10 = vunpack.i.l.bf16 %v9735_v30  ;;  %v3525_v14 = vsel %vm3508_vm2, %v3492_v19, %v6031_v29 }
 0x295   : > { %v3526_v18 = vsel %vm3508_vm2, %v3493_v15, %v6032_v26  ;;  %v3542_v50 = vsel %vm3541_vm3, %v3509_v46, %v6046_v1  ;;  %v3543_v4 = vsel %vm3541_vm3, %v3510_v17, %v6047_v35  ;;  %v6057_v21 = vunpack.i.h.bf16 %v6055_v44 }
 0x296   : > { %v6056_v0 = vunpack.i.l.bf16 %v6055_v44  ;;  %v3558_v62 = vsel %vm3541_vm3, %v3525_v14, %v6051_v43  ;;  %v3559_v30 = vsel %vm3541_vm3, %v3526_v18, %v6052_v2  ;;  %v3478_v45 = vsel %vm3475_vm0, %v3445_v16, %v6016_v41 }
 0x297   : > { %v3479_v55 = vsel %vm3475_vm0, %v3446_v38, %v6017_v42  ;;  %v6022_v26 = vunpack.i.h.bf16 %v9654_v47  ;;  %v6021_v29 = vunpack.i.l.bf16 %v9654_v47  ;;  %v3511_v35 = vsel %vm3508_vm2, %v3478_v45, %v6036_v10 }
 0x298   : > { %6329 = vrot.lane.b32.xlu0 %v6328_v5, %s6380_s22  ;;  %6334 = vrot.lane.b32.xlu1 %v6333_v13, %s6380_s22  ;;  %v3512_v1 = vsel %vm3508_vm2, %v3479_v55, %v6037_v51  ;;  %v6042_v52 = vunpack.i.h.bf16 %v9737_v59  ;;  %v6041_v36 = vunpack.i.l.bf16 %v9737_v59  ;;  %v3544_v16 = vsel %vm3541_vm3, %v3511_v35, %v6056_v0 }
 0x299   : > { %v3545_v38 = vsel %vm3541_vm3, %v3512_v1, %v6057_v21  ;;  %v6062_v47 = vunpack.i.h.bf16 %v9792_v49  ;;  %v6061_v42 = vunpack.i.l.bf16 %v9792_v49  ;;  %v3461_v41 = vsel %vm3442_vm14, %v9745_v34, %v5866_v11 }
 0x29a   : > { %v3462_v59 = vsel %vm3442_vm14, %v9755_v60, %v5867_v24  ;;  %v5591_v19 = vunpack.i.l.bf16 %v11096_v28  ;;  %v3494_v49 = vsel %vm3475_vm0, %v3461_v41, %v6021_v29  ;;  %v11123_v24 = vld [vmem:[#allocation106_spill] sm:$0xff]  ;;  %v3351_v21 = vsel %vm3343_vm11, %v9541_v3, %v5597_v53  ;;  %v11126_v3 = vld [vmem:[#allocation159_spill] sm:$0xff]  ;;  %v11129_v29 = vld [vmem:[#allocation129_spill] sm:$0xff] }
 0x29b   : > { %v3495_v15 = vsel %vm3475_vm0, %v3462_v59, %v6022_v26  ;;  %v3527_v34 = vsel %vm3508_vm2, %v3494_v49, %v6041_v36  ;;  %v5637_v18 = vunpack.i.h.bf16 %v11123_v24  ;;  %v5671_v53 = vunpack.i.l.bf16 %v11126_v3  ;;  %v11128_v28 = vld [vmem:[#allocation119_spill] sm:$0xff] }
 0x29c   : > { %v3528_v48 = vsel %vm3508_vm2, %v3495_v15, %v6042_v52  ;;  %v5672_v55 = vunpack.i.h.bf16 %v11126_v3  ;;  %v5712_v61 = vunpack.i.h.bf16 %v11128_v28  ;;  %v5711_v26 = vunpack.i.l.bf16 %v11128_v28 }
 0x29d   : > { %v3367_v45 = vsel %vm3343_vm11, %v9583_v58, %v5637_v18  ;;  %v5757_v35 = vunpack.i.h.bf16 %v11129_v29  ;;  %v5756_v1 = vunpack.i.l.bf16 %v11129_v29 }
 0x29e   : > { %v6070_v37 = vpop.permute.xlu0 %6069  ;;  %v6065_v7 = vpop.permute.xlu1 %6064 }
 0x29f   : > { %v6072_v22 = vunpack.i.h.bf16 %v6070_v37  ;;  %v6071_v31 = vunpack.i.l.bf16 %v6070_v37  ;;  %v6067_v23 = vunpack.i.h.bf16 %v6065_v7  ;;  %v6066_v6 = vunpack.i.l.bf16 %v6065_v7 }
 0x2a0   : > { %v5636_v37 = vunpack.i.l.bf16 %v11123_v24  ;;  %v3560_v7 = vsel %vm3541_vm3, %v3527_v34, %v6061_v42  ;;  %v11133_v34 = vld [vmem:[#allocation8_spill] sm:$0xff] }
 0x2a1   : > { %v3997_v5 = vsel %vm3996_vm1, %v3542_v50, %v6066_v6  ;;  %v3998_v13 = vsel %vm3996_vm1, %v3543_v4, %v6067_v23  ;;  %v4013_v9 = vsel %vm3996_vm1, %v3558_v62, %v6071_v31  ;;  %v4014_v8 = vsel %vm3996_vm1, %v3559_v30, %v6072_v22  ;;  %v11124_v22 = vld [vmem:[#allocation126_spill] sm:$0xff]  ;;  %v11125_v62 = vld [vmem:[#allocation123_spill] sm:$0xff] }
 0x2a2   : > { %v4029_v39 = vpack.c.bf16 %v3998_v13, %v3997_v5  ;;  %v4037_v12 = vpack.c.bf16 %v4014_v8, %v4013_v9  ;;  %v6075_v44 = vpop.permute.xlu1 %6074  ;;  %v3561_v50 = vsel %vm3541_vm3, %v3528_v48, %v6062_v47  ;;  %v3350_v4 = vsel %vm3343_vm11, %v9537_v57, %v5596_v25  ;;  %v11131_v47 = vld [vmem:[#allocation167_spill] sm:$0xff] }
 0x2a3   : > { %v6077_v46 = vunpack.i.h.bf16 %v6075_v44  ;;  %v6076_v17 = vunpack.i.l.bf16 %v6075_v44  ;;  %v5631_v31 = vunpack.i.l.bf16 %v11124_v22  ;;  %v5632_v0 = vunpack.i.h.bf16 %v11124_v22 }
 0x2a4   : > { %4858 = vmatprep.mubr.msk.bf16.mxu0 %vm4072_vm5, %v4029_v39  ;;  %4874 = vmatprep.mubr.msk.bf16.mxu1 %vm4072_vm5, %v4037_v12  ;;  %v5676_v30 = vunpack.i.l.bf16 %v11125_v62  ;;  %v3348_v57 = vsel %vm3343_vm11, %v9557_v54, %v5591_v19  ;;  %v5677_v25 = vunpack.i.h.bf16 %v11125_v62  ;;  %v3366_v8 = vsel %vm3343_vm11, %v9579_v33, %v5636_v37  ;;  %v11127_v39 = vld [vmem:[#allocation160_spill] sm:$0xff]  ;;  %v11132_v19 = vld [vmem:[#allocation169_spill] sm:$0xff] }
 0x2a5   : > { %v3999_v2 = vsel %vm3996_vm1, %v3544_v16, %v6076_v17  ;;  %v4000_v43 = vsel %vm3996_vm1, %v3545_v38, %v6077_v46  ;;  %v5716_v12 = vunpack.i.l.bf16 %v11127_v39  ;;  %v3364_v54 = vsel %vm3343_vm11, %v9593_v40, %v5631_v31  ;;  %v11130_v46 = vld [vmem:[#allocation161_spill] sm:$0xff]  ;;  %v11136_v62 = vld [vmem:[#allocation16_spill] sm:$0xff] }
 0x2a6   : > { %v4030_v51 = vpack.c.bf16 %v4000_v43, %v3999_v2  ;;  %v6080_v10 = vpop.permute.xlu0 %6079  ;;  %v9841_v14 = vpop.permute.xlu1 %6084  ;;  %v5717_v56 = vunpack.i.h.bf16 %v11127_v39  ;;  %v3365_v33 = vsel %vm3343_vm11, %v9598_v20, %v5632_v0  ;;  %v3383_v58 = vsel %vm3376_vm12, %v3350_v4, %v5676_v30 }
 0x2a7   : > { %v6082_v11 = vunpack.i.h.bf16 %v6080_v10  ;;  %v6081_v60 = vunpack.i.l.bf16 %v6080_v10  ;;  %v3384_v40 = vsel %vm3376_vm12, %v3351_v21, %v5677_v25  ;;  %v3381_v36 = vsel %vm3376_vm12, %v3348_v57, %v5671_v53 }
 0x2a8   : > { %4859 = vmatmul.mubr.msk.bf16.vlgmr.msra.gmra.mrb[0].mxu0 %vm4072_vm5, %v4030_v51  ;;  %v5752_v17 = vunpack.i.h.bf16 %v11130_v46  ;;  %v5751_v16 = vunpack.i.l.bf16 %v11130_v46  ;;  %v3382_v20 = vsel %vm3376_vm12, %v3349_v63, %v5672_v55  ;;  %v3399_v38 = vsel %vm3376_vm12, %v3366_v8, %v5716_v12 }
 0x2a9   : > { %v4016_v23 = vsel %vm3996_vm1, %v3561_v50, %v6082_v11  ;;  %v4015_v6 = vsel %vm3996_vm1, %v3560_v7, %v6081_v60  ;;  %v5797_v42 = vunpack.i.h.bf16 %v11131_v47  ;;  %v5796_v41 = vunpack.i.l.bf16 %v11131_v47  ;;  %v11134_v7 = vld [vmem:[#allocation10_spill] sm:$0xff] }
 0x2aa   : > { %v4038_v5 = vpack.c.bf16 %v4016_v23, %v4015_v6  ;;  %v9863_v13 = vpop.permute.xlu0 %6089  ;;  %v9865_v9 = vpop.permute.xlu1 %6094  ;;  %v3400_v59 = vsel %vm3376_vm12, %v3367_v45, %v5717_v56  ;;  %v3397_v2 = vsel %vm3376_vm12, %v3364_v54, %v5711_v26  ;;  %v3398_v43 = vsel %vm3376_vm12, %v3365_v33, %v5712_v61  ;;  %v11135_v23 = vld [vmem:[#allocation6_spill] sm:$0xff] }
 0x2ab   : > { %v5791_v15 = vunpack.i.l.bf16 %v11132_v19  ;;  %v3416_v49 = vsel %vm3409_vm13, %v3383_v58, %v5756_v1  ;;  %v3417_v51 = vsel %vm3409_vm13, %v3384_v40, %v5757_v35  ;;  %v5792_v10 = vunpack.i.h.bf16 %v11132_v19 }
 0x2ac   : > { %4875 = vmatmul.mubr.msk.bf16.vlgmr.msra.gmra.mrb[0].mxu1 %vm4072_vm5, %v4038_v5  ;;  %v5836_v48 = vunpack.i.l.bf16 %v11133_v34  ;;  %v3414_v24 = vsel %vm3409_vm13, %v3381_v36, %v5751_v16  ;;  %v3415_v18 = vsel %vm3409_vm13, %v3382_v20, %v5752_v17  ;;  %v5837_v37 = vunpack.i.h.bf16 %v11133_v34 }
 0x2ad   : > { %v5831_v50 = vunpack.i.l.bf16 %v11134_v7  ;;  %v3432_v4 = vsel %vm3409_vm13, %v3399_v38, %v5796_v41  ;;  %v3433_v22 = vsel %vm3409_vm13, %v3400_v59, %v5797_v42  ;;  %v5832_v31 = vunpack.i.h.bf16 %v11134_v7 }
 0x2ae   : > { %v9892_v44 = vpop.permute.xlu0 %6099  ;;  %v9894_v52 = vpop.permute.xlu1 %6104  ;;  %v5876_v6 = vunpack.i.l.bf16 %v11135_v23  ;;  %v3430_v21 = vsel %vm3409_vm13, %v3397_v2, %v5791_v15  ;;  %v5877_v0 = vunpack.i.h.bf16 %v11135_v23  ;;  %v5872_v30 = vunpack.i.h.bf16 %v11136_v62 }
 0x2af   : > { %v5871_v5 = vunpack.i.l.bf16 %v11136_v62  ;;  %v3431_v57 = vsel %vm3409_vm13, %v3398_v43, %v5792_v10  ;;  %v3449_v63 = vsel %vm3442_vm14, %v3416_v49, %v5836_v48  ;;  %v6087_v25 = vunpack.i.h.bf16 %v9841_v14 }
 0x2b0   : > { %v6086_v3 = vunpack.i.l.bf16 %v9841_v14  ;;  %v3450_v45 = vsel %vm3442_vm14, %v3417_v51, %v5837_v37  ;;  %v3447_v55 = vsel %vm3442_vm14, %v3414_v24, %v5831_v50  ;;  %v6092_v39 = vunpack.i.h.bf16 %v9863_v13 }
 0x2b1   : > { %v6091_v12 = vunpack.i.l.bf16 %v9863_v13  ;;  %v3448_v54 = vsel %vm3442_vm14, %v3415_v18, %v5832_v31  ;;  %v9938_v56 = vsel %vm3442_vm14, %v3432_v4, %v5876_v6  ;;  %v6097_v28 = vunpack.i.h.bf16 %v9865_v9 }
 0x2b2   : > { %v6110_v11 = vpop.permute.xlu0 %6109  ;;  %v9912_v60 = vpop.permute.xlu1 %6114  ;;  %v6096_v14 = vunpack.i.l.bf16 %v9865_v9  ;;  %v3466_v61 = vsel %vm3442_vm14, %v3433_v22, %v5877_v0  ;;  %v3463_v26 = vsel %vm3442_vm14, %v3430_v21, %v5871_v5  ;;  %v3464_v33 = vsel %vm3442_vm14, %v3431_v57, %v5872_v30 }
 0x2b3   : > { %v6106_v58 = vunpack.i.l.bf16 %v9894_v52  ;;  %v3480_v29 = vsel %vm3475_vm0, %v3447_v55, %v6086_v3  ;;  %v3481_v13 = vsel %vm3475_vm0, %v3448_v54, %v6087_v25  ;;  %v6107_v35 = vunpack.i.h.bf16 %v9894_v52 }
 0x2b4   : > { %v6111_v1 = vunpack.i.l.bf16 %v6110_v11  ;;  %v3496_v46 = vsel %vm3475_vm0, %v3463_v26, %v6091_v12  ;;  %v3497_v9 = vsel %vm3475_vm0, %v3464_v33, %v6092_v39  ;;  %v6112_v17 = vunpack.i.h.bf16 %v6110_v11 }
 0x2b5   : > { %v6116_v16 = vunpack.i.l.bf16 %v9912_v60  ;;  %v3483_v20 = vsel %vm3475_vm0, %v3450_v45, %v6097_v28  ;;  %v3482_v38 = vsel %vm3475_vm0, %v3449_v63, %v6096_v14  ;;  %v6102_v41 = vunpack.i.h.bf16 %v9892_v44 }
 0x2b6   : > { %v9930_v53 = vpop.permute.xlu0 %6119  ;;  %v6125_v8 = vpop.permute.xlu1 %6124  ;;  %v6101_v52 = vunpack.i.l.bf16 %v9892_v44  ;;  %v3513_v59 = vsel %vm3508_vm2, %v3480_v29, %v6106_v58  ;;  %v6117_v2 = vunpack.i.h.bf16 %v9912_v60  ;;  %v3514_v43 = vsel %vm3508_vm2, %v3481_v13, %v6107_v35 }
 0x2b7   : > { %v6127_v47 = vunpack.i.h.bf16 %v6125_v8  ;;  %v6126_v42 = vunpack.i.l.bf16 %v6125_v8  ;;  %v3529_v19 = vsel %vm3508_vm2, %v3496_v46, %v6111_v1  ;;  %v3530_v34 = vsel %vm3508_vm2, %v3497_v9, %v6112_v17 }
 0x2b8   : > { %v3515_v48 = vsel %vm3508_vm2, %v3482_v38, %v6116_v16  ;;  %v3516_v7 = vsel %vm3508_vm2, %v3483_v20, %v6117_v2  ;;  %v6122_v50 = vunpack.i.h.bf16 %v9930_v53  ;;  %v6121_v31 = vunpack.i.l.bf16 %v9930_v53 }
 0x2b9   : > { %v3546_v44 = vsel %vm3541_vm3, %v3513_v59, %v6126_v42  ;;  %v3547_v18 = vsel %vm3541_vm3, %v3514_v43, %v6127_v47  ;;  %v3499_v54 = vsel %vm3475_vm0, %v3466_v61, %v6102_v41  ;;  %v3498_v28 = vsel %vm3475_vm0, %v9938_v56, %v6101_v52  ;;  %v11137_v42 = vld [vmem:[#allocation15_spill] sm:$0xff]  ;;  %v11138_v59 = vld [vmem:[#allocation2_spill] sm:$0xff] }
 0x2ba   : > { %v6130_v40 = vpop.permute.xlu0 %6129  ;;  %v6135_v36 = vpop.permute.xlu1 %6134  ;;  %v3531_v29 = vsel %vm3508_vm2, %v3498_v28, %v6121_v31  ;;  %v3532_v13 = vsel %vm3508_vm2, %v3499_v54, %v6122_v50  ;;  %v5847_v41 = vunpack.i.h.bf16 %v11137_v42  ;;  %v5846_v52 = vunpack.i.l.bf16 %v11137_v42 }
 0x2bb   : > { %v6132_v15 = vunpack.i.h.bf16 %v6130_v40  ;;  %v6131_v49 = vunpack.i.l.bf16 %v6130_v40  ;;  %v6137_v37 = vunpack.i.h.bf16 %v6135_v36  ;;  %v6136_v60 = vunpack.i.l.bf16 %v6135_v36 }
 0x2bc   : > { %v5842_v2 = vunpack.i.h.bf16 %v11138_v59  ;;  %v5841_v43 = vunpack.i.l.bf16 %v11138_v59 }
 0x2bd   : > { %v3562_v23 = vsel %vm3541_vm3, %v3529_v19, %v6131_v49  ;;  %v3563_v6 = vsel %vm3541_vm3, %v3530_v34, %v6132_v15  ;;  %v3548_v25 = vsel %vm3541_vm3, %v3515_v48, %v6136_v60  ;;  %v3549_v3 = vsel %vm3541_vm3, %v3516_v7, %v6137_v37  ;;  %v11139_v48 = vld [vmem:[#allocation162_spill] sm:$0xff]  ;;  %v11141_v37 = vld [vmem:[#allocation165_spill] sm:$0xff] }
 0x2be   : > { %v6140_v51 = vpop.permute.xlu0 %6139  ;;  %v6145_v10 = vpop.permute.xlu1 %6144  ;;  %v3451_v60 = vsel %vm3442_vm14, %v11141_v37, %v5841_v43  ;;  %v11142_v7 = vld [vmem:[#allocation166_spill] sm:$0xff] }
 0x2bf   : > { %v6147_v11 = vunpack.i.h.bf16 %v6145_v10  ;;  %v6146_v24 = vunpack.i.l.bf16 %v6145_v10  ;;  %v6142_v8 = vunpack.i.h.bf16 %v6140_v51  ;;  %v6141_v45 = vunpack.i.l.bf16 %v6140_v51 }
 0x2c0   : > { %v3452_v50 = vsel %vm3442_vm14, %v11142_v7, %v5842_v2 }
 0x2c1   : > { %v4001_v4 = vsel %vm3996_vm1, %v3546_v44, %v6146_v24  ;;  %v4002_v22 = vsel %vm3996_vm1, %v3547_v18, %v6147_v11  ;;  %v3564_v40 = vsel %vm3541_vm3, %v3531_v29, %v6141_v45  ;;  %v3565_v36 = vsel %vm3541_vm3, %v3532_v13, %v6142_v8  ;;  %v11140_v24 = vld [vmem:[#allocation163_spill] sm:$0xff] }
 0x2c2   : > { %v4031_v21 = vpack.c.bf16 %v4002_v22, %v4001_v4  ;;  %v6150_v0 = vpop.permute.xlu0 %6149  ;;  %v6155_v62 = vpop.permute.xlu1 %6154  ;;  %v3453_v11 = vsel %vm3442_vm14, %v11139_v48, %v5846_v52  ;;  %v3454_v44 = vsel %vm3442_vm14, %v11140_v24, %v5847_v41  ;;  %v11143_v4 = vld [vmem:[#allocation171_spill] sm:$0xff] }
 0x2c3   : > { %v6152_v30 = vunpack.i.h.bf16 %v6150_v0  ;;  %v6151_v5 = vunpack.i.l.bf16 %v6150_v0  ;;  %v6157_v57 = vunpack.i.h.bf16 %v6155_v62  ;;  %v6156_v63 = vunpack.i.l.bf16 %v6155_v62 }
 0x2c4   : > { %4862 = vmatprep.mubr.msk.bf16.mxu0 %vm4072_vm5, %v4031_v21 }
 0x2c5   : > { %v4017_v53 = vsel %vm3996_vm1, %v3562_v23, %v6151_v5  ;;  %v4018_v55 = vsel %vm3996_vm1, %v3563_v6, %v6152_v30  ;;  %v4003_v39 = vsel %vm3996_vm1, %v3548_v25, %v6156_v63  ;;  %v4004_v12 = vsel %vm3996_vm1, %v3549_v3, %v6157_v57  ;;  %v11144_v23 = vld [vmem:[#allocation170_spill] sm:$0xff] }
 0x2c6   : > { %v4039_v14 = vpack.c.bf16 %v4018_v55, %v4017_v53  ;;  %v4032_v26 = vpack.c.bf16 %v4004_v12, %v4003_v39  ;;  %v6160_v33 = vpop.permute.xlu0 %6159  ;;  %v6165_v58 = vpop.permute.xlu1 %6164 }
 0x2c7   : > { %v6162_v35 = vunpack.i.h.bf16 %v6160_v33  ;;  %v6161_v1 = vunpack.i.l.bf16 %v6160_v33  ;;  %v6167_v19 = vunpack.i.h.bf16 %v6165_v58  ;;  %v6166_v15 = vunpack.i.l.bf16 %v6165_v58 }
 0x2c8   : > { %4863 = vmatmul.mubr.msk.bf16.gmra.mrb[4].mxu0 %vm4072_vm5, %v4032_v26  ;;  %4878 = vmatprep.mubr.msk.bf16.mxu1 %vm4072_vm5, %v4039_v14 }
 0x2c9   : > { %v4019_v56 = vsel %vm3996_vm1, %v3564_v40, %v6161_v1  ;;  %v4020_v61 = vsel %vm3996_vm1, %v3565_v36, %v6162_v35  ;;  %v3470_v22 = vsel %vm3442_vm14, %v11143_v4, %v6167_v19  ;;  %v3469_v6 = vsel %vm3442_vm14, %v11144_v23, %v6166_v15 }
 0x2ca   : > { %v4040_v46 = vpack.c.bf16 %v4020_v61, %v4019_v56  ;;  %v6170_v9 = vpop.permute.xlu0 %6169  ;;  %v6175_v17 = vpop.permute.xlu1 %6174 }
 0x2cb   : > { %v6172_v49 = vunpack.i.h.bf16 %v6170_v9  ;;  %v6171_v51 = vunpack.i.l.bf16 %v6170_v9  ;;  %v6176_v18 = vunpack.i.l.bf16 %v6175_v17  ;;  %v6177_v31 = vunpack.i.h.bf16 %v6175_v17 }
 0x2cc   : > { %4879 = vmatmul.mubr.msk.bf16.gmra.mrb[4].mxu1 %vm4072_vm5, %v4040_v46 }
 0x2cd   : > { %v3484_v21 = vsel %vm3475_vm0, %v3451_v60, %v6171_v51  ;;  %v3485_v0 = vsel %vm3475_vm0, %v3452_v50, %v6172_v49  ;;  %v3500_v8 = vsel %vm3475_vm0, %v9106_v27, %v6176_v18  ;;  %v3501_v39 = vsel %vm3475_vm0, %v9110_v32, %v6177_v31 }
 0x2ce   : > { %v6180_v16 = vpop.permute.xlu0 %6179  ;;  %v6185_v20 = vpop.permute.xlu1 %6184 }
 0x2cf   : > { %v6182_v62 = vunpack.i.h.bf16 %v6180_v16  ;;  %v6181_v57 = vunpack.i.l.bf16 %v6180_v16  ;;  %v6187_v63 = vunpack.i.h.bf16 %v6185_v20  ;;  %v6186_v25 = vunpack.i.l.bf16 %v6185_v20 }
 0x2d1   : > { %v3487_v14 = vsel %vm3475_vm0, %v3454_v44, %v6182_v62  ;;  %v3486_v35 = vsel %vm3475_vm0, %v3453_v11, %v6181_v57  ;;  %v3502_v27 = vsel %vm3475_vm0, %v3469_v6, %v6186_v25  ;;  %v3503_v1 = vsel %vm3475_vm0, %v3470_v22, %v6187_v63 }
 0x2d2   : > { %v6190_v38 = vpop.permute.xlu0 %6189  ;;  %v6195_v47 = vpop.permute.xlu1 %6194 }
 0x2d3   : > { %v6191_v3 = vunpack.i.l.bf16 %v6190_v38  ;;  %v6192_v45 = vunpack.i.h.bf16 %v6190_v38  ;;  %v6197_v53 = vunpack.i.h.bf16 %v6195_v47  ;;  %v6196_v55 = vunpack.i.l.bf16 %v6195_v47 }
 0x2d5   : > { %v3517_v40 = vsel %vm3508_vm2, %v3484_v21, %v6191_v3  ;;  %v3518_v32 = vsel %vm3508_vm2, %v3485_v0, %v6192_v45  ;;  %v3533_v36 = vsel %vm3508_vm2, %v3500_v8, %v6196_v55  ;;  %v3534_v56 = vsel %vm3508_vm2, %v3501_v39, %v6197_v53 }
 0x2d6   : > { %v6200_v10 = vpop.permute.xlu0 %6199  ;;  %v9994_v34 = vpop.permute.xlu1 %6204 }
 0x2d7   : > { %v6202_v12 = vunpack.i.h.bf16 %v6200_v10  ;;  %v6201_v54 = vunpack.i.l.bf16 %v6200_v10  ;;  %v6206_v28 = vunpack.i.l.bf16 %v9994_v34  ;;  %v6207_v17 = vunpack.i.h.bf16 %v9994_v34 }
 0x2d9   : > { %v3519_v46 = vsel %vm3508_vm2, %v3486_v35, %v6201_v54  ;;  %v3520_v9 = vsel %vm3508_vm2, %v3487_v14, %v6202_v12  ;;  %v3535_v16 = vsel %vm3508_vm2, %v3502_v27, %v6206_v28  ;;  %v3536_v44 = vsel %vm3508_vm2, %v3503_v1, %v6207_v17  ;;  %v11145_v1 = vld [vmem:[#allocation11_spill] sm:$0xff] }
 0x2da   : > { %v6210_v30 = vpop.permute.xlu0 %6209  ;;  %v6215_v5 = vpop.permute.xlu1 %6214 }
 0x2db   : > { %v6212_v26 = vunpack.i.h.bf16 %v6210_v30  ;;  %v6211_v33 = vunpack.i.l.bf16 %v6210_v30  ;;  %v6216_v58 = vunpack.i.l.bf16 %v6215_v5  ;;  %v6217_v61 = vunpack.i.h.bf16 %v6215_v5 }
 0x2dd   : > { %v3550_v20 = vsel %vm3541_vm3, %v3517_v40, %v6211_v33  ;;  %v3551_v38 = vsel %vm3541_vm3, %v3518_v32, %v6212_v26  ;;  %v3566_v47 = vsel %vm3541_vm3, %v3533_v36, %v6216_v58  ;;  %v3567_v15 = vsel %vm3541_vm3, %v3534_v56, %v6217_v61  ;;  %v11146_v32 = vld [vmem:[#allocation175_spill] sm:$0xff]  ;;  %v11147_v56 = vld [vmem:[#allocation173_spill] sm:$0xff] }
 0x2de   : > { %v6220_v29 = vpop.permute.xlu0 %6219  ;;  %v6225_v13 = vpop.permute.xlu1 %6224 }
 0x2df   : > { %v6221_v42 = vunpack.i.l.bf16 %v6220_v29  ;;  %v6222_v49 = vunpack.i.h.bf16 %v6220_v29  ;;  %v6227_v51 = vunpack.i.h.bf16 %v6225_v13  ;;  %v6226_v10 = vunpack.i.l.bf16 %v6225_v13 }
 0x2e1   : > { %v3552_v18 = vsel %vm3541_vm3, %v3519_v46, %v6221_v42  ;;  %v3553_v6 = vsel %vm3541_vm3, %v3520_v9, %v6222_v49  ;;  %v3568_v21 = vsel %vm3541_vm3, %v3535_v16, %v6226_v10  ;;  %v3569_v0 = vsel %vm3541_vm3, %v3536_v44, %v6227_v51  ;;  %v11148_v9 = vld [vmem:[#allocation172_spill] sm:$0xff]  ;;  %v11149_v16 = vld [vmem:[#allocation7_spill] sm:$0xff] }
 0x2e2   : > { %v6230_v41 = vpop.permute.xlu0 %6229  ;;  %v6235_v52 = vpop.permute.xlu1 %6234  ;;  %v11151_v44 = vld [vmem:[#allocation4_spill] sm:$0xff] }
 0x2e3   : > { %v6232_v59 = vunpack.i.h.bf16 %v6230_v41  ;;  %v6231_v2 = vunpack.i.l.bf16 %v6230_v41  ;;  %v6237_v43 = vunpack.i.h.bf16 %v6235_v52  ;;  %v6236_v19 = vunpack.i.l.bf16 %v6235_v52 }
 0x2e5   : > { %v4005_v34 = vsel %vm3996_vm1, %v3550_v20, %v6231_v2  ;;  %v4006_v48 = vsel %vm3996_vm1, %v3551_v38, %v6232_v59  ;;  %v4021_v11 = vsel %vm3996_vm1, %v3566_v47, %v6236_v19  ;;  %v4022_v24 = vsel %vm3996_vm1, %v3567_v15, %v6237_v43  ;;  %v11150_v38 = vld [vmem:[#allocation12_spill] sm:$0xff] }
 0x2e6   : > { %v4033_v37 = vpack.c.bf16 %v4006_v48, %v4005_v34  ;;  %v4041_v60 = vpack.c.bf16 %v4022_v24, %v4021_v11  ;;  %v6240_v7 = vpop.permute.xlu0 %6239  ;;  %v6245_v50 = vpop.permute.xlu1 %6244 }
 0x2e7   : > { %v6242_v4 = vunpack.i.h.bf16 %v6240_v7  ;;  %v6241_v22 = vunpack.i.l.bf16 %v6240_v7  ;;  %v6247_v31 = vunpack.i.h.bf16 %v6245_v50  ;;  %v6246_v23 = vunpack.i.l.bf16 %v6245_v50 }
 0x2e8   : > { %4866 = vmatprep.mubr.msk.bf16.mxu0 %vm4072_vm5, %v4033_v37  ;;  %4882 = vmatprep.mubr.msk.bf16.mxu1 %vm4072_vm5, %v4041_v60 }
 0x2e9   : > { %v4007_v62 = vsel %vm3996_vm1, %v3552_v18, %v6241_v22  ;;  %v4008_v30 = vsel %vm3996_vm1, %v3553_v6, %v6242_v4  ;;  %v4023_v5 = vsel %vm3996_vm1, %v3568_v21, %v6246_v23  ;;  %v4024_v57 = vsel %vm3996_vm1, %v3569_v0, %v6247_v31  ;;  %v11152_v22 = vld [vmem:[#allocation3_spill] sm:$0xff] }
 0x2ea   : > { %v4034_v63 = vpack.c.bf16 %v4008_v30, %v4007_v62  ;;  %v4042_v25 = vpack.c.bf16 %v4024_v57, %v4023_v5  ;;  %v6250_v3 = vpop.permute.xlu0 %6249  ;;  %v6255_v8 = vpop.permute.xlu1 %6254 }
 0x2eb   : > { %v6252_v28 = vunpack.i.h.bf16 %v6250_v3  ;;  %v6251_v14 = vunpack.i.l.bf16 %v6250_v3  ;;  %v6257_v26 = vunpack.i.h.bf16 %v6255_v8  ;;  %v6256_v33 = vunpack.i.l.bf16 %v6255_v8 }
 0x2ec   : > { %4867 = vmatmul.mubr.msk.bf16.gmra.mrb[8].mxu0 %vm4072_vm5, %v4034_v63  ;;  %4883 = vmatmul.mubr.msk.bf16.gmra.mrb[8].mxu1 %vm4072_vm5, %v4042_v25 }
 0x2ed   : > { %v3471_v40 = vsel %vm3442_vm14, %v11145_v1, %v6251_v14  ;;  %v3472_v36 = vsel %vm3442_vm14, %v11146_v32, %v6252_v28  ;;  %v3474_v61 = vsel %vm3442_vm14, %v11147_v56, %v6257_v26  ;;  %v3473_v17 = vsel %vm3442_vm14, %v11148_v9, %v6256_v33 }
 0x2ee   : > { %v6260_v45 = vpop.permute.xlu0 %6259  ;;  %v6265_v53 = vpop.permute.xlu1 %6264 }
 0x2ef   : > { %v6262_v58 = vunpack.i.h.bf16 %v6260_v45  ;;  %v6261_v29 = vunpack.i.l.bf16 %v6260_v45  ;;  %v6266_v27 = vunpack.i.l.bf16 %v6265_v53  ;;  %v6267_v46 = vunpack.i.h.bf16 %v6265_v53 }
 0x2f1   : > { %v3488_v20 = vsel %vm3475_vm0, %v11149_v16, %v6261_v29  ;;  %v3489_v47 = vsel %vm3475_vm0, %v11150_v38, %v6262_v58  ;;  %v3504_v15 = vsel %vm3475_vm0, %v3471_v40, %v6266_v27  ;;  %v3505_v34 = vsel %vm3475_vm0, %v3472_v36, %v6267_v46 }
 0x2f2   : > { %v6270_v55 = vpop.permute.xlu0 %6269  ;;  %v6275_v39 = vpop.permute.xlu1 %6274 }
 0x2f3   : > { %v6272_v42 = vunpack.i.h.bf16 %v6270_v55  ;;  %v6271_v59 = vunpack.i.l.bf16 %v6270_v55  ;;  %v6277_v2 = vunpack.i.h.bf16 %v6275_v39  ;;  %v6276_v43 = vunpack.i.l.bf16 %v6275_v39 }
 0x2f5   : > { %v3491_v18 = vsel %vm3475_vm0, %v11151_v44, %v6272_v42  ;;  %v3490_v31 = vsel %vm3475_vm0, %v11152_v22, %v6271_v59  ;;  %v3506_v23 = vsel %vm3475_vm0, %v3473_v17, %v6276_v43  ;;  %v3507_v6 = vsel %vm3475_vm0, %v3474_v61, %v6277_v2 }
 0x2f6   : > { %v6280_v12 = vpop.permute.xlu0 %6279  ;;  %v6285_v54 = vpop.permute.xlu1 %6284 }
 0x2f7   : > { %v6281_v19 = vunpack.i.l.bf16 %v6280_v12  ;;  %v6282_v49 = vunpack.i.h.bf16 %v6280_v12  ;;  %v6287_v51 = vunpack.i.h.bf16 %v6285_v54  ;;  %v6286_v10 = vunpack.i.l.bf16 %v6285_v54 }
 0x2f9   : > { %v3521_v21 = vsel %vm3508_vm2, %v3488_v20, %v6281_v19  ;;  %v3522_v0 = vsel %vm3508_vm2, %v3489_v47, %v6282_v49  ;;  %v3537_v62 = vsel %vm3508_vm2, %v3504_v15, %v6286_v10  ;;  %v3538_v30 = vsel %vm3508_vm2, %v3505_v34, %v6287_v51  ;;  %v10105_v49 = vld [vmem:[%s10256_s7] ss:$0 sm:$0xff]  ;;  %v4288_v10 = vld [vmem:[%s10100_s27 + $0x10] sm:$0xff] }
 0x2fa   : > { %v6290_v13 = vpop.permute.xlu0 %6289  ;;  %v6295_v35 = vpop.permute.xlu1 %6294 }
 0x2fb   : > { %v6292_v48 = vunpack.i.h.bf16 %v6290_v13  ;;  %v6291_v11 = vunpack.i.l.bf16 %v6290_v13  ;;  %v6296_v24 = vunpack.i.l.bf16 %v6295_v35  ;;  %v6297_v25 = vunpack.i.h.bf16 %v6295_v35 }
 0x2fd   : > { %v3523_v57 = vsel %vm3508_vm2, %v3490_v31, %v6291_v11  ;;  %v3524_v63 = vsel %vm3508_vm2, %v3491_v18, %v6292_v48  ;;  %v3539_v3 = vsel %vm3508_vm2, %v3506_v23, %v6296_v24  ;;  %v3540_v32 = vsel %vm3508_vm2, %v3507_v6, %v6297_v25  ;;  %v4286_v11 = vld [vmem:[%s10100_s27] sm:$0xff]  ;;  %v4289_v18 = vld [vmem:[%s10100_s27 + $0x18] sm:$0xff]  ;;  %v4304_v23 = vld [vmem:[%s10100_s27 + $0x90] sm:$0xff] }
 0x2fe   : > { %v6300_v41 = vpop.permute.xlu0 %6299  ;;  %v6305_v52 = vpop.permute.xlu1 %6304 }
 0x2ff   : > { %v6302_v37 = vunpack.i.h.bf16 %v6300_v41  ;;  %v6301_v60 = vunpack.i.l.bf16 %v6300_v41  ;;  %v6306_v7 = vunpack.i.l.bf16 %v6305_v52  ;;  %v6307_v5 = vunpack.i.h.bf16 %v6305_v52 }
 0x301   : > { %v3554_v8 = vsel %vm3541_vm3, %v3521_v21, %v6301_v60  ;;  %v3555_v45 = vsel %vm3541_vm3, %v3522_v0, %v6302_v37  ;;  %v3570_v53 = vsel %vm3541_vm3, %v3537_v62, %v6306_v7  ;;  %v3571_v33 = vsel %vm3541_vm3, %v3538_v30, %v6307_v5  ;;  %v4302_v62 = vld [vmem:[%s10100_s27 + $0x80] sm:$0xff] }
 0x302   : > { %v6310_v50 = vpop.permute.xlu0 %6309  ;;  %v6315_v4 = vpop.permute.xlu1 %6314 }
 0x303   : > { %v6311_v55 = vunpack.i.l.bf16 %v6310_v50  ;;  %v6312_v58 = vunpack.i.h.bf16 %v6310_v50  ;;  %v6317_v29 = vunpack.i.h.bf16 %v6315_v4  ;;  %v6316_v13 = vunpack.i.l.bf16 %v6315_v4  ;;  %v4287_v50 = vld [vmem:[%s10100_s27 + $0x8] sm:$0xff] }
 0x305   : > { %v3556_v36 = vsel %vm3541_vm3, %v3523_v57, %v6311_v55  ;;  %v3557_v47 = vsel %vm3541_vm3, %v3524_v63, %v6312_v58  ;;  %v3572_v42 = vsel %vm3541_vm3, %v3539_v3, %v6316_v13  ;;  %v3573_v41 = vsel %vm3541_vm3, %v3540_v32, %v6317_v29  ;;  %v4305_v63 = vld [vmem:[%s10100_s27 + $0x98] sm:$0xff] }
 0x306   : > { %v6320_v39 = vpop.permute.xlu0 %6319  ;;  %v6325_v12 = vpop.permute.xlu1 %6324  ;;  %v4293_v13 = vld [vmem:[%s10100_s27 + $0x38] sm:$0xff] }
 0x307   : > { %v6322_v54 = vunpack.i.h.bf16 %v6320_v39  ;;  %v6321_v28 = vunpack.i.l.bf16 %v6320_v39  ;;  %v6327_v14 = vunpack.i.h.bf16 %v6325_v12  ;;  %v6326_v26 = vunpack.i.l.bf16 %v6325_v12 }
 0x309   : > { %v4009_v35 = vsel %vm3996_vm1, %v3554_v8, %v6321_v28  ;;  %v4010_v27 = vsel %vm3996_vm1, %v3555_v45, %v6322_v54  ;;  %v4025_v1 = vsel %vm3996_vm1, %v3570_v53, %v6326_v26  ;;  %v4026_v40 = vsel %vm3996_vm1, %v3571_v33, %v6327_v14  ;;  %v4303_v45 = vld [vmem:[%s10100_s27 + $0x88] sm:$0xff]  ;;  %v4292_v28 = vld [vmem:[%s10100_s27 + $0x30] sm:$0xff]  ;;  %v4290_v33 = vld [vmem:[%s10100_s27 + $0x20] sm:$0xff] }
 0x30a   : > { %v4035_v56 = vpack.c.bf16 %v4010_v27, %v4009_v35  ;;  %v4043_v61 = vpack.c.bf16 %v4026_v40, %v4025_v1  ;;  %v6330_v46 = vpop.permute.xlu0 %6329  ;;  %v6335_v9 = vpop.permute.xlu1 %6334  ;;  %v4291_v40 = vld [vmem:[%s10100_s27 + $0x28] sm:$0xff] }
 0x30b   : > { %v6332_v17 = vunpack.i.h.bf16 %v6330_v46  ;;  %v6331_v16 = vunpack.i.l.bf16 %v6330_v46  ;;  %v6337_v20 = vunpack.i.h.bf16 %v6335_v9  ;;  %v6336_v38 = vunpack.i.l.bf16 %v6335_v9 }
 0x30c   : > { %4870 = vmatprep.mubr.msk.bf16.mxu0 %vm4072_vm5, %v4035_v56  ;;  %4886 = vmatprep.mubr.msk.bf16.mxu1 %vm4072_vm5, %v4043_v61  ;;  %v4308_v61 = vld [vmem:[%s10100_s27 + $0xb0] sm:$0xff] }
 0x30d   : > { %v4011_v52 = vsel %vm3996_vm1, %v3556_v36, %v6331_v16  ;;  %v4012_v59 = vsel %vm3996_vm1, %v3557_v47, %v6332_v17  ;;  %v4027_v2 = vsel %vm3996_vm1, %v3572_v42, %v6336_v38  ;;  %v4028_v43 = vsel %vm3996_vm1, %v3573_v41, %v6337_v20  ;;  %v4306_v16 = vld [vmem:[%s10100_s27 + $0xa0] sm:$0xff]  ;;  %v4309_v42 = vld [vmem:[%s10100_s27 + $0xb8] sm:$0xff] }
 0x30e   : > { %v4036_v19 = vpack.c.bf16 %v4012_v59, %v4011_v52  ;;  %v4044_v15 = vpack.c.bf16 %v4028_v43, %v4027_v2  ;;  %v4307_v2 = vld [vmem:[%s10100_s27 + $0xa8] sm:$0xff] }
 0x310   : > { %4871 = vmatmul.mubr.msk.bf16.gmra.mrb[12].mxu0 %vm4072_vm5, %v4036_v19  ;;  %4887 = vmatmul.mubr.msk.bf16.gmra.mrb[12].mxu1 %vm4072_vm5, %v4044_v15 }
 0x37b   : > { %v4860_v51 = vpop.f32.mrb[0].mxu0 }
 0x37c   : > { %v4168_v34 = vadd.f32 %v4860_v51, %v10105_v49  ;;  %v4159_v48 = vpop.f32.mrb[1].mxu0 }
 0x37d   : > { %v4160_v24 = vadd.f32 %v10105_v49, %v4159_v48  ;;  %v4861_v44 = vpop.f32.mrb[2].mxu0 }
 0x37e   : > { %v4320_v37 = vadd.f32 %v4288_v10, %v4168_v34  ;;  %v4171_v60 = vadd.f32 %v4861_v44, %v10105_v49  ;;  %v4162_v7 = vpop.f32.mrb[3].mxu0  ;;  %v4296_v34 = vld [vmem:[%s10100_s27 + $0x50] sm:$0xff] }
 0x37f   : > { %v4318_v4 = vadd.f32 %v4286_v11, %v4160_v24  ;;  %v4163_v22 = vadd.f32 %v10105_v49, %v4162_v7  ;;  %v4876_v31 = vpop.f32.mrb[0].mxu1  ;;  %v4312_v11 = vld [vmem:[%s10100_s27 + $0xd0] sm:$0xff]  ;;  %v4310_v7 = vld [vmem:[%s10100_s27 + $0xc0] sm:$0xff] }
 0x380   : > { %4352 = vst.msk [vmem:[%s10113_s13 + $0x10] sm:$0xff] %vm3112_vm4, %v4320_v37  ;;  %v4321_v6 = vadd.f32 %v4289_v18, %v4171_v60  ;;  %v4232_v21 = vadd.f32 %v4876_v31, %v10105_v49  ;;  %v4223_v0 = vpop.f32.mrb[1].mxu1  ;;  %v4294_v37 = vld [vmem:[%s10100_s27 + $0x40] sm:$0xff]  ;;  %v4297_v31 = vld [vmem:[%s10100_s27 + $0x58] sm:$0xff] }
 0x381   : > { %4350 = vst.msk [vmem:[%s10113_s13] sm:$0xff] %vm3112_vm4, %v4318_v4  ;;  %v4319_v30 = vadd.f32 %v4287_v50, %v4163_v22  ;;  %v4224_v5 = vadd.f32 %v10105_v49, %v4223_v0  ;;  %v4877_v57 = vpop.f32.mrb[2].mxu1 }
 0x382   : > { %4353 = vst.msk [vmem:[%s10113_s13 + $0x18] sm:$0xff] %vm3112_vm4, %v4321_v6  ;;  %v4336_v25 = vadd.f32 %v4304_v23, %v4232_v21  ;;  %v4235_v3 = vadd.f32 %v4877_v57, %v10105_v49  ;;  %v4226_v8 = vpop.f32.mrb[3].mxu1  ;;  %v4313_v6 = vld [vmem:[%s10100_s27 + $0xd8] sm:$0xff]  ;;  %v4295_v57 = vld [vmem:[%s10100_s27 + $0x48] sm:$0xff] }
 0x383   : > { %4351 = vst.msk [vmem:[%s10113_s13 + $0x8] sm:$0xff] %vm3112_vm4, %v4319_v30  ;;  %v4334_v53 = vadd.f32 %v4302_v62, %v4224_v5  ;;  %v4227_v55 = vadd.f32 %v10105_v49, %v4226_v8 }
 0x384   : > { %4368 = vst.msk [vmem:[%s10113_s13 + $0x90] sm:$0xff] %vm3112_vm4, %v4336_v25  ;;  %v4337_v39 = vadd.f32 %v4305_v63, %v4235_v3  ;;  %v4311_v25 = vld [vmem:[%s10100_s27 + $0xc8] sm:$0xff] }
 0x385   : > { %4366 = vst.msk [vmem:[%s10113_s13 + $0x80] sm:$0xff] %vm3112_vm4, %v4334_v53  ;;  %v4335_v12 = vadd.f32 %v4303_v45, %v4227_v55 }
 0x386   : > { %4369 = vst.msk [vmem:[%s10113_s13 + $0x98] sm:$0xff] %vm3112_vm4, %v4337_v39 }
 0x387   : > { %4367 = vst.msk [vmem:[%s10113_s13 + $0x88] sm:$0xff] %vm3112_vm4, %v4335_v12 }
 0x39b   : > { %v4864_v54 = vpop.f32.mrb[4].mxu0 }
 0x39c   : > { %v4184_v14 = vadd.f32 %v4864_v54, %v10105_v49  ;;  %v4175_v26 = vpop.f32.mrb[5].mxu0 }
 0x39d   : > { %v4176_v58 = vadd.f32 %v10105_v49, %v4175_v26  ;;  %v4865_v29 = vpop.f32.mrb[6].mxu0 }
 0x39e   : > { %v4324_v35 = vadd.f32 %v4292_v28, %v4184_v14  ;;  %v4187_v27 = vadd.f32 %v4865_v29, %v10105_v49  ;;  %v4178_v1 = vpop.f32.mrb[7].mxu0  ;;  %v4300_v14 = vld [vmem:[%s10100_s27 + $0x70] sm:$0xff] }
 0x39f   : > { %v4322_v32 = vadd.f32 %v4290_v33, %v4176_v58  ;;  %v4179_v36 = vadd.f32 %v10105_v49, %v4178_v1  ;;  %v4880_v56 = vpop.f32.mrb[4].mxu1  ;;  %v4316_v33 = vld [vmem:[%s10100_s27 + $0xf0] sm:$0xff]  ;;  %v4314_v1 = vld [vmem:[%s10100_s27 + $0xe0] sm:$0xff] }
 0x3a0   : > { %4356 = vst.msk [vmem:[%s10113_s13 + $0x30] sm:$0xff] %vm3112_vm4, %v4324_v35  ;;  %v4325_v46 = vadd.f32 %v4293_v13, %v4187_v27  ;;  %v4248_v9 = vadd.f32 %v4880_v56, %v10105_v49  ;;  %v4239_v17 = vpop.f32.mrb[5].mxu1  ;;  %v4298_v35 = vld [vmem:[%s10100_s27 + $0x60] sm:$0xff]  ;;  %v4301_v56 = vld [vmem:[%s10100_s27 + $0x78] sm:$0xff] }
 0x3a1   : > { %4354 = vst.msk [vmem:[%s10113_s13 + $0x20] sm:$0xff] %vm3112_vm4, %v4322_v32  ;;  %v4323_v20 = vadd.f32 %v4291_v40, %v4179_v36  ;;  %v4240_v38 = vadd.f32 %v10105_v49, %v4239_v17  ;;  %v4881_v47 = vpop.f32.mrb[6].mxu1 }
 0x3a2   : > { %4357 = vst.msk [vmem:[%s10113_s13 + $0x38] sm:$0xff] %vm3112_vm4, %v4325_v46  ;;  %v4340_v41 = vadd.f32 %v4308_v61, %v4248_v9  ;;  %v4251_v52 = vadd.f32 %v4881_v47, %v10105_v49  ;;  %v4242_v59 = vpop.f32.mrb[7].mxu1  ;;  %v4317_v46 = vld [vmem:[%s10100_s27 + $0xf8] sm:$0xff]  ;;  %v4299_v47 = vld [vmem:[%s10100_s27 + $0x68] sm:$0xff] }
 0x3a3   : > { %4355 = vst.msk [vmem:[%s10113_s13 + $0x28] sm:$0xff] %vm3112_vm4, %v4323_v20  ;;  %v4338_v43 = vadd.f32 %v4306_v16, %v4240_v38  ;;  %v4243_v19 = vadd.f32 %v10105_v49, %v4242_v59 }
 0x3a4   : > { %4372 = vst.msk [vmem:[%s10113_s13 + $0xb0] sm:$0xff] %vm3112_vm4, %v4340_v41  ;;  %v4341_v15 = vadd.f32 %v4309_v42, %v4251_v52  ;;  %v4315_v41 = vld [vmem:[%s10100_s27 + $0xe8] sm:$0xff] }
 0x3a5   : > { %4370 = vst.msk [vmem:[%s10113_s13 + $0xa0] sm:$0xff] %vm3112_vm4, %v4338_v43  ;;  %v4339_v51 = vadd.f32 %v4307_v2, %v4243_v19 }
 0x3a6   : > { %4373 = vst.msk [vmem:[%s10113_s13 + $0xb8] sm:$0xff] %vm3112_vm4, %v4341_v15 }
 0x3a7   : > { %4371 = vst.msk [vmem:[%s10113_s13 + $0xa8] sm:$0xff] %vm3112_vm4, %v4339_v51 }
 0x3bf   : > { %v4868_v10 = vpop.f32.mrb[8].mxu0  ;;  %v4884_v48 = vpop.f32.mrb[8].mxu1 }
 0x3c0   : > { %v4200_v24 = vadd.f32 %v4868_v10, %v10105_v49  ;;  %v4264_v44 = vadd.f32 %v4884_v48, %v10105_v49  ;;  %v4191_v18 = vpop.f32.mrb[9].mxu0  ;;  %v4255_v60 = vpop.f32.mrb[9].mxu1 }
 0x3c1   : > { %v4192_v50 = vadd.f32 %v10105_v49, %v4191_v18  ;;  %v4256_v4 = vadd.f32 %v10105_v49, %v4255_v60  ;;  %v4869_v22 = vpop.f32.mrb[10].mxu0  ;;  %v4885_v23 = vpop.f32.mrb[10].mxu1 }
 0x3c2   : > { %v4328_v21 = vadd.f32 %v4296_v34, %v4200_v24  ;;  %v4344_v0 = vadd.f32 %v4312_v11, %v4264_v44  ;;  %v4203_v62 = vadd.f32 %v4869_v22, %v10105_v49  ;;  %v4267_v30 = vadd.f32 %v4885_v23, %v10105_v49  ;;  %v4194_v5 = vpop.f32.mrb[11].mxu0  ;;  %v4258_v63 = vpop.f32.mrb[11].mxu1 }
 0x3c3   : > { %v4326_v3 = vadd.f32 %v4294_v37, %v4192_v50  ;;  %v4342_v8 = vadd.f32 %v4310_v7, %v4256_v4  ;;  %v4195_v45 = vadd.f32 %v10105_v49, %v4194_v5  ;;  %v4259_v53 = vadd.f32 %v10105_v49, %v4258_v63 }
 0x3c4   : > { %4360 = vst.msk [vmem:[%s10113_s13 + $0x50] sm:$0xff] %vm3112_vm4, %v4328_v21  ;;  %4376 = vst.msk [vmem:[%s10113_s13 + $0xd0] sm:$0xff] %vm3112_vm4, %v4344_v0  ;;  %v4329_v55 = vadd.f32 %v4297_v31, %v4203_v62  ;;  %v4345_v39 = vadd.f32 %v4313_v6, %v4267_v30 }
 0x3c5   : > { %4358 = vst.msk [vmem:[%s10113_s13 + $0x40] sm:$0xff] %vm3112_vm4, %v4326_v3  ;;  %4374 = vst.msk [vmem:[%s10113_s13 + $0xc0] sm:$0xff] %vm3112_vm4, %v4342_v8  ;;  %v4327_v12 = vadd.f32 %v4295_v57, %v4195_v45  ;;  %v4343_v54 = vadd.f32 %v4311_v25, %v4259_v53 }
 0x3c6   : > { %4361 = vst.msk [vmem:[%s10113_s13 + $0x58] sm:$0xff] %vm3112_vm4, %v4329_v55  ;;  %4377 = vst.msk [vmem:[%s10113_s13 + $0xd8] sm:$0xff] %vm3112_vm4, %v4345_v39 }
 0x3c7   : > { %4359 = vst.msk [vmem:[%s10113_s13 + $0x48] sm:$0xff] %vm3112_vm4, %v4327_v12  ;;  %4375 = vst.msk [vmem:[%s10113_s13 + $0xc8] sm:$0xff] %vm3112_vm4, %v4343_v54 }
 0x3e3   : > { %v4872_v28 = vpop.f32.mrb[12].mxu0  ;;  %v4888_v26 = vpop.f32.mrb[12].mxu1 }
 0x3e4   : > { %v4216_v58 = vadd.f32 %v4872_v28, %v10105_v49  ;;  %v4280_v29 = vadd.f32 %v4888_v26, %v10105_v49  ;;  %v4207_v13 = vpop.f32.mrb[13].mxu0  ;;  %v4271_v27 = vpop.f32.mrb[13].mxu1 }
 0x3e5   : > { %v4208_v40 = vadd.f32 %v10105_v49, %v4207_v13  ;;  %v4272_v32 = vadd.f32 %v10105_v49, %v4271_v27  ;;  %v4873_v36 = vpop.f32.mrb[14].mxu0  ;;  %v4889_v61 = vpop.f32.mrb[14].mxu1 }
 0x3e6   : > { %v4332_v9 = vadd.f32 %v4300_v14, %v4216_v58  ;;  %v4348_v17 = vadd.f32 %v4316_v33, %v4280_v29  ;;  %v4219_v16 = vadd.f32 %v4873_v36, %v10105_v49  ;;  %v4283_v20 = vadd.f32 %v4889_v61, %v10105_v49  ;;  %v4210_v38 = vpop.f32.mrb[15].mxu0  ;;  %v4274_v42 = vpop.f32.mrb[15].mxu1 }
 0x3e7   : > { %v4330_v52 = vadd.f32 %v4298_v35, %v4208_v40  ;;  %v4346_v59 = vadd.f32 %v4314_v1, %v4272_v32  ;;  %v4211_v2 = vadd.f32 %v10105_v49, %v4210_v38  ;;  %v4275_v43 = vadd.f32 %v10105_v49, %v4274_v42 }
 0x3e8   : > { %4364 = vst.msk [vmem:[%s10113_s13 + $0x70] sm:$0xff] %vm3112_vm4, %v4332_v9  ;;  %4380 = vst.msk [vmem:[%s10113_s13 + $0xf0] sm:$0xff] %vm3112_vm4, %v4348_v17  ;;  %v4333_v19 = vadd.f32 %v4301_v56, %v4219_v16  ;;  %v4349_v15 = vadd.f32 %v4317_v46, %v4283_v20 }
 0x3e9   : > { %4362 = vst.msk [vmem:[%s10113_s13 + $0x60] sm:$0xff] %vm3112_vm4, %v4330_v52  ;;  %4378 = vst.msk [vmem:[%s10113_s13 + $0xe0] sm:$0xff] %vm3112_vm4, %v4346_v59  ;;  %v4331_v51 = vadd.f32 %v4299_v47, %v4211_v2  ;;  %v4347_v10 = vadd.f32 %v4315_v41, %v4275_v43 }
 0x3ea   : > { %4365 = vst.msk [vmem:[%s10113_s13 + $0x78] sm:$0xff] %vm3112_vm4, %v4333_v19  ;;  %4381 = vst.msk [vmem:[%s10113_s13 + $0xf8] sm:$0xff] %vm3112_vm4, %v4349_v15 }
 0x3eb   : > { %4363 = vst.msk [vmem:[%s10113_s13 + $0x68] sm:$0xff] %vm3112_vm4, %v4331_v51  ;;  %4379 = vst.msk [vmem:[%s10113_s13 + $0xe8] sm:$0xff] %vm3112_vm4, %v4347_v10 }
 0x3ec PF: > { %s19_s11 = sadd.s32 1, %s6363_s11   ;;  %s11153_s30 = smov %s6359_s10 }
 0x3ed   : > { %p16_p5 = scmp.ge.s32.totalorder %s19_s11, 4   ;;  %s11154_s10 = smov %s11156_s12 }
 0x3ef   :  { %18 = sbr.rel (!%p16_p5) target bundleno = 2 (0x2), region = 104 }

</bundles_post_ra>
